<compile_context>
chip_gen: v5e
topology: v5e:2x2
jax: 0.10.0
libtpu: 0.0.40
codegen_flags: <defaults>
</compile_context>

<pallas_src>
import functools

import jax
import jax.numpy as jnp
from jax.experimental import pallas as pl
from jax.experimental.pallas import tpu as pltpu

EPS = 1e-5


def _bn_rows(y, g, b):
    # train-mode BatchNorm over rows (axis 0), biased variance (matches nn.BatchNorm2d training forward)
    mean = jnp.mean(y, axis=0, keepdims=True)
    var = jnp.mean((y - mean) ** 2, axis=0, keepdims=True)
    return (y - mean) * jax.lax.rsqrt(var + EPS) * g + b


# ----------------------------------------------------------------------------
# fused MBConv kernel
# ----------------------------------------------------------------------------
def _mbconv_kernel(*refs, N, H, W, K, stride, padding, Ho, Wo,
                   flag_expand, flag_residual):
    it = iter(refs)
    x2d_ref = next(it)                                   # [N*H*W, Cin]  channels-last input
    x_cm_ref = next(it) if flag_residual else None       # [N, Cin, H*W] channel-major residual
    if flag_expand:
        w_e_ref, g_e_ref, b_e_ref = next(it), next(it), next(it)
    w_dw_ref, g_dw_ref, b_dw_ref = next(it), next(it), next(it)
    w_se1_ref, b_se1_ref, w_se2_ref, b_se2_ref = next(it), next(it), next(it), next(it)
    w_pT_ref, g_p_ref, b_p_ref = next(it), next(it), next(it)
    o_ref = next(it)                                     # [N, Cout, Ho*Wo]  lane-dense, NCHW-compatible
    pad_ref = next(it)                                   # VMEM scratch [N, Hp, Wp, hidden]

    f32 = jnp.float32
    x2d = x2d_ref[...].astype(f32)

    # ---- stage 1: 1x1 expand + BN + ReLU (channels-last) --------------------
    if flag_expand:
        h2d = jnp.dot(x2d, w_e_ref[...].astype(f32), preferred_element_type=f32)
        h2d = jnp.maximum(
            _bn_rows(h2d, g_e_ref[...].astype(f32), b_e_ref[...].astype(f32)), 0.0)
    else:
        h2d = x2d
    hidden = h2d.shape[1]

    # ---- stage 2: KxK depthwise + BN + ReLU (zero-pad via VMEM scratch) -----
    Hp, Wp = H + 2 * padding, W + 2 * padding
    pad_ref[...] = jnp.zeros((N, Hp, Wp, hidden), f32)
    pad_ref[:, padding:padding + H, padding:padding + W, :] = h2d.reshape(N, H, W, hidden)
    xp = pad_ref[...]
    w_dw = w_dw_ref[...].astype(f32)                     # [K, K, hidden]
    acc = jnp.zeros((N, Ho, Wo, hidden), f32)
    for kh in range(K):                                  # static unrolled taps (pure VPU MACs)
        for kw in range(K):
            if stride == 1:
                patch = xp[:, kh:kh + Ho, kw:kw + Wo, :]
            else:
                patch = jax.lax.slice(
                    xp, (0, kh, kw, 0),
                    (N, kh + stride * (Ho - 1) + 1, kw + stride * (Wo - 1) + 1, hidden),
                    (1, stride, stride, 1))
            acc = acc + patch * w_dw[kh, kw, :]
    d2d = jnp.maximum(
        _bn_rows(acc.reshape(N * Ho * Wo, hidden),
                 g_dw_ref[...].astype(f32), b_dw_ref[...].astype(f32)), 0.0)
    d4 = d2d.reshape(N, Ho, Wo, hidden)

    # ---- stage 3: Squeeze-and-Excitation ------------------------------------
    pooled = jnp.mean(d4, axis=(1, 2))                                    # [N, hidden]
    s = jnp.dot(pooled, w_se1_ref[...].astype(f32),
                preferred_element_type=f32) + b_se1_ref[...].astype(f32)  # [N, reduced]
    s = jnp.maximum(s, 0.0)
    s = jnp.dot(s, w_se2_ref[...].astype(f32),
                preferred_element_type=f32) + b_se2_ref[...].astype(f32)  # [N, hidden]
    s = jax.nn.sigmoid(s)
    h_se2d = (d4 * s[:, None, None, :]).reshape(N * Ho * Wo, hidden)

    # ---- stage 4: 1x1 project + BN (+residual), channel-major output --------
    w_pT = w_pT_ref[...].astype(f32)                                      # [Cout, hidden]
    out_all = jax.lax.dot_general(                                        # [Cout, N*Ho*Wo]
        w_pT, h_se2d, (((1,), (1,)), ((), ())), preferred_element_type=f32)
    mean = jnp.mean(out_all, axis=1, keepdims=True)
    var = jnp.mean((out_all - mean) ** 2, axis=1, keepdims=True)
    y_all = (out_all - mean) * jax.lax.rsqrt(var + EPS) * g_p_ref[...].astype(f32) \
            + b_p_ref[...].astype(f32)
    HWo = Ho * Wo
    for n in range(N):
        y_n = y_all[:, n * HWo:(n + 1) * HWo]                             # [Cout, Ho*Wo]
        if flag_residual:
            y_n = y_n + x_cm_ref[n].astype(f32)                           # channel-major residual
        o_ref[n] = y_n.astype(o_ref.dtype)


# ----------------------------------------------------------------------------
# wrapper: NCHW in / NCHW out, single pallas_call
# ----------------------------------------------------------------------------
def mb_conv_forward(x_nchw, params, *, kernel_size, stride, padding):
    N, Cin, H, W = x_nchw.shape
    flag_expand = "w_expand" in params
    hidden = params["w_proj"].shape[0]
    Cout = params["w_proj"].shape[1]
    flag_residual = (Cin == Cout) and (stride == 1)
    Hp, Wp = H + 2 * padding, W + 2 * padding
    Ho = (Hp - kernel_size) // stride + 1
    Wo = (Wp - kernel_size) // stride + 1

    # channels-last view for expand/depthwise/SE (one tiny XLA transpose); the projection is
    # computed transposed in-kernel so the kernel output (N, Cout, Ho*Wo) is already NCHW layout.
    x2d = jnp.transpose(x_nchw, (0, 2, 3, 1)).reshape(N * H * W, Cin)

    args = [x2d]
    if flag_residual:
        args.append(x_nchw.reshape(N, Cin, H * W))        # free reshape: channel-major residual
    if flag_expand:
        args += [params["w_expand"],
                 params["g_expand"].reshape(1, hidden),
                 params["b_expand"].reshape(1, hidden)]
    args += [params["w_dw"],
             params["g_dw"].reshape(1, hidden),
             params["b_dw"].reshape(1, hidden),
             params["w_se1"], params["b_se1"],
             params["w_se2"], params["b_se2"],
             params["w_proj"].T,                          # [Cout, hidden]
             params["g_proj"].reshape(Cout, 1),
             params["b_proj"].reshape(Cout, 1)]

    kernel = functools.partial(
        _mbconv_kernel, N=N, H=H, W=W, K=kernel_size, stride=stride,
        padding=padding, Ho=Ho, Wo=Wo,
        flag_expand=flag_expand, flag_residual=flag_residual)

    out = pl.pallas_call(
        kernel,
        out_shape=jax.ShapeDtypeStruct((N, Cout, Ho * Wo), x_nchw.dtype),
        grid=(1,),
        in_specs=[pl.BlockSpec(tuple(a.shape), lambda i, n=a.ndim: (0,) * n) for a in args],
        out_specs=pl.BlockSpec((N, Cout, Ho * Wo), lambda i: (0, 0, 0)),
        scratch_shapes=[pltpu.VMEM((N, Hp, Wp, hidden), jnp.float32)],
        compiler_params=pltpu.CompilerParams(
            dimension_semantics=("arbitrary",),
            vmem_limit_bytes=32 * 1024 * 1024),
    )(*args)
    return out.reshape(N, Cout, Ho, Wo)


# ----------------------------------------------------------------------------
# parameter init + pure-JAX reference (for a correctness sanity check)
# ----------------------------------------------------------------------------
def init_params(key, in_channels, out_channels, kernel_size, expand_ratio, reduction):
    hidden = in_channels * expand_ratio
    reduced = int(in_channels / reduction)
    ks = jax.random.split(key, 12)

    def nrm(k, shape, scale=0.3):
        return scale * jax.random.normal(k, shape, jnp.float32)

    params = {}
    if hidden != in_channels:
        params["w_expand"] = nrm(ks[0], (in_channels, hidden))          # 1x1 conv (no bias)
        params["g_expand"] = 1.0 + nrm(ks[1], (hidden,), 0.1)           # BN gamma
        params["b_expand"] = nrm(ks[2], (hidden,), 0.1)                 # BN beta
    params["w_dw"] = nrm(ks[3], (kernel_size, kernel_size, hidden))     # depthwise (no bias)
    params["g_dw"] = 1.0 + nrm(ks[4], (hidden,), 0.1)
    params["b_dw"] = nrm(ks[5], (hidden,), 0.1)
    params["w_se1"] = nrm(ks[6], (hidden, reduced))                     # SE conv1 (with bias)
    params["b_se1"] = nrm(ks[7], (1, reduced), 0.1)
    params["w_se2"] = nrm(ks[8], (reduced, hidden))                     # SE conv2 (with bias)
    params["b_se2"] = nrm(ks[9], (1, hidden), 0.1)
    params["w_proj"] = nrm(ks[10], (hidden, out_channels))              # 1x1 projection (no bias)
    params["g_proj"] = 1.0 + nrm(ks[11], (out_channels,), 0.1)
    params["b_proj"] = jnp.zeros((out_channels,), jnp.float32)
    return params


def mb_conv_reference(x_nchw, params, *, kernel_size, stride, padding):
    N, Cin, H, W = x_nchw.shape
    flag_expand = "w_expand" in params
    hidden = params["w_proj"].shape[0]
    Cout = params["w_proj"].shape[1]
    flag_residual = (Cin == Cout) and (stride == 1)

    def bn(y2d, g, b):
        m = jnp.mean(y2d, axis=0)
        v = jnp.mean((y2d - m) ** 2, axis=0)
        return (y2d - m) / jnp.sqrt(v + EPS) * g + b

    x = jnp.transpose(x_nchw, (0, 2, 3, 1))
    if flag_expand:
        h = bn(x.reshape(N * H * W, Cin) @ params["w_expand"],
               params["g_expand"], params["b_expand"])
        h = jnp.maximum(h, 0.0).reshape(N, H, W, hidden)
    else:
        h = x
    p = padding
    hp = jnp.pad(h, ((0, 0), (p, p), (p, p), (0, 0)))
    Ho = (H + 2 * p - kernel_size) // stride + 1
    Wo = (W + 2 * p - kernel_size) // stride + 1
    acc = jnp.zeros((N, Ho, Wo, hidden), jnp.float32)
    for kh in range(kernel_size):
        for kw in range(kernel_size):
            acc = acc + hp[:, kh:kh + stride * (Ho - 1) + 1:stride,
                           kw:kw + stride * (Wo - 1) + 1:stride, :] * params["w_dw"][kh, kw, :]
    d = jnp.maximum(bn(acc.reshape(N * Ho * Wo, hidden),
                       params["g_dw"], params["b_dw"]), 0.0).reshape(N, Ho, Wo, hidden)
    pooled = jnp.mean(d, axis=(1, 2))
    s = jnp.maximum(pooled @ params["w_se1"] + params["b_se1"], 0.0)
    s = jax.nn.sigmoid(s @ params["w_se2"] + params["b_se2"])
    hs = d * s[:, None, None, :]
    o = bn(hs.reshape(N * Ho * Wo, hidden) @ params["w_proj"],
           params["g_proj"], params["b_proj"]).reshape(N, Ho, Wo, Cout)
    o = jnp.transpose(o, (0, 3, 1, 2))
    if flag_residual:
        o = o + x_nchw
    return o


if __name__ == "__main__":
    # mb_conv(in_channels=4, out_channels=4, kernel_size=3, stride=1, padding=1,
    #         expand_ratio=4, reduction=4) -> hidden=16, reduced=1, residual path active.
    N, Cin, H, W = 2, 4, 16, 16
    Cout, K, stride, padding = 4, 3, 1, 1
    expand_ratio, reduction = 4, 4

    x = jax.random.normal(jax.random.PRNGKey(0), (N, Cin, H, W), jnp.float32)
    params = init_params(jax.random.PRNGKey(1), Cin, Cout, K, expand_ratio, reduction)

    out = mb_conv_forward(x, params, kernel_size=K, stride=stride, padding=padding)
    out = jax.block_until_ready(out)
    assert out.shape == (N, Cout, H, W) and out.dtype == jnp.float32
    assert bool(jnp.all(jnp.isfinite(out)))

    ref = jax.block_until_ready(
        mb_conv_reference(x, params, kernel_size=K, stride=stride, padding=padding))
    err = float(jnp.max(jnp.abs(out - ref)))
    assert err < 5e-2, f"max abs diff vs reference = {err}"
    print("KERNEL_OK")
</pallas_src>

<mosaic_0001>
module attributes {stable_mosaic.version = 11 : i64} {
  func.func @_mbconv_kernel(%arg0: i32, %arg1: memref<512x4xf32, #tpu.memory_space<vmem>>, %arg2: memref<2x4x256xf32, #tpu.memory_space<vmem>>, %arg3: memref<4x16xf32, #tpu.memory_space<vmem>>, %arg4: memref<1x16xf32, #tpu.memory_space<vmem>>, %arg5: memref<1x16xf32, #tpu.memory_space<vmem>>, %arg6: memref<3x3x16xf32, #tpu.memory_space<vmem>>, %arg7: memref<1x16xf32, #tpu.memory_space<vmem>>, %arg8: memref<1x16xf32, #tpu.memory_space<vmem>>, %arg9: memref<16x1xf32, #tpu.memory_space<vmem>>, %arg10: memref<1x1xf32, #tpu.memory_space<vmem>>, %arg11: memref<1x16xf32, #tpu.memory_space<vmem>>, %arg12: memref<1x16xf32, #tpu.memory_space<vmem>>, %arg13: memref<4x16xf32, #tpu.memory_space<vmem>>, %arg14: memref<4x1xf32, #tpu.memory_space<vmem>>, %arg15: memref<4x1xf32, #tpu.memory_space<vmem>>, %arg16: memref<2x4x256xf32, #tpu.memory_space<vmem>>, %arg17: memref<2x18x18x16xf32, #tpu.memory_space<vmem>>) attributes {dimension_semantics = [#tpu.dimension_semantics<arbitrary>], iteration_bounds = array<i64: 1>, scalar_prefetch = 0 : i64, scratch_operands = 1 : i64, tpu.core_type = #tpu.core_type<tc>, window_params = [{pipeline_mode = #tpu.pipeline_mode<synchronous>, transform_indices = @transform_0, window_bounds = array<i64: 512, 4>}, {pipeline_mode = #tpu.pipeline_mode<synchronous>, transform_indices = @transform_1, window_bounds = array<i64: 2, 4, 256>}, {pipeline_mode = #tpu.pipeline_mode<synchronous>, transform_indices = @transform_2, window_bounds = array<i64: 4, 16>}, {pipeline_mode = #tpu.pipeline_mode<synchronous>, transform_indices = @transform_3, window_bounds = array<i64: 1, 16>}, {pipeline_mode = #tpu.pipeline_mode<synchronous>, transform_indices = @transform_4, window_bounds = array<i64: 1, 16>}, {pipeline_mode = #tpu.pipeline_mode<synchronous>, transform_indices = @transform_5, window_bounds = array<i64: 3, 3, 16>}, {pipeline_mode = #tpu.pipeline_mode<synchronous>, transform_indices = @transform_6, window_bounds = array<i64: 1, 16>}, {pipeline_mode = #tpu.pipeline_mode<synchronous>, transform_indices = @transform_7, window_bounds = array<i64: 1, 16>}, {pipeline_mode = #tpu.pipeline_mode<synchronous>, transform_indices = @transform_8, window_bounds = array<i64: 16, 1>}, {pipeline_mode = #tpu.pipeline_mode<synchronous>, transform_indices = @transform_9, window_bounds = array<i64: 1, 1>}, {pipeline_mode = #tpu.pipeline_mode<synchronous>, transform_indices = @transform_10, window_bounds = array<i64: 1, 16>}, {pipeline_mode = #tpu.pipeline_mode<synchronous>, transform_indices = @transform_11, window_bounds = array<i64: 1, 16>}, {pipeline_mode = #tpu.pipeline_mode<synchronous>, transform_indices = @transform_12, window_bounds = array<i64: 4, 16>}, {pipeline_mode = #tpu.pipeline_mode<synchronous>, transform_indices = @transform_13, window_bounds = array<i64: 4, 1>}, {pipeline_mode = #tpu.pipeline_mode<synchronous>, transform_indices = @transform_14, window_bounds = array<i64: 4, 1>}, {pipeline_mode = #tpu.pipeline_mode<synchronous>, transform_indices = @transform_15, window_bounds = array<i64: 2, 4, 256>}]} {
    %c0 = arith.constant 0 : index
    %c0_0 = arith.constant 0 : index
    %0 = vector.load %arg1[%c0, %c0_0] : memref<512x4xf32, #tpu.memory_space<vmem>>, vector<512x4xf32>
    %c0_1 = arith.constant 0 : index
    %c0_2 = arith.constant 0 : index
    %1 = vector.load %arg3[%c0_1, %c0_2] : memref<4x16xf32, #tpu.memory_space<vmem>>, vector<4x16xf32>
    %cst = arith.constant dense<0.000000e+00> : vector<512x16xf32>
    %2 = tpu.matmul %0, %1, %cst {dimension_numbers = #tpu.dot_dimension_numbers<[1], [0], [0], [1], [0, 0, 1, 1], [], []>} : vector<512x4xf32>, vector<4x16xf32>, vector<512x16xf32> -> vector<512x16xf32>
    %c0_3 = arith.constant 0 : index
    %c0_4 = arith.constant 0 : index
    %3 = vector.load %arg4[%c0_3, %c0_4] : memref<1x16xf32, #tpu.memory_space<vmem>>, vector<1x16xf32>
    %c0_5 = arith.constant 0 : index
    %c0_6 = arith.constant 0 : index
    %4 = vector.load %arg5[%c0_5, %c0_6] : memref<1x16xf32, #tpu.memory_space<vmem>>, vector<1x16xf32>
    %cst_7 = arith.constant dense<0.000000e+00> : vector<16xf32>
    %5 = vector.multi_reduction <add>, %2, %cst_7 [0] : vector<512x16xf32> to vector<16xf32>
    %6 = vector.shape_cast %5 : vector<16xf32> to vector<1x16xf32>
    %cst_8 = arith.constant 5.120000e+02 : f32
    %7 = vector.broadcast %cst_8 : f32 to vector<1x16xf32>
    %8 = arith.divf %6, %7 : vector<1x16xf32>
    %9 = vector.broadcast %8 : vector<1x16xf32> to vector<512x16xf32>
    %10 = arith.subf %2, %9 : vector<512x16xf32>
    %11 = arith.mulf %10, %10 : vector<512x16xf32>
    %cst_9 = arith.constant dense<0.000000e+00> : vector<16xf32>
    %12 = vector.multi_reduction <add>, %11, %cst_9 [0] : vector<512x16xf32> to vector<16xf32>
    %13 = vector.shape_cast %12 : vector<16xf32> to vector<1x16xf32>
    %cst_10 = arith.constant 5.120000e+02 : f32
    %14 = vector.broadcast %cst_10 : f32 to vector<1x16xf32>
    %15 = arith.divf %13, %14 : vector<1x16xf32>
    %16 = vector.broadcast %8 : vector<1x16xf32> to vector<512x16xf32>
    %17 = arith.subf %2, %16 : vector<512x16xf32>
    %cst_11 = arith.constant 9.99999974E-6 : f32
    %18 = vector.broadcast %cst_11 : f32 to vector<1x16xf32>
    %19 = arith.addf %15, %18 : vector<1x16xf32>
    %20 = math.rsqrt %19 : vector<1x16xf32>
    %21 = vector.broadcast %20 : vector<1x16xf32> to vector<512x16xf32>
    %22 = arith.mulf %17, %21 : vector<512x16xf32>
    %23 = vector.broadcast %3 : vector<1x16xf32> to vector<512x16xf32>
    %24 = arith.mulf %22, %23 : vector<512x16xf32>
    %25 = vector.broadcast %4 : vector<1x16xf32> to vector<512x16xf32>
    %26 = arith.addf %24, %25 : vector<512x16xf32>
    %cst_12 = arith.constant 0.000000e+00 : f32
    %27 = vector.broadcast %cst_12 : f32 to vector<512x16xf32>
    %28 = arith.maximumf %26, %27 : vector<512x16xf32>
    %cst_13 = arith.constant 0.000000e+00 : f32
    %29 = vector.broadcast %cst_13 : f32 to vector<2x18x18x16xf32>
    %c0_14 = arith.constant 0 : index
    %c0_15 = arith.constant 0 : index
    %c0_16 = arith.constant 0 : index
    %c0_17 = arith.constant 0 : index
    %30 = vector.load %arg17[%c0_14, %c0_15, %c0_16, %c0_17] : memref<2x18x18x16xf32, #tpu.memory_space<vmem>>, vector<2x18x18x16xf32>
    tpu.vector_store %arg17[%c0_14, %c0_15, %c0_16, %c0_17], %29 {strides = array<i32>} : memref<2x18x18x16xf32, #tpu.memory_space<vmem>>, vector<2x18x18x16xf32>,
    %31 = vector.shape_cast %28 : vector<512x16xf32> to vector<2x16x16x16xf32>
    %c0_18 = arith.constant 0 : index
    %c1 = arith.constant 1 : index
    %c1_19 = arith.constant 1 : index
    %c0_20 = arith.constant 0 : index
    %32 = vector.load %arg17[%c0_18, %c1, %c1_19, %c0_20] : memref<2x18x18x16xf32, #tpu.memory_space<vmem>>, vector<2x16x16x16xf32>
    tpu.vector_store %arg17[%c0_18, %c1, %c1_19, %c0_20], %31 {strides = array<i32>} : memref<2x18x18x16xf32, #tpu.memory_space<vmem>>, vector<2x16x16x16xf32>,
    %c0_21 = arith.constant 0 : index
    %c0_22 = arith.constant 0 : index
    %c0_23 = arith.constant 0 : index
    %c0_24 = arith.constant 0 : index
    %33 = vector.load %arg17[%c0_21, %c0_22, %c0_23, %c0_24] : memref<2x18x18x16xf32, #tpu.memory_space<vmem>>, vector<2x18x18x16xf32>
    %c0_25 = arith.constant 0 : index
    %c0_26 = arith.constant 0 : index
    %c0_27 = arith.constant 0 : index
    %34 = vector.load %arg6[%c0_25, %c0_26, %c0_27] : memref<3x3x16xf32, #tpu.memory_space<vmem>>, vector<3x3x16xf32>
    %cst_28 = arith.constant 0.000000e+00 : f32
    %35 = vector.broadcast %cst_28 : f32 to vector<2x16x16x16xf32>
    %36 = vector.extract_strided_slice %33 {offsets = [0, 0, 0, 0], sizes = [2, 16, 16, 16], strides = [1, 1, 1, 1]} : vector<2x18x18x16xf32> to vector<2x16x16x16xf32>
    %37 = vector.extract_strided_slice %34 {offsets = [0, 0, 0], sizes = [1, 1, 16], strides = [1, 1, 1]} : vector<3x3x16xf32> to vector<1x1x16xf32>
    %38 = vector.shape_cast %37 : vector<1x1x16xf32> to vector<16xf32>
    %39 = vector.shape_cast %38 : vector<16xf32> to vector<1x1x1x16xf32>
    %40 = vector.broadcast %39 : vector<1x1x1x16xf32> to vector<2x16x16x16xf32>
    %41 = arith.mulf %36, %40 : vector<2x16x16x16xf32>
    %42 = arith.addf %35, %41 : vector<2x16x16x16xf32>
    %43 = vector.extract_strided_slice %33 {offsets = [0, 0, 1, 0], sizes = [2, 16, 16, 16], strides = [1, 1, 1, 1]} : vector<2x18x18x16xf32> to vector<2x16x16x16xf32>
    %44 = vector.extract_strided_slice %34 {offsets = [0, 1, 0], sizes = [1, 1, 16], strides = [1, 1, 1]} : vector<3x3x16xf32> to vector<1x1x16xf32>
    %45 = vector.shape_cast %44 : vector<1x1x16xf32> to vector<16xf32>
    %46 = vector.shape_cast %45 : vector<16xf32> to vector<1x1x1x16xf32>
    %47 = vector.broadcast %46 : vector<1x1x1x16xf32> to vector<2x16x16x16xf32>
    %48 = arith.mulf %43, %47 : vector<2x16x16x16xf32>
    %49 = arith.addf %42, %48 : vector<2x16x16x16xf32>
    %50 = vector.extract_strided_slice %33 {offsets = [0, 0, 2, 0], sizes = [2, 16, 16, 16], strides = [1, 1, 1, 1]} : vector<2x18x18x16xf32> to vector<2x16x16x16xf32>
    %51 = vector.extract_strided_slice %34 {offsets = [0, 2, 0], sizes = [1, 1, 16], strides = [1, 1, 1]} : vector<3x3x16xf32> to vector<1x1x16xf32>
    %52 = vector.shape_cast %51 : vector<1x1x16xf32> to vector<16xf32>
    %53 = vector.shape_cast %52 : vector<16xf32> to vector<1x1x1x16xf32>
    %54 = vector.broadcast %53 : vector<1x1x1x16xf32> to vector<2x16x16x16xf32>
    %55 = arith.mulf %50, %54 : vector<2x16x16x16xf32>
    %56 = arith.addf %49, %55 : vector<2x16x16x16xf32>
    %57 = vector.extract_strided_slice %33 {offsets = [0, 1, 0, 0], sizes = [2, 16, 16, 16], strides = [1, 1, 1, 1]} : vector<2x18x18x16xf32> to vector<2x16x16x16xf32>
    %58 = vector.extract_strided_slice %34 {offsets = [1, 0, 0], sizes = [1, 1, 16], strides = [1, 1, 1]} : vector<3x3x16xf32> to vector<1x1x16xf32>
    %59 = vector.shape_cast %58 : vector<1x1x16xf32> to vector<16xf32>
    %60 = vector.shape_cast %59 : vector<16xf32> to vector<1x1x1x16xf32>
    %61 = vector.broadcast %60 : vector<1x1x1x16xf32> to vector<2x16x16x16xf32>
    %62 = arith.mulf %57, %61 : vector<2x16x16x16xf32>
    %63 = arith.addf %56, %62 : vector<2x16x16x16xf32>
    %64 = vector.extract_strided_slice %33 {offsets = [0, 1, 1, 0], sizes = [2, 16, 16, 16], strides = [1, 1, 1, 1]} : vector<2x18x18x16xf32> to vector<2x16x16x16xf32>
    %65 = vector.extract_strided_slice %34 {offsets = [1, 1, 0], sizes = [1, 1, 16], strides = [1, 1, 1]} : vector<3x3x16xf32> to vector<1x1x16xf32>
    %66 = vector.shape_cast %65 : vector<1x1x16xf32> to vector<16xf32>
    %67 = vector.shape_cast %66 : vector<16xf32> to vector<1x1x1x16xf32>
    %68 = vector.broadcast %67 : vector<1x1x1x16xf32> to vector<2x16x16x16xf32>
    %69 = arith.mulf %64, %68 : vector<2x16x16x16xf32>
    %70 = arith.addf %63, %69 : vector<2x16x16x16xf32>
    %71 = vector.extract_strided_slice %33 {offsets = [0, 1, 2, 0], sizes = [2, 16, 16, 16], strides = [1, 1, 1, 1]} : vector<2x18x18x16xf32> to vector<2x16x16x16xf32>
    %72 = vector.extract_strided_slice %34 {offsets = [1, 2, 0], sizes = [1, 1, 16], strides = [1, 1, 1]} : vector<3x3x16xf32> to vector<1x1x16xf32>
    %73 = vector.shape_cast %72 : vector<1x1x16xf32> to vector<16xf32>
    %74 = vector.shape_cast %73 : vector<16xf32> to vector<1x1x1x16xf32>
    %75 = vector.broadcast %74 : vector<1x1x1x16xf32> to vector<2x16x16x16xf32>
    %76 = arith.mulf %71, %75 : vector<2x16x16x16xf32>
    %77 = arith.addf %70, %76 : vector<2x16x16x16xf32>
    %78 = vector.extract_strided_slice %33 {offsets = [0, 2, 0, 0], sizes = [2, 16, 16, 16], strides = [1, 1, 1, 1]} : vector<2x18x18x16xf32> to vector<2x16x16x16xf32>
    %79 = vector.extract_strided_slice %34 {offsets = [2, 0, 0], sizes = [1, 1, 16], strides = [1, 1, 1]} : vector<3x3x16xf32> to vector<1x1x16xf32>
    %80 = vector.shape_cast %79 : vector<1x1x16xf32> to vector<16xf32>
    %81 = vector.shape_cast %80 : vector<16xf32> to vector<1x1x1x16xf32>
    %82 = vector.broadcast %81 : vector<1x1x1x16xf32> to vector<2x16x16x16xf32>
    %83 = arith.mulf %78, %82 : vector<2x16x16x16xf32>
    %84 = arith.addf %77, %83 : vector<2x16x16x16xf32>
    %85 = vector.extract_strided_slice %33 {offsets = [0, 2, 1, 0], sizes = [2, 16, 16, 16], strides = [1, 1, 1, 1]} : vector<2x18x18x16xf32> to vector<2x16x16x16xf32>
    %86 = vector.extract_strided_slice %34 {offsets = [2, 1, 0], sizes = [1, 1, 16], strides = [1, 1, 1]} : vector<3x3x16xf32> to vector<1x1x16xf32>
    %87 = vector.shape_cast %86 : vector<1x1x16xf32> to vector<16xf32>
    %88 = vector.shape_cast %87 : vector<16xf32> to vector<1x1x1x16xf32>
    %89 = vector.broadcast %88 : vector<1x1x1x16xf32> to vector<2x16x16x16xf32>
    %90 = arith.mulf %85, %89 : vector<2x16x16x16xf32>
    %91 = arith.addf %84, %90 : vector<2x16x16x16xf32>
    %92 = vector.extract_strided_slice %33 {offsets = [0, 2, 2, 0], sizes = [2, 16, 16, 16], strides = [1, 1, 1, 1]} : vector<2x18x18x16xf32> to vector<2x16x16x16xf32>
    %93 = vector.extract_strided_slice %34 {offsets = [2, 2, 0], sizes = [1, 1, 16], strides = [1, 1, 1]} : vector<3x3x16xf32> to vector<1x1x16xf32>
    %94 = vector.shape_cast %93 : vector<1x1x16xf32> to vector<16xf32>
    %95 = vector.shape_cast %94 : vector<16xf32> to vector<1x1x1x16xf32>
    %96 = vector.broadcast %95 : vector<1x1x1x16xf32> to vector<2x16x16x16xf32>
    %97 = arith.mulf %92, %96 : vector<2x16x16x16xf32>
    %98 = arith.addf %91, %97 : vector<2x16x16x16xf32>
    %99 = vector.shape_cast %98 : vector<2x16x16x16xf32> to vector<512x16xf32>
    %c0_29 = arith.constant 0 : index
    %c0_30 = arith.constant 0 : index
    %100 = vector.load %arg7[%c0_29, %c0_30] : memref<1x16xf32, #tpu.memory_space<vmem>>, vector<1x16xf32>
    %c0_31 = arith.constant 0 : index
    %c0_32 = arith.constant 0 : index
    %101 = vector.load %arg8[%c0_31, %c0_32] : memref<1x16xf32, #tpu.memory_space<vmem>>, vector<1x16xf32>
    %cst_33 = arith.constant dense<0.000000e+00> : vector<16xf32>
    %102 = vector.multi_reduction <add>, %99, %cst_33 [0] : vector<512x16xf32> to vector<16xf32>
    %103 = vector.shape_cast %102 : vector<16xf32> to vector<1x16xf32>
    %cst_34 = arith.constant 5.120000e+02 : f32
    %104 = vector.broadcast %cst_34 : f32 to vector<1x16xf32>
    %105 = arith.divf %103, %104 : vector<1x16xf32>
    %106 = vector.broadcast %105 : vector<1x16xf32> to vector<512x16xf32>
    %107 = arith.subf %99, %106 : vector<512x16xf32>
    %108 = arith.mulf %107, %107 : vector<512x16xf32>
    %cst_35 = arith.constant dense<0.000000e+00> : vector<16xf32>
    %109 = vector.multi_reduction <add>, %108, %cst_35 [0] : vector<512x16xf32> to vector<16xf32>
    %110 = vector.shape_cast %109 : vector<16xf32> to vector<1x16xf32>
    %cst_36 = arith.constant 5.120000e+02 : f32
    %111 = vector.broadcast %cst_36 : f32 to vector<1x16xf32>
    %112 = arith.divf %110, %111 : vector<1x16xf32>
    %113 = vector.broadcast %105 : vector<1x16xf32> to vector<512x16xf32>
    %114 = arith.subf %99, %113 : vector<512x16xf32>
    %cst_37 = arith.constant 9.99999974E-6 : f32
    %115 = vector.broadcast %cst_37 : f32 to vector<1x16xf32>
    %116 = arith.addf %112, %115 : vector<1x16xf32>
    %117 = math.rsqrt %116 : vector<1x16xf32>
    %118 = vector.broadcast %117 : vector<1x16xf32> to vector<512x16xf32>
    %119 = arith.mulf %114, %118 : vector<512x16xf32>
    %120 = vector.broadcast %100 : vector<1x16xf32> to vector<512x16xf32>
    %121 = arith.mulf %119, %120 : vector<512x16xf32>
    %122 = vector.broadcast %101 : vector<1x16xf32> to vector<512x16xf32>
    %123 = arith.addf %121, %122 : vector<512x16xf32>
    %cst_38 = arith.constant 0.000000e+00 : f32
    %124 = vector.broadcast %cst_38 : f32 to vector<512x16xf32>
    %125 = arith.maximumf %123, %124 : vector<512x16xf32>
    %126 = vector.shape_cast %125 : vector<512x16xf32> to vector<2x16x16x16xf32>
    %cst_39 = arith.constant dense<0.000000e+00> : vector<2x16xf32>
    %127 = vector.multi_reduction <add>, %126, %cst_39 [1, 2] : vector<2x16x16x16xf32> to vector<2x16xf32>
    %cst_40 = arith.constant 2.560000e+02 : f32
    %128 = vector.broadcast %cst_40 : f32 to vector<2x16xf32>
    %129 = arith.divf %127, %128 : vector<2x16xf32>
    %c0_41 = arith.constant 0 : index
    %c0_42 = arith.constant 0 : index
    %130 = vector.load %arg9[%c0_41, %c0_42] : memref<16x1xf32, #tpu.memory_space<vmem>>, vector<16x1xf32>
    %cst_43 = arith.constant dense<0.000000e+00> : vector<2x1xf32>
    %131 = tpu.matmul %129, %130, %cst_43 {dimension_numbers = #tpu.dot_dimension_numbers<[1], [0], [0], [1], [0, 0, 1, 1], [], []>} : vector<2x16xf32>, vector<16x1xf32>, vector<2x1xf32> -> vector<2x1xf32>
    %c0_44 = arith.constant 0 : index
    %c0_45 = arith.constant 0 : index
    %132 = vector.load %arg10[%c0_44, %c0_45] : memref<1x1xf32, #tpu.memory_space<vmem>>, vector<1x1xf32>
    %133 = vector.broadcast %132 : vector<1x1xf32> to vector<2x1xf32>
    %134 = arith.addf %131, %133 : vector<2x1xf32>
    %cst_46 = arith.constant 0.000000e+00 : f32
    %135 = vector.broadcast %cst_46 : f32 to vector<2x1xf32>
    %136 = arith.maximumf %134, %135 : vector<2x1xf32>
    %c0_47 = arith.constant 0 : index
    %c0_48 = arith.constant 0 : index
    %137 = vector.load %arg11[%c0_47, %c0_48] : memref<1x16xf32, #tpu.memory_space<vmem>>, vector<1x16xf32>
    %cst_49 = arith.constant dense<0.000000e+00> : vector<2x16xf32>
    %138 = tpu.matmul %136, %137, %cst_49 {dimension_numbers = #tpu.dot_dimension_numbers<[1], [0], [0], [1], [0, 0, 1, 1], [], []>} : vector<2x1xf32>, vector<1x16xf32>, vector<2x16xf32> -> vector<2x16xf32>
    %c0_50 = arith.constant 0 : index
    %c0_51 = arith.constant 0 : index
    %139 = vector.load %arg12[%c0_50, %c0_51] : memref<1x16xf32, #tpu.memory_space<vmem>>, vector<1x16xf32>
    %140 = vector.broadcast %139 : vector<1x16xf32> to vector<2x16xf32>
    %141 = arith.addf %138, %140 : vector<2x16xf32>
    %142 = arith.negf %141 : vector<2x16xf32>
    %143 = math.exp %142 : vector<2x16xf32>
    %cst_52 = arith.constant 1.000000e+00 : f32
    %144 = vector.broadcast %cst_52 : f32 to vector<2x16xf32>
    %145 = arith.addf %144, %143 : vector<2x16xf32>
    %146 = arith.divf %144, %145 : vector<2x16xf32>
    %147 = vector.shape_cast %146 : vector<2x16xf32> to vector<2x1x1x16xf32>
    %148 = vector.broadcast %147 : vector<2x1x1x16xf32> to vector<2x16x16x16xf32>
    %149 = arith.mulf %126, %148 : vector<2x16x16x16xf32>
    %150 = vector.shape_cast %149 : vector<2x16x16x16xf32> to vector<512x16xf32>
    %c0_53 = arith.constant 0 : index
    %c0_54 = arith.constant 0 : index
    %151 = vector.load %arg13[%c0_53, %c0_54] : memref<4x16xf32, #tpu.memory_space<vmem>>, vector<4x16xf32>
    %cst_55 = arith.constant dense<0.000000e+00> : vector<4x512xf32>
    %152 = tpu.matmul %151, %150, %cst_55 {dimension_numbers = #tpu.dot_dimension_numbers<[1], [1], [0], [0], [0, 0, 1, 0], [], []>} : vector<4x16xf32>, vector<512x16xf32>, vector<4x512xf32> -> vector<4x512xf32>
    %cst_56 = arith.constant dense<0.000000e+00> : vector<4xf32>
    %153 = vector.multi_reduction <add>, %152, %cst_56 [1] : vector<4x512xf32> to vector<4xf32>
    %154 = vector.shape_cast %153 : vector<4xf32> to vector<4x1xf32>
    %cst_57 = arith.constant 5.120000e+02 : f32
    %155 = vector.broadcast %cst_57 : f32 to vector<4x1xf32>
    %156 = arith.divf %154, %155 : vector<4x1xf32>
    %157 = vector.broadcast %156 : vector<4x1xf32> to vector<4x512xf32>
    %158 = arith.subf %152, %157 : vector<4x512xf32>
    %159 = arith.mulf %158, %158 : vector<4x512xf32>
    %cst_58 = arith.constant dense<0.000000e+00> : vector<4xf32>
    %160 = vector.multi_reduction <add>, %159, %cst_58 [1] : vector<4x512xf32> to vector<4xf32>
    %161 = vector.shape_cast %160 : vector<4xf32> to vector<4x1xf32>
    %cst_59 = arith.constant 5.120000e+02 : f32
    %162 = vector.broadcast %cst_59 : f32 to vector<4x1xf32>
    %163 = arith.divf %161, %162 : vector<4x1xf32>
    %164 = vector.broadcast %156 : vector<4x1xf32> to vector<4x512xf32>
    %165 = arith.subf %152, %164 : vector<4x512xf32>
    %cst_60 = arith.constant 9.99999974E-6 : f32
    %166 = vector.broadcast %cst_60 : f32 to vector<4x1xf32>
    %167 = arith.addf %163, %166 : vector<4x1xf32>
    %168 = math.rsqrt %167 : vector<4x1xf32>
    %169 = vector.broadcast %168 : vector<4x1xf32> to vector<4x512xf32>
    %170 = arith.mulf %165, %169 : vector<4x512xf32>
    %c0_61 = arith.constant 0 : index
    %c0_62 = arith.constant 0 : index
    %171 = vector.load %arg14[%c0_61, %c0_62] : memref<4x1xf32, #tpu.memory_space<vmem>>, vector<4x1xf32>
    %172 = vector.broadcast %171 : vector<4x1xf32> to vector<4x512xf32>
    %173 = arith.mulf %170, %172 : vector<4x512xf32>
    %c0_63 = arith.constant 0 : index
    %c0_64 = arith.constant 0 : index
    %174 = vector.load %arg15[%c0_63, %c0_64] : memref<4x1xf32, #tpu.memory_space<vmem>>, vector<4x1xf32>
    %175 = vector.broadcast %174 : vector<4x1xf32> to vector<4x512xf32>
    %176 = arith.addf %173, %175 : vector<4x512xf32>
    %177 = vector.extract_strided_slice %176 {offsets = [0, 0], sizes = [4, 256], strides = [1, 1]} : vector<4x512xf32> to vector<4x256xf32>
    %c0_65 = arith.constant 0 : index
    %c0_66 = arith.constant 0 : index
    %c0_67 = arith.constant 0 : index
    %178 = vector.load %arg2[%c0_65, %c0_66, %c0_67] : memref<2x4x256xf32, #tpu.memory_space<vmem>>, vector<1x4x256xf32>
    %179 = vector.shape_cast %178 : vector<1x4x256xf32> to vector<4x256xf32>
    %180 = arith.addf %177, %179 : vector<4x256xf32>
    %c0_68 = arith.constant 0 : index
    %c0_69 = arith.constant 0 : index
    %c0_70 = arith.constant 0 : index
    %181 = vector.load %arg16[%c0_68, %c0_69, %c0_70] : memref<2x4x256xf32, #tpu.memory_space<vmem>>, vector<1x4x256xf32>
    %182 = vector.shape_cast %181 : vector<1x4x256xf32> to vector<4x256xf32>
    %183 = vector.shape_cast %180 : vector<4x256xf32> to vector<1x4x256xf32>
    tpu.vector_store %arg16[%c0_68, %c0_69, %c0_70], %183 {strides = array<i32>} : memref<2x4x256xf32, #tpu.memory_space<vmem>>, vector<1x4x256xf32>,
    %184 = vector.extract_strided_slice %176 {offsets = [0, 256], sizes = [4, 256], strides = [1, 1]} : vector<4x512xf32> to vector<4x256xf32>
    %c1_71 = arith.constant 1 : index
    %c0_72 = arith.constant 0 : index
    %c0_73 = arith.constant 0 : index
    %185 = vector.load %arg2[%c1_71, %c0_72, %c0_73] : memref<2x4x256xf32, #tpu.memory_space<vmem>>, vector<1x4x256xf32>
    %186 = vector.shape_cast %185 : vector<1x4x256xf32> to vector<4x256xf32>
    %187 = arith.addf %184, %186 : vector<4x256xf32>
    %c1_74 = arith.constant 1 : index
    %c0_75 = arith.constant 0 : index
    %c0_76 = arith.constant 0 : index
    %188 = vector.load %arg16[%c1_74, %c0_75, %c0_76] : memref<2x4x256xf32, #tpu.memory_space<vmem>>, vector<1x4x256xf32>
    %189 = vector.shape_cast %188 : vector<1x4x256xf32> to vector<4x256xf32>
    %190 = vector.shape_cast %187 : vector<4x256xf32> to vector<1x4x256xf32>
    tpu.vector_store %arg16[%c1_74, %c0_75, %c0_76], %190 {strides = array<i32>} : memref<2x4x256xf32, #tpu.memory_space<vmem>>, vector<1x4x256xf32>,
    return
  }
  func.func @transform_0(%arg0: i32) -> (i32, i32) {
    %c0_i32 = arith.constant 0 : i32
    %c0_i32_0 = arith.constant 0 : i32
    %c0_i32_1 = arith.constant 0 : i32
    return %c0_i32, %c0_i32_0 : i32, i32
  }
  func.func @transform_1(%arg0: i32) -> (i32, i32, i32) {
    %c0_i32 = arith.constant 0 : i32
    %c0_i32_0 = arith.constant 0 : i32
    %c0_i32_1 = arith.constant 0 : i32
    %c0_i32_2 = arith.constant 0 : i32
    return %c0_i32, %c0_i32_0, %c0_i32_1 : i32, i32, i32
  }
  func.func @transform_2(%arg0: i32) -> (i32, i32) {
    %c0_i32 = arith.constant 0 : i32
    %c0_i32_0 = arith.constant 0 : i32
    %c0_i32_1 = arith.constant 0 : i32
    return %c0_i32, %c0_i32_0 : i32, i32
  }
  func.func @transform_3(%arg0: i32) -> (i32, i32) {
    %c0_i32 = arith.constant 0 : i32
    %c0_i32_0 = arith.constant 0 : i32
    %c0_i32_1 = arith.constant 0 : i32
    return %c0_i32, %c0_i32_0 : i32, i32
  }
  func.func @transform_4(%arg0: i32) -> (i32, i32) {
    %c0_i32 = arith.constant 0 : i32
    %c0_i32_0 = arith.constant 0 : i32
    %c0_i32_1 = arith.constant 0 : i32
    return %c0_i32, %c0_i32_0 : i32, i32
  }
  func.func @transform_5(%arg0: i32) -> (i32, i32, i32) {
    %c0_i32 = arith.constant 0 : i32
    %c0_i32_0 = arith.constant 0 : i32
    %c0_i32_1 = arith.constant 0 : i32
    %c0_i32_2 = arith.constant 0 : i32
    return %c0_i32, %c0_i32_0, %c0_i32_1 : i32, i32, i32
  }
  func.func @transform_6(%arg0: i32) -> (i32, i32) {
    %c0_i32 = arith.constant 0 : i32
    %c0_i32_0 = arith.constant 0 : i32
    %c0_i32_1 = arith.constant 0 : i32
    return %c0_i32, %c0_i32_0 : i32, i32
  }
  func.func @transform_7(%arg0: i32) -> (i32, i32) {
    %c0_i32 = arith.constant 0 : i32
    %c0_i32_0 = arith.constant 0 : i32
    %c0_i32_1 = arith.constant 0 : i32
    return %c0_i32, %c0_i32_0 : i32, i32
  }
  func.func @transform_8(%arg0: i32) -> (i32, i32) {
    %c0_i32 = arith.constant 0 : i32
    %c0_i32_0 = arith.constant 0 : i32
    %c0_i32_1 = arith.constant 0 : i32
    return %c0_i32, %c0_i32_0 : i32, i32
  }
  func.func @transform_9(%arg0: i32) -> (i32, i32) {
    %c0_i32 = arith.constant 0 : i32
    %c0_i32_0 = arith.constant 0 : i32
    %c0_i32_1 = arith.constant 0 : i32
    return %c0_i32, %c0_i32_0 : i32, i32
  }
  func.func @transform_10(%arg0: i32) -> (i32, i32) {
    %c0_i32 = arith.constant 0 : i32
    %c0_i32_0 = arith.constant 0 : i32
    %c0_i32_1 = arith.constant 0 : i32
    return %c0_i32, %c0_i32_0 : i32, i32
  }
  func.func @transform_11(%arg0: i32) -> (i32, i32) {
    %c0_i32 = arith.constant 0 : i32
    %c0_i32_0 = arith.constant 0 : i32
    %c0_i32_1 = arith.constant 0 : i32
    return %c0_i32, %c0_i32_0 : i32, i32
  }
  func.func @transform_12(%arg0: i32) -> (i32, i32) {
    %c0_i32 = arith.constant 0 : i32
    %c0_i32_0 = arith.constant 0 : i32
    %c0_i32_1 = arith.constant 0 : i32
    return %c0_i32, %c0_i32_0 : i32, i32
  }
  func.func @transform_13(%arg0: i32) -> (i32, i32) {
    %c0_i32 = arith.constant 0 : i32
    %c0_i32_0 = arith.constant 0 : i32
    %c0_i32_1 = arith.constant 0 : i32
    return %c0_i32, %c0_i32_0 : i32, i32
  }
  func.func @transform_14(%arg0: i32) -> (i32, i32) {
    %c0_i32 = arith.constant 0 : i32
    %c0_i32_0 = arith.constant 0 : i32
    %c0_i32_1 = arith.constant 0 : i32
    return %c0_i32, %c0_i32_0 : i32, i32
  }
  func.func @transform_15(%arg0: i32) -> (i32, i32, i32) {
    %c0_i32 = arith.constant 0 : i32
    %c0_i32_0 = arith.constant 0 : i32
    %c0_i32_1 = arith.constant 0 : i32
    %c0_i32_2 = arith.constant 0 : i32
    return %c0_i32, %c0_i32_0, %c0_i32_1 : i32, i32, i32
  }
}

</mosaic_0001>

<bundles_post_ra>
// kernel: tpu_custom_call.1
= control target key start
LH: loop header
LB: loop body
LE: loop exit
PB: predicated region body
PF: predicated region fallthrough
CT: control target
= control target key end

     0   :  { %s16256_s0 = inlined_call_operand.vmem [shape: f32[512,4], index: 0, kind: input, shape index: {}]   ;;  %s16257_s1 = inlined_call_operand.vmem [shape: f32[2,4,256], index: 1, kind: input, shape index: {}]   ;;  %s16258_s2 = inlined_call_operand.vmem [shape: f32[4,16], index: 2, kind: input, shape index: {}]   ;;  %s16259_s3 = inlined_call_operand.vmem [shape: f32[1,16], index: 3, kind: input, shape index: {}]   ;;  %s16260_s4 = inlined_call_operand.vmem [shape: f32[1,16], index: 4, kind: input, shape index: {}]   ;;  %s16261_s5 = inlined_call_operand.vmem [shape: f32[3,3,16], index: 5, kind: input, shape index: {}]   ;;  %s16262_s6 = inlined_call_operand.vmem [shape: f32[1,16], index: 6, kind: input, shape index: {}]   ;;  %s16263_s7 = inlined_call_operand.vmem [shape: f32[1,16], index: 7, kind: input, shape index: {}]   ;;  %s16264_s8 = inlined_call_operand.vmem [shape: f32[16,1], index: 8, kind: input, shape index: {}]   ;;  %s16265_s9 = inlined_call_operand.<no memory space> [shape: f32[1,1], index: 9, kind: input, shape index: {}]   ;;  %s16266_s10 = inlined_call_operand.vmem [shape: f32[1,16], index: 10, kind: input, shape index: {}]   ;;  %s16267_s11 = inlined_call_operand.vmem [shape: f32[1,16], index: 11, kind: input, shape index: {}]   ;;  %s16268_s12 = inlined_call_operand.vmem [shape: f32[4,16], index: 12, kind: input, shape index: {}]   ;;  %s16269_s13 = inlined_call_operand.vmem [shape: f32[4,1], index: 13, kind: input, shape index: {}]   ;;  %s16270_s14 = inlined_call_operand.vmem [shape: f32[4,1], index: 14, kind: input, shape index: {}]   ;;  %s16271_s15 = inlined_call_operand.hbm [shape: f32[2,4,256], index: 15, kind: output, shape index: {}]  }
   0x1   :  { %v20_v0 = vstv %s16265_s9 }
   0x2   :  { %21 = vst [vmem:[#allocation3] sm:$0x1] %v20_v0 }
   0x3   :  { %v117_v1 = vld [vmem:[%s16258_s2] sm:$0xf]  ;;  %vm311_vm0 = vcmask 1043456   ;;  %vm118_vm1 = vcmask 31744  }
   0x4   :  { %v53_v2 = vld [vmem:[%s16256_s0] sm:$0xff]  ;;  %6125 = vmatpush.msk.msra.mxu0 %vm311_vm0, %v117_v1  ;;  %6263 = vmatpush.msk.msra.mxu1 %vm311_vm0, %v117_v1 }
   0x5   :  { %6126 = vmatmul.msk.f32.vlgmr.msra.gmra.mxu0 %vm118_vm1, %v53_v2  ;;  %6264 = vmatpush.msk.msra.mxu2 %vm311_vm0, %v117_v1 }
   0x6   :  { %6265 = vmatpush.msk.msra.mxu3 %vm311_vm0, %v117_v1 }
   0x7   :  { %22 = vsyncpa [#allocation5], 0  ;;  %v54_v3 = vld [vmem:[%s16256_s0 + $0x8] sm:$0xff]  ;;  %v55_v4 = vld [vmem:[%s16256_s0 + $0x10] sm:$0xff]  ;;  %vm526_vm2 = vcmask 130048   ;;  %v6514_v18 = vmov 0.0  }
   0x8   :  { %v56_v5 = vld [vmem:[%s16256_s0 + $0x18] sm:$0xff]  ;;  %v57_v6 = vld [vmem:[%s16256_s0 + $0x20] sm:$0xff]  ;;  %v58_v7 = vld [vmem:[%s16256_s0 + $0x28] sm:$0xff]  ;;  %1203 = vst.msk [vmem:[#allocation2] sm:$0xff] %vm526_vm2, %v6514_v18  ;;  %vm1205_vm3 = vcmask 123904   ;;  %vm1810_vm8 = vcmask 1046528  }
   0x9   :  { %v59_v8 = vld [vmem:[%s16256_s0 + $0x30] sm:$0xff]  ;;  %v60_v9 = vld [vmem:[%s16256_s0 + $0x38] sm:$0xff]  ;;  %v61_v10 = vld [vmem:[%s16256_s0 + $0x40] sm:$0xff]  ;;  %1204 = vst.msk [vmem:[#allocation2 + $0x8] sm:$0xff] %vm526_vm2, %v6514_v18  ;;  %vm2292_vm9 = vcmask 1045504   ;;  %vm5623_vm13 = vcmask 1040384  }
   0xa   :  { %v62_v11 = vld [vmem:[%s16256_s0 + $0x48] sm:$0xff]  ;;  %v63_v12 = vld [vmem:[%s16256_s0 + $0x50] sm:$0xff]  ;;  %v64_v14 = vld [vmem:[%s16256_s0 + $0x58] sm:$0xff]  ;;  %1207 = vst.msk [vmem:[#allocation2 + $0x18] sm:$0xff] %vm526_vm2, %v6514_v18  ;;  %vm5589_vm15 = vcmask 1041409   ;;  %s6113_s21 = sshll.u32 %s16271_s15, 4  ;;  %s6114_s21 = int_to_ptr.hbm [resolvable:$true] %s6113_s21 }
   0xb   :  { %v78_v13 = vld [vmem:[%s16256_s0 + $0xc8] sm:$0xff]  ;;  %v79_v15 = vld [vmem:[%s16256_s0 + $0xd0] sm:$0xff]  ;;  %v65_v16 = vld [vmem:[%s16256_s0 + $0x60] sm:$0xff]  ;;  %1208 = vst.msk [vmem:[#allocation2 + $0x20] sm:$0xff] %vm526_vm2, %v6514_v18  ;;  %s6519_s22 = smov 128   ;;  %s6520_s23 = smov 8  }
   0xc   :  { %6151 = vmatmul.msk.f32.vlgmr.msra.gmra.mxu1 %vm118_vm1, %v78_v13  ;;  %v92_v17 = vld [vmem:[%s16256_s0 + $0x138] sm:$0xff]  ;;  %1210 = vst.msk [vmem:[#allocation2 + $0x30] sm:$0xff] %vm526_vm2, %v6514_v18  ;;  %v66_v20 = vld [vmem:[%s16256_s0 + $0x68] sm:$0xff]  ;;  %v93_v21 = vld [vmem:[%s16256_s0 + $0x140] sm:$0xff] }
   0xd   :  { %6127 = vmatmul.msk.f32.gmra.mxu0 %vm118_vm1, %v54_v3  ;;  %6165 = vmatmul.msk.f32.vlgmr.msra.gmra.mxu2 %vm118_vm1, %v92_v17  ;;  %v80_v19 = vld [vmem:[%s16256_s0 + $0xd8] sm:$0xff]  ;;  %1211 = vst.msk [vmem:[#allocation2 + $0x38] sm:$0xff] %vm526_vm2, %v6514_v18  ;;  %v81_v22 = vld [vmem:[%s16256_s0 + $0xe0] sm:$0xff]  ;;  %v67_v23 = vld [vmem:[%s16256_s0 + $0x70] sm:$0xff] }
   0xe   :  { %1213 = vst.msk [vmem:[#allocation2 + $0x48] sm:$0xff] %vm526_vm2, %v6514_v18  ;;  %v94_v24 = vld [vmem:[%s16256_s0 + $0x148] sm:$0xff]  ;;  %v68_v26 = vld [vmem:[%s16256_s0 + $0x78] sm:$0xff]  ;;  %v95_v27 = vld [vmem:[%s16256_s0 + $0x150] sm:$0xff] }
   0xf   :  { %1214 = vst.msk [vmem:[#allocation2 + $0x50] sm:$0xff] %vm526_vm2, %v6514_v18  ;;  %v82_v25 = vld [vmem:[%s16256_s0 + $0xe8] sm:$0xff]  ;;  %v83_v28 = vld [vmem:[%s16256_s0 + $0xf0] sm:$0xff]  ;;  %v69_v30 = vld [vmem:[%s16256_s0 + $0x80] sm:$0xff] }
  0x10   :  { %1216 = vst.msk [vmem:[#allocation2 + $0x60] sm:$0xff] %vm526_vm2, %v6514_v18  ;;  %v96_v31 = vld [vmem:[%s16256_s0 + $0x158] sm:$0xff]  ;;  %v70_v34 = vld [vmem:[%s16256_s0 + $0x88] sm:$0xff]  ;;  %v97_v35 = vld [vmem:[%s16256_s0 + $0x160] sm:$0xff] }
  0x11   :  { %1217 = vst.msk [vmem:[#allocation2 + $0x68] sm:$0xff] %vm526_vm2, %v6514_v18  ;;  %v84_v32 = vld [vmem:[%s16256_s0 + $0xf8] sm:$0xff]  ;;  %v85_v36 = vld [vmem:[%s16256_s0 + $0x100] sm:$0xff]  ;;  %v71_v38 = vld [vmem:[%s16256_s0 + $0x90] sm:$0xff] }
  0x12   :  { %1219 = vst.msk [vmem:[#allocation2 + $0x78] sm:$0xff] %vm526_vm2, %v6514_v18  ;;  %v98_v39 = vld [vmem:[%s16256_s0 + $0x168] sm:$0xff]  ;;  %v72_v42 = vld [vmem:[%s16256_s0 + $0x98] sm:$0xff]  ;;  %v99_v43 = vld [vmem:[%s16256_s0 + $0x170] sm:$0xff] }
  0x13   :  { %1220 = vst.msk [vmem:[#allocation2 + $0x80] sm:$0xff] %vm526_vm2, %v6514_v18  ;;  %v86_v40 = vld [vmem:[%s16256_s0 + $0x108] sm:$0xff]  ;;  %v87_v44 = vld [vmem:[%s16256_s0 + $0x110] sm:$0xff]  ;;  %v73_v46 = vld [vmem:[%s16256_s0 + $0xa0] sm:$0xff] }
  0x14   :  { %6152 = vmatmul.msk.f32.gmra.mxu1 %vm118_vm1, %v79_v15  ;;  %1222 = vst.msk [vmem:[#allocation2 + $0x90] sm:$0xff] %vm526_vm2, %v6514_v18  ;;  %v100_v47 = vld [vmem:[%s16256_s0 + $0x178] sm:$0xff]  ;;  %v74_v50 = vld [vmem:[%s16256_s0 + $0xa8] sm:$0xff]  ;;  %v101_v51 = vld [vmem:[%s16256_s0 + $0x180] sm:$0xff] }
  0x15   :  { %6128 = vmatmul.msk.f32.gmra.mxu0 %vm118_vm1, %v55_v4  ;;  %6166 = vmatmul.msk.f32.gmra.mxu2 %vm118_vm1, %v93_v21  ;;  %1223 = vst.msk [vmem:[#allocation2 + $0x98] sm:$0xff] %vm526_vm2, %v6514_v18  ;;  %v88_v48 = vld [vmem:[%s16256_s0 + $0x118] sm:$0xff]  ;;  %v89_v53 = vld [vmem:[%s16256_s0 + $0x120] sm:$0xff]  ;;  %v75_v55 = vld [vmem:[%s16256_s0 + $0xb0] sm:$0xff] }
  0x16   :  { %1225 = vst.msk [vmem:[#allocation2 + $0xa8] sm:$0xff] %vm526_vm2, %v6514_v18  ;;  %v108_v52 = vld [vmem:[%s16256_s0 + $0x1b8] sm:$0xff]  ;;  %v102_v56 = vld [vmem:[%s16256_s0 + $0x188] sm:$0xff]  ;;  %v109_v57 = vld [vmem:[%s16256_s0 + $0x1c0] sm:$0xff] }
  0x17   :  { %1226 = vst.msk [vmem:[#allocation2 + $0xb0] sm:$0xff] %vm526_vm2, %v6514_v18  ;;  %6181 = vmatmul.msk.f32.vlgmr.msra.gmra.mxu3 %vm118_vm1, %v108_v52  ;;  %v90_v58 = vld [vmem:[%s16256_s0 + $0x128] sm:$0xff]  ;;  %v76_v60 = vld [vmem:[%s16256_s0 + $0xb8] sm:$0xff]  ;;  %v103_v61 = vld [vmem:[%s16256_s0 + $0x190] sm:$0xff] }
  0x18   :  { %1228 = vst.msk [vmem:[#allocation2 + $0xc0] sm:$0xff] %vm526_vm2, %v6514_v18  ;;  %v110_v62 = vld [vmem:[%s16256_s0 + $0x1c8] sm:$0xff]  ;;  %v91_v63 = vld [vmem:[%s16256_s0 + $0x130] sm:$0xff]  ;;  %v77_v1 = vld [vmem:[%s16256_s0 + $0xc0] sm:$0xff] }
  0x19   :  { %1229 = vst.msk [vmem:[#allocation2 + $0xc8] sm:$0xff] %vm526_vm2, %v6514_v18  ;;  %v104_v2 = vld [vmem:[%s16256_s0 + $0x198] sm:$0xff]  ;;  %v111_v3 = vld [vmem:[%s16256_s0 + $0x1d0] sm:$0xff]  ;;  %v114_v13 = vld [vmem:[%s16256_s0 + $0x1e8] sm:$0xff] }
  0x1a   :  { %1231 = vst.msk [vmem:[#allocation2 + $0xd8] sm:$0xff] %vm526_vm2, %v6514_v18 }
  0x1b   :  { %1232 = vst.msk [vmem:[#allocation2 + $0xe0] sm:$0xff] %vm526_vm2, %v6514_v18 }
  0x1c   :  { %6153 = vmatmul.msk.f32.gmra.mxu1 %vm118_vm1, %v80_v19  ;;  %1234 = vst.msk [vmem:[#allocation2 + $0xf0] sm:$0xff] %vm526_vm2, %v6514_v18 }
  0x1d   :  { %6129 = vmatmul.msk.f32.gmra.mxu0 %vm118_vm1, %v56_v5  ;;  %6167 = vmatmul.msk.f32.gmra.mxu2 %vm118_vm1, %v94_v24  ;;  %1235 = vst.msk [vmem:[#allocation2 + $0xf8] sm:$0xff] %vm526_vm2, %v6514_v18  ;;  %v105_v5 = vld [vmem:[%s16256_s0 + $0x1a0] sm:$0xff] }
  0x1e   :  { %1237 = vst.msk [vmem:[#allocation2 + $0x108] sm:$0xff] %vm526_vm2, %v6514_v18 }
  0x1f   :  { %1238 = vst.msk [vmem:[#allocation2 + $0x110] sm:$0xff] %vm526_vm2, %v6514_v18  ;;  %6182 = vmatmul.msk.f32.gmra.mxu3 %vm118_vm1, %v109_v57 }
  0x20   :  { %1240 = vst.msk [vmem:[#allocation2 + $0x120] sm:$0xff] %vm526_vm2, %v6514_v18 }
  0x21   :  { %1241 = vst.msk [vmem:[#allocation2 + $0x128] sm:$0xff] %vm526_vm2, %v6514_v18 }
  0x22   :  { %1243 = vst.msk [vmem:[#allocation2 + $0x138] sm:$0xff] %vm526_vm2, %v6514_v18 }
  0x23   :  { %1244 = vst.msk [vmem:[#allocation2 + $0x140] sm:$0xff] %vm526_vm2, %v6514_v18 }
  0x24   :  { %6154 = vmatmul.msk.f32.gmra.mxu1 %vm118_vm1, %v81_v22  ;;  %1246 = vst.msk [vmem:[#allocation2 + $0x150] sm:$0xff] %vm526_vm2, %v6514_v18 }
  0x25   :  { %6130 = vmatmul.msk.f32.gmra.mxu0 %vm118_vm1, %v57_v6  ;;  %6168 = vmatmul.msk.f32.gmra.mxu2 %vm118_vm1, %v95_v27  ;;  %1247 = vst.msk [vmem:[#allocation2 + $0x158] sm:$0xff] %vm526_vm2, %v6514_v18  ;;  %v112_v6 = vld [vmem:[%s16256_s0 + $0x1d8] sm:$0xff] }
  0x26   :  { %1249 = vst.msk [vmem:[#allocation2 + $0x168] sm:$0xff] %vm526_vm2, %v6514_v18 }
  0x27   :  { %1250 = vst.msk [vmem:[#allocation2 + $0x170] sm:$0xff] %vm526_vm2, %v6514_v18  ;;  %6183 = vmatmul.msk.f32.gmra.mxu3 %vm118_vm1, %v110_v62 }
  0x28   :  { %1252 = vst.msk [vmem:[#allocation2 + $0x180] sm:$0xff] %vm526_vm2, %v6514_v18 }
  0x29   :  { %1253 = vst.msk [vmem:[#allocation2 + $0x188] sm:$0xff] %vm526_vm2, %v6514_v18 }
  0x2a   :  { %1255 = vst.msk [vmem:[#allocation2 + $0x198] sm:$0xff] %vm526_vm2, %v6514_v18 }
  0x2b   :  { %1256 = vst.msk [vmem:[#allocation2 + $0x1a0] sm:$0xff] %vm526_vm2, %v6514_v18 }
  0x2c   :  { %6155 = vmatmul.msk.f32.gmra.mxu1 %vm118_vm1, %v82_v25  ;;  %1258 = vst.msk [vmem:[#allocation2 + $0x1b0] sm:$0xff] %vm526_vm2, %v6514_v18 }
  0x2d   :  { %6131 = vmatmul.msk.f32.gmra.mxu0 %vm118_vm1, %v58_v7  ;;  %6169 = vmatmul.msk.f32.gmra.mxu2 %vm118_vm1, %v96_v31  ;;  %1259 = vst.msk [vmem:[#allocation2 + $0x1b8] sm:$0xff] %vm526_vm2, %v6514_v18 }
  0x2e   :  { %1261 = vst.msk [vmem:[#allocation2 + $0x1c8] sm:$0xff] %vm526_vm2, %v6514_v18 }
  0x2f   :  { %1262 = vst.msk [vmem:[#allocation2 + $0x1d0] sm:$0xff] %vm526_vm2, %v6514_v18  ;;  %6184 = vmatmul.msk.f32.gmra.mxu3 %vm118_vm1, %v111_v3 }
  0x30   :  { %1264 = vst.msk [vmem:[#allocation2 + $0x1e0] sm:$0xff] %vm526_vm2, %v6514_v18 }
  0x31   :  { %1265 = vst.msk [vmem:[#allocation2 + $0x1e8] sm:$0xff] %vm526_vm2, %v6514_v18 }
  0x32   :  { %1267 = vst.msk [vmem:[#allocation2 + $0x1f8] sm:$0xff] %vm526_vm2, %v6514_v18 }
  0x33   :  { %1268 = vst.msk [vmem:[#allocation2 + $0x200] sm:$0xff] %vm526_vm2, %v6514_v18 }
  0x34   :  { %6156 = vmatmul.msk.f32.gmra.mxu1 %vm118_vm1, %v83_v28  ;;  %1270 = vst.msk [vmem:[#allocation2 + $0x210] sm:$0xff] %vm526_vm2, %v6514_v18 }
  0x35   :  { %6132 = vmatmul.msk.f32.gmra.mxu0 %vm118_vm1, %v59_v8  ;;  %6170 = vmatmul.msk.f32.gmra.mxu2 %vm118_vm1, %v97_v35  ;;  %1271 = vst.msk [vmem:[#allocation2 + $0x218] sm:$0xff] %vm526_vm2, %v6514_v18  ;;  %v106_v8 = vld [vmem:[%s16256_s0 + $0x1a8] sm:$0xff] }
  0x36   :  { %1273 = vst.msk [vmem:[#allocation2 + $0x228] sm:$0xff] %vm526_vm2, %v6514_v18 }
  0x37   :  { %1274 = vst.msk [vmem:[#allocation2 + $0x230] sm:$0xff] %vm526_vm2, %v6514_v18  ;;  %6185 = vmatmul.msk.f32.gmra.mxu3 %vm118_vm1, %v112_v6 }
  0x38   :  { %1276 = vst.msk [vmem:[#allocation2 + $0x240] sm:$0xff] %vm526_vm2, %v6514_v18 }
  0x39   :  { %1277 = vst.msk [vmem:[#allocation2 + $0x248] sm:$0xff] %vm526_vm2, %v6514_v18 }
  0x3a   :  { %1279 = vst.msk [vmem:[#allocation2 + $0x258] sm:$0xff] %vm526_vm2, %v6514_v18 }
  0x3b   :  { %1280 = vst.msk [vmem:[#allocation2 + $0x260] sm:$0xff] %vm526_vm2, %v6514_v18 }
  0x3c   :  { %6157 = vmatmul.msk.f32.gmra.mxu1 %vm118_vm1, %v84_v32  ;;  %1282 = vst.msk [vmem:[#allocation2 + $0x270] sm:$0xff] %vm526_vm2, %v6514_v18 }
  0x3d   :  { %6133 = vmatmul.msk.f32.gmra.mxu0 %vm118_vm1, %v60_v9  ;;  %6171 = vmatmul.msk.f32.gmra.mxu2 %vm118_vm1, %v98_v39  ;;  %1283 = vst.msk [vmem:[#allocation2 + $0x278] sm:$0xff] %vm526_vm2, %v6514_v18  ;;  %v113_v9 = vld [vmem:[%s16256_s0 + $0x1e0] sm:$0xff] }
  0x3e   :  { %1285 = vst.msk [vmem:[#allocation2 + $0x288] sm:$0xff] %vm526_vm2, %v6514_v18 }
  0x3f   :  { %1286 = vst.msk [vmem:[#allocation2 + $0x290] sm:$0xff] %vm526_vm2, %v6514_v18  ;;  %6186 = vmatmul.msk.f32.gmra.mxu3 %vm118_vm1, %v113_v9 }
  0x40   :  { %1288 = vst.msk [vmem:[#allocation2 + $0x2a0] sm:$0xff] %vm526_vm2, %v6514_v18 }
  0x41   :  { %1289 = vst.msk [vmem:[#allocation2 + $0x2a8] sm:$0xff] %vm526_vm2, %v6514_v18 }
  0x42   :  { %1291 = vst.msk [vmem:[#allocation2 + $0x2b8] sm:$0xff] %vm526_vm2, %v6514_v18 }
  0x43   :  { %1292 = vst.msk [vmem:[#allocation2 + $0x2c0] sm:$0xff] %vm526_vm2, %v6514_v18 }
  0x44   :  { %6158 = vmatmul.msk.f32.gmra.mxu1 %vm118_vm1, %v85_v36  ;;  %1294 = vst.msk [vmem:[#allocation2 + $0x2d0] sm:$0xff] %vm526_vm2, %v6514_v18 }
  0x45   :  { %6134 = vmatmul.msk.f32.gmra.mxu0 %vm118_vm1, %v61_v10  ;;  %6172 = vmatmul.msk.f32.gmra.mxu2 %vm118_vm1, %v99_v43  ;;  %1295 = vst.msk [vmem:[#allocation2 + $0x2d8] sm:$0xff] %vm526_vm2, %v6514_v18 }
  0x46   :  { %1297 = vst.msk [vmem:[#allocation2 + $0x2e8] sm:$0xff] %vm526_vm2, %v6514_v18 }
  0x47   :  { %1298 = vst.msk [vmem:[#allocation2 + $0x2f0] sm:$0xff] %vm526_vm2, %v6514_v18  ;;  %6187 = vmatmul.msk.f32.gmra.mxu3 %vm118_vm1, %v114_v13 }
  0x48   :  { %1300 = vst.msk [vmem:[#allocation2 + $0x300] sm:$0xff] %vm526_vm2, %v6514_v18 }
  0x49   :  { %1301 = vst.msk [vmem:[#allocation2 + $0x308] sm:$0xff] %vm526_vm2, %v6514_v18 }
  0x4a   :  { %1303 = vst.msk [vmem:[#allocation2 + $0x318] sm:$0xff] %vm526_vm2, %v6514_v18 }
  0x4b   :  { %1304 = vst.msk [vmem:[#allocation2 + $0x320] sm:$0xff] %vm526_vm2, %v6514_v18 }
  0x4c   :  { %6159 = vmatmul.msk.f32.gmra.mxu1 %vm118_vm1, %v86_v40  ;;  %1306 = vst.msk [vmem:[#allocation2 + $0x330] sm:$0xff] %vm526_vm2, %v6514_v18 }
  0x4d   :  { %6135 = vmatmul.msk.f32.gmra.mxu0 %vm118_vm1, %v62_v11  ;;  %6173 = vmatmul.msk.f32.gmra.mxu2 %vm118_vm1, %v100_v47  ;;  %1307 = vst.msk [vmem:[#allocation2 + $0x338] sm:$0xff] %vm526_vm2, %v6514_v18 }
  0x4e   :  { %1309 = vst.msk [vmem:[#allocation2 + $0x348] sm:$0xff] %vm526_vm2, %v6514_v18 }
  0x4f   :  { %1310 = vst.msk [vmem:[#allocation2 + $0x350] sm:$0xff] %vm526_vm2, %v6514_v18 }
  0x50   :  { %1206 = vst.msk [vmem:[#allocation2 + $0x10] sm:$0x3] %vm1205_vm3, %v6514_v18 }
  0x51   :  { %1209 = vst.msk [vmem:[#allocation2 + $0x28] sm:$0x3] %vm1205_vm3, %v6514_v18 }
  0x52   :  { %1212 = vst.msk [vmem:[#allocation2 + $0x40] sm:$0x3] %vm1205_vm3, %v6514_v18 }
  0x53   :  { %1215 = vst.msk [vmem:[#allocation2 + $0x58] sm:$0x3] %vm1205_vm3, %v6514_v18 }
  0x54   :  { %6160 = vmatmul.msk.f32.gmra.mxu1 %vm118_vm1, %v87_v44  ;;  %1218 = vst.msk [vmem:[#allocation2 + $0x70] sm:$0x3] %vm1205_vm3, %v6514_v18 }
  0x55   :  { %6136 = vmatmul.msk.f32.gmra.mxu0 %vm118_vm1, %v63_v12  ;;  %6174 = vmatmul.msk.f32.gmra.mxu2 %vm118_vm1, %v101_v51  ;;  %1221 = vst.msk [vmem:[#allocation2 + $0x88] sm:$0x3] %vm1205_vm3, %v6514_v18  ;;  %v107_v12 = vld [vmem:[%s16256_s0 + $0x1b0] sm:$0xff] }
  0x56   :  { %1224 = vst.msk [vmem:[#allocation2 + $0xa0] sm:$0x3] %vm1205_vm3, %v6514_v18 }
  0x57   :  { %1227 = vst.msk [vmem:[#allocation2 + $0xb8] sm:$0x3] %vm1205_vm3, %v6514_v18 }
  0x58   :  { %1230 = vst.msk [vmem:[#allocation2 + $0xd0] sm:$0x3] %vm1205_vm3, %v6514_v18 }
  0x59   :  { %1233 = vst.msk [vmem:[#allocation2 + $0xe8] sm:$0x3] %vm1205_vm3, %v6514_v18 }
  0x5a   :  { %1236 = vst.msk [vmem:[#allocation2 + $0x100] sm:$0x3] %vm1205_vm3, %v6514_v18 }
  0x5b   :  { %1239 = vst.msk [vmem:[#allocation2 + $0x118] sm:$0x3] %vm1205_vm3, %v6514_v18 }
  0x5c   :  { %6161 = vmatmul.msk.f32.gmra.mxu1 %vm118_vm1, %v88_v48  ;;  %1242 = vst.msk [vmem:[#allocation2 + $0x130] sm:$0x3] %vm1205_vm3, %v6514_v18 }
  0x5d   :  { %6137 = vmatmul.msk.f32.gmra.mxu0 %vm118_vm1, %v64_v14  ;;  %6175 = vmatmul.msk.f32.gmra.mxu2 %vm118_vm1, %v102_v56  ;;  %1245 = vst.msk [vmem:[#allocation2 + $0x148] sm:$0x3] %vm1205_vm3, %v6514_v18 }
  0x5e   :  { %1248 = vst.msk [vmem:[#allocation2 + $0x160] sm:$0x3] %vm1205_vm3, %v6514_v18 }
  0x5f   :  { %1251 = vst.msk [vmem:[#allocation2 + $0x178] sm:$0x3] %vm1205_vm3, %v6514_v18 }
  0x60   :  { %1254 = vst.msk [vmem:[#allocation2 + $0x190] sm:$0x3] %vm1205_vm3, %v6514_v18 }
  0x61   :  { %1257 = vst.msk [vmem:[#allocation2 + $0x1a8] sm:$0x3] %vm1205_vm3, %v6514_v18 }
  0x62   :  { %1260 = vst.msk [vmem:[#allocation2 + $0x1c0] sm:$0x3] %vm1205_vm3, %v6514_v18 }
  0x63   :  { %1263 = vst.msk [vmem:[#allocation2 + $0x1d8] sm:$0x3] %vm1205_vm3, %v6514_v18 }
  0x64   :  { %6162 = vmatmul.msk.f32.gmra.mxu1 %vm118_vm1, %v89_v53  ;;  %1266 = vst.msk [vmem:[#allocation2 + $0x1f0] sm:$0x3] %vm1205_vm3, %v6514_v18 }
  0x65   :  { %6138 = vmatmul.msk.f32.gmra.mxu0 %vm118_vm1, %v65_v16  ;;  %6176 = vmatmul.msk.f32.gmra.mxu2 %vm118_vm1, %v103_v61  ;;  %1269 = vst.msk [vmem:[#allocation2 + $0x208] sm:$0x3] %vm1205_vm3, %v6514_v18  ;;  %v115_v16 = vld [vmem:[%s16256_s0 + $0x1f0] sm:$0xff] }
  0x66   :  { %1272 = vst.msk [vmem:[#allocation2 + $0x220] sm:$0x3] %vm1205_vm3, %v6514_v18  ;;  %6188 = vmatmul.msk.f32.gmra.mxu3 %vm118_vm1, %v115_v16 }
  0x67   :  { %1275 = vst.msk [vmem:[#allocation2 + $0x238] sm:$0x3] %vm1205_vm3, %v6514_v18 }
  0x68   :  { %1278 = vst.msk [vmem:[#allocation2 + $0x250] sm:$0x3] %vm1205_vm3, %v6514_v18 }
  0x69   :  { %1281 = vst.msk [vmem:[#allocation2 + $0x268] sm:$0x3] %vm1205_vm3, %v6514_v18 }
  0x6a   :  { %1284 = vst.msk [vmem:[#allocation2 + $0x280] sm:$0x3] %vm1205_vm3, %v6514_v18 }
  0x6b   :  { %1287 = vst.msk [vmem:[#allocation2 + $0x298] sm:$0x3] %vm1205_vm3, %v6514_v18 }
  0x6c   :  { %6163 = vmatmul.msk.f32.gmra.mxu1 %vm118_vm1, %v90_v58  ;;  %1290 = vst.msk [vmem:[#allocation2 + $0x2b0] sm:$0x3] %vm1205_vm3, %v6514_v18 }
  0x6d   :  { %6139 = vmatmul.msk.f32.gmra.mxu0 %vm118_vm1, %v66_v20  ;;  %6177 = vmatmul.msk.f32.gmra.mxu2 %vm118_vm1, %v104_v2  ;;  %1293 = vst.msk [vmem:[#allocation2 + $0x2c8] sm:$0x3] %vm1205_vm3, %v6514_v18  ;;  %v116_v20 = vld [vmem:[%s16256_s0 + $0x1f8] sm:$0xff] }
  0x6e   :  { %1296 = vst.msk [vmem:[#allocation2 + $0x2e0] sm:$0x3] %vm1205_vm3, %v6514_v18  ;;  %6189 = vmatmul.msk.f32.gmra.mxu3 %vm118_vm1, %v116_v20 }
  0x6f   :  { %1299 = vst.msk [vmem:[#allocation2 + $0x2f8] sm:$0x3] %vm1205_vm3, %v6514_v18 }
  0x70   :  { %1302 = vst.msk [vmem:[#allocation2 + $0x310] sm:$0x3] %vm1205_vm3, %v6514_v18 }
  0x71   :  { %1305 = vst.msk [vmem:[#allocation2 + $0x328] sm:$0x3] %vm1205_vm3, %v6514_v18 }
  0x72   :  { %1308 = vst.msk [vmem:[#allocation2 + $0x340] sm:$0x3] %vm1205_vm3, %v6514_v18 }
  0x73   :  { %1311 = vst.msk [vmem:[#allocation2 + $0x358] sm:$0x3] %vm1205_vm3, %v6514_v18 }
  0x74   :  { %6164 = vmatmul.msk.f32.gmra.mxu1 %vm118_vm1, %v91_v63 }
  0x75   :  { %6140 = vmatmul.msk.f32.gmra.mxu0 %vm118_vm1, %v67_v23  ;;  %6178 = vmatmul.msk.f32.gmra.mxu2 %vm118_vm1, %v105_v5 }
  0x7d   :  { %6141 = vmatmul.msk.f32.gmra.mxu0 %vm118_vm1, %v68_v26  ;;  %6179 = vmatmul.msk.f32.gmra.mxu2 %vm118_vm1, %v106_v8 }
  0x82   :  { %v6775_v29 = vpop.f32.mrf.mxu0 }
  0x85   :  { %6142 = vmatmul.msk.f32.gmra.mxu0 %vm118_vm1, %v69_v30  ;;  %6180 = vmatmul.msk.f32.gmra.mxu2 %vm118_vm1, %v107_v12 }
  0x89   :  { %v7089_v10 = vpop.f32.mrf.mxu1 }
  0x8a   :  { %v6807_v33 = vpop.f32.mrf.mxu0 }
  0x8b   :  { %v528_v35 = vsel %vm526_vm2, %v6807_v33, 0.0 }
  0x8d   :  { %6143 = vmatmul.msk.f32.gmra.mxu0 %vm118_vm1, %v70_v34 }
  0x90   :  { %v7109_v17 = vpop.f32.mrf.mxu2 }
  0x91   :  { %v7103_v15 = vpop.f32.mrf.mxu1 }
  0x92   :  { %v6837_v37 = vpop.f32.mrf.mxu0 }
  0x93   :  { %v530_v39 = vsel %vm526_vm2, %v6837_v37, 0.0 }
  0x95   :  { %6144 = vmatmul.msk.f32.gmra.mxu0 %vm118_vm1, %v71_v38  ;;  %v527_v38 = vsel %vm526_vm2, %v6775_v29, 0.0 }
  0x96   :  { %v529_v40 = vadd.f32 %v528_v35, %v527_v38 }
  0x98   :  { %v7119_v21 = vpop.f32.mrf.mxu2  ;;  %v531_v44 = vadd.f32 %v530_v39, %v529_v40 }
  0x99   :  { %v7113_v19 = vpop.f32.mrf.mxu1  ;;  %16817 = vst [vmem:[#allocation7_spill] sm:$0xff] %v7119_v21 }
  0x9a   :  { %v6867_v41 = vpop.f32.mrf.mxu0 }
  0x9b   :  { %v532_v43 = vsel %vm526_vm2, %v6867_v41, 0.0 }
  0x9c   :  { %v533_v47 = vadd.f32 %v532_v43, %v531_v44 }
  0x9d   :  { %6145 = vmatmul.msk.f32.gmra.mxu0 %vm118_vm1, %v72_v42 }
  0xa0   :  { %v7125_v24 = vpop.f32.mrf.mxu2 }
  0xa1   :  { %v7123_v23 = vpop.f32.mrf.mxu1 }
  0xa2   :  { %v6897_v45 = vpop.f32.mrf.mxu0 }
  0xa5   :  { %6146 = vmatmul.msk.f32.gmra.mxu0 %vm118_vm1, %v73_v46  ;;  %v534_v46 = vsel %vm526_vm2, %v6897_v45, 0.0 }
  0xa6   :  { %v535_v51 = vadd.f32 %v534_v46, %v533_v47 }
  0xa8   :  { %v7133_v28 = vpop.f32.mrf.mxu2 }
  0xa9   :  { %v7129_v26 = vpop.f32.mrf.mxu1  ;;  %16818 = vst [vmem:[#allocation8_spill] sm:$0xff] %v7133_v28 }
  0xaa   :  { %v6927_v49 = vpop.f32.mrf.mxu0 }
  0xad   :  { %6147 = vmatmul.msk.f32.gmra.mxu0 %vm118_vm1, %v74_v50  ;;  %v536_v50 = vsel %vm526_vm2, %v6927_v49, 0.0 }
  0xae   :  { %v537_v53 = vadd.f32 %v536_v50, %v535_v51 }
  0xb0   :  { %v7139_v32 = vpop.f32.mrf.mxu2 }
  0xb1   :  { %v7137_v31 = vpop.f32.mrf.mxu1 }
  0xb2   :  { %v6961_v54 = vpop.f32.mrf.mxu0 }
  0xb3   :  { %v538_v52 = vsel %vm526_vm2, %v6961_v54, 0.0 }
  0xb4   :  { %v539_v57 = vadd.f32 %v538_v52, %v537_v53 }
  0xb5   :  { %6148 = vmatmul.msk.f32.gmra.mxu0 %vm118_vm1, %v75_v55 }
  0xb8   :  { %v7151_v42 = vpop.f32.mrf.mxu2 }
  0xb9   :  { %v7145_v36 = vpop.f32.mrf.mxu1 }
  0xba   :  { %v6995_v59 = vpop.f32.mrf.mxu0 }
  0xbb   :  { %v540_v56 = vsel %vm526_vm2, %v6995_v59, 0.0 }
  0xbc   :  { %v541_v61 = vadd.f32 %v540_v56, %v539_v57 }
  0xbd   :  { %6149 = vmatmul.msk.f32.gmra.mxu0 %vm118_vm1, %v76_v60 }
  0xc0   :  { %v7167_v58 = vpop.f32.mrf.mxu2 }
  0xc1   :  { %v7163_v55 = vpop.f32.mrf.mxu1  ;;  %16819 = vst [vmem:[#allocation9_spill] sm:$0xff] %v7167_v58 }
  0xc2   :  { %v7029_v0 = vpop.f32.mrf.mxu0 }
  0xc3   :  { %v542_v60 = vsel %vm526_vm2, %v7029_v0, 0.0 }
  0xc5   :  { %6150 = vmatmul.msk.f32.gmra.mxu0 %vm118_vm1, %v77_v1  ;;  %v543_v1 = vadd.f32 %v542_v60, %v541_v61  ;;  %vm5619_vm1 = vcmask 7168  }
  0xc8   :  { %v7185_v16 = vpop.f32.mrf.mxu2 }
  0xc9   :  { %v7179_v8 = vpop.f32.mrf.mxu1 }
  0xca   :  { %v7059_v4 = vpop.f32.mrf.mxu0 }
  0xcb   :  { %v544_v63 = vsel %vm526_vm2, %v7059_v4, 0.0 }
  0xcc   :  { %v545_v3 = vadd.f32 %v544_v63, %v543_v1 }
  0xd0   :  { %v7201_v53 = vpop.f32.mrf.mxu2 }
  0xd1   :  { %v7197_v50 = vpop.f32.mrf.mxu1  ;;  %16821 = vst [vmem:[#allocation11_spill] sm:$0xff] %v7201_v53 }
  0xd2   :  { %v7079_v7 = vpop.f32.mrf.mxu0  ;;  %16820 = vst [vmem:[#allocation10_spill] sm:$0xff] %v7197_v50 }
  0xd3   :  { %v546_v2 = vsel %vm526_vm2, %v7079_v7, 0.0 }
  0xd4   :  { %v547_v6 = vadd.f32 %v546_v2, %v545_v3 }
  0xda   :  { %v7091_v11 = vpop.f32.mrf.mxu0 }
  0xdb   :  { %v548_v5 = vsel %vm526_vm2, %v7091_v11, 0.0 }
  0xdc   :  { %v549_v12 = vadd.f32 %v548_v5, %v547_v6  ;;  %v7213_v6 = vpop.f32.mrf.mxu1 }
  0xdd   :  { %16822 = vst [vmem:[#allocation12_spill] sm:$0xff] %v7213_v6 }
  0xe2   :  { %v7101_v14 = vpop.f32.mrf.mxu0 }
  0xe3   :  { %v550_v9 = vsel %vm526_vm2, %v7101_v14, 0.0 }
  0xe4   :  { %v551_v35 = vadd.f32 %v550_v9, %v549_v12 }
  0xea   :  { %v7111_v18 = vpop.f32.mrf.mxu0 }
  0xeb   :  { %v552_v20 = vsel %vm526_vm2, %v7111_v18, 0.0 }
  0xec   :  { %v553_v39 = vadd.f32 %v552_v20, %v551_v35  ;;  %v7217_v20 = vpop.f32.mrf.mxu2 }
  0xf2   :  { %v7121_v22 = vpop.f32.mrf.mxu0 }
  0xf3   :  { %v554_v38 = vsel %vm526_vm2, %v7121_v22, 0.0 }
  0xf4   :  { %v555_v43 = vadd.f32 %v554_v38, %v553_v39 }
  0xfa   :  { %v7127_v25 = vpop.f32.mrf.mxu0 }
  0xfb   :  { %v556_v40 = vsel %vm526_vm2, %v7127_v25, 0.0 }
  0xfc   :  { %v557_v46 = vadd.f32 %v556_v40, %v555_v43 }
 0x102   :  { %v7131_v27 = vpop.f32.mrf.mxu0 }
 0x103   :  { %v558_v44 = vsel %vm526_vm2, %v7131_v27, 0.0 }
 0x104   :  { %v559_v52 = vadd.f32 %v558_v44, %v557_v46  ;;  %v7225_v46 = vpop.f32.mrf.mxu3 }
 0x10a   :  { %v7135_v30 = vpop.f32.mrf.mxu0 }
 0x10b   :  { %v560_v51 = vsel %vm526_vm2, %v7135_v30, 0.0 }
 0x10c   :  { %v561_v57 = vadd.f32 %v560_v51, %v559_v52  ;;  %v576_v51 = vsel %vm526_vm2, %v7089_v10, 0.0 }
 0x112   :  { %v7141_v34 = vpop.f32.mrf.mxu0 }
 0x113   :  { %v562_v56 = vsel %vm526_vm2, %v7141_v34, 0.0 }
 0x114   :  { %v563_v61 = vadd.f32 %v562_v56, %v561_v57  ;;  %v7229_v56 = vpop.f32.mrf.mxu1  ;;  %v578_v57 = vsel %vm526_vm2, %v7103_v15, 0.0 }
 0x115   :  { %16823 = vst [vmem:[#allocation13_spill] sm:$0xff] %v7229_v56 }
 0x11a   :  { %v7157_v48 = vpop.f32.mrf.mxu0 }
 0x11b   :  { %v564_v60 = vsel %vm526_vm2, %v7157_v48, 0.0 }
 0x11c   :  { %v565_v1 = vadd.f32 %v564_v60, %v563_v61  ;;  %v7233_v61 = vpop.f32.mrf.mxu2 }
 0x122   :  { %v7171_v62 = vpop.f32.mrf.mxu0 }
 0x123   :  { %v566_v63 = vsel %vm526_vm2, %v7171_v62, 0.0 }
 0x124   :  { %v567_v5 = vadd.f32 %v566_v63, %v565_v1  ;;  %v580_v63 = vsel %vm526_vm2, %v7113_v19, 0.0 }
 0x12a   :  { %v7183_v13 = vpop.f32.mrf.mxu0 }
 0x12b   :  { %v568_v3 = vsel %vm526_vm2, %v7183_v13, 0.0 }
 0x12c   :  { %v569_v12 = vadd.f32 %v568_v3, %v567_v5  ;;  %v582_v3 = vsel %vm526_vm2, %v7123_v23, 0.0 }
 0x132   :  { %v7195_v47 = vpop.f32.mrf.mxu0 }
 0x133   :  { %v570_v9 = vsel %vm526_vm2, %v7195_v47, 0.0 }
 0x134   :  { %v571_v38 = vadd.f32 %v570_v9, %v569_v12  ;;  %v584_v9 = vsel %vm526_vm2, %v7129_v26, 0.0 }
 0x13a   :  { %v7209_v2 = vpop.f32.mrf.mxu0 }
 0x13b   :  { %v572_v35 = vsel %vm526_vm2, %v7209_v2, 0.0 }
 0x13c   :  { %v573_v39 = vadd.f32 %v572_v35, %v571_v38  ;;  %v7241_v35 = vpop.f32.mrf.mxu3  ;;  %v586_v38 = vsel %vm526_vm2, %v7137_v31, 0.0 }
 0x13d   :  { %16824 = vst [vmem:[#allocation14_spill] sm:$0xff] %v7241_v35 }
 0x142   :  { %v7221_v40 = vpop.f32.mrf.mxu0 }
 0x143   :  { %v574_v43 = vsel %vm526_vm2, %v7221_v40, 0.0 }
 0x144   :  { %v575_v44 = vadd.f32 %v574_v43, %v573_v39  ;;  %v7245_v43 = vpop.f32.mrf.mxu1 }
 0x145   :  { %16825 = vst [vmem:[#allocation15_spill] sm:$0xff] %v7245_v43 }
 0x146   :  { %v577_v52 = vadd.f32 %v576_v51, %v575_v44  ;;  %v588_v44 = vsel %vm526_vm2, %v7145_v36, 0.0 }
 0x148   :  { %v579_v60 = vadd.f32 %v578_v57, %v577_v52  ;;  %v7249_v52 = vpop.f32.mrf.mxu2  ;;  %v590_v57 = vsel %vm526_vm2, %v7163_v55, 0.0 }
 0x149   :  { %16826 = vst [vmem:[#allocation16_spill] sm:$0xff] %v7249_v52 }
 0x14a   :  { %v581_v1 = vadd.f32 %v580_v63, %v579_v60  ;;  %v592_v63 = vsel %vm526_vm2, %v7179_v8, 0.0 }
 0x14c   :  { %v583_v5 = vadd.f32 %v582_v3, %v581_v1  ;;  %v594_v3 = vsel %vm526_vm2, %v7197_v50, 0.0 }
 0x14e   :  { %v585_v12 = vadd.f32 %v584_v9, %v583_v5  ;;  %v7257_v9 = vpop.f32.mrf.mxu3 }
 0x14f   :  { %16827 = vst [vmem:[#allocation17_spill] sm:$0xff] %v7257_v9 }
 0x150   :  { %v587_v39 = vadd.f32 %v586_v38, %v585_v12  ;;  %v596_v12 = vsel %vm526_vm2, %v7213_v6, 0.0  ;;  %v604_v6 = vsel %vm526_vm2, %v7109_v17, 0.0 }
 0x152   :  { %v589_v51 = vadd.f32 %v588_v44, %v587_v39  ;;  %v7261_v39 = vpop.f32.mrf.mxu1  ;;  %v598_v44 = vsel %vm526_vm2, %v7229_v56, 0.0  ;;  %v606_v56 = vsel %vm526_vm2, %v7119_v21, 0.0 }
 0x154   :  { %v591_v60 = vadd.f32 %v590_v57, %v589_v51  ;;  %v7265_v57 = vpop.f32.mrf.mxu2 }
 0x156   :  { %v593_v1 = vadd.f32 %v592_v63, %v591_v60  ;;  %v600_v60 = vsel %vm526_vm2, %v7245_v43, 0.0  ;;  %v602_v63 = vsel %vm526_vm2, %v7261_v39, 0.0 }
 0x158   :  { %v595_v5 = vadd.f32 %v594_v3, %v593_v1 }
 0x15a   :  { %v597_v38 = vadd.f32 %v596_v12, %v595_v5  ;;  %v7273_v12 = vpop.f32.mrf.mxu3 }
 0x15b   :  { %16828 = vst [vmem:[#allocation18_spill] sm:$0xff] %v7273_v12 }
 0x15c   :  { %v599_v51 = vadd.f32 %v598_v44, %v597_v38  ;;  %v608_v44 = vsel %vm526_vm2, %v7125_v24, 0.0  ;;  %v7279_v43 = vpop.f32.mrf.mxu2 }
 0x15e   :  { %v601_v1 = vadd.f32 %v600_v60, %v599_v51  ;;  %v610_v51 = vsel %vm526_vm2, %v7133_v28, 0.0 }
 0x160   :  { %v603_v3 = vadd.f32 %v602_v63, %v601_v1  ;;  %v612_v63 = vsel %vm526_vm2, %v7139_v32, 0.0  ;;  %v614_v1 = vsel %vm526_vm2, %v7151_v42, 0.0 }
 0x162   :  { %v605_v5 = vadd.f32 %v604_v6, %v603_v3  ;;  %v7287_v21 = vpop.f32.mrf.mxu3 }
 0x163   :  { %16829 = vst [vmem:[#allocation19_spill] sm:$0xff] %v7287_v21 }
 0x164   :  { %v607_v38 = vadd.f32 %v606_v56, %v605_v5  ;;  %v616_v56 = vsel %vm526_vm2, %v7167_v58, 0.0  ;;  %v7293_v28 = vpop.f32.mrf.mxu2 }
 0x165   :  { %16830 = vst [vmem:[#allocation20_spill] sm:$0xff] %v7293_v28 }
 0x166   :  { %v609_v50 = vadd.f32 %v608_v44, %v607_v38  ;;  %v618_v38 = vsel %vm526_vm2, %v7185_v16, 0.0 }
 0x168   :  { %v611_v60 = vadd.f32 %v610_v51, %v609_v50  ;;  %v620_v50 = vsel %vm526_vm2, %v7201_v53, 0.0 }
 0x16a   :  { %v613_v6 = vadd.f32 %v612_v63, %v611_v60  ;;  %v622_v60 = vsel %vm526_vm2, %v7217_v20, 0.0  ;;  %v7301_v58 = vpop.f32.mrf.mxu3 }
 0x16b   :  { %16831 = vst [vmem:[#allocation21_spill] sm:$0xff] %v7301_v58 }
 0x16c   :  { %v615_v3 = vadd.f32 %v614_v1, %v613_v6  ;;  %v624_v6 = vsel %vm526_vm2, %v7233_v61, 0.0  ;;  %v7307_v53 = vpop.f32.mrf.mxu2 }
 0x16d   :  { %16832 = vst [vmem:[#allocation22_spill] sm:$0xff] %v7307_v53 }
 0x16e   :  { %v617_v5 = vadd.f32 %v616_v56, %v615_v3  ;;  %v626_v3 = vsel %vm526_vm2, %v7249_v52, 0.0 }
 0x170   :  { %v619_v44 = vadd.f32 %v618_v38, %v617_v5  ;;  %v628_v5 = vsel %vm526_vm2, %v7265_v57, 0.0 }
 0x172   :  { %v621_v51 = vadd.f32 %v620_v50, %v619_v44  ;;  %v630_v44 = vsel %vm526_vm2, %v7279_v43, 0.0  ;;  %v7315_v52 = vpop.f32.mrf.mxu3 }
 0x173   :  { %16833 = vst [vmem:[#allocation23_spill] sm:$0xff] %v7315_v52 }
 0x174   :  { %v623_v63 = vadd.f32 %v622_v60, %v621_v51  ;;  %v632_v51 = vsel %vm526_vm2, %v7293_v28, 0.0  ;;  %v634_v60 = vsel %vm526_vm2, %v7307_v53, 0.0  ;;  %v642_v28 = vsel %vm526_vm2, %v7273_v12, 0.0 }
 0x176   :  { %v625_v1 = vadd.f32 %v624_v6, %v623_v63 }
 0x178   :  { %v627_v56 = vadd.f32 %v626_v3, %v625_v1  ;;  %v636_v1 = vsel %vm526_vm2, %v7225_v46, 0.0 }
 0x17a   :  { %v629_v38 = vadd.f32 %v628_v5, %v627_v56  ;;  %v638_v56 = vsel %vm526_vm2, %v7241_v35, 0.0 }
 0x17c   :  { %v631_v50 = vadd.f32 %v630_v44, %v629_v38  ;;  %v640_v38 = vsel %vm526_vm2, %v7257_v9, 0.0 }
 0x17e   :  { %v633_v63 = vadd.f32 %v632_v51, %v631_v50  ;;  %v644_v50 = vsel %vm526_vm2, %v7287_v21, 0.0 }
 0x180   :  { %v635_v6 = vadd.f32 %v634_v60, %v633_v63  ;;  %v7327_v60 = vpop.f32.mrf.mxu3  ;;  %v646_v63 = vsel %vm526_vm2, %v7301_v58, 0.0 }
 0x181   :  { %16834 = vst [vmem:[#allocation24_spill] sm:$0xff] %v7327_v60 }
 0x182   :  { %v637_v3 = vadd.f32 %v636_v1, %v635_v6  ;;  %v648_v1 = vsel %vm526_vm2, %v7315_v52, 0.0 }
 0x184   :  { %v639_v5 = vadd.f32 %v638_v56, %v637_v3 }
 0x186   :  { %v641_v44 = vadd.f32 %v640_v38, %v639_v5  ;;  %v650_v5 = vsel %vm526_vm2, %v7327_v60, 0.0 }
 0x188   :  { %v643_v53 = vadd.f32 %v642_v28, %v641_v44  ;;  %v7333_v56 = vpop.f32.mrf.mxu3  ;;  %v6515_v44 = vmov 512.0  }
 0x189   :  { %v652_v38 = vsel %vm526_vm2, %v7333_v56, 0.0  ;;  %6281 = vrcp.f32 %v6515_v44 }
 0x18a   :  { %v645_v51 = vadd.f32 %v644_v50, %v643_v53 }
 0x18c   :  { %v647_v6 = vadd.f32 %v646_v63, %v645_v51 }
 0x18e   :  { %v649_v3 = vadd.f32 %v648_v1, %v647_v6 }
 0x18f   :  { %v6282_v21 = vpop.eup %6281 }
 0x190   :  { %v651_v28 = vadd.f32 %v650_v5, %v649_v3  ;;  %v661_v51 = vmul.f32 512.0, %v6282_v21  ;;  %vm665_vm4 = vweird.f32 %v6282_v21 }
 0x192   :  { %v653_v53 = vadd.f32 %v652_v38, %v651_v28  ;;  %v662_v12 = vsub.f32 1.0, %v661_v51 }
 0x194   :  { %v654_v50 = vrot.slane %v653_v53, 4  ;;  %v663_v6 = vmul.f32 %v6282_v21, %v662_v12 }
 0x196   :  { %v655_v58 = vadd.f32 %v654_v50, %v653_v53  ;;  %v664_v9 = vadd.f32 %v6282_v21, %v663_v6 }
 0x198   :  { %v656_v63 = vrot.slane %v655_v58, 2  ;;  %v7339_v60 = vsel %vm665_vm4, %v6282_v21, %v664_v9 }
 0x199   :  { %16835 = vst [vmem:[#allocation25_spill] sm:$0xff] %v7339_v60 }
 0x19a   :  { %v657_v52 = vadd.f32 %v656_v63, %v655_v58 }
 0x19c   :  { %v658_v1 = vrot.slane %v657_v52, 1 }
 0x19e   :  { %v659_v35 = vadd.f32 %v658_v1, %v657_v52 }
 0x1a0   :  { %v7342_v3 = vmul.f32 %v7339_v60, %v659_v35 }
 0x1a2   :  { %v7346_v5 = vsub.f32 %v6775_v29, %v7342_v3  ;;  %v7350_v28 = vsub.f32 %v6807_v33, %v7342_v3  ;;  %v7354_v58 = vsub.f32 %v6837_v37, %v7342_v3  ;;  %v7358_v52 = vsub.f32 %v6867_v41, %v7342_v3 }
 0x1a3   :  { %v7366_v29 = vsub.f32 %v6897_v45, %v7342_v3  ;;  %v7372_v37 = vsub.f32 %v6927_v49, %v7342_v3  ;;  %v7380_v53 = vsub.f32 %v6961_v54, %v7342_v3  ;;  %v7387_v49 = vsub.f32 %v6995_v59, %v7342_v3 }
 0x1a4   :  { %v732_v21 = vmul.f32 %v7346_v5, %v7346_v5  ;;  %v733_v35 = vmul.f32 %v7350_v28, %v7350_v28  ;;  %v734_v33 = vmul.f32 %v7354_v58, %v7354_v58  ;;  %v735_v41 = vmul.f32 %v7358_v52, %v7358_v52 }
 0x1a5   :  { %v736_v45 = vmul.f32 %v7366_v29, %v7366_v29  ;;  %v737_v51 = vmul.f32 %v7372_v37, %v7372_v37  ;;  %v7394_v54 = vsub.f32 %v7029_v0, %v7342_v3  ;;  %v738_v1 = vmul.f32 %v7380_v53, %v7380_v53 }
 0x1a6   :  { %v796_v9 = vsel %vm526_vm2, %v732_v21, 0.0  ;;  %v797_v12 = vsel %vm526_vm2, %v733_v35, 0.0  ;;  %v799_v44 = vsel %vm526_vm2, %v734_v33, 0.0  ;;  %v801_v63 = vsel %vm526_vm2, %v735_v41, 0.0 }
 0x1a7   :  { %v798_v38 = vadd.f32 %v797_v12, %v796_v9  ;;  %v803_v21 = vsel %vm526_vm2, %v736_v45, 0.0  ;;  %v7401_v59 = vsub.f32 %v7059_v4, %v7342_v3  ;;  %v739_v33 = vmul.f32 %v7387_v49, %v7387_v49 }
 0x1a8   :  { %v805_v41 = vsel %vm526_vm2, %v737_v51, 0.0  ;;  %v7408_v0 = vsub.f32 %v7079_v7, %v7342_v3  ;;  %v740_v12 = vmul.f32 %v7394_v54, %v7394_v54  ;;  %v7415_v4 = vsub.f32 %v7091_v11, %v7342_v3 }
 0x1a9   :  { %v800_v50 = vadd.f32 %v799_v44, %v798_v38  ;;  %v807_v38 = vsel %vm526_vm2, %v738_v1, 0.0  ;;  %v741_v44 = vmul.f32 %v7401_v59, %v7401_v59  ;;  %v7422_v7 = vsub.f32 %v7101_v14, %v7342_v3 }
 0x1aa   :  { %16836 = vst [vmem:[#allocation26_spill] sm:$0xff] %v7415_v4  ;;  %v7429_v11 = vsub.f32 %v7111_v18, %v7342_v3  ;;  %v7436_v14 = vsub.f32 %v7121_v22, %v7342_v3  ;;  %v7443_v18 = vsub.f32 %v7127_v25, %v7342_v3  ;;  %v7450_v22 = vsub.f32 %v7131_v27, %v7342_v3 }
 0x1ab   :  { %v802_v6 = vadd.f32 %v801_v63, %v800_v50  ;;  %v809_v50 = vsel %vm526_vm2, %v739_v33, 0.0  ;;  %16837 = vst [vmem:[#allocation27_spill] sm:$0xff] %v7422_v7  ;;  %v742_v63 = vmul.f32 %v7408_v0, %v7408_v0  ;;  %v7457_v25 = vsub.f32 %v7135_v30, %v7342_v3 }
 0x1ac   :  { %16838 = vst [vmem:[#allocation28_spill] sm:$0xff] %v7429_v11  ;;  %v7464_v27 = vsub.f32 %v7141_v34, %v7342_v3  ;;  %v7471_v30 = vsub.f32 %v7157_v48, %v7342_v3  ;;  %v7478_v34 = vsub.f32 %v7171_v62, %v7342_v3  ;;  %v7485_v48 = vsub.f32 %v7183_v13, %v7342_v3 }
 0x1ad   :  { %v804_v35 = vadd.f32 %v803_v21, %v802_v6  ;;  %v811_v6 = vsel %vm526_vm2, %v740_v12, 0.0  ;;  %v743_v21 = vmul.f32 %v7415_v4, %v7415_v4  ;;  %16839 = vst [vmem:[#allocation29_spill] sm:$0xff] %v7436_v14  ;;  %v7492_v62 = vsub.f32 %v7195_v47, %v7342_v3 }
 0x1ae   :  { %16840 = vst [vmem:[#allocation30_spill] sm:$0xff] %v7443_v18  ;;  %v7499_v13 = vsub.f32 %v7209_v2, %v7342_v3  ;;  %v7506_v47 = vsub.f32 %v7221_v40, %v7342_v3  ;;  %v7513_v2 = vsub.f32 %v7089_v10, %v7342_v3  ;;  %v7520_v40 = vsub.f32 %v7103_v15, %v7342_v3 }
 0x1af   :  { %v806_v9 = vadd.f32 %v805_v41, %v804_v35  ;;  %v813_v35 = vsel %vm526_vm2, %v741_v44, 0.0  ;;  %v744_v41 = vmul.f32 %v7422_v7, %v7422_v7  ;;  %16841 = vst [vmem:[#allocation31_spill] sm:$0xff] %v7450_v22  ;;  %v7527_v10 = vsub.f32 %v7113_v19, %v7342_v3 }
 0x1b0   :  { %16842 = vst [vmem:[#allocation32_spill] sm:$0xff] %v7457_v25  ;;  %v7534_v15 = vsub.f32 %v7123_v23, %v7342_v3  ;;  %v7541_v19 = vsub.f32 %v7129_v26, %v7342_v3  ;;  %v7548_v23 = vsub.f32 %v7137_v31, %v7342_v3  ;;  %v7555_v26 = vsub.f32 %v7145_v36, %v7342_v3 }
 0x1b1   :  { %v808_v45 = vadd.f32 %v807_v38, %v806_v9  ;;  %v815_v9 = vsel %vm526_vm2, %v742_v63, 0.0  ;;  %v745_v38 = vmul.f32 %v7429_v11, %v7429_v11  ;;  %16843 = vst [vmem:[#allocation33_spill] sm:$0xff] %v7464_v27  ;;  %v7562_v31 = vsub.f32 %v7163_v55, %v7342_v3 }
 0x1b2   :  { %16844 = vst [vmem:[#allocation34_spill] sm:$0xff] %v7471_v30  ;;  %v7569_v36 = vsub.f32 %v7179_v8, %v7342_v3 }
 0x1b3   :  { %v810_v51 = vadd.f32 %v809_v50, %v808_v45  ;;  %v817_v45 = vsel %vm526_vm2, %v743_v21, 0.0  ;;  %v746_v50 = vmul.f32 %v7436_v14, %v7436_v14  ;;  %16845 = vst [vmem:[#allocation35_spill] sm:$0xff] %v7478_v34 }
 0x1b5   :  { %v812_v1 = vadd.f32 %v811_v6, %v810_v51  ;;  %v819_v51 = vsel %vm526_vm2, %v744_v41, 0.0  ;;  %v747_v6 = vmul.f32 %v7443_v18, %v7443_v18 }
 0x1b7   :  { %v814_v33 = vadd.f32 %v813_v35, %v812_v1  ;;  %v821_v1 = vsel %vm526_vm2, %v745_v38, 0.0  ;;  %v748_v35 = vmul.f32 %v7450_v22, %v7450_v22 }
 0x1b9   :  { %v816_v12 = vadd.f32 %v815_v9, %v814_v33  ;;  %v823_v33 = vsel %vm526_vm2, %v746_v50, 0.0  ;;  %v749_v9 = vmul.f32 %v7457_v25, %v7457_v25 }
 0x1bb   :  { %v818_v44 = vadd.f32 %v817_v45, %v816_v12  ;;  %v825_v12 = vsel %vm526_vm2, %v747_v6, 0.0  ;;  %v750_v45 = vmul.f32 %v7464_v27, %v7464_v27 }
 0x1bd   :  { %v820_v63 = vadd.f32 %v819_v51, %v818_v44  ;;  %v827_v44 = vsel %vm526_vm2, %v748_v35, 0.0  ;;  %v751_v51 = vmul.f32 %v7471_v30, %v7471_v30 }
 0x1bf   :  { %v822_v21 = vadd.f32 %v821_v1, %v820_v63  ;;  %v829_v63 = vsel %vm526_vm2, %v749_v9, 0.0  ;;  %v752_v1 = vmul.f32 %v7478_v34, %v7478_v34 }
 0x1c1   :  { %v824_v41 = vadd.f32 %v823_v33, %v822_v21  ;;  %v831_v21 = vsel %vm526_vm2, %v750_v45, 0.0  ;;  %v753_v33 = vmul.f32 %v7485_v48, %v7485_v48 }
 0x1c3   :  { %v826_v38 = vadd.f32 %v825_v12, %v824_v41  ;;  %v833_v41 = vsel %vm526_vm2, %v751_v51, 0.0  ;;  %v754_v12 = vmul.f32 %v7492_v62, %v7492_v62 }
 0x1c5   :  { %v828_v50 = vadd.f32 %v827_v44, %v826_v38  ;;  %v835_v38 = vsel %vm526_vm2, %v752_v1, 0.0  ;;  %v755_v44 = vmul.f32 %v7499_v13, %v7499_v13 }
 0x1c7   :  { %v830_v6 = vadd.f32 %v829_v63, %v828_v50  ;;  %v837_v50 = vsel %vm526_vm2, %v753_v33, 0.0  ;;  %v756_v63 = vmul.f32 %v7506_v47, %v7506_v47 }
 0x1c9   :  { %v832_v35 = vadd.f32 %v831_v21, %v830_v6  ;;  %v839_v6 = vsel %vm526_vm2, %v754_v12, 0.0  ;;  %v757_v21 = vmul.f32 %v7513_v2, %v7513_v2 }
 0x1cb   :  { %v834_v9 = vadd.f32 %v833_v41, %v832_v35  ;;  %v841_v35 = vsel %vm526_vm2, %v755_v44, 0.0  ;;  %v758_v41 = vmul.f32 %v7520_v40, %v7520_v40 }
 0x1cd   :  { %v836_v45 = vadd.f32 %v835_v38, %v834_v9  ;;  %v843_v9 = vsel %vm526_vm2, %v756_v63, 0.0  ;;  %v759_v38 = vmul.f32 %v7527_v10, %v7527_v10 }
 0x1cf   :  { %v838_v51 = vadd.f32 %v837_v50, %v836_v45  ;;  %v845_v45 = vsel %vm526_vm2, %v757_v21, 0.0  ;;  %v760_v50 = vmul.f32 %v7534_v15, %v7534_v15 }
 0x1d1   :  { %v840_v1 = vadd.f32 %v839_v6, %v838_v51  ;;  %v847_v51 = vsel %vm526_vm2, %v758_v41, 0.0  ;;  %v761_v6 = vmul.f32 %v7541_v19, %v7541_v19 }
 0x1d3   :  { %v842_v33 = vadd.f32 %v841_v35, %v840_v1  ;;  %v849_v1 = vsel %vm526_vm2, %v759_v38, 0.0  ;;  %v762_v35 = vmul.f32 %v7548_v23, %v7548_v23 }
 0x1d5   :  { %v844_v12 = vadd.f32 %v843_v9, %v842_v33  ;;  %v851_v33 = vsel %vm526_vm2, %v760_v50, 0.0  ;;  %v763_v9 = vmul.f32 %v7555_v26, %v7555_v26  ;;  %v855_v50 = vsel %vm526_vm2, %v762_v35, 0.0 }
 0x1d7   :  { %v846_v44 = vadd.f32 %v845_v45, %v844_v12  ;;  %v853_v12 = vsel %vm526_vm2, %v761_v6, 0.0  ;;  %v16846_v45 = vld [vmem:[#allocation10_spill] sm:$0xff]  ;;  %v857_v6 = vsel %vm526_vm2, %v763_v9, 0.0 }
 0x1d8   :  { %v7576_v55 = vsub.f32 %v16846_v45, %v7342_v3  ;;  %v16849_v45 = vld [vmem:[#allocation15_spill] sm:$0xff] }
 0x1d9   :  { %v848_v63 = vadd.f32 %v847_v51, %v846_v44  ;;  %v764_v44 = vmul.f32 %v7562_v31, %v7562_v31 }
 0x1db   :  { %v850_v21 = vadd.f32 %v849_v1, %v848_v63  ;;  %v16847_v63 = vld [vmem:[#allocation12_spill] sm:$0xff]  ;;  %v765_v1 = vmul.f32 %v7569_v36, %v7569_v36  ;;  %v859_v35 = vsel %vm526_vm2, %v764_v44, 0.0 }
 0x1dc   :  { %v7583_v8 = vsub.f32 %v16847_v63, %v7342_v3 }
 0x1dd   :  { %v852_v41 = vadd.f32 %v851_v33, %v850_v21  ;;  %v16848_v33 = vld [vmem:[#allocation13_spill] sm:$0xff]  ;;  %v861_v9 = vsel %vm526_vm2, %v765_v1, 0.0 }
 0x1de   :  { %v767_v63 = vmul.f32 %v7583_v8, %v7583_v8 }
 0x1df   :  { %v854_v38 = vadd.f32 %v853_v12, %v852_v41  ;;  %v7590_v41 = vsub.f32 %v16848_v33, %v7342_v3  ;;  %v766_v12 = vmul.f32 %v7576_v55, %v7576_v55 }
 0x1e0   :  { %v865_v1 = vsel %vm526_vm2, %v767_v63, 0.0 }
 0x1e1   :  { %v856_v51 = vadd.f32 %v855_v50, %v854_v38  ;;  %v7597_v50 = vsub.f32 %v16849_v45, %v7342_v3  ;;  %v768_v33 = vmul.f32 %v7590_v41, %v7590_v41  ;;  %v863_v44 = vsel %vm526_vm2, %v766_v12, 0.0 }
 0x1e3   :  { %v858_v21 = vadd.f32 %v857_v6, %v856_v51  ;;  %v7604_v6 = vsub.f32 %v7261_v39, %v7342_v3  ;;  %v769_v45 = vmul.f32 %v7597_v50, %v7597_v50  ;;  %v867_v12 = vsel %vm526_vm2, %v768_v33, 0.0 }
 0x1e5   :  { %v860_v38 = vadd.f32 %v859_v35, %v858_v21  ;;  %v7611_v35 = vsub.f32 %v7109_v17, %v7342_v3  ;;  %v770_v34 = vmul.f32 %v7604_v6, %v7604_v6  ;;  %v7625_v17 = vsub.f32 %v7125_v24, %v7342_v3 }
 0x1e6   :  { %v869_v63 = vsel %vm526_vm2, %v769_v45, 0.0  ;;  %v7639_v24 = vsub.f32 %v7139_v32, %v7342_v3 }
 0x1e7   :  { %v862_v51 = vadd.f32 %v861_v9, %v860_v38  ;;  %v16850_v9 = vld [vmem:[#allocation7_spill] sm:$0xff]  ;;  %v871_v33 = vsel %vm526_vm2, %v770_v34, 0.0 }
 0x1e8   :  { %v7618_v39 = vsub.f32 %v16850_v9, %v7342_v3  ;;  %v775_v27 = vmul.f32 %v7639_v24, %v7639_v24 }
 0x1e9   :  { %v864_v21 = vadd.f32 %v863_v44, %v862_v51  ;;  %v771_v44 = vmul.f32 %v7611_v35, %v7611_v35 }
 0x1ea   :  { %v772_v30 = vmul.f32 %v7618_v39, %v7618_v39 }
 0x1eb   :  { %v866_v38 = vadd.f32 %v865_v1, %v864_v21  ;;  %v16851_v1 = vld [vmem:[#allocation8_spill] sm:$0xff]  ;;  %v873_v45 = vsel %vm526_vm2, %v771_v44, 0.0 }
 0x1ec   :  { %v7632_v9 = vsub.f32 %v16851_v1, %v7342_v3  ;;  %v875_v34 = vsel %vm526_vm2, %v772_v30, 0.0 }
 0x1ed   :  { %v868_v51 = vadd.f32 %v867_v12, %v866_v38  ;;  %v773_v12 = vmul.f32 %v7625_v17, %v7625_v17 }
 0x1ee   :  { %v774_v1 = vmul.f32 %v7632_v9, %v7632_v9 }
 0x1ef   :  { %v870_v21 = vadd.f32 %v869_v63, %v868_v51  ;;  %v7646_v63 = vsub.f32 %v7151_v42, %v7342_v3  ;;  %v877_v44 = vsel %vm526_vm2, %v773_v12, 0.0  ;;  %v7660_v42 = vsub.f32 %v7185_v16, %v7342_v3 }
 0x1f0   :  { %v879_v30 = vsel %vm526_vm2, %v774_v1, 0.0  ;;  %v881_v12 = vsel %vm526_vm2, %v775_v27, 0.0  ;;  %v7674_v16 = vsub.f32 %v7217_v20, %v7342_v3 }
 0x1f1   :  { %v872_v38 = vadd.f32 %v871_v33, %v870_v21  ;;  %v16852_v33 = vld [vmem:[#allocation9_spill] sm:$0xff] }
 0x1f2   :  { %v7653_v32 = vsub.f32 %v16852_v33, %v7342_v3  ;;  %v780_v22 = vmul.f32 %v7674_v16, %v7674_v16 }
 0x1f3   :  { %v874_v51 = vadd.f32 %v873_v45, %v872_v38  ;;  %v776_v45 = vmul.f32 %v7646_v63, %v7646_v63 }
 0x1f4   :  { %v777_v25 = vmul.f32 %v7653_v32, %v7653_v32 }
 0x1f5   :  { %v876_v21 = vadd.f32 %v875_v34, %v874_v51  ;;  %v16853_v34 = vld [vmem:[#allocation11_spill] sm:$0xff]  ;;  %v883_v1 = vsel %vm526_vm2, %v776_v45, 0.0 }
 0x1f6   :  { %v7667_v33 = vsub.f32 %v16853_v34, %v7342_v3  ;;  %v885_v27 = vsel %vm526_vm2, %v777_v25, 0.0 }
 0x1f7   :  { %v878_v38 = vadd.f32 %v877_v44, %v876_v21  ;;  %v778_v44 = vmul.f32 %v7660_v42, %v7660_v42 }
 0x1f8   :  { %v779_v34 = vmul.f32 %v7667_v33, %v7667_v33 }
 0x1f9   :  { %v880_v51 = vadd.f32 %v879_v30, %v878_v38  ;;  %v7681_v30 = vsub.f32 %v7233_v61, %v7342_v3  ;;  %v887_v45 = vsel %vm526_vm2, %v778_v44, 0.0  ;;  %v7695_v61 = vsub.f32 %v7265_v57, %v7342_v3 }
 0x1fa   :  { %v889_v25 = vsel %vm526_vm2, %v779_v34, 0.0  ;;  %v891_v44 = vsel %vm526_vm2, %v780_v22, 0.0 }
 0x1fb   :  { %v882_v21 = vadd.f32 %v881_v12, %v880_v51  ;;  %v16854_v12 = vld [vmem:[#allocation16_spill] sm:$0xff]  ;;  %v783_v18 = vmul.f32 %v7695_v61, %v7695_v61 }
 0x1fc   :  { %v7688_v20 = vsub.f32 %v16854_v12, %v7342_v3 }
 0x1fd   :  { %v884_v38 = vadd.f32 %v883_v1, %v882_v21  ;;  %v781_v1 = vmul.f32 %v7681_v30, %v7681_v30 }
 0x1fe   :  { %v782_v12 = vmul.f32 %v7688_v20, %v7688_v20 }
 0x1ff   :  { %v886_v51 = vadd.f32 %v885_v27, %v884_v38  ;;  %v7702_v27 = vsub.f32 %v7279_v43, %v7342_v3  ;;  %v893_v34 = vsel %vm526_vm2, %v781_v1, 0.0  ;;  %v897_v1 = vsel %vm526_vm2, %v783_v18, 0.0 }
 0x200   :  { %v895_v22 = vsel %vm526_vm2, %v782_v12, 0.0 }
 0x201   :  { %v888_v21 = vadd.f32 %v887_v45, %v886_v51  ;;  %16855 = vst [vmem:[#allocation10_spill] sm:$0xff] %v7702_v27  ;;  %v16856_v45 = vld [vmem:[#allocation20_spill] sm:$0xff]  ;;  %v784_v14 = vmul.f32 %v7702_v27, %v7702_v27 }
 0x202   :  { %v7709_v57 = vsub.f32 %v16856_v45, %v7342_v3 }
 0x203   :  { %v890_v38 = vadd.f32 %v889_v25, %v888_v21  ;;  %v16858_v25 = vld [vmem:[#allocation22_spill] sm:$0xff]  ;;  %v899_v12 = vsel %vm526_vm2, %v784_v14, 0.0 }
 0x204   :  { %16857 = vst [vmem:[#allocation12_spill] sm:$0xff] %v7709_v57  ;;  %v7716_v43 = vsub.f32 %v16858_v25, %v7342_v3  ;;  %v785_v45 = vmul.f32 %v7709_v57, %v7709_v57 }
 0x205   :  { %v892_v51 = vadd.f32 %v891_v44, %v890_v38  ;;  %v7723_v44 = vsub.f32 %v7225_v46, %v7342_v3 }
 0x206   :  { %16859 = vst [vmem:[#allocation13_spill] sm:$0xff] %v7716_v43  ;;  %v786_v11 = vmul.f32 %v7716_v43, %v7716_v43  ;;  %v901_v18 = vsel %vm526_vm2, %v785_v45, 0.0 }
 0x207   :  { %v894_v21 = vadd.f32 %v893_v34, %v892_v51  ;;  %16860 = vst [vmem:[#allocation15_spill] sm:$0xff] %v7723_v44  ;;  %v16861_v34 = vld [vmem:[#allocation14_spill] sm:$0xff]  ;;  %v787_v7 = vmul.f32 %v7723_v44, %v7723_v44 }
 0x208   :  { %v7730_v25 = vsub.f32 %v16861_v34, %v7342_v3  ;;  %v903_v14 = vsel %vm526_vm2, %v786_v11, 0.0 }
 0x209   :  { %v896_v38 = vadd.f32 %v895_v22, %v894_v21  ;;  %v16863_v22 = vld [vmem:[#allocation17_spill] sm:$0xff]  ;;  %v905_v45 = vsel %vm526_vm2, %v787_v7, 0.0 }
 0x20a   :  { %16862 = vst [vmem:[#allocation7_spill] sm:$0xff] %v7730_v25  ;;  %v7737_v46 = vsub.f32 %v16863_v22, %v7342_v3  ;;  %v788_v4 = vmul.f32 %v7730_v25, %v7730_v25 }
 0x20b   :  { %v898_v51 = vadd.f32 %v897_v1, %v896_v38  ;;  %v16865_v1 = vld [vmem:[#allocation18_spill] sm:$0xff] }
 0x20c   :  { %16864 = vst [vmem:[#allocation8_spill] sm:$0xff] %v7737_v46  ;;  %v7744_v34 = vsub.f32 %v16865_v1, %v7342_v3  ;;  %v789_v44 = vmul.f32 %v7737_v46, %v7737_v46  ;;  %v907_v11 = vsel %vm526_vm2, %v788_v4, 0.0 }
 0x20d   :  { %v900_v21 = vadd.f32 %v899_v12, %v898_v51  ;;  %v16867_v12 = vld [vmem:[#allocation19_spill] sm:$0xff] }
 0x20e   :  { %16866 = vst [vmem:[#allocation9_spill] sm:$0xff] %v7744_v34  ;;  %v7751_v22 = vsub.f32 %v16867_v12, %v7342_v3  ;;  %v790_v25 = vmul.f32 %v7744_v34, %v7744_v34  ;;  %v909_v7 = vsel %vm526_vm2, %v789_v44, 0.0 }
 0x20f   :  { %v902_v38 = vadd.f32 %v901_v18, %v900_v21  ;;  %v16869_v18 = vld [vmem:[#allocation21_spill] sm:$0xff] }
 0x210   :  { %16868 = vst [vmem:[#allocation11_spill] sm:$0xff] %v7751_v22  ;;  %v7758_v1 = vsub.f32 %v16869_v18, %v7342_v3  ;;  %v791_v46 = vmul.f32 %v7751_v22, %v7751_v22  ;;  %v911_v4 = vsel %vm526_vm2, %v790_v25, 0.0 }
 0x211   :  { %v904_v51 = vadd.f32 %v903_v14, %v902_v38  ;;  %v16871_v14 = vld [vmem:[#allocation23_spill] sm:$0xff] }
 0x212   :  { %16870 = vst [vmem:[#allocation16_spill] sm:$0xff] %v7758_v1  ;;  %v7765_v12 = vsub.f32 %v16871_v14, %v7342_v3  ;;  %v792_v34 = vmul.f32 %v7758_v1, %v7758_v1  ;;  %v913_v22 = vsel %vm526_vm2, %v791_v46, 0.0 }
 0x213   :  { %v906_v21 = vadd.f32 %v905_v45, %v904_v51  ;;  %v16873_v45 = vld [vmem:[#allocation24_spill] sm:$0xff] }
 0x214   :  { %16872 = vst [vmem:[#allocation20_spill] sm:$0xff] %v7765_v12  ;;  %v7772_v18 = vsub.f32 %v16873_v45, %v7342_v3  ;;  %v793_v14 = vmul.f32 %v7765_v12, %v7765_v12 }
 0x215   :  { %v908_v38 = vadd.f32 %v907_v11, %v906_v21  ;;  %v731_v11 = vsub.f32 %v7333_v56, %v7342_v3 }
 0x216   :  { %16874 = vst [vmem:[#allocation22_spill] sm:$0xff] %v7772_v18  ;;  %v917_v1 = vsel %vm526_vm2, %v793_v14, 0.0 }
 0x217   :  { %v910_v51 = vadd.f32 %v909_v7, %v908_v38  ;;  %v794_v38 = vmul.f32 %v7772_v18, %v7772_v18  ;;  %v915_v7 = vsel %vm526_vm2, %v792_v34, 0.0  ;;  %v795_v43 = vmul.f32 %v731_v11, %v731_v11 }
 0x219   :  { %v912_v21 = vadd.f32 %v911_v4, %v910_v51  ;;  %v919_v51 = vsel %vm526_vm2, %v794_v38, 0.0  ;;  %v921_v56 = vsel %vm526_vm2, %v795_v43, 0.0  ;;  %v7792_v43 = vld [vmem:[%s16259_s3] ss:$0 sm:$0xff] }
 0x21b   :  { %v914_v44 = vadd.f32 %v913_v22, %v912_v21 }
 0x21d   :  { %v916_v45 = vadd.f32 %v915_v7, %v914_v44 }
 0x21f   :  { %v918_v25 = vadd.f32 %v917_v1, %v916_v45 }
 0x221   :  { %v920_v4 = vadd.f32 %v919_v51, %v918_v25 }
 0x223   :  { %v922_v3 = vadd.f32 %v921_v56, %v920_v4 }
 0x225   :  { %v923_v12 = vrot.slane %v922_v3, 4 }
 0x227   :  { %v924_v57 = vadd.f32 %v923_v12, %v922_v3 }
 0x229   :  { %v925_v46 = vrot.slane %v924_v57, 2 }
 0x22b   :  { %v926_v22 = vadd.f32 %v925_v46, %v924_v57 }
 0x22d   :  { %v927_v21 = vrot.slane %v926_v22, 1 }
 0x22f   :  { %v928_v27 = vadd.f32 %v927_v21, %v926_v22 }
 0x231   :  { %v929_v18 = vmul.f32 %v928_v27, %v7339_v60  ;;  %v7799_v27 = vld [vmem:[%s16260_s4] ss:$0 sm:$0xff] }
 0x232   :  { %16875 = vst [vmem:[#allocation14_spill] sm:$0xff] %v7799_v27 }
 0x233   :  { %v930_v34 = vadd.f32 1e-05, %v929_v18 }
 0x235   :  { %6283 = vrsqrt.f32 %v930_v34  ;;  %vm937_vm6 = vweird.f32 %v930_v34 }
 0x23b   :  { %v6284_v44 = vpop.eup %6283 }
 0x23c   :  { %v932_v7 = vmul.f32 %v6284_v44, %v930_v34  ;;  %vm938_vm5 = vweird.f32 %v6284_v44  ;;  %v16877_v34 = vld [vmem:[#allocation10_spill] sm:$0xff] }
 0x23d   :  { %vm939_vm7 = vmor %vm937_vm6, %vm938_vm5 }
 0x23e   :  { %v933_v14 = vmul.f32 %v6284_v44, %v932_v7  ;;  %v16879_v7 = vld [vmem:[#allocation13_spill] sm:$0xff] }
 0x240   :  { %v934_v1 = vmul.f32 0.5, %v933_v14  ;;  %v16880_v14 = vld [vmem:[#allocation15_spill] sm:$0xff] }
 0x242   :  { %v935_v45 = vsub.f32 1.5, %v934_v1  ;;  %v16881_v1 = vld [vmem:[#allocation7_spill] sm:$0xff] }
 0x244   :  { %v936_v38 = vmul.f32 %v6284_v44, %v935_v45  ;;  %v16882_v45 = vld [vmem:[#allocation8_spill] sm:$0xff] }
 0x246   :  { %v7794_v57 = vsel %vm939_vm7, %v6284_v44, %v936_v38  ;;  %v16878_v44 = vld [vmem:[#allocation12_spill] sm:$0xff]  ;;  %v16883_v38 = vld [vmem:[#allocation9_spill] sm:$0xff] }
 0x247   :  { %v1004_v12 = vmul.f32 %v7794_v57, %v731_v11  ;;  %v941_v4 = vmul.f32 %v7794_v57, %v7346_v5  ;;  %v942_v56 = vmul.f32 %v7794_v57, %v7350_v28  ;;  %v7811_v3 = vmul.f32 %v7794_v57, %v7354_v58 }
 0x248   :  { %v7815_v11 = vmul.f32 %v7794_v57, %v7358_v52  ;;  %v7819_v46 = vmul.f32 %v7794_v57, %v7366_v29  ;;  %v7823_v22 = vmul.f32 %v7794_v57, %v7372_v37  ;;  %v7827_v5 = vmul.f32 %v7794_v57, %v7380_v53 }
 0x249   :  { %v1071_v18 = vmul.f32 %v7792_v43, %v1004_v12  ;;  %v7831_v28 = vmul.f32 %v7794_v57, %v7387_v49  ;;  %v7835_v58 = vmul.f32 %v7794_v57, %v7394_v54  ;;  %v7839_v52 = vmul.f32 %v7794_v57, %v7401_v59  ;;  %v16884_v12 = vld [vmem:[#allocation11_spill] sm:$0xff] }
 0x24a   :  { %v7843_v29 = vmul.f32 %v7794_v57, %v7408_v0  ;;  %v962_v37 = vmul.f32 %v7794_v57, %v7485_v48  ;;  %v963_v53 = vmul.f32 %v7794_v57, %v7492_v62  ;;  %v964_v49 = vmul.f32 %v7794_v57, %v7499_v13 }
 0x24b   :  { %v1138_v25 = vadd.f32 %v7799_v27, %v1071_v18  ;;  %v965_v54 = vmul.f32 %v7794_v57, %v7506_v47  ;;  %v966_v59 = vmul.f32 %v7794_v57, %v7513_v2  ;;  %v967_v21 = vmul.f32 %v7794_v57, %v7520_v40 }
 0x24c   :  { %16876 = vst [vmem:[#allocation17_spill] sm:$0xff] %v7843_v29  ;;  %v968_v0 = vmul.f32 %v7794_v57, %v7527_v10  ;;  %v969_v48 = vmul.f32 %v7794_v57, %v7534_v15  ;;  %v970_v62 = vmul.f32 %v7794_v57, %v7541_v19  ;;  %v971_v13 = vmul.f32 %v7794_v57, %v7548_v23 }
 0x24d   :  { %v1202_v51 = vmax.f32 %v1138_v25, 0.0  ;;  %v972_v47 = vmul.f32 %v7794_v57, %v7555_v26  ;;  %v973_v2 = vmul.f32 %v7794_v57, %v7562_v31  ;;  %v974_v40 = vmul.f32 %v7794_v57, %v7569_v36  ;;  %v16885_v25 = vld [vmem:[#allocation16_spill] sm:$0xff] }
 0x24e   :  { %v975_v10 = vmul.f32 %v7794_v57, %v7576_v55  ;;  %v976_v15 = vmul.f32 %v7794_v57, %v7583_v8  ;;  %v977_v19 = vmul.f32 %v7794_v57, %v7590_v41  ;;  %v978_v23 = vmul.f32 %v7794_v57, %v7597_v50 }
 0x24f   :  { %1376 = vst.msk [vmem:[#allocation2 + $0x339] sm:$0xff] %vm526_vm2, %v1202_v51  ;;  %v979_v26 = vmul.f32 %v7794_v57, %v7604_v6  ;;  %v980_v31 = vmul.f32 %v7794_v57, %v7611_v35  ;;  %v981_v36 = vmul.f32 %v7794_v57, %v7618_v39  ;;  %v982_v55 = vmul.f32 %v7794_v57, %v7625_v17 }
 0x250   :  { %v983_v8 = vmul.f32 %v7794_v57, %v7632_v9  ;;  %v984_v41 = vmul.f32 %v7794_v57, %v7639_v24  ;;  %v985_v50 = vmul.f32 %v7794_v57, %v7646_v63  ;;  %v986_v6 = vmul.f32 %v7794_v57, %v7653_v32 }
 0x251   :  { %v987_v35 = vmul.f32 %v7794_v57, %v7660_v42  ;;  %v988_v39 = vmul.f32 %v7794_v57, %v7667_v33  ;;  %v989_v17 = vmul.f32 %v7794_v57, %v7674_v16  ;;  %v990_v9 = vmul.f32 %v7794_v57, %v7681_v30 }
 0x252   :  { %v991_v24 = vmul.f32 %v7794_v57, %v7688_v20  ;;  %v992_v63 = vmul.f32 %v7794_v57, %v7695_v61  ;;  %v993_v32 = vmul.f32 %v7794_v57, %v16877_v34  ;;  %v994_v42 = vmul.f32 %v7794_v57, %v16878_v44  ;;  %v16886_v34 = vld [vmem:[#allocation20_spill] sm:$0xff] }
 0x253   :  { %v995_v33 = vmul.f32 %v7794_v57, %v16879_v7  ;;  %v996_v16 = vmul.f32 %v7794_v57, %v16880_v14  ;;  %v997_v30 = vmul.f32 %v7794_v57, %v16881_v1  ;;  %v998_v20 = vmul.f32 %v7794_v57, %v16882_v45  ;;  %v16887_v7 = vld [vmem:[#allocation22_spill] sm:$0xff] }
 0x254   :  { %v999_v61 = vmul.f32 %v7794_v57, %v16883_v38  ;;  %v1000_v18 = vmul.f32 %v7794_v57, %v16884_v12  ;;  %v1001_v51 = vmul.f32 %v7794_v57, %v16885_v25  ;;  %v1002_v44 = vmul.f32 %v7794_v57, %v16886_v34 }
 0x255   :  { %v1003_v14 = vmul.f32 %v7794_v57, %v16887_v7  ;;  %v1008_v1 = vmul.f32 %v7792_v43, %v941_v4  ;;  %v1009_v60 = vmul.f32 %v7792_v43, %v942_v56  ;;  %v1029_v45 = vmul.f32 %v7792_v43, %v962_v37 }
 0x256   :  { %v1030_v38 = vmul.f32 %v7792_v43, %v963_v53  ;;  %v1031_v27 = vmul.f32 %v7792_v43, %v964_v49  ;;  %v1032_v12 = vmul.f32 %v7792_v43, %v965_v54  ;;  %v1033_v25 = vmul.f32 %v7792_v43, %v966_v59 }
 0x257   :  { %v1034_v29 = vmul.f32 %v7792_v43, %v967_v21  ;;  %v1035_v34 = vmul.f32 %v7792_v43, %v968_v0  ;;  %v1036_v7 = vmul.f32 %v7792_v43, %v969_v48  ;;  %v1037_v4 = vmul.f32 %v7792_v43, %v970_v62 }
 0x258   :  { %v1038_v56 = vmul.f32 %v7792_v43, %v971_v13  ;;  %v1039_v37 = vmul.f32 %v7792_v43, %v972_v47  ;;  %v1040_v53 = vmul.f32 %v7792_v43, %v973_v2  ;;  %v1041_v49 = vmul.f32 %v7792_v43, %v974_v40 }
 0x259   :  { %v1042_v54 = vmul.f32 %v7792_v43, %v975_v10  ;;  %v1043_v59 = vmul.f32 %v7792_v43, %v976_v15  ;;  %v1044_v21 = vmul.f32 %v7792_v43, %v977_v19  ;;  %v1045_v0 = vmul.f32 %v7792_v43, %v978_v23 }
 0x25a   :  { %v1046_v48 = vmul.f32 %v7792_v43, %v979_v26  ;;  %v1047_v62 = vmul.f32 %v7792_v43, %v980_v31  ;;  %v1048_v13 = vmul.f32 %v7792_v43, %v981_v36  ;;  %v1049_v47 = vmul.f32 %v7792_v43, %v982_v55 }
 0x25b   :  { %v1050_v2 = vmul.f32 %v7792_v43, %v983_v8  ;;  %v1051_v40 = vmul.f32 %v7792_v43, %v984_v41  ;;  %v1052_v10 = vmul.f32 %v7792_v43, %v985_v50  ;;  %v1053_v15 = vmul.f32 %v7792_v43, %v986_v6 }
 0x25c   :  { %v1054_v19 = vmul.f32 %v7792_v43, %v987_v35  ;;  %v1055_v23 = vmul.f32 %v7792_v43, %v988_v39  ;;  %v1056_v26 = vmul.f32 %v7792_v43, %v989_v17  ;;  %v1057_v31 = vmul.f32 %v7792_v43, %v990_v9 }
 0x25d   :  { %v1058_v36 = vmul.f32 %v7792_v43, %v991_v24  ;;  %v1059_v55 = vmul.f32 %v7792_v43, %v992_v63  ;;  %v1060_v8 = vmul.f32 %v7792_v43, %v993_v32  ;;  %v1061_v41 = vmul.f32 %v7792_v43, %v994_v42 }
 0x25e   :  { %v1062_v50 = vmul.f32 %v7792_v43, %v995_v33  ;;  %v1063_v6 = vmul.f32 %v7792_v43, %v996_v16  ;;  %v1064_v35 = vmul.f32 %v7792_v43, %v997_v30  ;;  %v1065_v39 = vmul.f32 %v7792_v43, %v998_v20 }
 0x25f   :  { %v1066_v17 = vmul.f32 %v7792_v43, %v999_v61  ;;  %v1067_v9 = vmul.f32 %v7792_v43, %v1000_v18  ;;  %v1068_v24 = vmul.f32 %v7792_v43, %v1001_v51  ;;  %v1010_v63 = vmul.f32 %v7792_v43, %v7811_v3  ;;  %v16888_v61 = vld [vmem:[#allocation26_spill] sm:$0xff]  ;;  %v16889_v3 = vld [vmem:[#allocation27_spill] sm:$0xff] }
 0x260   :  { %v1011_v32 = vmul.f32 %v7792_v43, %v7815_v11  ;;  %v1069_v42 = vmul.f32 %v7792_v43, %v1002_v44  ;;  %v1070_v33 = vmul.f32 %v7792_v43, %v1003_v14  ;;  %v1012_v16 = vmul.f32 %v7792_v43, %v7819_v46  ;;  %v16891_v11 = vld [vmem:[#allocation28_spill] sm:$0xff]  ;;  %v16893_v14 = vld [vmem:[#allocation29_spill] sm:$0xff] }
 0x261   :  { %v1013_v30 = vmul.f32 %v7792_v43, %v7823_v22  ;;  %v1014_v20 = vmul.f32 %v7792_v43, %v7827_v5  ;;  %v952_v18 = vmul.f32 %v7794_v57, %v16888_v61  ;;  %v7987_v51 = vmul.f32 %v7794_v57, %v16889_v3  ;;  %v16895_v3 = vld [vmem:[#allocation17_spill] sm:$0xff] }
 0x262   :  { %v7991_v44 = vmul.f32 %v7794_v57, %v16891_v11  ;;  %v7995_v46 = vmul.f32 %v7794_v57, %v16893_v14  ;;  %v1015_v22 = vmul.f32 %v7792_v43, %v7831_v28  ;;  %v1016_v5 = vmul.f32 %v7792_v43, %v7835_v58  ;;  %v16896_v11 = vld [vmem:[#allocation14_spill] sm:$0xff] }
 0x263   :  { %16890 = vst [vmem:[#allocation18_spill] sm:$0xff] %v7987_v51  ;;  %v8003_v61 = vmul.f32 %v7792_v43, %v7839_v52  ;;  %v8007_v51 = vmul.f32 %v7792_v43, %v16895_v3  ;;  %v8011_v14 = vadd.f32 %v16896_v11, %v1009_v60  ;;  %v8017_v28 = vadd.f32 %v16896_v11, %v1011_v32 }
 0x264   :  { %16892 = vst [vmem:[#allocation19_spill] sm:$0xff] %v7991_v44  ;;  %v1075_v44 = vadd.f32 %v16896_v11, %v1008_v1  ;;  %v8020_v58 = vadd.f32 %v16896_v11, %v1012_v16  ;;  %v8023_v52 = vadd.f32 %v16896_v11, %v1013_v30  ;;  %v8026_v3 = vadd.f32 %v16896_v11, %v1014_v20 }
 0x265   :  { %16894 = vst [vmem:[#allocation21_spill] sm:$0xff] %v7995_v46  ;;  %v8014_v46 = vadd.f32 %v16896_v11, %v1010_v63  ;;  %v8029_v1 = vadd.f32 %v16896_v11, %v1029_v45  ;;  %v8032_v60 = vadd.f32 %v16896_v11, %v1030_v38  ;;  %v8035_v63 = vadd.f32 %v16896_v11, %v1031_v27 }
 0x266   :  { %v8038_v32 = vadd.f32 %v16896_v11, %v1032_v12  ;;  %v8041_v16 = vadd.f32 %v16896_v11, %v1033_v25  ;;  %v8044_v30 = vadd.f32 %v16896_v11, %v1034_v29  ;;  %v8047_v20 = vadd.f32 %v16896_v11, %v1035_v34 }
 0x267   :  { %v8050_v45 = vadd.f32 %v16896_v11, %v1036_v7  ;;  %v8053_v38 = vadd.f32 %v16896_v11, %v1037_v4  ;;  %v8056_v27 = vadd.f32 %v16896_v11, %v1038_v56  ;;  %v8059_v12 = vadd.f32 %v16896_v11, %v1039_v37 }
 0x268   :  { %v8062_v25 = vadd.f32 %v16896_v11, %v1040_v53  ;;  %v8065_v29 = vadd.f32 %v16896_v11, %v1041_v49  ;;  %v8068_v34 = vadd.f32 %v16896_v11, %v1042_v54  ;;  %v8071_v7 = vadd.f32 %v16896_v11, %v1043_v59 }
 0x269   :  { %v8074_v4 = vadd.f32 %v16896_v11, %v1044_v21  ;;  %v8077_v56 = vadd.f32 %v16896_v11, %v1045_v0  ;;  %v8080_v37 = vadd.f32 %v16896_v11, %v1046_v48  ;;  %v8083_v53 = vadd.f32 %v16896_v11, %v1047_v62 }
 0x26a   :  { %v8086_v49 = vadd.f32 %v16896_v11, %v1048_v13  ;;  %v8089_v54 = vadd.f32 %v16896_v11, %v1049_v47  ;;  %v8092_v59 = vadd.f32 %v16896_v11, %v1050_v2  ;;  %v8095_v21 = vadd.f32 %v16896_v11, %v1051_v40 }
 0x26b   :  { %v8098_v0 = vadd.f32 %v16896_v11, %v1052_v10  ;;  %v8101_v48 = vadd.f32 %v16896_v11, %v1053_v15  ;;  %v8104_v62 = vadd.f32 %v16896_v11, %v1054_v19  ;;  %v8107_v13 = vadd.f32 %v16896_v11, %v1055_v23 }
 0x26c   :  { %v8110_v47 = vadd.f32 %v16896_v11, %v1056_v26  ;;  %v8113_v2 = vadd.f32 %v16896_v11, %v1057_v31  ;;  %v8116_v40 = vadd.f32 %v16896_v11, %v1058_v36  ;;  %v8119_v10 = vadd.f32 %v16896_v11, %v1059_v55 }
 0x26d   :  { %v8122_v15 = vadd.f32 %v16896_v11, %v1060_v8  ;;  %v8125_v19 = vadd.f32 %v16896_v11, %v1061_v41  ;;  %v8128_v23 = vadd.f32 %v16896_v11, %v1062_v50  ;;  %v8131_v26 = vadd.f32 %v16896_v11, %v1063_v6 }
 0x26e   :  { %v8134_v31 = vadd.f32 %v16896_v11, %v1064_v35  ;;  %v8137_v36 = vadd.f32 %v16896_v11, %v1065_v39  ;;  %v8140_v55 = vadd.f32 %v16896_v11, %v1066_v17  ;;  %v8143_v8 = vadd.f32 %v16896_v11, %v1067_v9 }
 0x26f   :  { %16897 = vst [vmem:[#allocation23_spill] sm:$0xff] %v8131_v26  ;;  %v8146_v41 = vadd.f32 %v16896_v11, %v1068_v24  ;;  %v8149_v50 = vadd.f32 %v16896_v11, %v1069_v42  ;;  %v8152_v6 = vadd.f32 %v16896_v11, %v1070_v33  ;;  %v1139_v35 = vmax.f32 %v1075_v44, 0.0 }
 0x270   :  { %16898 = vst [vmem:[#allocation24_spill] sm:$0xff] %v8134_v31  ;;  %v1140_v31 = vmax.f32 %v8011_v14, 0.0  ;;  %v1141_v39 = vmax.f32 %v8014_v46, 0.0  ;;  %v1019_v9 = vmul.f32 %v7792_v43, %v952_v18  ;;  %v1142_v24 = vmax.f32 %v8017_v28, 0.0  ;;  %v16908_v46 = vld [vmem:[#allocation32_spill] sm:$0xff]  ;;  %v16909_v18 = vld [vmem:[#allocation19_spill] sm:$0xff] }
 0x271   :  { %16899 = vst [vmem:[#allocation10_spill] sm:$0xff] %v8137_v36  ;;  %v16905_v36 = vld [vmem:[#allocation30_spill] sm:$0xff]  ;;  %v1083_v44 = vadd.f32 %v16896_v11, %v1016_v5  ;;  %v1143_v14 = vmax.f32 %v8020_v58, 0.0  ;;  %v1084_v28 = vadd.f32 %v16896_v11, %v8003_v61 }
 0x272   :  { %16900 = vst [vmem:[#allocation12_spill] sm:$0xff] %v8140_v55  ;;  %v956_v17 = vmul.f32 %v7794_v57, %v16905_v36  ;;  %v958_v36 = vmul.f32 %v7794_v57, %v16908_v46  ;;  %v1145_v46 = vmax.f32 %v8026_v3, 0.0 }
 0x273   :  { %16901 = vst [vmem:[#allocation13_spill] sm:$0xff] %v8143_v8  ;;  %v1082_v8 = vadd.f32 %v16896_v11, %v1015_v22  ;;  %v1021_v22 = vmul.f32 %v7792_v43, %v16909_v18  ;;  %v16912_v18 = vld [vmem:[#allocation34_spill] sm:$0xff]  ;;  %v1147_v3 = vmax.f32 %v1083_v44, 0.0 }
 0x274   :  { %16902 = vst [vmem:[#allocation15_spill] sm:$0xff] %v8146_v41  ;;  %v16906_v41 = vld [vmem:[#allocation31_spill] sm:$0xff]  ;;  %v960_v61 = vmul.f32 %v7794_v57, %v16912_v18 }
 0x275   :  { %16903 = vst [vmem:[#allocation7_spill] sm:$0xff] %v8149_v50  ;;  %v957_v42 = vmul.f32 %v7794_v57, %v16906_v41  ;;  %v16907_v50 = vld [vmem:[#allocation18_spill] sm:$0xff]  ;;  %v1144_v41 = vmax.f32 %v8023_v52, 0.0  ;;  %v1023_v52 = vmul.f32 %v7792_v43, %v956_v17  ;;  %v1146_v55 = vmax.f32 %v1082_v8, 0.0 }
 0x276   :  { %16904 = vst [vmem:[#allocation8_spill] sm:$0xff] %v8152_v6  ;;  %v1020_v33 = vmul.f32 %v7792_v43, %v16907_v50  ;;  %v16910_v50 = vld [vmem:[#allocation33_spill] sm:$0xff]  ;;  %v1088_v18 = vadd.f32 %v16896_v11, %v1021_v22  ;;  %v1148_v17 = vmax.f32 %v1084_v28, 0.0 }
 0x277   :  { %1313 = vst.msk [vmem:[#allocation2 + $0x19] sm:$0xff] %vm526_vm2, %v1139_v35  ;;  %v959_v5 = vmul.f32 %v7794_v57, %v16910_v50  ;;  %v16911_v6 = vld [vmem:[#allocation21_spill] sm:$0xff]  ;;  %v1085_v35 = vadd.f32 %v16896_v11, %v8007_v51  ;;  %v16913_v50 = vld [vmem:[#allocation35_spill] sm:$0xff]  ;;  %v1024_v26 = vmul.f32 %v7792_v43, %v957_v42  ;;  %v1090_v42 = vadd.f32 %v16896_v11, %v1023_v52 }
 0x278   :  { %1314 = vst.msk [vmem:[#allocation2 + $0x21] sm:$0xff] %vm526_vm2, %v1140_v31  ;;  %v1022_v58 = vmul.f32 %v7792_v43, %v16911_v6  ;;  %v1086_v31 = vadd.f32 %v16896_v11, %v1019_v9  ;;  %v961_v6 = vmul.f32 %v7794_v57, %v16913_v50  ;;  %v1087_v51 = vadd.f32 %v16896_v11, %v1020_v33 }
 0x279   :  { %1315 = vst.msk [vmem:[#allocation2 + $0x31] sm:$0xff] %vm526_vm2, %v1141_v39  ;;  %v1025_v39 = vmul.f32 %v7792_v43, %v958_v36  ;;  %v1026_v8 = vmul.f32 %v7792_v43, %v959_v5  ;;  %v1027_v57 = vmul.f32 %v7792_v43, %v960_v61  ;;  %v1152_v28 = vmax.f32 %v1088_v18, 0.0  ;;  %v16916_v18 = vld [vmem:[#allocation10_spill] sm:$0xff] }
 0x27a   :  { %1316 = vst.msk [vmem:[#allocation2 + $0x39] sm:$0xff] %vm526_vm2, %v1142_v24  ;;  %v1089_v9 = vadd.f32 %v16896_v11, %v1022_v58  ;;  %v1149_v24 = vmax.f32 %v1085_v35, 0.0  ;;  %v1150_v33 = vmax.f32 %v1086_v31, 0.0  ;;  %v1028_v44 = vmul.f32 %v7792_v43, %v961_v6 }
 0x27b   :  { %1317 = vst.msk [vmem:[#allocation2 + $0x49] sm:$0xff] %vm526_vm2, %v1143_v14  ;;  %v1091_v14 = vadd.f32 %v16896_v11, %v1024_v26  ;;  %v1151_v36 = vmax.f32 %v1087_v51, 0.0  ;;  %v1092_v22 = vadd.f32 %v16896_v11, %v1025_v39  ;;  %v1094_v58 = vadd.f32 %v16896_v11, %v1027_v57  ;;  %v16915_v39 = vld [vmem:[#allocation24_spill] sm:$0xff] }
 0x27c   :  { %1318 = vst.msk [vmem:[#allocation2 + $0x51] sm:$0xff] %vm526_vm2, %v1144_v41  ;;  %v1093_v41 = vadd.f32 %v16896_v11, %v1026_v8  ;;  %v1153_v5 = vmax.f32 %v1089_v9, 0.0  ;;  %v1095_v43 = vadd.f32 %v16896_v11, %v1028_v44  ;;  %v1160_v31 = vmax.f32 %v8029_v1, 0.0  ;;  %v16918_v8 = vld [vmem:[#allocation13_spill] sm:$0xff]  ;;  %v16919_v9 = vld [vmem:[#allocation15_spill] sm:$0xff] }
 0x27d   :  { %1319 = vst.msk [vmem:[#allocation2 + $0x61] sm:$0xff] %vm526_vm2, %v1145_v46  ;;  %v1155_v26 = vmax.f32 %v1091_v14, 0.0  ;;  %v1156_v35 = vmax.f32 %v1092_v22, 0.0  ;;  %v1158_v61 = vmax.f32 %v1094_v58, 0.0  ;;  %v1161_v11 = vmax.f32 %v8032_v60, 0.0  ;;  %v16920_v57 = vld [vmem:[#allocation7_spill] sm:$0xff] }
 0x27e   :  { %1320 = vst.msk [vmem:[#allocation2 + $0x69] sm:$0xff] %vm526_vm2, %v1146_v55  ;;  %v1154_v55 = vmax.f32 %v1090_v42, 0.0  ;;  %v1157_v46 = vmax.f32 %v1093_v41, 0.0  ;;  %v1159_v52 = vmax.f32 %v1095_v43, 0.0  ;;  %v1162_v50 = vmax.f32 %v8035_v63, 0.0  ;;  %v1377_v22 = vld [vmem:[#allocation2] sm:$0xff] }
 0x27f   :  { %1321 = vst.msk [vmem:[#allocation2 + $0x79] sm:$0xff] %vm526_vm2, %v1147_v3  ;;  %v1163_v6 = vmax.f32 %v8038_v32, 0.0  ;;  %v1164_v51 = vmax.f32 %v8041_v16, 0.0  ;;  %v1165_v1 = vmax.f32 %v8044_v30, 0.0  ;;  %v1166_v60 = vmax.f32 %v8047_v20, 0.0  ;;  %v16914_v3 = vld [vmem:[#allocation23_spill] sm:$0xff] }
 0x280   :  { %1322 = vst.msk [vmem:[#allocation2 + $0x81] sm:$0xff] %vm526_vm2, %v1148_v17  ;;  %v1167_v63 = vmax.f32 %v8050_v45, 0.0  ;;  %v1168_v32 = vmax.f32 %v8053_v38, 0.0  ;;  %v1169_v16 = vmax.f32 %v8056_v27, 0.0  ;;  %v1170_v30 = vmax.f32 %v8059_v12, 0.0  ;;  %v16917_v17 = vld [vmem:[#allocation12_spill] sm:$0xff] }
 0x281   :  { %1323 = vst.msk [vmem:[#allocation2 + $0x91] sm:$0xff] %vm526_vm2, %v1149_v24  ;;  %v1171_v20 = vmax.f32 %v8062_v25, 0.0  ;;  %v1172_v45 = vmax.f32 %v8065_v29, 0.0  ;;  %v1173_v38 = vmax.f32 %v8068_v34, 0.0  ;;  %v1174_v27 = vmax.f32 %v8071_v7, 0.0 }
 0x282   :  { %1324 = vst.msk [vmem:[#allocation2 + $0x99] sm:$0xff] %vm526_vm2, %v1150_v33  ;;  %v1175_v12 = vmax.f32 %v8074_v4, 0.0  ;;  %v1176_v25 = vmax.f32 %v8077_v56, 0.0  ;;  %v1177_v29 = vmax.f32 %v8080_v37, 0.0  ;;  %v1178_v34 = vmax.f32 %v8083_v53, 0.0  ;;  %v16921_v33 = vld [vmem:[#allocation8_spill] sm:$0xff] }
 0x283   :  { %1325 = vst.msk [vmem:[#allocation2 + $0xa9] sm:$0xff] %vm526_vm2, %v1151_v36  ;;  %v1179_v7 = vmax.f32 %v8086_v49, 0.0  ;;  %v1180_v4 = vmax.f32 %v8089_v54, 0.0  ;;  %v1181_v56 = vmax.f32 %v8092_v59, 0.0  ;;  %v1182_v37 = vmax.f32 %v8095_v21, 0.0 }
 0x284   :  { %1326 = vst.msk [vmem:[#allocation2 + $0xb1] sm:$0xff] %vm526_vm2, %v1152_v28  ;;  %v1183_v53 = vmax.f32 %v8098_v0, 0.0  ;;  %v1184_v49 = vmax.f32 %v8101_v48, 0.0  ;;  %v1185_v54 = vmax.f32 %v8104_v62, 0.0  ;;  %v1186_v59 = vmax.f32 %v8107_v13, 0.0  ;;  %v1378_v28 = vld [vmem:[#allocation2 + $0x8] sm:$0xff] }
 0x285   :  { %1327 = vst.msk [vmem:[#allocation2 + $0xc1] sm:$0xff] %vm526_vm2, %v1153_v5  ;;  %v1187_v21 = vmax.f32 %v8110_v47, 0.0  ;;  %v1188_v0 = vmax.f32 %v8113_v2, 0.0  ;;  %v1189_v48 = vmax.f32 %v8116_v40, 0.0  ;;  %v1190_v62 = vmax.f32 %v8119_v10, 0.0 }
 0x286   :  { %1328 = vst.msk [vmem:[#allocation2 + $0xc9] sm:$0xff] %vm526_vm2, %v1154_v55  ;;  %v1191_v13 = vmax.f32 %v8122_v15, 0.0  ;;  %v1192_v47 = vmax.f32 %v8125_v19, 0.0  ;;  %v1193_v2 = vmax.f32 %v8128_v23, 0.0  ;;  %v1194_v40 = vmax.f32 %v16914_v3, 0.0 }
 0x287   :  { %1329 = vst.msk [vmem:[#allocation2 + $0xd9] sm:$0xff] %vm526_vm2, %v1155_v26  ;;  %v1195_v10 = vmax.f32 %v16915_v39, 0.0  ;;  %v1196_v15 = vmax.f32 %v16916_v18, 0.0  ;;  %v1197_v19 = vmax.f32 %v16917_v17, 0.0  ;;  %v1198_v23 = vmax.f32 %v16918_v8, 0.0 }
 0x288   :  { %1330 = vst.msk [vmem:[#allocation2 + $0xe1] sm:$0xff] %vm526_vm2, %v1156_v35  ;;  %v1199_v24 = vmax.f32 %v16919_v9, 0.0  ;;  %v1200_v42 = vmax.f32 %v16920_v57, 0.0  ;;  %v1201_v44 = vmax.f32 %v16921_v33, 0.0  ;;  %v1485_v14 = vld [vmem:[%s16261_s5] sm:$0x7] }
 0x289   :  { %1331 = vst.msk [vmem:[#allocation2 + $0xf1] sm:$0xff] %vm526_vm2, %v1157_v46  ;;  %v8309_v36 = vperm.slane %v1485_v14, 1  ;;  %v1379_v41 = vld [vmem:[#allocation2 + $0x10] sm:$0x3]  ;;  %v8313_v55 = vperm.slane %v1485_v14, 2  ;;  %v8316_v26 = vperm.slane %v1485_v14, 0 }
 0x28a   :  { %1332 = vst.msk [vmem:[#allocation2 + $0xf9] sm:$0xff] %vm526_vm2, %v1158_v61  ;;  %v8419_v33 = vld [vmem:[#allocation2 + $0x40] sm:$0x3] }
 0x28b   :  { %1333 = vst.msk [vmem:[#allocation2 + $0x109] sm:$0xff] %vm526_vm2, %v1159_v52  ;;  %v1618_v5 = vmul.f32 %v8309_v36, %v1377_v22  ;;  %v1619_v58 = vmul.f32 %v8309_v36, %v1378_v28  ;;  %v1620_v43 = vmul.f32 %v8309_v36, %v1379_v41  ;;  %v2100_v61 = vmul.f32 %v8313_v55, %v1377_v22 }
 0x28c   :  { %1334 = vst.msk [vmem:[#allocation2 + $0x111] sm:$0xff] %vm526_vm2, %v1160_v31  ;;  %v2101_v52 = vmul.f32 %v8313_v55, %v1378_v28 }
 0x28d   :  { %1335 = vst.msk [vmem:[#allocation2 + $0x121] sm:$0xff] %vm526_vm2, %v1161_v11  ;;  %v1811_v35 = vrot.slane %v1618_v5, 1  ;;  %v1812_v46 = vrot.slane %v1619_v58, 1  ;;  %v1814_v31 = vrot.slane %v1620_v43, 1  ;;  %v2102_v11 = vmul.f32 %v8313_v55, %v1379_v41  ;;  %v8379_v39 = vld [vmem:[#allocation2 + $0xc8] sm:$0xff] }
 0x28e   :  { %1336 = vst.msk [vmem:[#allocation2 + $0x129] sm:$0xff] %vm526_vm2, %v1162_v50  ;;  %v1489_v50 = vmul.f32 %v8316_v26, %v1377_v22  ;;  %v8437_v41 = vld [vmem:[#allocation2 + $0x58] sm:$0x3]  ;;  %v8439_v5 = vld [vmem:[#allocation2 + $0x70] sm:$0x3]  ;;  %v8447_v43 = vmul.f32 %v8316_v26, %v8379_v39 }
 0x28f   :  { %1337 = vst.msk [vmem:[#allocation2 + $0x139] sm:$0xff] %vm526_vm2, %v1163_v6  ;;  %v1813_v6 = vsel %vm1810_vm8, %v1811_v35, %v1812_v46  ;;  %v8383_v18 = vld [vmem:[#allocation2 + $0xe0] sm:$0xff] }
 0x290   :  { %1338 = vst.msk [vmem:[#allocation2 + $0x141] sm:$0xff] %vm526_vm2, %v1164_v51  ;;  %v2293_v51 = vrot.slane %v2100_v61, 2  ;;  %v8457_v61 = vld [vmem:[#allocation2 + $0x88] sm:$0x3] }
 0x291   :  { %1339 = vst.msk [vmem:[#allocation2 + $0x151] sm:$0xff] %vm526_vm2, %v1165_v1  ;;  %v2294_v1 = vrot.slane %v2101_v52, 2 }
 0x292   :  { %1340 = vst.msk [vmem:[#allocation2 + $0x159] sm:$0xff] %vm526_vm2, %v1166_v60  ;;  %v1490_v60 = vmul.f32 %v8316_v26, %v1378_v28 }
 0x293   :  { %1341 = vst.msk [vmem:[#allocation2 + $0x169] sm:$0xff] %vm526_vm2, %v1167_v63  ;;  %v1815_v63 = vsel %vm1810_vm8, %v1812_v46, %v1814_v31  ;;  %v8455_v46 = vmul.f32 %v8316_v26, %v8383_v18 }
 0x294   :  { %1342 = vst.msk [vmem:[#allocation2 + $0x171] sm:$0xff] %vm526_vm2, %v1168_v32  ;;  %v2296_v32 = vrot.slane %v2102_v11, 2 }
 0x295   :  { %1343 = vst.msk [vmem:[#allocation2 + $0x181] sm:$0xff] %vm526_vm2, %v1169_v16  ;;  %v1486_v16 = vld [vmem:[%s16261_s5 + $0x4] sm:$0x7] }
 0x296   :  { %1344 = vst.msk [vmem:[#allocation2 + $0x189] sm:$0xff] %vm526_vm2, %v1170_v30  ;;  %v2035_v30 = vadd.f32 %v1813_v6, %v1489_v50  ;;  %v8475_v6 = vld [vmem:[#allocation2 + $0xa0] sm:$0x3] }
 0x297   :  { %1345 = vst.msk [vmem:[#allocation2 + $0x1c9] sm:$0xff] %vm526_vm2, %v1171_v20  ;;  %v1487_v20 = vld [vmem:[%s16261_s5 + $0x8] sm:$0x7] }
 0x298   :  { %1346 = vst.msk [vmem:[#allocation2 + $0x1d1] sm:$0xff] %vm526_vm2, %v1172_v45  ;;  %v2295_v45 = vsel %vm2292_vm9, %v2293_v51, %v2294_v1 }
 0x299   :  { %1347 = vst.msk [vmem:[#allocation2 + $0x1e1] sm:$0xff] %vm526_vm2, %v1173_v38  ;;  %v2036_v38 = vadd.f32 %v1815_v63, %v1490_v60  ;;  %v8485_v60 = vmul.f32 %v8309_v36, %v8419_v33 }
 0x29a   :  { %1348 = vst.msk [vmem:[#allocation2 + $0x1e9] sm:$0xff] %vm526_vm2, %v1174_v27  ;;  %v8332_v27 = vld [vmem:[#allocation2 + $0x18] sm:$0xff] }
 0x29b   :  { %1349 = vst.msk [vmem:[#allocation2 + $0x1f9] sm:$0xff] %vm526_vm2, %v1175_v12  ;;  %v8334_v12 = vld [vmem:[#allocation2 + $0x20] sm:$0xff]  ;;  %v8373_v3 = vmul.f32 %v8316_v26, %v8332_v27  ;;  %v8461_v52 = vmul.f32 %v8309_v36, %v8332_v27 }
 0x29c   :  { %1350 = vst.msk [vmem:[#allocation2 + $0x201] sm:$0xff] %vm526_vm2, %v1176_v25  ;;  %v8336_v25 = vld [vmem:[#allocation2 + $0x30] sm:$0xff]  ;;  %v8465_v31 = vmul.f32 %v8309_v36, %v8334_v12 }
 0x29d   :  { %1351 = vst.msk [vmem:[#allocation2 + $0x211] sm:$0xff] %vm526_vm2, %v1177_v29  ;;  %v2297_v29 = vsel %vm2292_vm9, %v2294_v1, %v2296_v32  ;;  %v8473_v50 = vmul.f32 %v8309_v36, %v8336_v25 }
 0x29e   :  { %1352 = vst.msk [vmem:[#allocation2 + $0x219] sm:$0xff] %vm526_vm2, %v1178_v34  ;;  %v8339_v34 = vld [vmem:[#allocation2 + $0x38] sm:$0xff] }
 0x29f   :  { %1353 = vst.msk [vmem:[#allocation2 + $0x229] sm:$0xff] %vm526_vm2, %v1179_v7  ;;  %v8341_v7 = vld [vmem:[#allocation2 + $0x48] sm:$0xff]  ;;  %v8391_v17 = vmul.f32 %v8316_v26, %v8339_v34  ;;  %v8477_v51 = vld [vmem:[#allocation2 + $0x1d0] sm:$0xff]  ;;  %v8481_v1 = vmul.f32 %v8309_v36, %v8339_v34 }
 0x2a0   :  { %1354 = vst.msk [vmem:[#allocation2 + $0x231] sm:$0xff] %vm526_vm2, %v1180_v4  ;;  %v8343_v4 = vld [vmem:[#allocation2 + $0x50] sm:$0xff]  ;;  %v8489_v63 = vmul.f32 %v8309_v36, %v8341_v7 }
 0x2a1   :  { %1355 = vst.msk [vmem:[#allocation2 + $0x241] sm:$0xff] %vm526_vm2, %v1181_v56  ;;  %v8345_v56 = vld [vmem:[#allocation2 + $0x60] sm:$0xff]  ;;  %v8399_v8 = vmul.f32 %v8316_v26, %v8343_v4  ;;  %v8493_v32 = vmul.f32 %v8309_v36, %v8343_v4 }
 0x2a2   :  { %1356 = vst.msk [vmem:[#allocation2 + $0x249] sm:$0xff] %vm526_vm2, %v1182_v37  ;;  %v8347_v37 = vld [vmem:[#allocation2 + $0x68] sm:$0xff]  ;;  %v8405_v9 = vmul.f32 %v8316_v26, %v8345_v56 }
 0x2a3   :  { %1357 = vst.msk [vmem:[#allocation2 + $0x259] sm:$0xff] %vm526_vm2, %v1183_v53  ;;  %v8349_v53 = vld [vmem:[#allocation2 + $0x78] sm:$0xff] }
 0x2a4   :  { %1358 = vst.msk [vmem:[#allocation2 + $0x261] sm:$0xff] %vm526_vm2, %v1184_v49  ;;  %v8351_v49 = vadd.f32 %v2295_v45, %v2035_v30  ;;  %v8413_v57 = vmul.f32 %v8316_v26, %v8349_v53  ;;  %v8497_v30 = vld [vmem:[#allocation2 + $0xd0] sm:$0x3]  ;;  %v8503_v45 = vmul.f32 %v8309_v36, %v8437_v41 }
 0x2a5   :  { %1359 = vst.msk [vmem:[#allocation2 + $0x271] sm:$0xff] %vm526_vm2, %v1185_v54  ;;  %v8353_v54 = vperm.slane %v1486_v16, 0  ;;  %v8495_v16 = vld [vmem:[#allocation2 + $0xb8] sm:$0x3] }
 0x2a6   :  { %1360 = vst.msk [vmem:[#allocation2 + $0x279] sm:$0xff] %vm526_vm2, %v1186_v59  ;;  %v8355_v59 = vld [vmem:[#allocation2 + $0x80] sm:$0xff] }
 0x2a7   :  { %1361 = vst.msk [vmem:[#allocation2 + $0x289] sm:$0xff] %vm526_vm2, %v1187_v21  ;;  %v8357_v21 = vld [vmem:[#allocation2 + $0x90] sm:$0xff] }
 0x2a8   :  { %1362 = vst.msk [vmem:[#allocation2 + $0x291] sm:$0xff] %vm526_vm2, %v1188_v0  ;;  %v8359_v0 = vld [vmem:[#allocation2 + $0x98] sm:$0xff] }
 0x2a9   :  { %1363 = vst.msk [vmem:[#allocation2 + $0x2a1] sm:$0xff] %vm526_vm2, %v1189_v48  ;;  %v8361_v48 = vadd.f32 %v2297_v29, %v2036_v38  ;;  %v8427_v14 = vmul.f32 %v8316_v26, %v8359_v0  ;;  %v8507_v38 = vmul.f32 %v8309_v36, %v8345_v56  ;;  %v8511_v29 = vmul.f32 %v8309_v36, %v8347_v37 }
 0x2aa   :  { %1364 = vst.msk [vmem:[#allocation2 + $0x2a9] sm:$0xff] %vm526_vm2, %v1190_v62  ;;  %v8363_v62 = vperm.slane %v1487_v20, 0  ;;  %v8499_v20 = vld [vmem:[#allocation2 + $0xe8] sm:$0x3] }
 0x2ab   :  { %1365 = vst.msk [vmem:[#allocation2 + $0x2b9] sm:$0xff] %vm526_vm2, %v1191_v13  ;;  %v8365_v13 = vld [vmem:[#allocation2 + $0xa8] sm:$0xff] }
 0x2ac   :  { %1366 = vst.msk [vmem:[#allocation2 + $0x2c1] sm:$0xff] %vm526_vm2, %v1192_v47  ;;  %v8367_v47 = vld [vmem:[#allocation2 + $0xb0] sm:$0xff]  ;;  %v8431_v22 = vmul.f32 %v8316_v26, %v8365_v13 }
 0x2ad   :  { %1367 = vst.msk [vmem:[#allocation2 + $0x2d1] sm:$0xff] %vm526_vm2, %v1193_v2  ;;  %v8369_v2 = vld [vmem:[#allocation2 + $0xc0] sm:$0xff]  ;;  %v8435_v28 = vmul.f32 %v8316_v26, %v8367_v47 }
 0x2ae   :  { %1368 = vst.msk [vmem:[#allocation2 + $0x2d9] sm:$0xff] %vm526_vm2, %v1194_v40  ;;  %v8377_v40 = vmul.f32 %v8316_v26, %v8334_v12  ;;  %v8443_v58 = vmul.f32 %v8316_v26, %v8369_v2 }
 0x2af   :  { %1369 = vst.msk [vmem:[#allocation2 + $0x2e9] sm:$0xff] %vm526_vm2, %v1195_v10  ;;  %v8381_v10 = vld [vmem:[#allocation2 + $0xd8] sm:$0xff] }
 0x2b0   :  { %1370 = vst.msk [vmem:[#allocation2 + $0x2f1] sm:$0xff] %vm526_vm2, %v1196_v15  ;;  %v8387_v15 = vmul.f32 %v8316_v26, %v8336_v25  ;;  %v8451_v35 = vmul.f32 %v8316_v26, %v8381_v10 }
 0x2b1   :  { %1371 = vst.msk [vmem:[#allocation2 + $0x301] sm:$0xff] %vm526_vm2, %v1197_v19  ;;  %v8395_v19 = vmul.f32 %v8316_v26, %v8341_v7 }
 0x2b2   :  { %1372 = vst.msk [vmem:[#allocation2 + $0x309] sm:$0xff] %vm526_vm2, %v1198_v23  ;;  %v8401_v23 = vld [vmem:[#allocation2 + $0x28] sm:$0x3] }
 0x2b3   :  { %1373 = vst.msk [vmem:[#allocation2 + $0x319] sm:$0xff] %vm526_vm2, %v1199_v24  ;;  %v8409_v24 = vmul.f32 %v8316_v26, %v8347_v37  ;;  %v8469_v11 = vmul.f32 %v8309_v36, %v8401_v23 }
 0x2b4   :  { %1374 = vst.msk [vmem:[#allocation2 + $0x321] sm:$0xff] %vm526_vm2, %v1200_v42  ;;  %v8417_v42 = vmul.f32 %v8316_v26, %v8355_v59 }
 0x2b5   :  { %1375 = vst.msk [vmem:[#allocation2 + $0x331] sm:$0xff] %vm526_vm2, %v1201_v44  ;;  %v8423_v44 = vmul.f32 %v8316_v26, %v8357_v21 }
 0x2b6   :  { %16922 = vst [vmem:[#allocation9_spill] sm:$0xff] %v8309_v36 }
 0x2b7   :  { %16923 = vst [vmem:[#allocation11_spill] sm:$0xff] %v8313_v55 }
 0x2b8   :  { %16924 = vst [vmem:[#allocation16_spill] sm:$0xff] %v8316_v26 }
 0x2b9   :  { %16925 = vst [vmem:[#allocation20_spill] sm:$0xff] %v8332_v27 }
 0x2ba   :  { %16926 = vst [vmem:[#allocation22_spill] sm:$0xff] %v8334_v12 }
 0x2bb   :  { %16927 = vst [vmem:[#allocation26_spill] sm:$0xff] %v8336_v25  ;;  %v8583_v25 = vld [vmem:[#allocation2 + $0x1c8] sm:$0xff] }
 0x2bc   :  { %16928 = vst [vmem:[#allocation27_spill] sm:$0xff] %v8339_v34  ;;  %v8565_v34 = vld [vmem:[#allocation2 + $0x230] sm:$0xff] }
 0x2bd   :  { %16929 = vst [vmem:[#allocation28_spill] sm:$0xff] %v8341_v7  ;;  %v8561_v7 = vld [vmem:[#allocation2 + $0x130] sm:$0x3] }
 0x2be   :  { %16930 = vst [vmem:[#allocation29_spill] sm:$0xff] %v8343_v4  ;;  %v8543_v4 = vld [vmem:[#allocation2 + $0x218] sm:$0xff] }
 0x2bf   :  { %16931 = vst [vmem:[#allocation17_spill] sm:$0xff] %v8345_v56  ;;  %v8539_v56 = vld [vmem:[#allocation2 + $0x100] sm:$0x3] }
 0x2c0   :  { %16932 = vst [vmem:[#allocation14_spill] sm:$0xff] %v8347_v37  ;;  %v8533_v37 = vmul.f32 %v8309_v36, %v8457_v61 }
 0x2c1   :  { %16933 = vst [vmem:[#allocation30_spill] sm:$0xff] %v8349_v53 }
 0x2c2   :  { %16934 = vst [vmem:[#allocation31_spill] sm:$0xff] %v8351_v49  ;;  %v8525_v49 = vmul.f32 %v8309_v36, %v8349_v53  ;;  %v8547_v53 = vmul.f32 %v8316_v26, %v8477_v51 }
 0x2c3   :  { %16935 = vst [vmem:[#allocation18_spill] sm:$0xff] %v8353_v54  ;;  %v8529_v54 = vmul.f32 %v8309_v36, %v8355_v59 }
 0x2c4   :  { %16936 = vst [vmem:[#allocation32_spill] sm:$0xff] %v8355_v59  ;;  %v8551_v59 = vmul.f32 %v8309_v36, %v8359_v0 }
 0x2c5   :  { %16937 = vst [vmem:[#allocation19_spill] sm:$0xff] %v8357_v21 }
 0x2c6   :  { %16938 = vst [vmem:[#allocation33_spill] sm:$0xff] %v8359_v0  ;;  %v8573_v0 = vmul.f32 %v8309_v36, %v8495_v16 }
 0x2c7   :  { %16939 = vst [vmem:[#allocation21_spill] sm:$0xff] %v8361_v48  ;;  %v8521_v48 = vld [vmem:[#allocation2 + $0x200] sm:$0xff] }
 0x2c8   :  { %16940 = vst [vmem:[#allocation34_spill] sm:$0xff] %v8363_v62  ;;  %v8519_v62 = vld [vmem:[#allocation2 + $0xf8] sm:$0xff] }
 0x2c9   :  { %16941 = vst [vmem:[#allocation35_spill] sm:$0xff] %v8365_v13 }
 0x2ca   :  { %16942 = vst [vmem:[#allocation23_spill] sm:$0xff] %v8367_v47 }
 0x2cb   :  { %16943 = vst [vmem:[#allocation24_spill] sm:$0xff] %v8369_v2 }
 0x2cc   :  { %16944 = vst [vmem:[#allocation10_spill] sm:$0xff] %v8377_v40  ;;  %v8729_v40 = vld [vmem:[#allocation2 + $0x290] sm:$0xff] }
 0x2cd   :  { %16945 = vst [vmem:[#allocation12_spill] sm:$0xff] %v8379_v39 }
 0x2ce   :  { %16946 = vst [vmem:[#allocation13_spill] sm:$0xff] %v8381_v10 }
 0x2cf   :  { %16947 = vst [vmem:[#allocation15_spill] sm:$0xff] %v8383_v18 }
 0x2d0   :  { %16948 = vst [vmem:[#allocation7_spill] sm:$0xff] %v8387_v15 }
 0x2d1   :  { %16949 = vst [vmem:[#allocation8_spill] sm:$0xff] %v8391_v17  ;;  %v8709_v17 = vld [vmem:[#allocation2 + $0x288] sm:$0xff] }
 0x2d2   :  { %16950 = vst [vmem:[#allocation36_spill] sm:$0xff] %v8395_v19 }
 0x2d3   :  { %16951 = vst [vmem:[#allocation37_spill] sm:$0xff] %v8399_v8 }
 0x2d4   :  { %16952 = vst [vmem:[#allocation38_spill] sm:$0xff] %v8401_v23  ;;  %v8585_v23 = vld [vmem:[#allocation2 + $0x240] sm:$0xff] }
 0x2d5   :  { %16953 = vst [vmem:[#allocation39_spill] sm:$0xff] %v8405_v9  ;;  %v8671_v9 = vld [vmem:[#allocation2 + $0x278] sm:$0xff] }
 0x2d6   :  { %16954 = vst [vmem:[#allocation40_spill] sm:$0xff] %v8409_v24  ;;  %v8655_v24 = vmul.f32 %v8316_v26, %v8585_v23 }
 0x2d7   :  { %16955 = vst [vmem:[#allocation41_spill] sm:$0xff] %v8413_v57  ;;  %v8651_v57 = vld [vmem:[#allocation2 + $0x270] sm:$0xff] }
 0x2d8   :  { %16956 = vst [vmem:[#allocation42_spill] sm:$0xff] %v8417_v42  ;;  %v8631_v42 = vld [vmem:[#allocation2 + $0x260] sm:$0xff]  ;;  %v8713_v15 = vmul.f32 %v8316_v26, %v8651_v57 }
 0x2d9   :  { %16957 = vst [vmem:[#allocation43_spill] sm:$0xff] %v8419_v33  ;;  %v8563_v33 = vld [vmem:[#allocation2 + $0x228] sm:$0xff]  ;;  %v8693_v19 = vmul.f32 %v8316_v26, %v8631_v42 }
 0x2da   :  { %16958 = vst [vmem:[#allocation44_spill] sm:$0xff] %v8423_v44  ;;  %v8629_v44 = vld [vmem:[#allocation2 + $0x210] sm:$0xff] }
 0x2db   :  { %16959 = vst [vmem:[#allocation45_spill] sm:$0xff] %v8427_v14  ;;  %v8627_v14 = vld [vmem:[#allocation2 + $0x208] sm:$0x3] }
 0x2dc   :  { %16960 = vst [vmem:[#allocation46_spill] sm:$0xff] %v8431_v22  ;;  %v8609_v22 = vld [vmem:[#allocation2 + $0x258] sm:$0xff] }
 0x2dd   :  { %16961 = vst [vmem:[#allocation47_spill] sm:$0xff] %v8435_v28  ;;  %v8607_v28 = vld [vmem:[#allocation2 + $0x1f0] sm:$0x3]  ;;  %v8675_v8 = vmul.f32 %v8316_v26, %v8609_v22 }
 0x2de   :  { %16962 = vst [vmem:[#allocation48_spill] sm:$0xff] %v8437_v41  ;;  %v8541_v41 = vld [vmem:[#allocation2 + $0x118] sm:$0x3] }
 0x2df   :  { %16963 = vst [vmem:[#allocation49_spill] sm:$0xff] %v8439_v5 }
 0x2e0   :  { %16964 = vst [vmem:[#allocation50_spill] sm:$0xff] %v8443_v58  ;;  %v8517_v58 = vld [vmem:[#allocation2 + $0xf0] sm:$0xff] }
 0x2e1   :  { %16965 = vst [vmem:[#allocation51_spill] sm:$0xff] %v8447_v43  ;;  %v8605_v43 = vld [vmem:[#allocation2 + $0x1d8] sm:$0x3] }
 0x2e2   :  { %16966 = vst [vmem:[#allocation52_spill] sm:$0xff] %v8451_v35  ;;  %v8515_v35 = vmul.f32 %v8309_v36, %v8439_v5  ;;  %v8537_v5 = vmul.f32 %v8309_v36, %v8357_v21  ;;  %v8559_v21 = vmul.f32 %v8309_v36, %v8365_v13  ;;  %v8581_v13 = vmul.f32 %v8309_v36, %v8379_v39 }
 0x2e3   :  { %16967 = vst [vmem:[#allocation53_spill] sm:$0xff] %v8455_v46  ;;  %v8587_v46 = vld [vmem:[#allocation2 + $0x248] sm:$0xff]  ;;  %v8603_v39 = vmul.f32 %v8309_v36, %v8383_v18  ;;  %v8625_v18 = vmul.f32 %v8309_v36, %v8519_v62 }
 0x2e4   :  { %16968 = vst [vmem:[#allocation54_spill] sm:$0xff] %v8457_v61  ;;  %v8555_v61 = vmul.f32 %v8309_v36, %v8475_v6 }
 0x2e5   :  { %16969 = vst [vmem:[#allocation55_spill] sm:$0xff] %v8475_v6  ;;  %v8577_v6 = vmul.f32 %v8309_v36, %v8369_v2  ;;  %v8599_v2 = vmul.f32 %v8309_v36, %v8381_v10  ;;  %v8621_v10 = vmul.f32 %v8309_v36, %v8517_v58 }
 0x2e6   :  { %16970 = vst [vmem:[#allocation56_spill] sm:$0xff] %v8477_v51 }
 0x2e7   :  { %16971 = vst [vmem:[#allocation57_spill] sm:$0xff] %v8495_v16  ;;  %v8595_v16 = vmul.f32 %v8309_v36, %v8497_v30 }
 0x2e8   :  { %16972 = vst [vmem:[#allocation58_spill] sm:$0xff] %v8497_v30  ;;  %v8617_v30 = vmul.f32 %v8309_v36, %v8499_v20 }
 0x2e9   :  { %16973 = vst [vmem:[#allocation59_spill] sm:$0xff] %v8499_v20  ;;  %v8639_v20 = vmul.f32 %v8316_v26, %v8565_v34 }
 0x2ea   :  { %16974 = vst [vmem:[#allocation60_spill] sm:$0xff] %v8517_v58  ;;  %v8649_v58 = vld [vmem:[#allocation2 + $0x220] sm:$0x3] }
 0x2eb   :  { %16975 = vst [vmem:[#allocation61_spill] sm:$0xff] %v8519_v62  ;;  %v8647_v62 = vmul.f32 %v8309_v36, %v8541_v41 }
 0x2ec   :  { %16976 = vst [vmem:[#allocation62_spill] sm:$0xff] %v8521_v48 }
 0x2ed   :  { %16977 = vst [vmem:[#allocation63_spill] sm:$0xff] %v8539_v56 }
 0x2ee   :  { %16978 = vst [vmem:[#allocation64_spill] sm:$0xff] %v8541_v41  ;;  %v8667_v41 = vmul.f32 %v8309_v36, %v8583_v25 }
 0x2ef   :  { %16979 = vst [vmem:[#allocation65_spill] sm:$0xff] %v8543_v4 }
 0x2f0   :  { %16980 = vst [vmem:[#allocation66_spill] sm:$0xff] %v8547_v53  ;;  %v8569_v53 = vmul.f32 %v8309_v36, %v8367_v47  ;;  %v8591_v47 = vmul.f32 %v8316_v26, %v8521_v48 }
 0x2f1   :  { %16981 = vst [vmem:[#allocation67_spill] sm:$0xff] %v8561_v7 }
 0x2f2   :  { %16982 = vst [vmem:[#allocation68_spill] sm:$0xff] %v8563_v33 }
 0x2f3   :  { %16983 = vst [vmem:[#allocation69_spill] sm:$0xff] %v8565_v34 }
 0x2f4   :  { %16984 = vst [vmem:[#allocation70_spill] sm:$0xff] %v8583_v25  ;;  %v8687_v25 = vmul.f32 %v8309_v36, %v8607_v28 }
 0x2f5   :  { %16985 = vst [vmem:[#allocation71_spill] sm:$0xff] %v8585_v23 }
 0x2f6   :  { %16986 = vst [vmem:[#allocation72_spill] sm:$0xff] %v8587_v46 }
 0x2f7   :  { %16987 = vst [vmem:[#allocation73_spill] sm:$0xff] %v8591_v47  ;;  %v8613_v47 = vmul.f32 %v8316_v26, %v8543_v4 }
 0x2f8   :  { %16988 = vst [vmem:[#allocation74_spill] sm:$0xff] %v8599_v2  ;;  %v17131_v2 = vld [vmem:[#allocation58_spill] sm:$0xff] }
 0x2f9   :  { %16989 = vst [vmem:[#allocation75_spill] sm:$0xff] %v8603_v39 }
 0x2fa   :  { %16990 = vst [vmem:[#allocation76_spill] sm:$0xff] %v8605_v43 }
 0x2fb   :  { %16991 = vst [vmem:[#allocation77_spill] sm:$0xff] %v8607_v28  ;;  %v8707_v28 = vld [vmem:[#allocation2 + $0x268] sm:$0x3] }
 0x2fc   :  { %16992 = vst [vmem:[#allocation78_spill] sm:$0xff] %v8609_v22 }
 0x2fd   :  { %16993 = vst [vmem:[#allocation79_spill] sm:$0xff] %v8613_v47  ;;  %v8635_v47 = vmul.f32 %v8316_v26, %v8563_v33 }
 0x2fe   :  { %16994 = vst [vmem:[#allocation80_spill] sm:$0xff] %v8621_v10  ;;  %v8643_v10 = vmul.f32 %v8309_v36, %v8539_v56  ;;  %v8663_v56 = vmul.f32 %v8309_v36, %v8561_v7  ;;  %v8683_v7 = vmul.f32 %v8309_v36, %v8605_v43  ;;  %v8705_v43 = vmul.f32 %v8309_v36, %v8629_v44 }
 0x2ff   :  { %16995 = vst [vmem:[#allocation81_spill] sm:$0xff] %v8625_v18 }
 0x300   :  { %16996 = vst [vmem:[#allocation82_spill] sm:$0xff] %v8627_v14 }
 0x301   :  { %16997 = vst [vmem:[#allocation83_spill] sm:$0xff] %v8629_v44  ;;  %v8725_v44 = vmul.f32 %v8309_v36, %v8563_v33  ;;  %v8745_v33 = vmul.f32 %v8309_v36, %v8585_v23  ;;  %v8765_v23 = vmul.f32 %v8309_v36, %v8609_v22  ;;  %v8787_v22 = vmul.f32 %v8309_v36, %v8651_v57 }
 0x302   :  { %16998 = vst [vmem:[#allocation84_spill] sm:$0xff] %v8631_v42 }
 0x303   :  { %16999 = vst [vmem:[#allocation85_spill] sm:$0xff] %v8635_v47  ;;  %v8659_v47 = vmul.f32 %v8316_v26, %v8587_v46 }
 0x304   :  { %17000 = vst [vmem:[#allocation86_spill] sm:$0xff] %v8639_v20  ;;  %v8669_v20 = vld [vmem:[#allocation2 + $0x238] sm:$0x3] }
 0x305   :  { %17001 = vst [vmem:[#allocation87_spill] sm:$0xff] %v8647_v62 }
 0x306   :  { %17002 = vst [vmem:[#allocation88_spill] sm:$0xff] %v8649_v58 }
 0x307   :  { %17003 = vst [vmem:[#allocation89_spill] sm:$0xff] %v8651_v57  ;;  %v1822_v57 = vrot.slane %v8481_v1, 1 }
 0x308   :  { %17004 = vst [vmem:[#allocation90_spill] sm:$0xff] %v8655_v24  ;;  %v8679_v24 = vmul.f32 %v8309_v36, %v8477_v51  ;;  %v8701_v51 = vmul.f32 %v8309_v36, %v8627_v14  ;;  %v8721_v14 = vmul.f32 %v8309_v36, %v8649_v58  ;;  %v8741_v58 = vmul.f32 %v8309_v36, %v8669_v20 }
 0x309   :  { %17005 = vst [vmem:[#allocation91_spill] sm:$0xff] %v8659_v47  ;;  %v8689_v47 = vld [vmem:[#allocation2 + $0x250] sm:$0x3] }
 0x30a   :  { %17006 = vst [vmem:[#allocation92_spill] sm:$0xff] %v8663_v56  ;;  %v17127_v56 = vld [vmem:[#allocation24_spill] sm:$0xff] }
 0x30b   :  { %17007 = vst [vmem:[#allocation93_spill] sm:$0xff] %v8667_v41  ;;  %v17126_v41 = vld [vmem:[#allocation57_spill] sm:$0xff]  ;;  %v9114_v62 = vmul.f32 %v8313_v55, %v17127_v56 }
 0x30c   :  { %17008 = vst [vmem:[#allocation94_spill] sm:$0xff] %v8669_v20  ;;  %v8761_v20 = vmul.f32 %v8316_v26, %v8709_v17 }
 0x30d   :  { %17009 = vst [vmem:[#allocation95_spill] sm:$0xff] %v8671_v9 }
 0x30e   :  { %17010 = vst [vmem:[#allocation96_spill] sm:$0xff] %v8675_v8  ;;  %v8697_v8 = vmul.f32 %v8309_v36, %v8521_v48  ;;  %v8717_v48 = vmul.f32 %v8309_v36, %v8543_v4  ;;  %v8749_v4 = vmul.f32 %v8309_v36, %v8587_v46  ;;  %v8769_v46 = vmul.f32 %v8309_v36, %v8631_v42 }
 0x30f   :  { %17011 = vst [vmem:[#allocation97_spill] sm:$0xff] %v8679_v24  ;;  %v8791_v42 = vmul.f32 %v8309_v36, %v8671_v9  ;;  %v9110_v24 = vmul.f32 %v8313_v55, %v17126_v41 }
 0x310   :  { %17012 = vst [vmem:[#allocation98_spill] sm:$0xff] %v8683_v7  ;;  %v17125_v7 = vld [vmem:[#allocation23_spill] sm:$0xff] }
 0x311   :  { %17013 = vst [vmem:[#allocation99_spill] sm:$0xff] %v8687_v25 }
 0x312   :  { %17014 = vst [vmem:[#allocation100_spill] sm:$0xff] %v8689_v47 }
 0x313   :  { %17015 = vst [vmem:[#allocation101_spill] sm:$0xff] %v8693_v19  ;;  %v8727_v19 = vld [vmem:[#allocation2 + $0x280] sm:$0x3] }
 0x314   :  { %17016 = vst [vmem:[#allocation102_spill] sm:$0xff] %v8697_v8 }
 0x315   :  { %17017 = vst [vmem:[#allocation103_spill] sm:$0xff] %v8705_v43  ;;  %v8733_v43 = vmul.f32 %v8316_v26, %v8671_v9 }
 0x316   :  { %17018 = vst [vmem:[#allocation104_spill] sm:$0xff] %v8707_v28 }
 0x317   :  { %17019 = vst [vmem:[#allocation105_spill] sm:$0xff] %v8709_v17 }
 0x318   :  { %17020 = vst [vmem:[#allocation106_spill] sm:$0xff] %v8713_v15  ;;  %v8737_v15 = vmul.f32 %v8309_v36, %v8565_v34  ;;  %v1817_v34 = vrot.slane %v8465_v31, 1  ;;  %v8777_v31 = vld [vmem:[#allocation2 + $0x2a8] sm:$0xff] }
 0x319   :  { %17021 = vst [vmem:[#allocation107_spill] sm:$0xff] %v8717_v48  ;;  %v8779_v48 = vld [vmem:[#allocation2 + $0x2b0] sm:$0x3] }
 0x31a   :  { %17022 = vst [vmem:[#allocation108_spill] sm:$0xff] %v8721_v14  ;;  %v8757_v14 = vld [vmem:[#allocation2 + $0x298] sm:$0x3]  ;;  %v8830_v1 = vmul.f32 %v8309_v36, %v8779_v48 }
 0x31b   :  { %17023 = vst [vmem:[#allocation109_spill] sm:$0xff] %v8725_v44  ;;  %v8753_v44 = vmul.f32 %v8309_v36, %v8689_v47  ;;  %v8773_v47 = vmul.f32 %v8309_v36, %v8707_v28  ;;  %v8795_v28 = vmul.f32 %v8309_v36, %v8727_v19 }
 0x31c   :  { %17024 = vst [vmem:[#allocation110_spill] sm:$0xff] %v8727_v19  ;;  %v1826_v19 = vrot.slane %v8489_v63, 1  ;;  %v8838_v63 = vmul.f32 %v8313_v55, %v8332_v27 }
 0x31d   :  { %17025 = vst [vmem:[#allocation111_spill] sm:$0xff] %v8729_v40 }
 0x31e   :  { %17026 = vst [vmem:[#allocation112_spill] sm:$0xff] %v8733_v43  ;;  %v1816_v43 = vrot.slane %v8461_v52, 1  ;;  %v8775_v52 = vld [vmem:[#allocation2 + $0x2a0] sm:$0xff] }
 0x31f   :  { %17027 = vst [vmem:[#allocation113_spill] sm:$0xff] %v8737_v15 }
 0x320   :  { %17028 = vst [vmem:[#allocation114_spill] sm:$0xff] %v8757_v14  ;;  %v1818_v9 = vsel %vm1810_vm8, %v1816_v43, %v1817_v34  ;;  %v8826_v43 = vmul.f32 %v8309_v36, %v8777_v31 }
 0x321   :  { %17029 = vst [vmem:[#allocation115_spill] sm:$0xff] %v8761_v20  ;;  %v8783_v20 = vmul.f32 %v8316_v26, %v8729_v40  ;;  %v1819_v26 = vrot.slane %v8469_v11, 1  ;;  %v8818_v11 = vmul.f32 %v8309_v36, %v8757_v14 }
 0x322   :  { %17030 = vst [vmem:[#allocation116_spill] sm:$0xff] %v8769_v46  ;;  %v8801_v46 = vmul.f32 %v8309_v36, %v8709_v17  ;;  %v8814_v17 = vmul.f32 %v8309_v36, %v8729_v40  ;;  %v1829_v40 = vrot.slane %v8503_v45, 1  ;;  %v1846_v45 = vrot.slane %v8559_v21, 1 }
 0x323   :  { %17031 = vst [vmem:[#allocation117_spill] sm:$0xff] %v8773_v47  ;;  %v8797_v47 = vld [vmem:[#allocation2 + $0x2c8] sm:$0x3]  ;;  %v16410_v21 = vrot.slane %v8625_v18, 1  ;;  %v17129_v18 = vld [vmem:[#allocation12_spill] sm:$0xff] }
 0x324   :  { %17032 = vst [vmem:[#allocation118_spill] sm:$0xff] %v8775_v52 }
 0x325   :  { %17033 = vst [vmem:[#allocation119_spill] sm:$0xff] %v8777_v31  ;;  %v5581_v31 = vld [vmem:[%s16264_s8] sm:$0xff] }
 0x326   :  { %17034 = vst [vmem:[#allocation120_spill] sm:$0xff] %v8779_v48 }
 0x327   :  { %17035 = vst [vmem:[#allocation121_spill] sm:$0xff] %v8783_v20  ;;  %v1821_v20 = vrot.slane %v8473_v50, 1  ;;  %v8822_v50 = vmul.f32 %v8309_v36, %v8775_v52 }
 0x328   :  { %17036 = vst [vmem:[#allocation122_spill] sm:$0xff] %v8787_v22  ;;  %v8806_v22 = vld [vmem:[#allocation2 + $0x2e0] sm:$0x3] }
 0x329   :  { %17037 = vst [vmem:[#allocation123_spill] sm:$0xff] %v8791_v42  ;;  %v1824_v42 = vrot.slane %v8485_v60, 1  ;;  %v8834_v60 = vmul.f32 %v8309_v36, %v8797_v47  ;;  %v8852_v52 = vmul.f32 %v8309_v36, %v8806_v22  ;;  %v8858_v27 = vsel %vm1810_vm8, %v1821_v20, %v1822_v57 }
 0x32a   :  { %17038 = vst [vmem:[#allocation124_spill] sm:$0xff] %v8795_v28  ;;  %v1827_v28 = vrot.slane %v8493_v32, 1  ;;  %v8842_v32 = vmul.f32 %v8313_v55, %v8334_v12  ;;  %v8861_v12 = vadd.f32 %v1818_v9, %v8373_v3  ;;  %v1831_v36 = vrot.slane %v8507_v38, 1 }
 0x32b   :  { %17039 = vst [vmem:[#allocation125_spill] sm:$0xff] %v8797_v47  ;;  %v8855_v47 = vsel %vm1810_vm8, %v1817_v34, %v1819_v26  ;;  %v8864_v48 = vsel %vm1810_vm8, %v1822_v57, %v1824_v42  ;;  %v1832_v26 = vrot.slane %v8511_v29, 1  ;;  %v1834_v34 = vrot.slane %v8515_v35, 1 }
 0x32c   :  { %17040 = vst [vmem:[#allocation126_spill] sm:$0xff] %v8801_v46  ;;  %v8867_v14 = vsel %vm1810_vm8, %v1826_v19, %v1827_v28  ;;  %v1836_v20 = vrot.slane %v8525_v49, 1  ;;  %v1837_v3 = vrot.slane %v8529_v54, 1  ;;  %v1839_v9 = vrot.slane %v8533_v37, 1  ;;  %v17121_v46 = vld [vmem:[#allocation19_spill] sm:$0xff] }
 0x32d   :  { %17041 = vst [vmem:[#allocation127_spill] sm:$0xff] %v8814_v17  ;;  %v1841_v57 = vrot.slane %v8537_v5, 1  ;;  %v1842_v19 = vrot.slane %v8551_v59, 1  ;;  %v1844_v42 = vrot.slane %v8555_v61, 1  ;;  %v1847_v38 = vrot.slane %v8569_v53, 1 }
 0x32e   :  { %17042 = vst [vmem:[#allocation128_spill] sm:$0xff] %v8822_v50  ;;  %v5582_v50 = vld [vmem:[%s16264_s8 + $0x8] sm:$0xff]  ;;  %v1849_v29 = vrot.slane %v8573_v0, 1  ;;  %v1851_v35 = vrot.slane %v8577_v6, 1  ;;  %v1852_v49 = vrot.slane %v8581_v13, 1  ;;  %v1854_v54 = vrot.slane %v8595_v16, 1 }
 0x32f   :  { %17043 = vst [vmem:[#allocation129_spill] sm:$0xff] %v8826_v43  ;;  %5607 = vmatpush.msrb.mxu1 %v5582_v50  ;;  %v16411_v37 = vrot.slane %v8603_v39, 1  ;;  %v1859_v5 = vrot.slane %v8617_v30, 1  ;;  %v1830_v59 = vsel %vm1810_vm8, %v1827_v28, %v1829_v40  ;;  %v1833_v61 = vsel %vm1810_vm8, %v1831_v36, %v1832_v26 }
 0x330   :  { %17044 = vst [vmem:[#allocation130_spill] sm:$0xff] %v8834_v60  ;;  %v1864_v53 = vrot.slane %v8643_v10, 1  ;;  %v1835_v0 = vsel %vm1810_vm8, %v1832_v26, %v1834_v34  ;;  %v1838_v6 = vsel %vm1810_vm8, %v1836_v20, %v1837_v3  ;;  %v1840_v13 = vsel %vm1810_vm8, %v1837_v3, %v1839_v9  ;;  %v17049_v3 = vld [vmem:[#allocation116_spill] sm:$0xff]  ;;  %v17050_v9 = vld [vmem:[#allocation117_spill] sm:$0xff]  ;;  %v17051_v26 = vld [vmem:[#allocation122_spill] sm:$0xff] }
 0x331   :  { %17045 = vst [vmem:[#allocation131_spill] sm:$0xff] %v8852_v52  ;;  %5608 = vmatpush.msrb.mxu1 %v5581_v31  ;;  %v1843_v16 = vsel %vm1810_vm8, %v1841_v57, %v1842_v19  ;;  %v1845_v31 = vsel %vm1810_vm8, %v1842_v19, %v1844_v42  ;;  %v1848_v30 = vsel %vm1810_vm8, %v1846_v45, %v1847_v38  ;;  %v1909_v45 = vrot.slane %v8701_v51, 1  ;;  %v17053_v36 = vld [vmem:[#allocation124_spill] sm:$0xff]  ;;  %v17118_v52 = vld [vmem:[#allocation30_spill] sm:$0xff] }
 0x332   :  { %v1850_v40 = vsel %vm1810_vm8, %v1847_v38, %v1849_v29  ;;  %v8900_v28 = vsel %vm1810_vm8, %v1851_v35, %v1852_v49  ;;  %v1855_v10 = vsel %vm1810_vm8, %v1852_v49, %v1854_v54  ;;  %v1860_v50 = vsel %vm1810_vm8, %v16411_v37, %v1859_v5  ;;  %v17124_v38 = vld [vmem:[#allocation35_spill] sm:$0xff] }
 0x333   :  { %17046 = vst [vmem:[#allocation132_spill] sm:$0xff] %v8900_v28  ;;  %v8910_v34 = vsel %vm1810_vm8, %v16410_v21, %v1864_v53  ;;  %v1919_v49 = vrot.slane %v8741_v58, 1  ;;  %v1921_v54 = vrot.slane %v8745_v33, 1  ;;  %v1922_v5 = vrot.slane %v8749_v4, 1  ;;  %v17052_v21 = vld [vmem:[#allocation123_spill] sm:$0xff] }
 0x334   :  { %17047 = vst [vmem:[#allocation133_spill] sm:$0xff] %v8910_v34  ;;  %v1924_v53 = vrot.slane %v8753_v44, 1  ;;  %v1926_v57 = vrot.slane %v8765_v23, 1  ;;  %v1927_v19 = vrot.slane %v17049_v3, 1  ;;  %v1929_v20 = vrot.slane %v17050_v9, 1  ;;  %v17122_v34 = vld [vmem:[#allocation33_spill] sm:$0xff] }
 0x335   :  { %v1931_v51 = vrot.slane %v17051_v26, 1  ;;  %v1932_v29 = vrot.slane %v17052_v21, 1  ;;  %v1934_v37 = vrot.slane %v17053_v36, 1  ;;  %v1939_v44 = vrot.slane %v8818_v11, 1 }
 0x336   :  { %v17056_v23 = vrot.slane %v8697_v8, 1  ;;  %v1944_v21 = vrot.slane %v8830_v1, 1  ;;  %v17058_v36 = vrot.slane %v8737_v15, 1  ;;  %v1923_v33 = vsel %vm1810_vm8, %v1921_v54, %v1922_v5  ;;  %v17120_v8 = vld [vmem:[#allocation54_spill] sm:$0xff]  ;;  %v17123_v15 = vld [vmem:[#allocation55_spill] sm:$0xff] }
 0x337   :  { %v1925_v4 = vsel %vm1810_vm8, %v1922_v5, %v1924_v53  ;;  %v1928_v11 = vsel %vm1810_vm8, %v1926_v57, %v1927_v19  ;;  %v1930_v28 = vsel %vm1810_vm8, %v1927_v19, %v1929_v20  ;;  %v17060_v1 = vrot.slane %v8814_v17, 1  ;;  %v17061_v5 = vld [vmem:[#allocation10_spill] sm:$0xff]  ;;  %v17066_v53 = vld [vmem:[#allocation8_spill] sm:$0xff] }
 0x338   :  { %v1910_v3 = vsel %vm1810_vm8, %v17056_v23, %v1909_v45  ;;  %v1920_v58 = vsel %vm1810_vm8, %v17058_v36, %v1919_v49  ;;  %v8949_v45 = vsel %vm1810_vm8, %v1931_v51, %v1932_v29  ;;  %v1935_v23 = vsel %vm1810_vm8, %v1932_v29, %v1934_v37  ;;  %v17064_v37 = vld [vmem:[#allocation7_spill] sm:$0xff]  ;;  %v17076_v49 = vld [vmem:[#allocation41_spill] sm:$0xff] }
 0x339   :  { %17059 = vst [vmem:[#allocation116_spill] sm:$0xff] %v8949_v45  ;;  %v1940_v26 = vsel %vm1810_vm8, %v17060_v1, %v1939_v44  ;;  %v8960_v57 = vadd.f32 %v8855_v47, %v17061_v5  ;;  %v17062_v20 = vrot.slane %v8826_v43, 1  ;;  %v8969_v29 = vadd.f32 %v8858_v27, %v17064_v37  ;;  %v17068_v44 = vld [vmem:[#allocation36_spill] sm:$0xff]  ;;  %v17070_v1 = vld [vmem:[#allocation37_spill] sm:$0xff]  ;;  %v17072_v5 = vld [vmem:[#allocation39_spill] sm:$0xff] }
 0x33a   :  { %v8973_v51 = vadd.f32 %v8864_v48, %v17066_v53  ;;  %v8977_v36 = vadd.f32 %v8867_v14, %v17068_v44  ;;  %v8980_v47 = vadd.f32 %v1830_v59, %v17070_v1  ;;  %v8983_v54 = vadd.f32 %v1833_v61, %v17072_v5  ;;  %v17078_v37 = vld [vmem:[#allocation42_spill] sm:$0xff]  ;;  %v17080_v48 = vld [vmem:[#allocation44_spill] sm:$0xff]  ;;  %v17082_v14 = vld [vmem:[#allocation45_spill] sm:$0xff] }
 0x33b   :  { %v8965_v19 = vsel %vm1810_vm8, %v17062_v20, %v1944_v21  ;;  %17065 = vst [vmem:[#allocation122_spill] sm:$0xff] %v8969_v29  ;;  %v17074_v21 = vld [vmem:[#allocation40_spill] sm:$0xff]  ;;  %v8989_v27 = vadd.f32 %v1838_v6, %v17076_v49  ;;  %v8992_v9 = vadd.f32 %v1840_v13, %v17078_v37  ;;  %v8995_v53 = vadd.f32 %v1843_v16, %v17080_v48  ;;  %v17084_v59 = vld [vmem:[#allocation46_spill] sm:$0xff]  ;;  %v17086_v61 = vld [vmem:[#allocation47_spill] sm:$0xff] }
 0x33c   :  { %17063 = vst [vmem:[#allocation117_spill] sm:$0xff] %v8965_v19  ;;  %v8986_v20 = vadd.f32 %v1835_v0, %v17074_v21  ;;  %v8998_v44 = vadd.f32 %v1845_v31, %v17082_v14  ;;  %v9001_v1 = vadd.f32 %v1848_v30, %v17084_v59  ;;  %v9004_v5 = vadd.f32 %v1850_v40, %v17086_v61  ;;  %v17088_v0 = vld [vmem:[#allocation51_spill] sm:$0xff]  ;;  %v17090_v6 = vld [vmem:[#allocation53_spill] sm:$0xff]  ;;  %v17094_v16 = vld [vmem:[#allocation86_spill] sm:$0xff] }
 0x33d   :  { %17067 = vst [vmem:[#allocation123_spill] sm:$0xff] %v8973_v51  ;;  %v9007_v21 = vadd.f32 %v1855_v10, %v17088_v0  ;;  %v9010_v49 = vadd.f32 %v1860_v50, %v17090_v6  ;;  %v17092_v13 = vld [vmem:[#allocation73_spill] sm:$0xff]  ;;  %v9016_v48 = vadd.f32 %v1920_v58, %v17094_v16  ;;  %v17096_v31 = vld [vmem:[#allocation90_spill] sm:$0xff]  ;;  %v17098_v30 = vld [vmem:[#allocation91_spill] sm:$0xff]  ;;  %v9078_v60 = vmul.f32 %v8313_v55, %v17118_v52 }
 0x33e   :  { %17069 = vst [vmem:[#allocation124_spill] sm:$0xff] %v8977_v36  ;;  %v9013_v37 = vadd.f32 %v1910_v3, %v17092_v13  ;;  %v9019_v14 = vadd.f32 %v1923_v33, %v17096_v31  ;;  %v9022_v59 = vadd.f32 %v1925_v4, %v17098_v30  ;;  %v17100_v40 = vld [vmem:[#allocation96_spill] sm:$0xff]  ;;  %v17102_v10 = vld [vmem:[#allocation101_spill] sm:$0xff]  ;;  %v17108_v58 = vld [vmem:[#allocation38_spill] sm:$0xff]  ;;  %v9086_v25 = vmul.f32 %v8313_v55, %v17120_v8 }
 0x33f   :  { %17071 = vst [vmem:[#allocation10_spill] sm:$0xff] %v8980_v47  ;;  %v9025_v61 = vadd.f32 %v1928_v11, %v17100_v40  ;;  %v9028_v0 = vadd.f32 %v1930_v28, %v17102_v10  ;;  %v17104_v50 = vld [vmem:[#allocation112_spill] sm:$0xff]  ;;  %v17106_v3 = vld [vmem:[#allocation121_spill] sm:$0xff]  ;;  %v9038_v16 = vmul.f32 %v8313_v55, %v17108_v58  ;;  %v17109_v33 = vld [vmem:[#allocation26_spill] sm:$0xff]  ;;  %v9090_v17 = vmul.f32 %v8313_v55, %v17121_v46 }
 0x340   :  { %17073 = vst [vmem:[#allocation7_spill] sm:$0xff] %v8983_v54  ;;  %v9031_v6 = vadd.f32 %v1935_v23, %v17104_v50  ;;  %v9034_v13 = vadd.f32 %v1940_v26, %v17106_v3  ;;  %v9042_v4 = vmul.f32 %v8313_v55, %v17109_v33  ;;  %v17110_v31 = vld [vmem:[#allocation27_spill] sm:$0xff]  ;;  %v17112_v23 = vld [vmem:[#allocation28_spill] sm:$0xff]  ;;  %v17113_v40 = vld [vmem:[#allocation29_spill] sm:$0xff]  ;;  %v9098_v42 = vmul.f32 %v8313_v55, %v17123_v15 }
 0x341   :  { %17075 = vst [vmem:[#allocation8_spill] sm:$0xff] %v8986_v20  ;;  %v9046_v11 = vmul.f32 %v8313_v55, %v17110_v31  ;;  %v17111_v28 = vld [vmem:[#allocation43_spill] sm:$0xff]  ;;  %v9054_v26 = vmul.f32 %v8313_v55, %v17112_v23  ;;  %v9058_v10 = vmul.f32 %v8313_v55, %v17113_v40  ;;  %v17114_v50 = vld [vmem:[#allocation48_spill] sm:$0xff]  ;;  %v17115_v58 = vld [vmem:[#allocation17_spill] sm:$0xff]  ;;  %v9102_v35 = vmul.f32 %v8313_v55, %v17124_v38 }
 0x342   :  { %17077 = vst [vmem:[#allocation36_spill] sm:$0xff] %v8989_v27  ;;  %v9050_v30 = vmul.f32 %v8313_v55, %v17111_v28  ;;  %v9062_v3 = vmul.f32 %v8313_v55, %v17114_v50  ;;  %v17117_v19 = vld [vmem:[#allocation49_spill] sm:$0xff]  ;;  %v17119_v43 = vld [vmem:[#allocation32_spill] sm:$0xff]  ;;  %v9106_v8 = vmul.f32 %v8313_v55, %v17125_v7  ;;  %v9118_v15 = vmul.f32 %v8313_v55, %v17129_v18  ;;  %v17136_v46 = vld [vmem:[#allocation59_spill] sm:$0xff] }
 0x343   :  { %17079 = vst [vmem:[#allocation37_spill] sm:$0xff] %v8992_v9  ;;  %v9074_v45 = vmul.f32 %v8313_v55, %v17117_v19  ;;  %v9082_v50 = vmul.f32 %v8313_v55, %v17119_v43  ;;  %v9094_v19 = vmul.f32 %v8313_v55, %v17122_v34  ;;  %v9122_v39 = vmul.f32 %v8313_v55, %v17131_v2  ;;  %v17132_v38 = vld [vmem:[#allocation13_spill] sm:$0xff]  ;;  %v17134_v34 = vld [vmem:[#allocation15_spill] sm:$0xff]  ;;  %v17139_v52 = vld [vmem:[#allocation64_spill] sm:$0xff] }
 0x344   :  { %17081 = vst [vmem:[#allocation39_spill] sm:$0xff] %v8995_v53  ;;  %v9126_v7 = vmul.f32 %v8313_v55, %v17132_v38  ;;  %v9130_v41 = vmul.f32 %v8313_v55, %v17134_v34  ;;  %v9134_v56 = vmul.f32 %v8313_v55, %v17136_v46  ;;  %v17137_v43 = vld [vmem:[#allocation63_spill] sm:$0xff]  ;;  %v9142_v2 = vmul.f32 %v8313_v55, %v17139_v52  ;;  %v17145_v40 = vld [vmem:[#allocation56_spill] sm:$0xff]  ;;  %v17149_v31 = vld [vmem:[#allocation77_spill] sm:$0xff] }
 0x345   :  { %17083 = vst [vmem:[#allocation40_spill] sm:$0xff] %v8998_v44  ;;  %v9138_v18 = vmul.f32 %v8313_v55, %v17137_v43  ;;  %v9154_v46 = vmul.f32 %v8313_v55, %v17145_v40  ;;  %v17147_v23 = vld [vmem:[#allocation76_spill] sm:$0xff]  ;;  %v9162_v52 = vmul.f32 %v8313_v55, %v17149_v31  ;;  %v17151_v33 = vld [vmem:[#allocation62_spill] sm:$0xff]  ;;  %v17173_v44 = vld [vmem:[#allocation95_spill] sm:$0xff]  ;;  %v2301_v47 = vrot.slane %v9038_v16, 2 }
 0x346   :  { %17085 = vst [vmem:[#allocation41_spill] sm:$0xff] %v9001_v1  ;;  %v9158_v43 = vmul.f32 %v8313_v55, %v17147_v23  ;;  %v2298_v1 = vrot.slane %v8838_v63, 2  ;;  %v17175_v53 = vld [vmem:[#allocation110_spill] sm:$0xff]  ;;  %v17176_v9 = vld [vmem:[#allocation105_spill] sm:$0xff]  ;;  %v17178_v27 = vld [vmem:[#allocation111_spill] sm:$0xff]  ;;  %v2304_v36 = vrot.slane %v9046_v11, 2 }
 0x347   :  { %17087 = vst [vmem:[#allocation42_spill] sm:$0xff] %v9004_v5  ;;  %v17171_v5 = vld [vmem:[#allocation89_spill] sm:$0xff]  ;;  %v17180_v20 = vld [vmem:[#allocation114_spill] sm:$0xff]  ;;  %v2311_v29 = vrot.slane %v9062_v3, 2  ;;  %v2316_v16 = vrot.slane %v9074_v45, 2  ;;  %v2319_v11 = vrot.slane %v9082_v50, 2 }
 0x348   :  { %17089 = vst [vmem:[#allocation44_spill] sm:$0xff] %v9007_v21  ;;  %v17170_v21 = vld [vmem:[#allocation104_spill] sm:$0xff]  ;;  %v9244_v63 = vmul.f32 %v8313_v55, %v17180_v20  ;;  %v17183_v54 = vld [vmem:[#allocation125_spill] sm:$0xff]  ;;  %v2306_v20 = vrot.slane %v9050_v30, 2  ;;  %v2321_v30 = vrot.slane %v9086_v25, 2  ;;  %v2328_v3 = vrot.slane %v9102_v35, 2 }
 0x349   :  { %17091 = vst [vmem:[#allocation45_spill] sm:$0xff] %v9010_v49  ;;  %v17169_v49 = vld [vmem:[#allocation84_spill] sm:$0xff]  ;;  %v16434_v50 = vrot.slane %v9118_v15, 2  ;;  %v2336_v25 = vrot.slane %v9122_v39, 2 }
 0x34a   :  { %17093 = vst [vmem:[#allocation46_spill] sm:$0xff] %v9013_v37  ;;  %v17116_v37 = vld [vmem:[#allocation14_spill] sm:$0xff] }
 0x34b   :  { %17095 = vst [vmem:[#allocation47_spill] sm:$0xff] %v9016_v48  ;;  %v9070_v28 = vmul.f32 %v8313_v55, %v17116_v37  ;;  %v17141_v37 = vld [vmem:[#allocation67_spill] sm:$0xff]  ;;  %v17168_v48 = vld [vmem:[#allocation78_spill] sm:$0xff] }
 0x34c   :  { %17097 = vst [vmem:[#allocation51_spill] sm:$0xff] %v9019_v14  ;;  %v9066_v14 = vmul.f32 %v8313_v55, %v17115_v58  ;;  %v9146_v38 = vmul.f32 %v8313_v55, %v17141_v37  ;;  %v17143_v58 = vld [vmem:[#allocation70_spill] sm:$0xff]  ;;  %v9166_v37 = vmul.f32 %v8313_v55, %v17151_v33 }
 0x34d   :  { %17099 = vst [vmem:[#allocation53_spill] sm:$0xff] %v9022_v59  ;;  %v9150_v34 = vmul.f32 %v8313_v55, %v17143_v58  ;;  %v17167_v59 = vld [vmem:[#allocation100_spill] sm:$0xff] }
 0x34e   :  { %17101 = vst [vmem:[#allocation73_spill] sm:$0xff] %v9025_v61  ;;  %v17164_v61 = vld [vmem:[#allocation94_spill] sm:$0xff] }
 0x34f   :  { %17103 = vst [vmem:[#allocation86_spill] sm:$0xff] %v9028_v0  ;;  %v17162_v0 = vld [vmem:[#allocation69_spill] sm:$0xff] }
 0x350   :  { %17105 = vst [vmem:[#allocation90_spill] sm:$0xff] %v9031_v6  ;;  %v17160_v6 = vld [vmem:[#allocation68_spill] sm:$0xff] }
 0x351   :  { %17107 = vst [vmem:[#allocation91_spill] sm:$0xff] %v9034_v13  ;;  %v17158_v13 = vld [vmem:[#allocation88_spill] sm:$0xff]  ;;  %v9186_v33 = vmul.f32 %v8313_v55, %v17160_v6  ;;  %v9206_v6 = vmul.f32 %v8313_v55, %v17167_v59  ;;  %v2299_v59 = vrot.slane %v8842_v32, 2 }
 0x352   :  { %17128 = vst [vmem:[#allocation96_spill] sm:$0xff] %v9114_v62  ;;  %v9182_v31 = vmul.f32 %v8313_v55, %v17158_v13  ;;  %v17181_v32 = vld [vmem:[#allocation120_spill] sm:$0xff]  ;;  %v17234_v62 = vld [vmem:[#allocation89_spill] sm:$0xff] }
 0x353   :  { %17130 = vst [vmem:[#allocation101_spill] sm:$0xff] %v9118_v15  ;;  %v9263_v51 = vsel %vm2292_vm9, %v2298_v1, %v2299_v59  ;;  %v2323_v1 = vrot.slane %v9090_v17, 2  ;;  %v2302_v45 = vsel %vm2292_vm9, %v2299_v59, %v2301_v47  ;;  %v2307_v17 = vsel %vm2292_vm9, %v2304_v36, %v2306_v20 }
 0x354   :  { %17133 = vst [vmem:[#allocation112_spill] sm:$0xff] %v9126_v7  ;;  %v2322_v47 = vsel %vm2292_vm9, %v2319_v11, %v2321_v30  ;;  %v17233_v7 = vld [vmem:[#allocation84_spill] sm:$0xff] }
 0x355   :  { %17135 = vst [vmem:[#allocation121_spill] sm:$0xff] %v9130_v41 }
 0x356   :  { %17138 = vst [vmem:[#allocation38_spill] sm:$0xff] %v9138_v18 }
 0x357   :  { %17140 = vst [vmem:[#allocation43_spill] sm:$0xff] %v9142_v2  ;;  %v17231_v2 = vld [vmem:[#allocation78_spill] sm:$0xff] }
 0x358   :  { %17142 = vst [vmem:[#allocation48_spill] sm:$0xff] %v9146_v38  ;;  %v17153_v38 = vld [vmem:[#allocation82_spill] sm:$0xff] }
 0x359   :  { %17144 = vst [vmem:[#allocation49_spill] sm:$0xff] %v9150_v34  ;;  %v9170_v58 = vmul.f32 %v8313_v55, %v17153_v38  ;;  %v17154_v34 = vld [vmem:[#allocation83_spill] sm:$0xff]  ;;  %v9190_v38 = vmul.f32 %v8313_v55, %v17162_v0  ;;  %v9210_v0 = vmul.f32 %v8313_v55, %v17168_v48  ;;  %v9228_v48 = vmul.f32 %v8313_v55, %v17173_v44 }
 0x35a   :  { %17146 = vst [vmem:[#allocation54_spill] sm:$0xff] %v9154_v46  ;;  %v9174_v40 = vmul.f32 %v8313_v55, %v17154_v34  ;;  %v17156_v46 = vld [vmem:[#allocation65_spill] sm:$0xff]  ;;  %v9194_v34 = vmul.f32 %v8313_v55, %v17164_v61  ;;  %v9214_v61 = vmul.f32 %v8313_v55, %v17169_v49  ;;  %v9232_v49 = vmul.f32 %v8313_v55, %v17175_v53 }
 0x35b   :  { %17148 = vst [vmem:[#allocation55_spill] sm:$0xff] %v9158_v43  ;;  %v9178_v23 = vmul.f32 %v8313_v55, %v17156_v46  ;;  %v9248_v44 = vmul.f32 %v8313_v55, %v17181_v32  ;;  %v9252_v53 = vmul.f32 %v8313_v55, %v17183_v54  ;;  %v2308_v32 = vrot.slane %v9054_v26, 2 }
 0x35c   :  { %17150 = vst [vmem:[#allocation57_spill] sm:$0xff] %v9162_v52  ;;  %v2309_v54 = vrot.slane %v9058_v10, 2  ;;  %v2324_v26 = vrot.slane %v9094_v19, 2  ;;  %v2326_v10 = vrot.slane %v9098_v42, 2  ;;  %v16431_v30 = vrot.slane %v9190_v38, 2  ;;  %v17230_v52 = vld [vmem:[#allocation72_spill] sm:$0xff] }
 0x35d   :  { %17152 = vst [vmem:[#allocation58_spill] sm:$0xff] %v9166_v37 }
 0x35e   :  { %17155 = vst [vmem:[#allocation59_spill] sm:$0xff] %v9174_v40  ;;  %v17165_v40 = vld [vmem:[#allocation71_spill] sm:$0xff]  ;;  %v2310_v19 = vsel %vm2292_vm9, %v2308_v32, %v2309_v54  ;;  %v2312_v42 = vsel %vm2292_vm9, %v2309_v54, %v2311_v29  ;;  %v2327_v59 = vsel %vm2292_vm9, %v2324_v26, %v2326_v10  ;;  %v2337_v29 = vsel %vm2292_vm9, %v16434_v50, %v2336_v25 }
 0x35f   :  { %17157 = vst [vmem:[#allocation63_spill] sm:$0xff] %v9178_v23  ;;  %v9198_v46 = vmul.f32 %v8313_v55, %v17165_v40  ;;  %v17166_v23 = vld [vmem:[#allocation72_spill] sm:$0xff]  ;;  %v9218_v40 = vmul.f32 %v8313_v55, %v17170_v21  ;;  %v9236_v21 = vmul.f32 %v8313_v55, %v17176_v9  ;;  %v9256_v9 = vmul.f32 %v8313_v55, %v8806_v22  ;;  %v17196_v50 = vld [vmem:[#allocation39_spill] sm:$0xff] }
 0x360   :  { %17159 = vst [vmem:[#allocation64_spill] sm:$0xff] %v9182_v31  ;;  %v9202_v13 = vmul.f32 %v8313_v55, %v17166_v23  ;;  %v9222_v23 = vmul.f32 %v8313_v55, %v17171_v5  ;;  %v9240_v5 = vmul.f32 %v8313_v55, %v17178_v27  ;;  %v2303_v27 = vrot.slane %v9042_v4, 2  ;;  %v17227_v31 = vld [vmem:[#allocation13_spill] sm:$0xff]  ;;  %v17235_v55 = vld [vmem:[#allocation95_spill] sm:$0xff] }
 0x361   :  { %17161 = vst [vmem:[#allocation67_spill] sm:$0xff] %v9186_v33  ;;  %v2313_v22 = vrot.slane %v9066_v14, 2  ;;  %v2318_v4 = vrot.slane %v9078_v60, 2  ;;  %v2329_v14 = vrot.slane %v9106_v8, 2  ;;  %v16432_v32 = vrot.slane %v9130_v41, 2 }
 0x362   :  { %17163 = vst [vmem:[#allocation56_spill] sm:$0xff] %v9190_v38  ;;  %v2305_v60 = vsel %vm2292_vm9, %v2303_v27, %v2304_v36  ;;  %v2325_v27 = vsel %vm2292_vm9, %v2323_v1, %v2324_v26  ;;  %v2341_v54 = vrot.slane %v9134_v56, 2  ;;  %v2401_v1 = vrot.slane %v9194_v34, 2  ;;  %v17229_v38 = vld [vmem:[#allocation15_spill] sm:$0xff] }
 0x363   :  { %17172 = vst [vmem:[#allocation76_spill] sm:$0xff] %v9222_v23  ;;  %v2330_v39 = vsel %vm2292_vm9, %v2328_v3, %v2329_v14  ;;  %v2403_v26 = vrot.slane %v9198_v46, 2  ;;  %v2404_v10 = vrot.slane %v9202_v13, 2  ;;  %v2406_v3 = vrot.slane %v9206_v6, 2  ;;  %v17226_v23 = vld [vmem:[#allocation12_spill] sm:$0xff] }
 0x364   :  { %17174 = vst [vmem:[#allocation77_spill] sm:$0xff] %v9228_v48  ;;  %v2408_v56 = vrot.slane %v9210_v0, 2  ;;  %v2416_v34 = vrot.slane %v9232_v49, 2  ;;  %v2342_v46 = vsel %vm2292_vm9, %v16432_v32, %v2341_v54  ;;  %v16433_v6 = vrot.slane %v9240_v5, 2  ;;  %v17194_v32 = vld [vmem:[#allocation36_spill] sm:$0xff] }
 0x365   :  { %17177 = vst [vmem:[#allocation62_spill] sm:$0xff] %v9236_v21  ;;  %v2421_v0 = vrot.slane %v9244_v63, 2  ;;  %v2402_v49 = vsel %vm2292_vm9, %v16431_v30, %v2401_v1  ;;  %v2407_v54 = vsel %vm2292_vm9, %v2404_v10, %v2406_v3  ;;  %v2520_v3 = vadd.f32 %v2302_v45, %v8960_v57  ;;  %v17193_v1 = vld [vmem:[#allocation8_spill] sm:$0xff]  ;;  %v17198_v45 = vld [vmem:[#allocation41_spill] sm:$0xff] }
 0x366   :  { %17179 = vst [vmem:[#allocation82_spill] sm:$0xff] %v9240_v5  ;;  %v17225_v21 = vld [vmem:[#allocation24_spill] sm:$0xff] }
 0x367   :  { %17182 = vst [vmem:[#allocation65_spill] sm:$0xff] %v9248_v44 }
 0x368   :  { %17184 = vst [vmem:[#allocation88_spill] sm:$0xff] %v9252_v53  ;;  %v17224_v53 = vld [vmem:[#allocation23_spill] sm:$0xff] }
 0x369   :  { %17185 = vst [vmem:[#allocation68_spill] sm:$0xff] %v9256_v9  ;;  %v2314_v9 = vrot.slane %v9070_v28, 2  ;;  %v2331_v28 = vrot.slane %v9110_v24, 2  ;;  %v2320_v24 = vsel %vm2292_vm9, %v2318_v4, %v2319_v11  ;;  %v16429_v4 = vrot.slane %v9166_v37, 2 }
 0x36a   :  { %v2391_v11 = vrot.slane %v9170_v58, 2  ;;  %v9334_v58 = vsel %vm2292_vm9, %v2403_v26, %v2404_v10  ;;  %v2422_v26 = vsel %vm2292_vm9, %v16433_v6, %v2421_v0  ;;  %v2519_v10 = vadd.f32 %v9263_v51, %v8861_v12  ;;  %v17195_v0 = vld [vmem:[#allocation37_spill] sm:$0xff]  ;;  %v17197_v51 = vld [vmem:[#allocation40_spill] sm:$0xff] }
 0x36b   :  { %v2315_v35 = vsel %vm2292_vm9, %v2313_v22, %v2314_v9  ;;  %v2317_v8 = vsel %vm2292_vm9, %v2314_v9, %v2316_v16  ;;  %v2332_v36 = vsel %vm2292_vm9, %v2329_v14, %v2331_v28  ;;  %v2409_v14 = vrot.slane %v9214_v61, 2  ;;  %17187 = vst [vmem:[#allocation94_spill] sm:$0xff] %v9334_v58  ;;  %v17223_v58 = vld [vmem:[#allocation35_spill] sm:$0xff] }
 0x36c   :  { %v2411_v28 = vrot.slane %v9218_v40, 2  ;;  %v16430_v16 = vrot.slane %v9228_v48, 2  ;;  %v9327_v61 = vsel %vm2292_vm9, %v16429_v4, %v2391_v11  ;;  %v17191_v40 = vld [vmem:[#allocation10_spill] sm:$0xff]  ;;  %v17192_v4 = vld [vmem:[#allocation7_spill] sm:$0xff]  ;;  %v2526_v9 = vadd.f32 %v2317_v8, %v17193_v1  ;;  %v17204_v8 = vld [vmem:[#allocation53_spill] sm:$0xff] }
 0x36d   :  { %17186 = vst [vmem:[#allocation69_spill] sm:$0xff] %v9327_v61  ;;  %v2410_v13 = vsel %vm2292_vm9, %v2408_v56, %v2409_v14  ;;  %v17188_v56 = vld [vmem:[#allocation122_spill] sm:$0xff]  ;;  %v2524_v30 = vadd.f32 %v2312_v42, %v17191_v40  ;;  %v2525_v22 = vadd.f32 %v2315_v35, %v17192_v4  ;;  %v2527_v20 = vadd.f32 %v2320_v24, %v17194_v32  ;;  %v17203_v35 = vld [vmem:[#allocation47_spill] sm:$0xff]  ;;  %v17205_v24 = vld [vmem:[#allocation73_spill] sm:$0xff] }
 0x36e   :  { %v2412_v63 = vsel %vm2292_vm9, %v2409_v14, %v2411_v28  ;;  %v2417_v11 = vsel %vm2292_vm9, %v16430_v16, %v2416_v34  ;;  %v2521_v14 = vadd.f32 %v2305_v60, %v17188_v56  ;;  %v17189_v28 = vld [vmem:[#allocation123_spill] sm:$0xff]  ;;  %v17190_v34 = vld [vmem:[#allocation124_spill] sm:$0xff]  ;;  %v2528_v6 = vadd.f32 %v2322_v47, %v17195_v0  ;;  %v17199_v56 = vld [vmem:[#allocation42_spill] sm:$0xff] }
 0x36f   :  { %v2522_v25 = vadd.f32 %v2307_v17, %v17189_v28  ;;  %v2523_v16 = vadd.f32 %v2310_v19, %v17190_v34  ;;  %v2529_v12 = vadd.f32 %v2325_v27, %v17196_v50  ;;  %v2530_v57 = vadd.f32 %v2327_v59, %v17197_v51  ;;  %v17200_v28 = vld [vmem:[#allocation44_spill] sm:$0xff]  ;;  %v17201_v34 = vld [vmem:[#allocation45_spill] sm:$0xff]  ;;  %v17206_v47 = vld [vmem:[#allocation86_spill] sm:$0xff] }
 0x370   :  { %v2531_v60 = vadd.f32 %v2330_v39, %v17198_v45  ;;  %v2532_v17 = vadd.f32 %v2332_v36, %v17199_v56  ;;  %v2534_v19 = vadd.f32 %v2337_v29, %v17200_v28  ;;  %v9366_v42 = vadd.f32 %v2342_v46, %v17201_v34  ;;  %v17207_v50 = vld [vmem:[#allocation90_spill] sm:$0xff]  ;;  %v17208_v59 = vld [vmem:[#allocation91_spill] sm:$0xff]  ;;  %v17210_v39 = vld [vmem:[#allocation20_spill] sm:$0xff] }
 0x371   :  { %v2560_v4 = vadd.f32 %v2402_v49, %v17203_v35  ;;  %v2562_v40 = vadd.f32 %v2407_v54, %v17204_v8  ;;  %v2563_v32 = vadd.f32 %v2410_v13, %v17205_v24  ;;  %v2564_v1 = vadd.f32 %v2412_v63, %v17206_v47  ;;  %v17211_v36 = vld [vmem:[#allocation18_spill] sm:$0xff]  ;;  %v17214_v56 = vld [vmem:[#allocation27_spill] sm:$0xff]  ;;  %v17215_v13 = vld [vmem:[#allocation28_spill] sm:$0xff] }
 0x372   :  { %17202 = vst [vmem:[#allocation71_spill] sm:$0xff] %v9366_v42  ;;  %v2566_v27 = vadd.f32 %v2417_v11, %v17207_v50  ;;  %v9374_v0 = vadd.f32 %v2422_v26, %v17208_v59  ;;  %v2582_v51 = vmul.f32 %v17211_v36, %v17210_v39  ;;  %v17212_v29 = vld [vmem:[#allocation22_spill] sm:$0xff]  ;;  %v2585_v54 = vmul.f32 %v17211_v36, %v17214_v56  ;;  %v17216_v28 = vld [vmem:[#allocation29_spill] sm:$0xff]  ;;  %v17220_v50 = vld [vmem:[#allocation32_spill] sm:$0xff] }
 0x373   :  { %v2583_v46 = vmul.f32 %v17211_v36, %v17212_v29  ;;  %v17213_v45 = vld [vmem:[#allocation26_spill] sm:$0xff]  ;;  %v2586_v63 = vmul.f32 %v17211_v36, %v17215_v13  ;;  %v2587_v11 = vmul.f32 %v17211_v36, %v17216_v28  ;;  %v17217_v26 = vld [vmem:[#allocation17_spill] sm:$0xff]  ;;  %v2591_v59 = vmul.f32 %v17211_v36, %v17220_v50  ;;  %v17221_v39 = vld [vmem:[#allocation19_spill] sm:$0xff] }
 0x374   :  { %17209 = vst [vmem:[#allocation100_spill] sm:$0xff] %v9374_v0  ;;  %v2584_v49 = vmul.f32 %v17211_v36, %v17213_v45  ;;  %v2588_v34 = vmul.f32 %v17211_v36, %v17217_v26  ;;  %v17218_v35 = vld [vmem:[#allocation14_spill] sm:$0xff]  ;;  %v2592_v29 = vmul.f32 %v17211_v36, %v17221_v39  ;;  %v17222_v0 = vld [vmem:[#allocation33_spill] sm:$0xff]  ;;  %v2594_v61 = vmul.f32 %v17211_v36, %v17223_v58 }
 0x375   :  { %v2589_v8 = vmul.f32 %v17211_v36, %v17218_v35  ;;  %v17219_v24 = vld [vmem:[#allocation30_spill] sm:$0xff]  ;;  %v2593_v42 = vmul.f32 %v17211_v36, %v17222_v0  ;;  %v2595_v44 = vmul.f32 %v17211_v36, %v17224_v53  ;;  %v2596_v5 = vmul.f32 %v17211_v36, %v17225_v21  ;;  %v17239_v21 = vld [vmem:[#allocation31_spill] sm:$0xff] }
 0x376   :  { %v2590_v47 = vmul.f32 %v17211_v36, %v17219_v24  ;;  %v2597_v48 = vmul.f32 %v17211_v36, %v17226_v23  ;;  %v9410_v33 = vmul.f32 %v17211_v36, %v17227_v31  ;;  %v2599_v37 = vmul.f32 %v17211_v36, %v17229_v38  ;;  %v17238_v38 = vld [vmem:[#allocation111_spill] sm:$0xff] }
 0x377   :  { %v2625_v43 = vmul.f32 %v17211_v36, %v17230_v52  ;;  %v9418_v18 = vmul.f32 %v17211_v36, %v17231_v2  ;;  %v2627_v41 = vmul.f32 %v17211_v36, %v17233_v7  ;;  %v2628_v15 = vmul.f32 %v17211_v36, %v17234_v62  ;;  %v17241_v2 = vld [vmem:[#allocation21_spill] sm:$0xff] }
 0x378   :  { %17228 = vst [vmem:[#allocation104_spill] sm:$0xff] %v9410_v33  ;;  %v2629_v31 = vmul.f32 %v17211_v36, %v17235_v55  ;;  %v17236_v33 = vld [vmem:[#allocation105_spill] sm:$0xff]  ;;  %v2631_v52 = vmul.f32 %v17211_v36, %v17238_v38  ;;  %v9433_v53 = vadd.f32 %v2582_v51, %v17239_v21  ;;  %v9438_v7 = vadd.f32 %v2584_v49, %v2519_v10  ;;  %v9536_v49 = vld [vmem:[#allocation2 + $0x170] sm:$0xff] }
 0x379   :  { %17232 = vst [vmem:[#allocation110_spill] sm:$0xff] %v9418_v18  ;;  %v9428_v23 = vmul.f32 %v17211_v36, %v17236_v33  ;;  %v9436_v18 = vadd.f32 %v2583_v46, %v17241_v2  ;;  %v9440_v58 = vadd.f32 %v2585_v54, %v2520_v3  ;;  %v9442_v62 = vadd.f32 %v2586_v63, %v2521_v14  ;;  %v9532_v46 = vld [vmem:[#allocation2 + $0x158] sm:$0xff] }
 0x37a   :  { %17240 = vst [vmem:[#allocation120_spill] sm:$0xff] %v9433_v53  ;;  %v9444_v55 = vadd.f32 %v2587_v11, %v2522_v25  ;;  %v9446_v0 = vadd.f32 %v2588_v34, %v2523_v16  ;;  %v9448_v33 = vadd.f32 %v2589_v8, %v2524_v30  ;;  %v9452_v38 = vadd.f32 %v2591_v59, %v2526_v9  ;;  %v9556_v8 = vld [vmem:[#allocation2 + $0x1e8] sm:$0xff]  ;;  %v17298_v59 = vld [vmem:[#allocation60_spill] sm:$0xff] }
 0x37b   :  { %17237 = vst [vmem:[#allocation114_spill] sm:$0xff] %v9428_v23  ;;  %v9450_v23 = vadd.f32 %v2590_v47, %v2525_v22  ;;  %v9454_v21 = vadd.f32 %v2592_v29, %v2527_v20  ;;  %v9456_v51 = vadd.f32 %v2593_v42, %v2528_v6  ;;  %v9458_v10 = vadd.f32 %v2594_v61, %v2529_v12  ;;  %v9474_v20 = vld [vmem:[#allocation2 + $0x108] sm:$0xff]  ;;  %v9514_v42 = vld [vmem:[#allocation2 + $0x150] sm:$0xff] }
 0x37c   :  { %17242 = vst [vmem:[#allocation125_spill] sm:$0xff] %v9436_v18  ;;  %v9460_v3 = vadd.f32 %v2595_v44, %v2530_v57  ;;  %v9462_v14 = vadd.f32 %v2596_v5, %v2531_v60  ;;  %v9464_v25 = vadd.f32 %v2597_v48, %v2532_v17  ;;  %v9466_v16 = vadd.f32 %v2599_v37, %v2534_v19  ;;  %v17264_v44 = vld [vmem:[#allocation34_spill] sm:$0xff]  ;;  %v9510_v17 = vld [vmem:[#allocation2 + $0x138] sm:$0xff]  ;;  %v9512_v19 = vld [vmem:[#allocation2 + $0x140] sm:$0xff] }
 0x37d   :  { %17243 = vst [vmem:[#allocation122_spill] sm:$0xff] %v9438_v7  ;;  %v9468_v30 = vadd.f32 %v2625_v43, %v2560_v4  ;;  %v9470_v22 = vadd.f32 %v2627_v41, %v2562_v40  ;;  %v9472_v9 = vadd.f32 %v2628_v15, %v2563_v32  ;;  %v9476_v6 = vadd.f32 %v2629_v31, %v2564_v1  ;;  %v9488_v43 = vld [vmem:[#allocation2 + $0x110] sm:$0xff]  ;;  %v9490_v41 = vld [vmem:[#allocation2 + $0x120] sm:$0xff]  ;;  %v9492_v15 = vld [vmem:[#allocation2 + $0x128] sm:$0xff] }
 0x37e   :  { %17244 = vst [vmem:[#allocation123_spill] sm:$0xff] %v9440_v58  ;;  %v9478_v61 = vadd.f32 %v2631_v52, %v2566_v27  ;;  %v9482_v5 = vmul.f32 %v17264_v44, %v17213_v45  ;;  %v9486_v48 = vmul.f32 %v17264_v44, %v17214_v56  ;;  %v9496_v37 = vmul.f32 %v17264_v44, %v17215_v13  ;;  %v17280_v1 = vld [vmem:[#allocation33_spill] sm:$0xff]  ;;  %v17285_v56 = vld [vmem:[#allocation35_spill] sm:$0xff] }
 0x37f   :  { %17245 = vst [vmem:[#allocation124_spill] sm:$0xff] %v9442_v62  ;;  %v9500_v12 = vmul.f32 %v17264_v44, %v17216_v28  ;;  %v9504_v57 = vmul.f32 %v17264_v44, %v17217_v26  ;;  %v9508_v60 = vmul.f32 %v17264_v44, %v17218_v35  ;;  %v9518_v4 = vmul.f32 %v17264_v44, %v17219_v24  ;;  %v9534_v45 = vld [vmem:[#allocation2 + $0x168] sm:$0xff]  ;;  %v17287_v13 = vld [vmem:[#allocation23_spill] sm:$0xff]  ;;  %v17289_v28 = vld [vmem:[#allocation24_spill] sm:$0xff] }
 0x380   :  { %17246 = vst [vmem:[#allocation10_spill] sm:$0xff] %v9444_v55  ;;  %v9522_v40 = vmul.f32 %v17264_v44, %v17220_v50  ;;  %v9526_v32 = vmul.f32 %v17264_v44, %v17221_v39  ;;  %v9530_v27 = vmul.f32 %v17264_v44, %v17280_v1  ;;  %v9540_v54 = vmul.f32 %v17264_v44, %v17285_v56  ;;  %v17291_v26 = vld [vmem:[#allocation12_spill] sm:$0xff]  ;;  %v17296_v47 = vld [vmem:[#allocation95_spill] sm:$0xff]  ;;  %v17300_v31 = vld [vmem:[#allocation61_spill] sm:$0xff] }
 0x381   :  { %17247 = vst [vmem:[#allocation7_spill] sm:$0xff] %v9446_v0  ;;  %v9544_v63 = vmul.f32 %v17264_v44, %v17287_v13  ;;  %v9548_v11 = vmul.f32 %v17264_v44, %v17289_v28  ;;  %v9552_v34 = vmul.f32 %v17264_v44, %v17291_v26  ;;  %v9554_v35 = vld [vmem:[#allocation2 + $0x1e0] sm:$0xff]  ;;  %v9558_v24 = vld [vmem:[#allocation2 + $0x1f8] sm:$0xff]  ;;  %v9562_v50 = vmul.f32 %v17264_v44, %v17296_v47  ;;  %v9580_v13 = vld [vmem:[#allocation2 + $0x2d0] sm:$0xff] }
 0x382   :  { %17248 = vst [vmem:[#allocation8_spill] sm:$0xff] %v9448_v33  ;;  %v17299_v39 = vld [vmem:[#allocation16_spill] sm:$0xff]  ;;  %v17340_v18 = vld [vmem:[#allocation9_spill] sm:$0xff] }
 0x383   :  { %17249 = vst [vmem:[#allocation36_spill] sm:$0xff] %v9450_v23  ;;  %v9566_v29 = vmul.f32 %v17299_v39, %v17298_v59  ;;  %v9570_v52 = vmul.f32 %v17299_v39, %v17300_v31  ;;  %v9574_v2 = vmul.f32 %v17299_v39, %v9474_v20  ;;  %v9576_v1 = vld [vmem:[#allocation2 + $0x2b8] sm:$0xff]  ;;  %v9578_v56 = vld [vmem:[#allocation2 + $0x2c0] sm:$0xff]  ;;  %v9584_v28 = vmul.f32 %v17299_v39, %v9488_v43 }
 0x384   :  { %17250 = vst [vmem:[#allocation37_spill] sm:$0xff] %v9452_v38  ;;  %v9588_v26 = vmul.f32 %v17299_v39, %v9490_v41  ;;  %v9592_v47 = vmul.f32 %v17299_v39, %v9492_v15  ;;  %v9596_v59 = vmul.f32 %v17299_v39, %v9510_v17  ;;  %v9598_v31 = vld [vmem:[#allocation2 + $0x2d8] sm:$0xff]  ;;  %v9698_v23 = vld [vmem:[#allocation2 + $0x160] sm:$0x3]  ;;  %v1651_v53 = vmul.f32 %v17340_v18, %v9474_v20 }
 0x385   :  { %17251 = vst [vmem:[#allocation39_spill] sm:$0xff] %v9454_v21  ;;  %v9644_v44 = vld [vmem:[#allocation2 + $0x318] sm:$0xff]  ;;  %v9680_v21 = vld [vmem:[#allocation2 + $0x148] sm:$0x3]  ;;  %v9718_v7 = vld [vmem:[#allocation2 + $0x1c0] sm:$0x3]  ;;  %v1652_v36 = vmul.f32 %v17340_v18, %v9488_v43 }
 0x386   :  { %17252 = vst [vmem:[#allocation40_spill] sm:$0xff] %v9456_v51  ;;  %v9678_v51 = vmul.f32 %v17299_v39, %v9578_v56  ;;  %v9710_v55 = vmul.f32 %v17299_v39, %v9644_v44  ;;  %v9716_v58 = vld [vmem:[#allocation2 + $0x178] sm:$0x3] }
 0x387   :  { %17253 = vst [vmem:[#allocation41_spill] sm:$0xff] %v9458_v10  ;;  %v9674_v10 = vmul.f32 %v17299_v39, %v9576_v1 }
 0x388   :  { %17254 = vst [vmem:[#allocation42_spill] sm:$0xff] %v9460_v3 }
 0x389   :  { %17255 = vst [vmem:[#allocation44_spill] sm:$0xff] %v9462_v14  ;;  %v17324_v14 = vld [vmem:[#allocation119_spill] sm:$0xff] }
 0x38a   :  { %17256 = vst [vmem:[#allocation45_spill] sm:$0xff] %v9464_v25  ;;  %v9670_v3 = vmul.f32 %v17299_v39, %v17324_v14 }
 0x38b   :  { %17257 = vst [vmem:[#allocation47_spill] sm:$0xff] %v9466_v16  ;;  %v17322_v16 = vld [vmem:[#allocation118_spill] sm:$0xff] }
 0x38c   :  { %17258 = vst [vmem:[#allocation53_spill] sm:$0xff] %v9468_v30  ;;  %v9666_v25 = vmul.f32 %v17299_v39, %v17322_v16  ;;  %v9688_v16 = vmul.f32 %v17299_v39, %v9598_v31 }
 0x38d   :  { %17259 = vst [vmem:[#allocation73_spill] sm:$0xff] %v9470_v22  ;;  %v9658_v22 = vmul.f32 %v17299_v39, %v9558_v24 }
 0x38e   :  { %17260 = vst [vmem:[#allocation86_spill] sm:$0xff] %v9472_v9  ;;  %v9654_v9 = vmul.f32 %v17299_v39, %v9556_v8 }
 0x38f   :  { %17261 = vst [vmem:[#allocation90_spill] sm:$0xff] %v9474_v20  ;;  %v1660_v20 = vmul.f32 %v17340_v18, %v9514_v42 }
 0x390   :  { %17262 = vst [vmem:[#allocation91_spill] sm:$0xff] %v9476_v6  ;;  %v9650_v6 = vmul.f32 %v17299_v39, %v9554_v35 }
 0x391   :  { %17263 = vst [vmem:[#allocation20_spill] sm:$0xff] %v9478_v61  ;;  %v9646_v61 = vld [vmem:[#allocation2 + $0x320] sm:$0xff] }
 0x392   :  { %17265 = vst [vmem:[#allocation22_spill] sm:$0xff] %v9482_v5  ;;  %v9642_v5 = vld [vmem:[#allocation2 + $0x308] sm:$0xff]  ;;  %v9714_v62 = vmul.f32 %v17299_v39, %v9646_v61 }
 0x393   :  { %17266 = vst [vmem:[#allocation26_spill] sm:$0xff] %v9486_v48  ;;  %v9706_v0 = vmul.f32 %v17299_v39, %v9642_v5 }
 0x394   :  { %17267 = vst [vmem:[#allocation27_spill] sm:$0xff] %v9488_v43  ;;  %v1661_v43 = vmul.f32 %v17340_v18, %v9532_v46 }
 0x395   :  { %17268 = vst [vmem:[#allocation28_spill] sm:$0xff] %v9490_v41 }
 0x396   :  { %17269 = vst [vmem:[#allocation29_spill] sm:$0xff] %v9492_v15 }
 0x397   :  { %17270 = vst [vmem:[#allocation17_spill] sm:$0xff] %v9496_v37  ;;  %v17312_v37 = vld [vmem:[#allocation70_spill] sm:$0xff] }
 0x398   :  { %17271 = vst [vmem:[#allocation14_spill] sm:$0xff] %v9500_v12  ;;  %v9640_v48 = vmul.f32 %v17299_v39, %v17312_v37  ;;  %v17320_v37 = vld [vmem:[#allocation83_spill] sm:$0xff] }
 0x399   :  { %17272 = vst [vmem:[#allocation30_spill] sm:$0xff] %v9504_v57  ;;  %v9662_v30 = vmul.f32 %v17299_v39, %v17320_v37  ;;  %v9684_v37 = vmul.f32 %v17299_v39, %v9580_v13 }
 0x39a   :  { %17273 = vst [vmem:[#allocation32_spill] sm:$0xff] %v9508_v60  ;;  %v9628_v60 = vmul.f32 %v17299_v39, %v9536_v49 }
 0x39b   :  { %17274 = vst [vmem:[#allocation19_spill] sm:$0xff] %v9510_v17 }
 0x39c   :  { %17275 = vst [vmem:[#allocation13_spill] sm:$0xff] %v9512_v19 }
 0x39d   :  { %17276 = vst [vmem:[#allocation15_spill] sm:$0xff] %v9514_v42 }
 0x39e   :  { %17277 = vst [vmem:[#allocation72_spill] sm:$0xff] %v9518_v4  ;;  %v9624_v4 = vld [vmem:[#allocation2 + $0x300] sm:$0xff] }
 0x39f   :  { %17278 = vst [vmem:[#allocation78_spill] sm:$0xff] %v9522_v40  ;;  %v9622_v40 = vld [vmem:[#allocation2 + $0x2f0] sm:$0xff]  ;;  %v9702_v33 = vmul.f32 %v17299_v39, %v9624_v4 }
 0x3a0   :  { %17279 = vst [vmem:[#allocation84_spill] sm:$0xff] %v9526_v32  ;;  %v9620_v32 = vld [vmem:[#allocation2 + $0x2e8] sm:$0xff]  ;;  %v9696_v38 = vmul.f32 %v17299_v39, %v9622_v40 }
 0x3a1   :  { %17281 = vst [vmem:[#allocation89_spill] sm:$0xff] %v9530_v27  ;;  %v9618_v27 = vmul.f32 %v17299_v39, %v9534_v45  ;;  %v9692_v14 = vmul.f32 %v17299_v39, %v9620_v32 }
 0x3a2   :  { %17282 = vst [vmem:[#allocation105_spill] sm:$0xff] %v9532_v46 }
 0x3a3   :  { %17283 = vst [vmem:[#allocation111_spill] sm:$0xff] %v9534_v45 }
 0x3a4   :  { %17284 = vst [vmem:[#allocation31_spill] sm:$0xff] %v9536_v49 }
 0x3a5   :  { %17286 = vst [vmem:[#allocation21_spill] sm:$0xff] %v9540_v54  ;;  %v9614_v54 = vmul.f32 %v17299_v39, %v9532_v46 }
 0x3a6   :  { %17288 = vst [vmem:[#allocation33_spill] sm:$0xff] %v9544_v63  ;;  %v9610_v63 = vmul.f32 %v17299_v39, %v9514_v42 }
 0x3a7   :  { %17290 = vst [vmem:[#allocation35_spill] sm:$0xff] %v9548_v11  ;;  %v9606_v11 = vmul.f32 %v17299_v39, %v9512_v19 }
 0x3a8   :  { %17292 = vst [vmem:[#allocation23_spill] sm:$0xff] %v9552_v34  ;;  %v9602_v34 = vld [vmem:[#allocation2 + $0x1b8] sm:$0xff] }
 0x3a9   :  { %17293 = vst [vmem:[#allocation24_spill] sm:$0xff] %v9554_v35  ;;  %v9636_v12 = vmul.f32 %v17299_v39, %v9602_v34  ;;  %v1667_v46 = vmul.f32 %v17340_v18, %v9602_v34 }
 0x3aa   :  { %17294 = vst [vmem:[#allocation12_spill] sm:$0xff] %v9556_v8 }
 0x3ab   :  { %17295 = vst [vmem:[#allocation134_spill] sm:$0xff] %v9558_v24 }
 0x3ac   :  { %17297 = vst [vmem:[#allocation95_spill] sm:$0xff] %v9562_v50  ;;  %v9600_v50 = vld [vmem:[#allocation2 + $0x1b0] sm:$0xff] }
 0x3ad   :  { %17301 = vst [vmem:[#allocation60_spill] sm:$0xff] %v9576_v1  ;;  %v9632_v57 = vmul.f32 %v17299_v39, %v9600_v50  ;;  %v1657_v39 = vmul.f32 %v17340_v18, %v9510_v17  ;;  %v1664_v17 = vmul.f32 %v17340_v18, %v9536_v49  ;;  %v1666_v42 = vmul.f32 %v17340_v18, %v9600_v50 }
 0x3ae   :  { %17302 = vst [vmem:[#allocation16_spill] sm:$0xff] %v9578_v56  ;;  %v9762_v49 = vmul.f32 %v17340_v18, %v9556_v8  ;;  %v9782_v8 = vmul.f32 %v17340_v18, %v9598_v31 }
 0x3af   :  { %17303 = vst [vmem:[#allocation61_spill] sm:$0xff] %v9580_v13 }
 0x3b0   :  { %17304 = vst [vmem:[#allocation135_spill] sm:$0xff] %v9598_v31  ;;  %v9802_v31 = vmul.f32 %v17340_v18, %v9642_v5 }
 0x3b1   :  { %17305 = vst [vmem:[#allocation136_spill] sm:$0xff] %v9600_v50  ;;  %v17343_v50 = vld [vmem:[#allocation80_spill] sm:$0xff] }
 0x3b2   :  { %17306 = vst [vmem:[#allocation137_spill] sm:$0xff] %v9602_v34  ;;  %v9770_v34 = vmul.f32 %v17340_v18, %v9576_v1  ;;  %v9790_v1 = vmul.f32 %v17340_v18, %v9622_v40 }
 0x3b3   :  { %17307 = vst [vmem:[#allocation138_spill] sm:$0xff] %v9620_v32 }
 0x3b4   :  { %17308 = vst [vmem:[#allocation139_spill] sm:$0xff] %v9622_v40  ;;  %v9810_v40 = vmul.f32 %v17340_v18, %v9644_v44 }
 0x3b5   :  { %17309 = vst [vmem:[#allocation140_spill] sm:$0xff] %v9624_v4 }
 0x3b6   :  { %17310 = vst [vmem:[#allocation141_spill] sm:$0xff] %v9632_v57 }
 0x3b7   :  { %17311 = vst [vmem:[#allocation142_spill] sm:$0xff] %v9636_v12 }
 0x3b8   :  { %17313 = vst [vmem:[#allocation70_spill] sm:$0xff] %v9640_v48  ;;  %v1891_v48 = vrot.slane %v1666_v42, 1 }
 0x3b9   :  { %17314 = vst [vmem:[#allocation143_spill] sm:$0xff] %v9642_v5  ;;  %v9817_v5 = vld [vmem:[#allocation2 + $0x328] sm:$0x3] }
 0x3ba   :  { %17315 = vst [vmem:[#allocation144_spill] sm:$0xff] %v9644_v44 }
 0x3bb   :  { %17316 = vst [vmem:[#allocation145_spill] sm:$0xff] %v9646_v61 }
 0x3bc   :  { %17317 = vst [vmem:[#allocation146_spill] sm:$0xff] %v9650_v6 }
 0x3bd   :  { %17318 = vst [vmem:[#allocation147_spill] sm:$0xff] %v9654_v9  ;;  %v1887_v9 = vrot.slane %v1664_v17, 1  ;;  %v17353_v17 = vld [vmem:[#allocation92_spill] sm:$0xff] }
 0x3be   :  { %17319 = vst [vmem:[#allocation148_spill] sm:$0xff] %v9658_v22 }
 0x3bf   :  { %17321 = vst [vmem:[#allocation83_spill] sm:$0xff] %v9662_v30  ;;  %v1882_v30 = vrot.slane %v1661_v43, 1 }
 0x3c0   :  { %17323 = vst [vmem:[#allocation118_spill] sm:$0xff] %v9666_v25  ;;  %v1881_v25 = vrot.slane %v1660_v20, 1 }
 0x3c1   :  { %17325 = vst [vmem:[#allocation119_spill] sm:$0xff] %v9670_v3 }
 0x3c2   :  { %17326 = vst [vmem:[#allocation149_spill] sm:$0xff] %v9674_v10  ;;  %v1876_v10 = vrot.slane %v1657_v39, 1 }
 0x3c3   :  { %17327 = vst [vmem:[#allocation150_spill] sm:$0xff] %v9678_v51 }
 0x3c4   :  { %17328 = vst [vmem:[#allocation151_spill] sm:$0xff] %v9680_v21 }
 0x3c5   :  { %17329 = vst [vmem:[#allocation152_spill] sm:$0xff] %v9684_v37 }
 0x3c6   :  { %17330 = vst [vmem:[#allocation153_spill] sm:$0xff] %v9688_v16  ;;  %v1867_v16 = vrot.slane %v1652_v36, 1  ;;  %v17345_v36 = vld [vmem:[#allocation75_spill] sm:$0xff] }
 0x3c7   :  { %17331 = vst [vmem:[#allocation154_spill] sm:$0xff] %v9692_v14  ;;  %v1861_v14 = vrot.slane %v17343_v50, 1 }
 0x3c8   :  { %17332 = vst [vmem:[#allocation155_spill] sm:$0xff] %v9696_v38  ;;  %v9744_v38 = vld [vmem:[#allocation2 + $0x2f8] sm:$0x3] }
 0x3c9   :  { %17333 = vst [vmem:[#allocation156_spill] sm:$0xff] %v9698_v23 }
 0x3ca   :  { %17334 = vst [vmem:[#allocation157_spill] sm:$0xff] %v9702_v33  ;;  %v1659_v33 = vmul.f32 %v17340_v18, %v9680_v21  ;;  %v1665_v21 = vmul.f32 %v17340_v18, %v9716_v58 }
 0x3cb   :  { %17335 = vst [vmem:[#allocation158_spill] sm:$0xff] %v9706_v0  ;;  %v1654_v0 = vmul.f32 %v17340_v18, %v9490_v41  ;;  %v1662_v41 = vmul.f32 %v17340_v18, %v9698_v23  ;;  %v1668_v23 = vmul.f32 %v17340_v18, %v9718_v7 }
 0x3cc   :  { %17336 = vst [vmem:[#allocation159_spill] sm:$0xff] %v9710_v55  ;;  %v1655_v55 = vmul.f32 %v17340_v18, %v9492_v15  ;;  %v1663_v15 = vmul.f32 %v17340_v18, %v9534_v45  ;;  %v9758_v45 = vmul.f32 %v17340_v18, %v9554_v35  ;;  %v9778_v35 = vmul.f32 %v17340_v18, %v9580_v13 }
 0x3cd   :  { %17337 = vst [vmem:[#allocation160_spill] sm:$0xff] %v9714_v62  ;;  %v1658_v62 = vmul.f32 %v17340_v18, %v9512_v19  ;;  %v9754_v19 = vld [vmem:[#allocation2 + $0x310] sm:$0x3]  ;;  %v9798_v13 = vmul.f32 %v17340_v18, %v9624_v4  ;;  %v1866_v4 = vrot.slane %v1651_v53, 1  ;;  %v1871_v37 = vrot.slane %v1654_v0, 1 }
 0x3ce   :  { %17338 = vst [vmem:[#allocation161_spill] sm:$0xff] %v9716_v58  ;;  %v9766_v58 = vmul.f32 %v17340_v18, %v9558_v24  ;;  %v9786_v24 = vmul.f32 %v17340_v18, %v9620_v32  ;;  %v9806_v32 = vmul.f32 %v17340_v18, %v9754_v19  ;;  %v1872_v51 = vrot.slane %v1655_v55, 1  ;;  %v17347_v55 = vld [vmem:[#allocation74_spill] sm:$0xff] }
 0x3cf   :  { %17339 = vst [vmem:[#allocation162_spill] sm:$0xff] %v9718_v7  ;;  %v9774_v7 = vmul.f32 %v17340_v18, %v9578_v56  ;;  %v9794_v56 = vmul.f32 %v17340_v18, %v9744_v38  ;;  %v1877_v3 = vrot.slane %v1658_v62, 1  ;;  %v1884_v22 = vrot.slane %v1662_v41, 1  ;;  %v17349_v62 = vld [vmem:[#allocation81_spill] sm:$0xff]  ;;  %v17351_v41 = vld [vmem:[#allocation87_spill] sm:$0xff] }
 0x3d0   :  { %17341 = vst [vmem:[#allocation9_spill] sm:$0xff] %v9744_v38  ;;  %v9814_v38 = vmul.f32 %v17340_v18, %v9646_v61  ;;  %v1886_v44 = vrot.slane %v1663_v15, 1  ;;  %v1889_v6 = vrot.slane %v1665_v21, 1  ;;  %v1892_v61 = vrot.slane %v1667_v46, 1 }
 0x3d1   :  { %17342 = vst [vmem:[#allocation163_spill] sm:$0xff] %v9754_v19  ;;  %v1879_v19 = vrot.slane %v1659_v33, 1  ;;  %v1894_v12 = vrot.slane %v1668_v23, 1  ;;  %v1713_v53 = vmul.f32 %v17340_v18, %v9817_v5  ;;  %v17346_v0 = vrot.slane %v17345_v36, 1 }
 0x3d2   :  { %17344 = vst [vmem:[#allocation80_spill] sm:$0xff] %v9817_v5  ;;  %v17348_v50 = vrot.slane %v17347_v55, 1  ;;  %v17350_v33 = vrot.slane %v17349_v62, 1  ;;  %v1868_v43 = vsel %vm1810_vm8, %v1866_v4, %v1867_v16  ;;  %v17352_v21 = vrot.slane %v17351_v41, 1  ;;  %v17359_v41 = vld [vmem:[#allocation98_spill] sm:$0xff]  ;;  %v17377_v5 = vld [vmem:[#allocation128_spill] sm:$0xff] }
 0x3d3   :  { %v1873_v23 = vsel %vm1810_vm8, %v1871_v37, %v1872_v51  ;;  %v17354_v18 = vrot.slane %v17353_v17, 1  ;;  %v1878_v46 = vsel %vm1810_vm8, %v1876_v10, %v1877_v3  ;;  %v1880_v36 = vsel %vm1810_vm8, %v1877_v3, %v1879_v19 }
 0x3d4   :  { %v1858_v39 = vsel %vm1810_vm8, %v17348_v50, %v17346_v0  ;;  %v1863_v20 = vsel %vm1810_vm8, %v1861_v14, %v17350_v33  ;;  %v1870_v15 = vsel %vm1810_vm8, %v1867_v16, %v17352_v21  ;;  %v1883_v0 = vsel %vm1810_vm8, %v1881_v25, %v1882_v30  ;;  %v17355_v50 = vld [vmem:[#allocation97_spill] sm:$0xff]  ;;  %v17366_v21 = vld [vmem:[#allocation108_spill] sm:$0xff] }
 0x3d5   :  { %v1875_v42 = vsel %vm1810_vm8, %v1872_v51, %v17354_v18  ;;  %v1885_v14 = vsel %vm1810_vm8, %v1882_v30, %v1884_v22  ;;  %v1888_v4 = vsel %vm1810_vm8, %v1886_v44, %v1887_v9  ;;  %v1890_v55 = vsel %vm1810_vm8, %v1887_v9, %v1889_v6  ;;  %v17357_v33 = vld [vmem:[#allocation93_spill] sm:$0xff]  ;;  %v17362_v44 = vld [vmem:[#allocation107_spill] sm:$0xff] }
 0x3d6   :  { %v1893_v16 = vsel %vm1810_vm8, %v1891_v48, %v1892_v61  ;;  %v1895_v37 = vsel %vm1810_vm8, %v1892_v61, %v1894_v12  ;;  %v17356_v62 = vrot.slane %v17355_v50, 1  ;;  %v17358_v51 = vrot.slane %v17357_v33, 1  ;;  %v17364_v48 = vld [vmem:[#allocation103_spill] sm:$0xff] }
 0x3d7   :  { %v17360_v3 = vrot.slane %v17359_v41, 1  ;;  %v1901_v22 = vrot.slane %v9758_v45, 1  ;;  %v1902_v9 = vrot.slane %v9762_v49, 1  ;;  %v1906_v6 = vrot.slane %v9766_v58, 1  ;;  %v17373_v41 = vld [vmem:[#allocation127_spill] sm:$0xff] }
 0x3d8   :  { %v1898_v10 = vsel %vm1810_vm8, %v17358_v51, %v17356_v62  ;;  %v17361_v25 = vmov %v17356_v62  ;;  %v17363_v61 = vrot.slane %v17362_v44, 1  ;;  %v17365_v12 = vrot.slane %v17364_v48, 1  ;;  %v17369_v62 = vld [vmem:[#allocation113_spill] sm:$0xff] }
 0x3d9   :  { %v1900_v30 = vsel %vm1810_vm8, %v17361_v25, %v17360_v3  ;;  %v17367_v17 = vrot.slane %v17366_v21, 1  ;;  %v17370_v33 = vrot.slane %v17369_v62, 1  ;;  %v17371_v51 = vld [vmem:[#allocation109_spill] sm:$0xff]  ;;  %v17374_v58 = vrot.slane %v17373_v41, 1  ;;  %v17375_v3 = vld [vmem:[#allocation126_spill] sm:$0xff]  ;;  %v17378_v41 = vld [vmem:[#allocation99_spill] sm:$0xff] }
 0x3da   :  { %v1913_v19 = vsel %vm1810_vm8, %v17365_v12, %v17363_v61  ;;  %v17368_v18 = vmov %v17363_v61  ;;  %v17372_v45 = vrot.slane %v17371_v51, 1  ;;  %v17376_v25 = vrot.slane %v17375_v3, 1 }
 0x3db   :  { %v1915_v50 = vsel %vm1810_vm8, %v17368_v18, %v17367_v17  ;;  %v1941_v61 = vrot.slane %v17377_v5, 1  ;;  %v1946_v12 = vrot.slane %v9770_v34, 1  ;;  %v1947_v44 = vrot.slane %v9774_v7, 1 }
 0x3dc   :  { %v1918_v49 = vsel %vm1810_vm8, %v17372_v45, %v17370_v33  ;;  %v1938_v48 = vsel %vm1810_vm8, %v17376_v25, %v17374_v58  ;;  %v1951_v21 = vrot.slane %v9778_v35, 1  ;;  %v1952_v17 = vrot.slane %v9782_v8, 1 }
 0x3dd   :  { %v1956_v18 = vrot.slane %v9786_v24, 1  ;;  %v1957_v62 = vrot.slane %v9790_v1, 1  ;;  %v1959_v33 = vrot.slane %v9794_v56, 1  ;;  %v1903_v51 = vsel %vm1810_vm8, %v1901_v22, %v1902_v9  ;;  %v17380_v1 = vld [vmem:[#allocation102_spill] sm:$0xff]  ;;  %v17382_v22 = vld [vmem:[#allocation129_spill] sm:$0xff] }
 0x3de   :  { %v1961_v45 = vrot.slane %v9798_v13, 1  ;;  %v1962_v5 = vrot.slane %v9802_v31, 1  ;;  %v1964_v34 = vrot.slane %v9806_v32, 1  ;;  %v17379_v7 = vrot.slane %v17378_v41, 1  ;;  %v17384_v32 = vld [vmem:[#allocation130_spill] sm:$0xff] }
 0x3df   :  { %v1966_v8 = vrot.slane %v9810_v40, 1  ;;  %v1967_v24 = vrot.slane %v9814_v38, 1  ;;  %v1969_v58 = vrot.slane %v1713_v53, 1  ;;  %v17381_v3 = vrot.slane %v17380_v1, 1  ;;  %v17386_v40 = vld [vmem:[#allocation131_spill] sm:$0xff] }
 0x3e0   :  { %v1905_v35 = vsel %vm1810_vm8, %v1902_v9, %v17379_v7  ;;  %v17383_v25 = vrot.slane %v17382_v22, 1  ;;  %v1948_v31 = vsel %vm1810_vm8, %v1946_v12, %v1947_v44  ;;  %v17385_v57 = vrot.slane %v17384_v32, 1  ;;  %v17389_v12 = vld [vmem:[#allocation132_spill] sm:$0xff]  ;;  %v17426_v32 = vld [vmem:[#allocation117_spill] sm:$0xff] }
 0x3e1   :  { %v1908_v56 = vsel %vm1810_vm8, %v1906_v6, %v17381_v3  ;;  %v1953_v9 = vsel %vm1810_vm8, %v1951_v21, %v1952_v17  ;;  %v17387_v7 = vrot.slane %v17386_v40, 1  ;;  %v1958_v53 = vsel %vm1810_vm8, %v1956_v18, %v1957_v62  ;;  %v17388_v3 = vld [vmem:[#allocation50_spill] sm:$0xff]  ;;  %v17391_v18 = vld [vmem:[#allocation133_spill] sm:$0xff] }
 0x3e2   :  { %v1943_v13 = vsel %vm1810_vm8, %v1941_v61, %v17383_v25  ;;  %v1950_v41 = vsel %vm1810_vm8, %v1947_v44, %v17385_v57  ;;  %v1960_v6 = vsel %vm1810_vm8, %v1957_v62, %v1959_v33  ;;  %v1963_v1 = vsel %vm1810_vm8, %v1961_v45, %v1962_v5  ;;  %v17390_v25 = vld [vmem:[#allocation52_spill] sm:$0xff]  ;;  %v17428_v40 = vld [vmem:[#allocation149_spill] sm:$0xff] }
 0x3e3   :  { %v1955_v38 = vsel %vm1810_vm8, %v1952_v17, %v17387_v7  ;;  %v1965_v61 = vsel %vm1810_vm8, %v1962_v5, %v1964_v34  ;;  %v9915_v22 = vadd.f32 %v17389_v12, %v17388_v3  ;;  %v9918_v57 = vadd.f32 %v1858_v39, %v17390_v25  ;;  %v17430_v7 = vld [vmem:[#allocation150_spill] sm:$0xff]  ;;  %v17432_v3 = vld [vmem:[#allocation152_spill] sm:$0xff]  ;;  %v17434_v25 = vld [vmem:[#allocation153_spill] sm:$0xff] }
 0x3e4   :  { %v1968_v44 = vsel %vm1810_vm8, %v1966_v8, %v1967_v24  ;;  %v1970_v21 = vsel %vm1810_vm8, %v1967_v24, %v1969_v58  ;;  %v9923_v17 = vadd.f32 %v1863_v20, %v9566_v29  ;;  %v9927_v62 = vadd.f32 %v17391_v18, %v9570_v52 }
 0x3e5   :  { %v9930_v33 = vadd.f32 %v1868_v43, %v9574_v2  ;;  %v9933_v45 = vadd.f32 %v1870_v15, %v9584_v28  ;;  %v9936_v39 = vadd.f32 %v1873_v23, %v9588_v26  ;;  %v9939_v5 = vadd.f32 %v1875_v42, %v9592_v47  ;;  %v17398_v47 = vld [vmem:[#allocation141_spill] sm:$0xff] }
 0x3e6   :  { %v9942_v34 = vadd.f32 %v1878_v46, %v9596_v59  ;;  %v9945_v29 = vadd.f32 %v1880_v36, %v9606_v11  ;;  %v9948_v52 = vadd.f32 %v1883_v0, %v9610_v63  ;;  %v9951_v2 = vadd.f32 %v1885_v14, %v9614_v54  ;;  %v17400_v59 = vld [vmem:[#allocation142_spill] sm:$0xff]  ;;  %v17412_v0 = vld [vmem:[#allocation83_spill] sm:$0xff] }
 0x3e7   :  { %v9954_v28 = vadd.f32 %v1888_v4, %v9618_v27  ;;  %v9957_v26 = vadd.f32 %v1890_v55, %v9628_v60  ;;  %v9960_v20 = vadd.f32 %v1893_v16, %v17398_v47  ;;  %v9963_v43 = vadd.f32 %v1895_v37, %v17400_v59  ;;  %v17402_v11 = vld [vmem:[#allocation70_spill] sm:$0xff]  ;;  %v17408_v27 = vld [vmem:[#allocation147_spill] sm:$0xff]  ;;  %v17410_v60 = vld [vmem:[#allocation148_spill] sm:$0xff] }
 0x3e8   :  { %17392 = vst [vmem:[#allocation75_spill] sm:$0xff] %v9942_v34  ;;  %v9966_v15 = vadd.f32 %v1898_v10, %v17402_v11  ;;  %v17404_v63 = vld [vmem:[#allocation66_spill] sm:$0xff]  ;;  %v9975_v46 = vadd.f32 %v1905_v35, %v17408_v27  ;;  %v9978_v36 = vadd.f32 %v1908_v56, %v17410_v60  ;;  %v9981_v14 = vadd.f32 %v1913_v19, %v17412_v0  ;;  %v17414_v4 = vld [vmem:[#allocation79_spill] sm:$0xff]  ;;  %v17416_v16 = vld [vmem:[#allocation85_spill] sm:$0xff] }
 0x3e9   :  { %17393 = vst [vmem:[#allocation74_spill] sm:$0xff] %v9945_v29  ;;  %v9969_v23 = vadd.f32 %v1900_v30, %v17404_v63  ;;  %v17406_v54 = vld [vmem:[#allocation146_spill] sm:$0xff]  ;;  %v9984_v55 = vadd.f32 %v1915_v50, %v17414_v4  ;;  %v9987_v37 = vadd.f32 %v1918_v49, %v17416_v16  ;;  %v17419_v30 = vld [vmem:[#allocation116_spill] sm:$0xff]  ;;  %v17425_v56 = vld [vmem:[#allocation119_spill] sm:$0xff]  ;;  %v10004_v50 = vadd.f32 %v1948_v31, %v17428_v40 }
 0x3ea   :  { %17394 = vst [vmem:[#allocation81_spill] sm:$0xff] %v9948_v52  ;;  %v9972_v42 = vadd.f32 %v1903_v51, %v17406_v54  ;;  %v17418_v10 = vld [vmem:[#allocation106_spill] sm:$0xff]  ;;  %v17421_v51 = vld [vmem:[#allocation115_spill] sm:$0xff]  ;;  %v10001_v19 = vadd.f32 %v17426_v32, %v17425_v56  ;;  %v10007_v49 = vadd.f32 %v1950_v41, %v17430_v7  ;;  %v10010_v12 = vadd.f32 %v1953_v9, %v17432_v3  ;;  %v17440_v11 = vld [vmem:[#allocation157_spill] sm:$0xff] }
 0x3eb   :  { %17395 = vst [vmem:[#allocation87_spill] sm:$0xff] %v9951_v2  ;;  %v9991_v8 = vadd.f32 %v17419_v30, %v17418_v10  ;;  %v9994_v24 = vadd.f32 %v1938_v48, %v17421_v51  ;;  %v17423_v35 = vld [vmem:[#allocation118_spill] sm:$0xff]  ;;  %v10013_v18 = vadd.f32 %v1955_v38, %v17434_v25  ;;  %v10022_v63 = vadd.f32 %v1963_v1, %v17440_v11  ;;  %v17444_v41 = vld [vmem:[#allocation159_spill] sm:$0xff]  ;;  %v17446_v9 = vld [vmem:[#allocation160_spill] sm:$0xff] }
 0x3ec   :  { %17396 = vst [vmem:[#allocation92_spill] sm:$0xff] %v9954_v28  ;;  %v9997_v58 = vadd.f32 %v1943_v13, %v17423_v35  ;;  %v17436_v48 = vld [vmem:[#allocation154_spill] sm:$0xff]  ;;  %v17438_v13 = vld [vmem:[#allocation155_spill] sm:$0xff]  ;;  %v10028_v27 = vadd.f32 %v1968_v44, %v17444_v41  ;;  %v10031_v60 = vadd.f32 %v1970_v21, %v17446_v9  ;;  %v17453_v10 = vld [vmem:[#allocation28_spill] sm:$0xff] }
 0x3ed   :  { %17397 = vst [vmem:[#allocation97_spill] sm:$0xff] %v9957_v26  ;;  %v10016_v47 = vadd.f32 %v1958_v53, %v17436_v48  ;;  %v10019_v59 = vadd.f32 %v1960_v6, %v17438_v13  ;;  %v17442_v31 = vld [vmem:[#allocation158_spill] sm:$0xff]  ;;  %v17449_v0 = vld [vmem:[#allocation11_spill] sm:$0xff]  ;;  %v17454_v30 = vld [vmem:[#allocation29_spill] sm:$0xff] }
 0x3ee   :  { %17399 = vst [vmem:[#allocation93_spill] sm:$0xff] %v9960_v20  ;;  %v10025_v54 = vadd.f32 %v1965_v61, %v17442_v31  ;;  %v10033_v38 = vld [vmem:[#allocation2 + $0xf0] sm:$0xff]  ;;  %v10037_v4 = vld [vmem:[#allocation2 + $0xf8] sm:$0xff]  ;;  %v2136_v21 = vmul.f32 %v17449_v0, %v17453_v10  ;;  %v10049_v51 = vmul.f32 %v17449_v0, %v17454_v30  ;;  %v17456_v32 = vld [vmem:[#allocation13_spill] sm:$0xff] }
 0x3ef   :  { %17401 = vst [vmem:[#allocation98_spill] sm:$0xff] %v9963_v43  ;;  %v2130_v53 = vmul.f32 %v10033_v38, %v17449_v0  ;;  %v2131_v6 = vmul.f32 %v10037_v4, %v17449_v0  ;;  %v17451_v1 = vld [vmem:[#allocation90_spill] sm:$0xff]  ;;  %v17452_v16 = vld [vmem:[#allocation27_spill] sm:$0xff]  ;;  %v10057_v40 = vmul.f32 %v17449_v0, %v17456_v32  ;;  %v17459_v13 = vld [vmem:[#allocation105_spill] sm:$0xff] }
 0x3f0   :  { %17403 = vst [vmem:[#allocation107_spill] sm:$0xff] %v9966_v15  ;;  %v2133_v61 = vmul.f32 %v17449_v0, %v17451_v1  ;;  %v2134_v44 = vmul.f32 %v17449_v0, %v17452_v16  ;;  %v17455_v35 = vld [vmem:[#allocation19_spill] sm:$0xff]  ;;  %v10069_v11 = vmul.f32 %v17449_v0, %v17459_v13  ;;  %v17460_v31 = vld [vmem:[#allocation156_spill] sm:$0xff]  ;;  %v17463_v30 = vld [vmem:[#allocation161_spill] sm:$0xff] }
 0x3f1   :  { %17405 = vst [vmem:[#allocation103_spill] sm:$0xff] %v9969_v23  ;;  %v10053_v56 = vmul.f32 %v17449_v0, %v17455_v35  ;;  %v17457_v7 = vld [vmem:[#allocation151_spill] sm:$0xff]  ;;  %v10073_v41 = vmul.f32 %v17449_v0, %v17460_v31  ;;  %v17464_v10 = vld [vmem:[#allocation136_spill] sm:$0xff]  ;;  %v17465_v16 = vld [vmem:[#allocation137_spill] sm:$0xff] }
 0x3f2   :  { %17407 = vst [vmem:[#allocation108_spill] sm:$0xff] %v9972_v42  ;;  %v10061_v3 = vmul.f32 %v17449_v0, %v17457_v7  ;;  %v17458_v25 = vld [vmem:[#allocation15_spill] sm:$0xff]  ;;  %v10089_v13 = vmul.f32 %v17449_v0, %v17464_v10  ;;  %v10093_v31 = vmul.f32 %v17449_v0, %v17465_v16  ;;  %v17466_v1 = vld [vmem:[#allocation162_spill] sm:$0xff]  ;;  %v17491_v15 = vld [vmem:[#allocation112_spill] sm:$0xff] }
 0x3f3   :  { %17409 = vst [vmem:[#allocation113_spill] sm:$0xff] %v9975_v46  ;;  %v10065_v48 = vmul.f32 %v17449_v0, %v17458_v25  ;;  %v17461_v9 = vld [vmem:[#allocation111_spill] sm:$0xff]  ;;  %v10085_v25 = vmul.f32 %v17449_v0, %v17463_v30  ;;  %v17487_v46 = vld [vmem:[#allocation96_spill] sm:$0xff]  ;;  %v17493_v20 = vld [vmem:[#allocation38_spill] sm:$0xff] }
 0x3f4   :  { %17411 = vst [vmem:[#allocation109_spill] sm:$0xff] %v9978_v36  ;;  %v10077_v32 = vmul.f32 %v17449_v0, %v17461_v9  ;;  %v17462_v35 = vld [vmem:[#allocation31_spill] sm:$0xff]  ;;  %v10097_v9 = vmul.f32 %v17449_v0, %v17466_v1  ;;  %v10117_v1 = vld [vmem:[#allocation2 + $0x2a8] sm:$0xff]  ;;  %v17525_v34 = vld [vmem:[#allocation88_spill] sm:$0xff] }
 0x3f5   :  { %17413 = vst [vmem:[#allocation127_spill] sm:$0xff] %v9981_v14  ;;  %v10081_v7 = vmul.f32 %v17449_v0, %v17462_v35  ;;  %v17482_v14 = vld [vmem:[#allocation144_spill] sm:$0xff]  ;;  %v17499_v26 = vld [vmem:[#allocation54_spill] sm:$0xff]  ;;  %v17500_v28 = vld [vmem:[#allocation59_spill] sm:$0xff] }
 0x3f6   :  { %17415 = vst [vmem:[#allocation126_spill] sm:$0xff] %v9984_v55  ;;  %v17481_v55 = vld [vmem:[#allocation163_spill] sm:$0xff]  ;;  %v17519_v52 = vld [vmem:[#allocation82_spill] sm:$0xff] }
 0x3f7   :  { %17417 = vst [vmem:[#allocation128_spill] sm:$0xff] %v9987_v37  ;;  %v17480_v37 = vld [vmem:[#allocation143_spill] sm:$0xff]  ;;  %v17521_v29 = vld [vmem:[#allocation62_spill] sm:$0xff] }
 0x3f8   :  { %17420 = vst [vmem:[#allocation99_spill] sm:$0xff] %v9991_v8  ;;  %v17479_v8 = vld [vmem:[#allocation140_spill] sm:$0xff]  ;;  %v17501_v2 = vld [vmem:[#allocation63_spill] sm:$0xff] }
 0x3f9   :  { %17422 = vst [vmem:[#allocation102_spill] sm:$0xff] %v9994_v24  ;;  %v2349_v24 = vrot.slane %v2134_v44, 2 }
 0x3fa   :  { %17424 = vst [vmem:[#allocation129_spill] sm:$0xff] %v9997_v58 }
 0x3fb   :  { %17427 = vst [vmem:[#allocation130_spill] sm:$0xff] %v10001_v19 }
 0x3fc   :  { %17429 = vst [vmem:[#allocation131_spill] sm:$0xff] %v10004_v50  ;;  %v2344_v50 = vrot.slane %v2131_v6, 2  ;;  %v2354_v6 = vrot.slane %v10049_v51, 2  ;;  %v17488_v51 = vrot.slane %v17487_v46, 2 }
 0x3fd   :  { %17431 = vst [vmem:[#allocation50_spill] sm:$0xff] %v10007_v49  ;;  %v2343_v49 = vrot.slane %v2130_v53, 2  ;;  %v2353_v53 = vrot.slane %v2136_v21, 2 }
 0x3fe   :  { %17433 = vst [vmem:[#allocation132_spill] sm:$0xff] %v10010_v12  ;;  %v17476_v12 = vld [vmem:[#allocation138_spill] sm:$0xff] }
 0x3ff   :  { %17435 = vst [vmem:[#allocation52_spill] sm:$0xff] %v10013_v18 }
 0x400   :  { %17437 = vst [vmem:[#allocation133_spill] sm:$0xff] %v10016_v47 }
 0x401   :  { %17439 = vst [vmem:[#allocation141_spill] sm:$0xff] %v10019_v59  ;;  %v17474_v59 = vld [vmem:[#allocation61_spill] sm:$0xff] }
 0x402   :  { %17441 = vst [vmem:[#allocation142_spill] sm:$0xff] %v10022_v63  ;;  %v17473_v63 = vld [vmem:[#allocation16_spill] sm:$0xff]  ;;  %v10133_v47 = vmul.f32 %v17449_v0, %v17474_v59  ;;  %v2348_v59 = vrot.slane %v2133_v61, 2  ;;  %v17483_v61 = vld [vmem:[#allocation145_spill] sm:$0xff] }
 0x403   :  { %17443 = vst [vmem:[#allocation70_spill] sm:$0xff] %v10025_v54  ;;  %v17472_v54 = vld [vmem:[#allocation60_spill] sm:$0xff]  ;;  %v10170_v44 = vmul.f32 %v17449_v0, %v17483_v61  ;;  %v10191_v61 = vsel %vm2292_vm9, %v2343_v49, %v2344_v50  ;;  %v2363_v49 = vrot.slane %v10065_v48, 2  ;;  %v2379_v48 = vrot.slane %v17499_v26, 2 }
 0x404   :  { %17445 = vst [vmem:[#allocation66_spill] sm:$0xff] %v10028_v27  ;;  %v10111_v27 = vld [vmem:[#allocation2 + $0x2a0] sm:$0xff]  ;;  %v10199_v46 = vsel %vm2292_vm9, %v2348_v59, %v2349_v24  ;;  %v2364_v59 = vrot.slane %v10069_v11, 2 }
 0x405   :  { %17447 = vst [vmem:[#allocation146_spill] sm:$0xff] %v10031_v60  ;;  %v17469_v60 = vld [vmem:[#allocation134_spill] sm:$0xff]  ;;  %v10115_v16 = vmul.f32 %v10111_v27, %v17449_v0 }
 0x406   :  { %17448 = vst [vmem:[#allocation147_spill] sm:$0xff] %v10033_v38  ;;  %v17468_v38 = vld [vmem:[#allocation12_spill] sm:$0xff]  ;;  %v10109_v10 = vmul.f32 %v17449_v0, %v17469_v60  ;;  %v10129_v60 = vmul.f32 %v17449_v0, %v17473_v63  ;;  %v17478_v63 = vld [vmem:[#allocation9_spill] sm:$0xff] }
 0x407   :  { %17450 = vst [vmem:[#allocation148_spill] sm:$0xff] %v10037_v4  ;;  %v17467_v4 = vld [vmem:[#allocation24_spill] sm:$0xff]  ;;  %v10105_v30 = vmul.f32 %v17449_v0, %v17468_v38  ;;  %v10125_v38 = vmul.f32 %v17449_v0, %v17472_v54  ;;  %v17477_v54 = vld [vmem:[#allocation139_spill] sm:$0xff]  ;;  %v10149_v58 = vmul.f32 %v17449_v0, %v17478_v63  ;;  %v10166_v63 = vmul.f32 %v17449_v0, %v17482_v14 }
 0x408   :  { %v10101_v35 = vmul.f32 %v17449_v0, %v17467_v4  ;;  %17470 = vst [vmem:[#allocation83_spill] sm:$0xff] %v10111_v27  ;;  %v10121_v4 = vmul.f32 %v10117_v1, %v17449_v0  ;;  %v17475_v27 = vld [vmem:[#allocation135_spill] sm:$0xff]  ;;  %v10145_v19 = vmul.f32 %v17449_v0, %v17477_v54  ;;  %v10162_v54 = vmul.f32 %v17449_v0, %v17481_v55  ;;  %v17489_v55 = vld [vmem:[#allocation121_spill] sm:$0xff] }
 0x409   :  { %17471 = vst [vmem:[#allocation79_spill] sm:$0xff] %v10117_v1  ;;  %v10137_v18 = vmul.f32 %v17449_v0, %v17475_v27  ;;  %v10141_v1 = vmul.f32 %v17449_v0, %v17476_v12  ;;  %v10153_v27 = vmul.f32 %v17449_v0, %v17479_v8  ;;  %v10157_v12 = vmul.f32 %v17449_v0, %v17480_v37  ;;  %v17484_v8 = vld [vmem:[#allocation80_spill] sm:$0xff]  ;;  %v17485_v37 = vld [vmem:[#allocation101_spill] sm:$0xff] }
 0x40a   :  { %v10174_v36 = vmul.f32 %v17449_v0, %v17484_v8  ;;  %v17486_v21 = vrot.slane %v17485_v37, 2  ;;  %v17490_v23 = vrot.slane %v17489_v55, 2  ;;  %v17492_v14 = vrot.slane %v17491_v15, 2  ;;  %v17495_v37 = vld [vmem:[#allocation43_spill] sm:$0xff]  ;;  %v17497_v15 = vld [vmem:[#allocation48_spill] sm:$0xff] }
 0x40b   :  { %v17494_v0 = vrot.slane %v17493_v20, 2  ;;  %v2359_v20 = vrot.slane %v10057_v40, 2  ;;  %v2376_v40 = vrot.slane %v10097_v9, 2  ;;  %v2383_v11 = vrot.slane %v10101_v35, 2 }
 0x40c   :  { %v10181_v42 = vsel %vm2292_vm9, %v17488_v51, %v17486_v21  ;;  %v10188_v43 = vsel %vm2292_vm9, %v17492_v14, %v17490_v23  ;;  %v17496_v21 = vrot.slane %v17495_v37, 2  ;;  %v2356_v51 = vrot.slane %v17497_v15, 2  ;;  %v17498_v15 = vld [vmem:[#allocation49_spill] sm:$0xff] }
 0x40d   :  { %v10196_v8 = vsel %vm2292_vm9, %v2344_v50, %v17494_v0  ;;  %v2358_v23 = vrot.slane %v10053_v56, 2  ;;  %v10209_v14 = vsel %vm2292_vm9, %v2353_v53, %v2354_v6  ;;  %v2361_v50 = vrot.slane %v10061_v3, 2 }
 0x40e   :  { %v10204_v55 = vsel %vm2292_vm9, %v2349_v24, %v17496_v21  ;;  %v2366_v0 = vrot.slane %v10073_v41, 2  ;;  %v2368_v24 = vrot.slane %v10077_v32, 2  ;;  %v2369_v37 = vrot.slane %v10081_v7, 2 }
 0x40f   :  { %v2371_v21 = vrot.slane %v10085_v25, 2  ;;  %v2373_v56 = vrot.slane %v10089_v13, 2  ;;  %v2374_v53 = vrot.slane %v10093_v31, 2  ;;  %v2378_v3 = vrot.slane %v17498_v15, 2 }
 0x410   :  { %v2384_v41 = vrot.slane %v10105_v30, 2  ;;  %v2357_v32 = vsel %vm2292_vm9, %v2354_v6, %v2356_v51  ;;  %v2388_v7 = vrot.slane %v10109_v10, 2  ;;  %v2393_v25 = vrot.slane %v17500_v28, 2  ;;  %v17502_v51 = vld [vmem:[#allocation55_spill] sm:$0xff] }
 0x411   :  { %v2394_v13 = vrot.slane %v17501_v2, 2  ;;  %v2360_v31 = vsel %vm2292_vm9, %v2358_v23, %v2359_v20  ;;  %v2362_v9 = vsel %vm2292_vm9, %v2359_v20, %v2361_v50  ;;  %v2365_v15 = vsel %vm2292_vm9, %v2363_v49, %v2364_v59  ;;  %v17504_v50 = vld [vmem:[#allocation57_spill] sm:$0xff] }
 0x412   :  { %v2367_v26 = vsel %vm2292_vm9, %v2364_v59, %v2366_v0  ;;  %v2370_v35 = vsel %vm2292_vm9, %v2368_v24, %v2369_v37  ;;  %v2372_v30 = vsel %vm2292_vm9, %v2369_v37, %v2371_v21  ;;  %v2375_v6 = vsel %vm2292_vm9, %v2373_v56, %v2374_v53  ;;  %v17506_v0 = vld [vmem:[#allocation58_spill] sm:$0xff]  ;;  %v17508_v56 = vld [vmem:[#allocation56_spill] sm:$0xff] }
 0x413   :  { %v2377_v10 = vsel %vm2292_vm9, %v2374_v53, %v2376_v40  ;;  %v2380_v28 = vsel %vm2292_vm9, %v2378_v3, %v2379_v48  ;;  %v17503_v2 = vrot.slane %v17502_v51, 2  ;;  %v2385_v20 = vsel %vm2292_vm9, %v2383_v11, %v2384_v41  ;;  %v17510_v40 = vld [vmem:[#allocation67_spill] sm:$0xff] }
 0x414   :  { %v17505_v49 = vrot.slane %v17504_v50, 2  ;;  %v17507_v24 = vrot.slane %v17506_v0, 2  ;;  %v2395_v21 = vsel %vm2292_vm9, %v2393_v25, %v2394_v13  ;;  %v17509_v53 = vrot.slane %v17508_v56, 2 }
 0x415   :  { %v2382_v23 = vsel %vm2292_vm9, %v2379_v48, %v17503_v2  ;;  %v17511_v3 = vrot.slane %v17510_v40, 2  ;;  %v2423_v48 = vrot.slane %v10115_v16, 2  ;;  %v2424_v11 = vrot.slane %v10121_v4, 2 }
 0x416   :  { %v2387_v59 = vsel %vm2292_vm9, %v2384_v41, %v17505_v49  ;;  %v2390_v37 = vsel %vm2292_vm9, %v2388_v7, %v17507_v24  ;;  %v2428_v2 = vrot.slane %v10125_v38, 2  ;;  %v2429_v41 = vrot.slane %v10129_v60, 2  ;;  %v17512_v49 = vld [vmem:[#allocation68_spill] sm:$0xff] }
 0x417   :  { %v2400_v51 = vsel %vm2292_vm9, %v17511_v3, %v17509_v53  ;;  %v2433_v50 = vrot.slane %v10133_v47, 2  ;;  %v2434_v7 = vrot.slane %v10137_v18, 2  ;;  %v2436_v25 = vrot.slane %v17512_v49, 2  ;;  %v17513_v53 = vld [vmem:[#allocation64_spill] sm:$0xff]  ;;  %v17515_v3 = vld [vmem:[#allocation77_spill] sm:$0xff] }
 0x418   :  { %v2438_v0 = vrot.slane %v10141_v1, 2  ;;  %v2439_v24 = vrot.slane %v10145_v19, 2  ;;  %v2441_v56 = vrot.slane %v10149_v58, 2  ;;  %v2443_v16 = vrot.slane %v10153_v27, 2  ;;  %v17517_v49 = vld [vmem:[#allocation76_spill] sm:$0xff] }
 0x419   :  { %v2444_v4 = vrot.slane %v10157_v12, 2  ;;  %v2446_v38 = vrot.slane %v10162_v54, 2  ;;  %v17514_v60 = vrot.slane %v17513_v53, 2  ;;  %v2448_v18 = vrot.slane %v10166_v63, 2 }
 0x41a   :  { %v2449_v40 = vrot.slane %v10170_v44, 2  ;;  %v2451_v1 = vrot.slane %v10174_v36, 2  ;;  %v17516_v19 = vrot.slane %v17515_v3, 2  ;;  %v17518_v58 = vrot.slane %v17517_v49, 2 }
 0x41b   :  { %v2397_v47 = vsel %vm2292_vm9, %v2394_v13, %v17514_v60  ;;  %v17520_v12 = vrot.slane %v17519_v52, 2  ;;  %v17522_v54 = vrot.slane %v17521_v29, 2  ;;  %v2425_v13 = vsel %vm2292_vm9, %v2423_v48, %v2424_v11  ;;  %v17523_v60 = vld [vmem:[#allocation65_spill] sm:$0xff] }
 0x41c   :  { %v2415_v27 = vsel %vm2292_vm9, %v17518_v58, %v17516_v19  ;;  %v17524_v63 = vrot.slane %v17523_v60, 2  ;;  %v2430_v36 = vsel %vm2292_vm9, %v2428_v2, %v2429_v41  ;;  %v17526_v3 = vrot.slane %v17525_v34, 2 }
 0x41d   :  { %v2420_v53 = vsel %vm2292_vm9, %v17522_v54, %v17520_v12  ;;  %v2435_v19 = vsel %vm2292_vm9, %v2433_v50, %v2434_v7  ;;  %v2437_v52 = vsel %vm2292_vm9, %v2434_v7, %v2436_v25  ;;  %v2440_v29 = vsel %vm2292_vm9, %v2438_v0, %v2439_v24 }
 0x41e   :  { %v2427_v44 = vsel %vm2292_vm9, %v2424_v11, %v17524_v63  ;;  %v2432_v49 = vsel %vm2292_vm9, %v2429_v41, %v17526_v3  ;;  %v2442_v58 = vsel %vm2292_vm9, %v2439_v24, %v2441_v56  ;;  %v2445_v48 = vsel %vm2292_vm9, %v2443_v16, %v2444_v4  ;;  %v17556_v3 = vld [vmem:[#allocation94_spill] sm:$0xff] }
 0x41f   :  { %v2447_v12 = vsel %vm2292_vm9, %v2444_v4, %v2446_v38  ;;  %v2450_v11 = vsel %vm2292_vm9, %v2448_v18, %v2449_v40  ;;  %v2452_v2 = vsel %vm2292_vm9, %v2449_v40, %v2451_v1  ;;  %v10302_v34 = vadd.f32 %v10181_v42, %v9915_v22  ;;  %v17547_v40 = vld [vmem:[#allocation69_spill] sm:$0xff] }
 0x420   :  { %v10306_v41 = vadd.f32 %v10188_v43, %v9918_v57  ;;  %v10310_v50 = vadd.f32 %v10191_v61, %v9923_v17  ;;  %v10314_v7 = vadd.f32 %v10196_v8, %v9927_v62  ;;  %v10318_v25 = vadd.f32 %v10199_v46, %v9930_v33  ;;  %v17527_v17 = vld [vmem:[#allocation75_spill] sm:$0xff]  ;;  %v17528_v62 = vld [vmem:[#allocation74_spill] sm:$0xff]  ;;  %v17529_v61 = vld [vmem:[#allocation81_spill] sm:$0xff] }
 0x421   :  { %v10322_v22 = vadd.f32 %v10204_v55, %v9933_v45  ;;  %v10326_v57 = vadd.f32 %v10209_v14, %v9936_v39  ;;  %v10329_v43 = vadd.f32 %v2357_v32, %v9939_v5  ;;  %v10332_v42 = vadd.f32 %v2360_v31, %v17527_v17  ;;  %v17530_v46 = vld [vmem:[#allocation87_spill] sm:$0xff]  ;;  %v17531_v45 = vld [vmem:[#allocation92_spill] sm:$0xff]  ;;  %v17532_v39 = vld [vmem:[#allocation97_spill] sm:$0xff] }
 0x422   :  { %v10335_v8 = vadd.f32 %v2362_v9, %v17528_v62  ;;  %v10338_v33 = vadd.f32 %v2365_v15, %v17529_v61  ;;  %v10341_v0 = vadd.f32 %v2367_v26, %v17530_v46  ;;  %v10344_v55 = vadd.f32 %v2370_v35, %v17531_v45  ;;  %v17533_v5 = vld [vmem:[#allocation93_spill] sm:$0xff]  ;;  %v17534_v31 = vld [vmem:[#allocation98_spill] sm:$0xff]  ;;  %v17536_v9 = vld [vmem:[#allocation107_spill] sm:$0xff] }
 0x423   :  { %v10347_v14 = vadd.f32 %v2372_v30, %v17532_v39  ;;  %v10350_v32 = vadd.f32 %v2375_v6, %v17533_v5  ;;  %v10353_v24 = vadd.f32 %v2377_v10, %v17534_v31  ;;  %v10356_v56 = vadd.f32 %v2380_v28, %v17536_v9  ;;  %v17538_v15 = vld [vmem:[#allocation103_spill] sm:$0xff]  ;;  %v17540_v26 = vld [vmem:[#allocation108_spill] sm:$0xff]  ;;  %v17542_v35 = vld [vmem:[#allocation113_spill] sm:$0xff] }
 0x424   :  { %v10359_v16 = vadd.f32 %v2382_v23, %v17538_v15  ;;  %v10362_v4 = vadd.f32 %v2385_v20, %v17540_v26  ;;  %v10365_v38 = vadd.f32 %v2387_v59, %v17542_v35  ;;  %v17544_v30 = vld [vmem:[#allocation109_spill] sm:$0xff]  ;;  %v17546_v6 = vld [vmem:[#allocation46_spill] sm:$0xff]  ;;  %v17549_v10 = vld [vmem:[#allocation127_spill] sm:$0xff] }
 0x425   :  { %17535 = vst [vmem:[#allocation85_spill] sm:$0xff] %v10353_v24  ;;  %v10368_v18 = vadd.f32 %v2390_v37, %v17544_v30  ;;  %v10372_v1 = vadd.f32 %v17547_v40, %v17546_v6  ;;  %v10375_v54 = vadd.f32 %v2395_v21, %v17549_v10  ;;  %v17551_v28 = vld [vmem:[#allocation126_spill] sm:$0xff]  ;;  %v17553_v23 = vld [vmem:[#allocation128_spill] sm:$0xff]  ;;  %v17555_v20 = vld [vmem:[#allocation51_spill] sm:$0xff] }
 0x426   :  { %17537 = vst [vmem:[#allocation106_spill] sm:$0xff] %v10356_v56  ;;  %v10378_v60 = vadd.f32 %v2397_v47, %v17551_v28  ;;  %v10381_v63 = vadd.f32 %v2400_v51, %v17553_v23  ;;  %v10385_v59 = vadd.f32 %v17556_v3, %v17555_v20  ;;  %v17558_v17 = vld [vmem:[#allocation99_spill] sm:$0xff]  ;;  %v17560_v62 = vld [vmem:[#allocation102_spill] sm:$0xff]  ;;  %v17562_v46 = vld [vmem:[#allocation129_spill] sm:$0xff] }
 0x427   :  { %17539 = vst [vmem:[#allocation116_spill] sm:$0xff] %v10359_v16  ;;  %v10388_v37 = vadd.f32 %v2415_v27, %v17558_v17  ;;  %v10391_v61 = vadd.f32 %v2420_v53, %v17560_v62  ;;  %v10394_v45 = vadd.f32 %v2425_v13, %v17562_v46  ;;  %v17564_v21 = vld [vmem:[#allocation130_spill] sm:$0xff]  ;;  %v17566_v47 = vld [vmem:[#allocation131_spill] sm:$0xff]  ;;  %v17570_v9 = vld [vmem:[#allocation132_spill] sm:$0xff] }
 0x428   :  { %17541 = vst [vmem:[#allocation115_spill] sm:$0xff] %v10362_v4  ;;  %v10397_v39 = vadd.f32 %v2427_v44, %v17564_v21  ;;  %v10400_v5 = vadd.f32 %v2430_v36, %v17566_v47  ;;  %v17568_v51 = vld [vmem:[#allocation50_spill] sm:$0xff]  ;;  %v10406_v15 = vadd.f32 %v2435_v19, %v17570_v9  ;;  %v17572_v27 = vld [vmem:[#allocation52_spill] sm:$0xff]  ;;  %v17574_v53 = vld [vmem:[#allocation133_spill] sm:$0xff] }
 0x429   :  { %17543 = vst [vmem:[#allocation118_spill] sm:$0xff] %v10365_v38  ;;  %v10403_v31 = vadd.f32 %v2432_v49, %v17568_v51  ;;  %v10409_v26 = vadd.f32 %v2437_v52, %v17572_v27  ;;  %v10412_v35 = vadd.f32 %v2440_v29, %v17574_v53  ;;  %v17576_v13 = vld [vmem:[#allocation141_spill] sm:$0xff]  ;;  %v17578_v44 = vld [vmem:[#allocation142_spill] sm:$0xff]  ;;  %v17589_v20 = vld [vmem:[#allocation147_spill] sm:$0xff] }
 0x42a   :  { %17545 = vst [vmem:[#allocation119_spill] sm:$0xff] %v10368_v18  ;;  %v10415_v30 = vadd.f32 %v2442_v58, %v17576_v13  ;;  %v10418_v6 = vadd.f32 %v2445_v48, %v17578_v44  ;;  %v17580_v36 = vld [vmem:[#allocation70_spill] sm:$0xff]  ;;  %v10423_v49 = vld [vmem:[#allocation2 + $0x180] sm:$0xff]  ;;  %v17592_v62 = vld [vmem:[#allocation27_spill] sm:$0xff] }
 0x42b   :  { %17548 = vst [vmem:[#allocation117_spill] sm:$0xff] %v10372_v1  ;;  %v10421_v40 = vadd.f32 %v2447_v12, %v17580_v36  ;;  %v10425_v10 = vld [vmem:[#allocation2 + $0x188] sm:$0xff]  ;;  %v17590_v3 = vld [vmem:[#allocation148_spill] sm:$0xff]  ;;  %v17597_v13 = vld [vmem:[#allocation15_spill] sm:$0xff] }
 0x42c   :  { %17550 = vst [vmem:[#allocation149_spill] sm:$0xff] %v10375_v54  ;;  %v17584_v19 = vld [vmem:[#allocation66_spill] sm:$0xff]  ;;  %v17593_v21 = vld [vmem:[#allocation28_spill] sm:$0xff]  ;;  %v17596_v27 = vld [vmem:[#allocation13_spill] sm:$0xff] }
 0x42d   :  { %17552 = vst [vmem:[#allocation150_spill] sm:$0xff] %v10378_v60  ;;  %v10428_v28 = vadd.f32 %v2450_v11, %v17584_v19  ;;  %v17586_v52 = vld [vmem:[#allocation146_spill] sm:$0xff]  ;;  %v17594_v11 = vld [vmem:[#allocation29_spill] sm:$0xff]  ;;  %v17621_v54 = vld [vmem:[#allocation139_spill] sm:$0xff] }
 0x42e   :  { %17554 = vst [vmem:[#allocation152_spill] sm:$0xff] %v10381_v63  ;;  %v10431_v23 = vadd.f32 %v2452_v2, %v17586_v52  ;;  %v17588_v29 = vld [vmem:[#allocation18_spill] sm:$0xff]  ;;  %v17595_v2 = vld [vmem:[#allocation19_spill] sm:$0xff]  ;;  %v17598_v36 = vld [vmem:[#allocation105_spill] sm:$0xff] }
 0x42f   :  { %17557 = vst [vmem:[#allocation153_spill] sm:$0xff] %v10385_v59  ;;  %v2600_v58 = vmul.f32 %v17589_v20, %v17588_v29  ;;  %v2601_v48 = vmul.f32 %v17590_v3, %v17588_v29  ;;  %v17591_v17 = vld [vmem:[#allocation90_spill] sm:$0xff]  ;;  %v2603_v46 = vmul.f32 %v17588_v29, %v17592_v62  ;;  %v2604_v47 = vmul.f32 %v17588_v29, %v17593_v21  ;;  %v17599_v52 = vld [vmem:[#allocation111_spill] sm:$0xff]  ;;  %v17622_v18 = vld [vmem:[#allocation140_spill] sm:$0xff] }
 0x430   :  { %17559 = vst [vmem:[#allocation154_spill] sm:$0xff] %v10388_v37  ;;  %v2602_v12 = vmul.f32 %v17588_v29, %v17591_v17  ;;  %v2605_v51 = vmul.f32 %v17588_v29, %v17594_v11  ;;  %v2606_v9 = vmul.f32 %v17588_v29, %v17595_v2  ;;  %v2607_v53 = vmul.f32 %v17588_v29, %v17596_v27  ;;  %v17600_v17 = vld [vmem:[#allocation31_spill] sm:$0xff]  ;;  %v10461_v3 = vld [vmem:[#allocation2 + $0x1c8] sm:$0xff]  ;;  %v17624_v4 = vld [vmem:[#allocation144_spill] sm:$0xff] }
 0x431   :  { %17561 = vst [vmem:[#allocation155_spill] sm:$0xff] %v10391_v61  ;;  %v2608_v44 = vmul.f32 %v17588_v29, %v17597_v13  ;;  %v2609_v19 = vmul.f32 %v17588_v29, %v17598_v36  ;;  %v2610_v62 = vmul.f32 %v17588_v29, %v17599_v52  ;;  %v2611_v21 = vmul.f32 %v17588_v29, %v17600_v17  ;;  %v10465_v27 = vld [vmem:[#allocation2 + $0x1d0] sm:$0xff]  ;;  %v17603_v52 = vld [vmem:[#allocation24_spill] sm:$0xff]  ;;  %v17625_v16 = vld [vmem:[#allocation145_spill] sm:$0xff] }
 0x432   :  { %17563 = vst [vmem:[#allocation157_spill] sm:$0xff] %v10394_v45  ;;  %v2612_v11 = vmul.f32 %v17588_v29, %v10423_v49  ;;  %v2613_v2 = vmul.f32 %v17588_v29, %v10425_v10  ;;  %v2614_v13 = vmul.f32 %v10461_v3, %v17588_v29  ;;  %v2615_v36 = vmul.f32 %v10465_v27, %v17588_v29  ;;  %v17604_v17 = vld [vmem:[#allocation12_spill] sm:$0xff]  ;;  %v17619_v63 = vld [vmem:[#allocation135_spill] sm:$0xff]  ;;  %v17620_v60 = vld [vmem:[#allocation138_spill] sm:$0xff] }
 0x433   :  { %17565 = vst [vmem:[#allocation158_spill] sm:$0xff] %v10397_v39  ;;  %v2616_v20 = vmul.f32 %v17588_v29, %v17603_v52  ;;  %v17616_v45 = vld [vmem:[#allocation60_spill] sm:$0xff]  ;;  %v2639_v1 = vmul.f32 %v17588_v29, %v17621_v54  ;;  %v17623_v38 = vld [vmem:[#allocation143_spill] sm:$0xff] }
 0x434   :  { %17567 = vst [vmem:[#allocation159_spill] sm:$0xff] %v10400_v5  ;;  %v17615_v5 = vld [vmem:[#allocation79_spill] sm:$0xff]  ;;  %v17617_v61 = vld [vmem:[#allocation16_spill] sm:$0xff] }
 0x435   :  { %17569 = vst [vmem:[#allocation160_spill] sm:$0xff] %v10403_v31  ;;  %v10503_v31 = vld [vmem:[#allocation2 + $0x338] sm:$0xff]  ;;  %v2633_v39 = vmul.f32 %v17615_v5, %v17588_v29  ;;  %v2635_v37 = vmul.f32 %v17588_v29, %v17617_v61  ;;  %v2640_v5 = vmul.f32 %v17588_v29, %v17622_v18  ;;  %v2642_v61 = vmul.f32 %v17588_v29, %v17624_v4 }
 0x436   :  { %17571 = vst [vmem:[#allocation11_spill] sm:$0xff] %v10406_v15  ;;  %v17613_v15 = vld [vmem:[#allocation83_spill] sm:$0xff]  ;;  %v17626_v54 = vld [vmem:[#allocation104_spill] sm:$0xff]  ;;  %v10536_v18 = vadd.f32 %v2600_v58, %v10306_v41  ;;  %v10542_v4 = vadd.f32 %v2602_v12, %v10310_v50  ;;  %v10557_v41 = vadd.f32 %v2607_v53, %v10329_v43  ;;  %v10563_v50 = vadd.f32 %v2609_v19, %v10335_v8  ;;  %v17646_v8 = vld [vmem:[#allocation106_spill] sm:$0xff] }
 0x437   :  { %17573 = vst [vmem:[#allocation136_spill] sm:$0xff] %v10409_v26  ;;  %v10497_v26 = vld [vmem:[#allocation2 + $0x240] sm:$0xff]  ;;  %v10533_v56 = vadd.f32 %v17626_v54, %v10302_v34  ;;  %v10554_v34 = vadd.f32 %v2606_v9, %v10326_v57  ;;  %v10575_v57 = vadd.f32 %v2613_v2, %v10347_v14  ;;  %v10578_v43 = vadd.f32 %v2614_v13, %v10350_v32  ;;  %v17654_v14 = vld [vmem:[#allocation119_spill] sm:$0xff]  ;;  %v17665_v9 = vld [vmem:[#allocation110_spill] sm:$0xff] }
 0x438   :  { %17575 = vst [vmem:[#allocation137_spill] sm:$0xff] %v10412_v35  ;;  %v10493_v35 = vld [vmem:[#allocation2 + $0x230] sm:$0xff]  ;;  %v10584_v58 = vadd.f32 %v2616_v20, %v17646_v8  ;;  %v17656_v32 = vld [vmem:[#allocation117_spill] sm:$0xff]  ;;  %v17672_v19 = vld [vmem:[#allocation100_spill] sm:$0xff] }
 0x439   :  { %17577 = vst [vmem:[#allocation162_spill] sm:$0xff] %v10415_v30  ;;  %v10487_v30 = vld [vmem:[#allocation2 + $0x330] sm:$0xff] }
 0x43a   :  { %17579 = vst [vmem:[#allocation101_spill] sm:$0xff] %v10418_v6  ;;  %v17660_v20 = vld [vmem:[#allocation150_spill] sm:$0xff] }
 0x43b   :  { %17581 = vst [vmem:[#allocation96_spill] sm:$0xff] %v10421_v40  ;;  %v17668_v13 = vld [vmem:[#allocation114_spill] sm:$0xff] }
 0x43c   :  { %17582 = vst [vmem:[#allocation121_spill] sm:$0xff] %v10423_v49  ;;  %v17605_v49 = vld [vmem:[#allocation134_spill] sm:$0xff] }
 0x43d   :  { %17583 = vst [vmem:[#allocation112_spill] sm:$0xff] %v10425_v10  ;;  %v10475_v10 = vld [vmem:[#allocation2 + $0x200] sm:$0xff]  ;;  %v17677_v8 = vld [vmem:[#allocation158_spill] sm:$0xff] }
 0x43e   :  { %17585 = vst [vmem:[#allocation38_spill] sm:$0xff] %v10428_v28  ;;  %v2618_v28 = vmul.f32 %v17588_v29, %v17605_v49  ;;  %v2619_v40 = vmul.f32 %v10475_v10, %v17588_v29 }
 0x43f   :  { %17587 = vst [vmem:[#allocation43_spill] sm:$0xff] %v10431_v23  ;;  %v2617_v23 = vmul.f32 %v17588_v29, %v17604_v17  ;;  %v10489_v17 = vld [vmem:[#allocation2 + $0x228] sm:$0xff] }
 0x440   :  { %17601 = vst [vmem:[#allocation48_spill] sm:$0xff] %v10461_v3  ;;  %v10479_v3 = vld [vmem:[#allocation2 + $0x210] sm:$0xff]  ;;  %v2622_v49 = vmul.f32 %v10489_v17, %v17588_v29 }
 0x441   :  { %17602 = vst [vmem:[#allocation49_spill] sm:$0xff] %v10465_v27  ;;  %v2620_v6 = vmul.f32 %v10479_v3, %v17588_v29  ;;  %v10483_v27 = vld [vmem:[#allocation2 + $0x218] sm:$0xff] }
 0x442   :  { %17606 = vst [vmem:[#allocation54_spill] sm:$0xff] %v10475_v10  ;;  %v2621_v52 = vmul.f32 %v10483_v27, %v17588_v29  ;;  %v2623_v10 = vmul.f32 %v10493_v35, %v17588_v29 }
 0x443   :  { %17607 = vst [vmem:[#allocation59_spill] sm:$0xff] %v10479_v3  ;;  %v2624_v3 = vmul.f32 %v10497_v26, %v17588_v29 }
 0x444   :  { %17608 = vst [vmem:[#allocation63_spill] sm:$0xff] %v10483_v27  ;;  %v2632_v27 = vmul.f32 %v17613_v15, %v17588_v29  ;;  %v2638_v15 = vmul.f32 %v17588_v29, %v17620_v60  ;;  %v2645_v60 = vmul.f32 %v17588_v29, %v10503_v31 }
 0x445   :  { %17609 = vst [vmem:[#allocation55_spill] sm:$0xff] %v10487_v30 }
 0x446   :  { %17610 = vst [vmem:[#allocation57_spill] sm:$0xff] %v10489_v17  ;;  %v2634_v17 = vmul.f32 %v17588_v29, %v17616_v45  ;;  %v2641_v45 = vmul.f32 %v17588_v29, %v17623_v38  ;;  %v17629_v38 = vld [vmem:[#allocation71_spill] sm:$0xff] }
 0x447   :  { %17611 = vst [vmem:[#allocation58_spill] sm:$0xff] %v10493_v35  ;;  %v17618_v35 = vld [vmem:[#allocation61_spill] sm:$0xff]  ;;  %v10539_v24 = vadd.f32 %v2601_v48, %v17629_v38  ;;  %v10560_v38 = vadd.f32 %v2608_v44, %v10332_v42  ;;  %v17670_v44 = vld [vmem:[#allocation155_spill] sm:$0xff] }
 0x448   :  { %17612 = vst [vmem:[#allocation56_spill] sm:$0xff] %v10497_v26  ;;  %v2636_v59 = vmul.f32 %v17588_v29, %v17618_v35  ;;  %v2637_v26 = vmul.f32 %v17588_v29, %v17619_v63  ;;  %v2643_v35 = vmul.f32 %v17588_v29, %v17625_v16  ;;  %v2644_v63 = vmul.f32 %v17588_v29, %v10487_v30  ;;  %v17644_v42 = vld [vmem:[#allocation85_spill] sm:$0xff] }
 0x449   :  { %17614 = vst [vmem:[#allocation67_spill] sm:$0xff] %v10503_v31  ;;  %v10545_v16 = vadd.f32 %v2603_v46, %v10314_v7  ;;  %v10548_v30 = vadd.f32 %v2604_v47, %v10318_v25  ;;  %v10551_v29 = vadd.f32 %v2605_v51, %v10322_v22  ;;  %v10566_v7 = vadd.f32 %v2610_v62, %v10338_v33  ;;  %v17648_v33 = vld [vmem:[#allocation116_spill] sm:$0xff]  ;;  %v17658_v47 = vld [vmem:[#allocation149_spill] sm:$0xff] }
 0x44a   :  { %17627 = vst [vmem:[#allocation68_spill] sm:$0xff] %v10533_v56  ;;  %v10569_v25 = vadd.f32 %v2611_v21, %v10341_v0  ;;  %v10572_v22 = vadd.f32 %v2612_v11, %v10344_v55  ;;  %v10581_v54 = vadd.f32 %v2615_v36, %v17644_v42  ;;  %v10587_v48 = vadd.f32 %v2617_v23, %v17648_v33  ;;  %v17650_v0 = vld [vmem:[#allocation115_spill] sm:$0xff]  ;;  %v17652_v55 = vld [vmem:[#allocation118_spill] sm:$0xff]  ;;  %v17662_v23 = vld [vmem:[#allocation152_spill] sm:$0xff] }
 0x44b   :  { %17628 = vst [vmem:[#allocation64_spill] sm:$0xff] %v10536_v18  ;;  %v10590_v12 = vadd.f32 %v2618_v28, %v17650_v0  ;;  %v10593_v62 = vadd.f32 %v2619_v40, %v17652_v55  ;;  %v10596_v46 = vadd.f32 %v2620_v6, %v17654_v14  ;;  %v10599_v21 = vadd.f32 %v2621_v52, %v17656_v32  ;;  %v17664_v28 = vld [vmem:[#allocation153_spill] sm:$0xff]  ;;  %v17667_v40 = vld [vmem:[#allocation154_spill] sm:$0xff]  ;;  %v17679_v0 = vld [vmem:[#allocation159_spill] sm:$0xff] }
 0x44c   :  { %17630 = vst [vmem:[#allocation77_spill] sm:$0xff] %v10539_v24  ;;  %v10602_v11 = vadd.f32 %v2622_v49, %v17658_v47  ;;  %v10605_v51 = vadd.f32 %v2623_v10, %v17660_v20  ;;  %v10608_v2 = vadd.f32 %v2624_v3, %v17662_v23  ;;  %v10612_v53 = vadd.f32 %v17665_v9, %v17664_v28  ;;  %v10627_v10 = vld [vmem:[%s16261_s5 + $0x4] sm:$0x7]  ;;  %v17675_v52 = vld [vmem:[#allocation157_spill] sm:$0xff]  ;;  %v17683_v14 = vld [vmem:[#allocation11_spill] sm:$0xff] }
 0x44d   :  { %17631 = vst [vmem:[#allocation76_spill] sm:$0xff] %v10542_v4  ;;  %v10616_v6 = vadd.f32 %v17668_v13, %v17667_v40  ;;  %v10619_v36 = vadd.f32 %v2632_v27, %v17670_v44  ;;  %v10622_v49 = vadd.f32 %v2633_v39, %v17672_v19  ;;  %v10630_v3 = vperm.slane %v10627_v10, 1  ;;  %v17681_v55 = vld [vmem:[#allocation160_spill] sm:$0xff]  ;;  %v17687_v23 = vld [vmem:[#allocation137_spill] sm:$0xff]  ;;  %v17763_v56 = vld [vmem:[#allocation59_spill] sm:$0xff] }
 0x44e   :  { %17632 = vst [vmem:[#allocation82_spill] sm:$0xff] %v10545_v16  ;;  %v10633_v42 = vadd.f32 %v2634_v17, %v17675_v52  ;;  %v10636_v33 = vadd.f32 %v2635_v37, %v17677_v8  ;;  %v10639_v27 = vadd.f32 %v2636_v59, %v17679_v0  ;;  %v10642_v39 = vadd.f32 %v2637_v26, %v17681_v55  ;;  %v17685_v47 = vld [vmem:[#allocation136_spill] sm:$0xff]  ;;  %v17689_v17 = vld [vmem:[#allocation162_spill] sm:$0xff]  ;;  %v17691_v37 = vld [vmem:[#allocation101_spill] sm:$0xff] }
 0x44f   :  { %17633 = vst [vmem:[#allocation62_spill] sm:$0xff] %v10548_v30  ;;  %v10645_v32 = vadd.f32 %v2638_v15, %v17683_v14  ;;  %v10648_v20 = vadd.f32 %v2639_v1, %v17685_v47  ;;  %v10651_v28 = vadd.f32 %v2640_v5, %v17687_v23  ;;  %v10654_v9 = vadd.f32 %v2641_v45, %v17689_v17  ;;  %v17693_v59 = vld [vmem:[#allocation96_spill] sm:$0xff]  ;;  %v17695_v26 = vld [vmem:[#allocation38_spill] sm:$0xff]  ;;  %v17697_v15 = vld [vmem:[#allocation43_spill] sm:$0xff] }
 0x450   :  { %17634 = vst [vmem:[#allocation65_spill] sm:$0xff] %v10551_v29  ;;  %v10657_v40 = vadd.f32 %v2642_v61, %v17691_v37  ;;  %v10660_v13 = vadd.f32 %v2643_v35, %v17693_v59  ;;  %v10663_v44 = vadd.f32 %v2644_v63, %v17695_v26  ;;  %v10666_v19 = vadd.f32 %v2645_v60, %v17697_v15  ;;  %v10668_v1 = vld [vmem:[#allocation2 + $0x18] sm:$0xff]  ;;  %v10674_v45 = vld [vmem:[#allocation2 + $0x20] sm:$0xff]  ;;  %v10680_v35 = vld [vmem:[#allocation2 + $0x28] sm:$0x3] }
 0x451   :  { %17635 = vst [vmem:[#allocation88_spill] sm:$0xff] %v10554_v34  ;;  %v10672_v5 = vmul.f32 %v10668_v1, %v10630_v3  ;;  %v10678_v61 = vmul.f32 %v10674_v45, %v10630_v3  ;;  %v10684_v63 = vmul.f32 %v10680_v35, %v10630_v3  ;;  %v10686_v60 = vld [vmem:[#allocation2 + $0x30] sm:$0xff]  ;;  %v10692_v8 = vld [vmem:[#allocation2 + $0x38] sm:$0xff]  ;;  %v10698_v55 = vld [vmem:[#allocation2 + $0x40] sm:$0x3] }
 0x452   :  { %17636 = vst [vmem:[#allocation75_spill] sm:$0xff] %v10557_v41  ;;  %v10690_v52 = vmul.f32 %v10686_v60, %v10630_v3  ;;  %v10696_v0 = vmul.f32 %v10692_v8, %v10630_v3  ;;  %v10702_v14 = vmul.f32 %v10698_v55, %v10630_v3  ;;  %v10704_v47 = vld [vmem:[#allocation2 + $0x48] sm:$0xff]  ;;  %v10710_v17 = vld [vmem:[#allocation2 + $0x50] sm:$0xff]  ;;  %v10716_v59 = vld [vmem:[#allocation2 + $0x58] sm:$0x3] }
 0x453   :  { %17637 = vst [vmem:[#allocation74_spill] sm:$0xff] %v10560_v38  ;;  %v10708_v23 = vmul.f32 %v10704_v47, %v10630_v3  ;;  %v10714_v37 = vmul.f32 %v10710_v17, %v10630_v3  ;;  %v10720_v26 = vmul.f32 %v10716_v59, %v10630_v3  ;;  %v10722_v15 = vld [vmem:[#allocation2 + $0x60] sm:$0xff] }
 0x454   :  { %17638 = vst [vmem:[#allocation81_spill] sm:$0xff] %v10563_v50 }
 0x455   :  { %17639 = vst [vmem:[#allocation87_spill] sm:$0xff] %v10566_v7 }
 0x456   :  { %17640 = vst [vmem:[#allocation92_spill] sm:$0xff] %v10569_v25 }
 0x457   :  { %17641 = vst [vmem:[#allocation97_spill] sm:$0xff] %v10572_v22 }
 0x458   :  { %17642 = vst [vmem:[#allocation93_spill] sm:$0xff] %v10575_v57 }
 0x459   :  { %17643 = vst [vmem:[#allocation98_spill] sm:$0xff] %v10578_v43 }
 0x45a   :  { %17645 = vst [vmem:[#allocation107_spill] sm:$0xff] %v10581_v54  ;;  %v17757_v54 = vld [vmem:[#allocation134_spill] sm:$0xff] }
 0x45b   :  { %17647 = vst [vmem:[#allocation103_spill] sm:$0xff] %v10584_v58  ;;  %v10952_v24 = vmul.f32 %v10630_v3, %v17757_v54  ;;  %v10972_v54 = vld [vmem:[#allocation2 + $0x220] sm:$0x3] }
 0x45c   :  { %17649 = vst [vmem:[#allocation108_spill] sm:$0xff] %v10587_v48 }
 0x45d   :  { %17651 = vst [vmem:[#allocation113_spill] sm:$0xff] %v10590_v12  ;;  %v10930_v12 = vld [vmem:[#allocation2 + $0x1d8] sm:$0x3] }
 0x45e   :  { %17653 = vst [vmem:[#allocation109_spill] sm:$0xff] %v10593_v62  ;;  %v17748_v62 = vld [vmem:[#allocation49_spill] sm:$0xff] }
 0x45f   :  { %17655 = vst [vmem:[#allocation46_spill] sm:$0xff] %v10596_v46  ;;  %v17747_v46 = vld [vmem:[#allocation48_spill] sm:$0xff] }
 0x460   :  { %17657 = vst [vmem:[#allocation69_spill] sm:$0xff] %v10599_v21  ;;  %v17746_v21 = vld [vmem:[#allocation112_spill] sm:$0xff] }
 0x461   :  { %17659 = vst [vmem:[#allocation127_spill] sm:$0xff] %v10602_v11  ;;  %v17745_v11 = vld [vmem:[#allocation121_spill] sm:$0xff] }
 0x462   :  { %17661 = vst [vmem:[#allocation126_spill] sm:$0xff] %v10605_v51  ;;  %v17744_v51 = vld [vmem:[#allocation161_spill] sm:$0xff] }
 0x463   :  { %17663 = vst [vmem:[#allocation128_spill] sm:$0xff] %v10608_v2  ;;  %v17743_v2 = vld [vmem:[#allocation31_spill] sm:$0xff] }
 0x464   :  { %17666 = vst [vmem:[#allocation51_spill] sm:$0xff] %v10612_v53  ;;  %v17742_v53 = vld [vmem:[#allocation111_spill] sm:$0xff] }
 0x465   :  { %17669 = vst [vmem:[#allocation94_spill] sm:$0xff] %v10616_v6  ;;  %v17741_v6 = vld [vmem:[#allocation156_spill] sm:$0xff] }
 0x466   :  { %17671 = vst [vmem:[#allocation99_spill] sm:$0xff] %v10619_v36  ;;  %v17740_v36 = vld [vmem:[#allocation105_spill] sm:$0xff] }
 0x467   :  { %17673 = vst [vmem:[#allocation102_spill] sm:$0xff] %v10622_v49 }
 0x468   :  { %17674 = vst [vmem:[#allocation129_spill] sm:$0xff] %v10627_v10 }
 0x469   :  { %17676 = vst [vmem:[#allocation130_spill] sm:$0xff] %v10633_v42 }
 0x46a   :  { %17678 = vst [vmem:[#allocation131_spill] sm:$0xff] %v10636_v33 }
 0x46b   :  { %17680 = vst [vmem:[#allocation50_spill] sm:$0xff] %v10639_v27  ;;  %v17736_v27 = vld [vmem:[#allocation19_spill] sm:$0xff] }
 0x46c   :  { %17682 = vst [vmem:[#allocation132_spill] sm:$0xff] %v10642_v39  ;;  %v10868_v39 = vld [vmem:[#allocation2 + $0x130] sm:$0x3]  ;;  %v10876_v33 = vmul.f32 %v10630_v3, %v17736_v27  ;;  %v10896_v27 = vmul.f32 %v10630_v3, %v17741_v6  ;;  %v10916_v6 = vmul.f32 %v10630_v3, %v17746_v21  ;;  %v17751_v21 = vld [vmem:[#allocation24_spill] sm:$0xff] }
 0x46d   :  { %17684 = vst [vmem:[#allocation52_spill] sm:$0xff] %v10645_v32  ;;  %v17734_v32 = vld [vmem:[#allocation29_spill] sm:$0xff]  ;;  %v10938_v48 = vmul.f32 %v10630_v3, %v17751_v21 }
 0x46e   :  { %17686 = vst [vmem:[#allocation133_spill] sm:$0xff] %v10648_v20  ;;  %v17733_v20 = vld [vmem:[#allocation28_spill] sm:$0xff]  ;;  %v10958_v21 = vld [vmem:[#allocation2 + $0x208] sm:$0x3] }
 0x46f   :  { %17688 = vst [vmem:[#allocation141_spill] sm:$0xff] %v10651_v28  ;;  %v10854_v28 = vld [vmem:[#allocation2 + $0x118] sm:$0x3] }
 0x470   :  { %17690 = vst [vmem:[#allocation142_spill] sm:$0xff] %v10654_v9 }
 0x471   :  { %17692 = vst [vmem:[#allocation70_spill] sm:$0xff] %v10657_v40 }
 0x472   :  { %17694 = vst [vmem:[#allocation66_spill] sm:$0xff] %v10660_v13  ;;  %v17729_v13 = vld [vmem:[#allocation90_spill] sm:$0xff] }
 0x473   :  { %17696 = vst [vmem:[#allocation146_spill] sm:$0xff] %v10663_v44  ;;  %v10838_v44 = vld [vmem:[#allocation2 + $0x100] sm:$0x3]  ;;  %v10846_v40 = vmul.f32 %v10630_v3, %v17729_v13  ;;  %v10866_v13 = vmul.f32 %v10630_v3, %v17734_v32  ;;  %v17739_v32 = vld [vmem:[#allocation15_spill] sm:$0xff] }
 0x474   :  { %17698 = vst [vmem:[#allocation18_spill] sm:$0xff] %v10666_v19  ;;  %v17727_v19 = vld [vmem:[#allocation148_spill] sm:$0xff]  ;;  %v10888_v49 = vmul.f32 %v10630_v3, %v17739_v32  ;;  %v10908_v32 = vmul.f32 %v10630_v3, %v17744_v51  ;;  %v10928_v51 = vmul.f32 %v17748_v62, %v10630_v3 }
 0x475   :  { %17699 = vst [vmem:[#allocation104_spill] sm:$0xff] %v10668_v1 }
 0x476   :  { %17700 = vst [vmem:[#allocation71_spill] sm:$0xff] %v10674_v45 }
 0x477   :  { %17701 = vst [vmem:[#allocation85_spill] sm:$0xff] %v10680_v35 }
 0x478   :  { %17702 = vst [vmem:[#allocation106_spill] sm:$0xff] %v10686_v60 }
 0x479   :  { %17703 = vst [vmem:[#allocation116_spill] sm:$0xff] %v10692_v8 }
 0x47a   :  { %17704 = vst [vmem:[#allocation115_spill] sm:$0xff] %v10698_v55  ;;  %v10726_v55 = vmul.f32 %v10722_v15, %v10630_v3 }
 0x47b   :  { %17705 = vst [vmem:[#allocation118_spill] sm:$0xff] %v10704_v47  ;;  %v10728_v47 = vld [vmem:[#allocation2 + $0x68] sm:$0xff] }
 0x47c   :  { %17706 = vst [vmem:[#allocation119_spill] sm:$0xff] %v10710_v17  ;;  %v10732_v8 = vmul.f32 %v10728_v47, %v10630_v3  ;;  %v10734_v17 = vld [vmem:[#allocation2 + $0x70] sm:$0x3] }
 0x47d   :  { %17707 = vst [vmem:[#allocation117_spill] sm:$0xff] %v10716_v59  ;;  %v10738_v60 = vmul.f32 %v10734_v17, %v10630_v3  ;;  %v10740_v59 = vld [vmem:[#allocation2 + $0x78] sm:$0xff] }
 0x47e   :  { %17708 = vst [vmem:[#allocation149_spill] sm:$0xff] %v10722_v15  ;;  %v10744_v35 = vmul.f32 %v10740_v59, %v10630_v3  ;;  %v10746_v15 = vld [vmem:[#allocation2 + $0x80] sm:$0xff] }
 0x47f   :  { %17709 = vst [vmem:[#allocation150_spill] sm:$0xff] %v10728_v47  ;;  %v10750_v45 = vmul.f32 %v10746_v15, %v10630_v3  ;;  %v10752_v47 = vld [vmem:[#allocation2 + $0x88] sm:$0x3] }
 0x480   :  { %17710 = vst [vmem:[#allocation152_spill] sm:$0xff] %v10734_v17  ;;  %v10756_v1 = vmul.f32 %v10752_v47, %v10630_v3  ;;  %v10758_v17 = vld [vmem:[#allocation2 + $0x90] sm:$0xff] }
 0x481   :  { %17711 = vst [vmem:[#allocation153_spill] sm:$0xff] %v10740_v59  ;;  %v10762_v43 = vmul.f32 %v10758_v17, %v10630_v3  ;;  %v10764_v59 = vld [vmem:[#allocation2 + $0x98] sm:$0xff] }
 0x482   :  { %17712 = vst [vmem:[#allocation110_spill] sm:$0xff] %v10746_v15  ;;  %v10768_v57 = vmul.f32 %v10764_v59, %v10630_v3  ;;  %v10770_v15 = vld [vmem:[#allocation2 + $0xa0] sm:$0x3] }
 0x483   :  { %17713 = vst [vmem:[#allocation154_spill] sm:$0xff] %v10752_v47  ;;  %v10774_v22 = vmul.f32 %v10770_v15, %v10630_v3  ;;  %v10776_v47 = vld [vmem:[#allocation2 + $0xa8] sm:$0xff] }
 0x484   :  { %17714 = vst [vmem:[#allocation114_spill] sm:$0xff] %v10758_v17  ;;  %v10780_v25 = vmul.f32 %v10776_v47, %v10630_v3  ;;  %v10782_v17 = vld [vmem:[#allocation2 + $0xb0] sm:$0xff] }
 0x485   :  { %17715 = vst [vmem:[#allocation155_spill] sm:$0xff] %v10764_v59  ;;  %v10786_v7 = vmul.f32 %v10782_v17, %v10630_v3  ;;  %v10788_v59 = vld [vmem:[#allocation2 + $0xb8] sm:$0x3] }
 0x486   :  { %17716 = vst [vmem:[#allocation100_spill] sm:$0xff] %v10770_v15  ;;  %v10792_v50 = vmul.f32 %v10788_v59, %v10630_v3  ;;  %v10794_v15 = vld [vmem:[#allocation2 + $0xc0] sm:$0xff] }
 0x487   :  { %17717 = vst [vmem:[#allocation157_spill] sm:$0xff] %v10776_v47  ;;  %v10798_v38 = vmul.f32 %v10794_v15, %v10630_v3  ;;  %v10800_v47 = vld [vmem:[#allocation2 + $0xc8] sm:$0xff] }
 0x488   :  { %17718 = vst [vmem:[#allocation158_spill] sm:$0xff] %v10782_v17  ;;  %v10804_v41 = vmul.f32 %v10800_v47, %v10630_v3  ;;  %v10806_v17 = vld [vmem:[#allocation2 + $0xd0] sm:$0x3] }
 0x489   :  { %17719 = vst [vmem:[#allocation159_spill] sm:$0xff] %v10788_v59  ;;  %v10810_v34 = vmul.f32 %v10806_v17, %v10630_v3  ;;  %v10812_v59 = vld [vmem:[#allocation2 + $0xd8] sm:$0xff] }
 0x48a   :  { %17720 = vst [vmem:[#allocation160_spill] sm:$0xff] %v10794_v15  ;;  %v10816_v29 = vmul.f32 %v10812_v59, %v10630_v3  ;;  %v10818_v15 = vld [vmem:[#allocation2 + $0xe0] sm:$0xff] }
 0x48b   :  { %17721 = vst [vmem:[#allocation11_spill] sm:$0xff] %v10800_v47  ;;  %v10822_v30 = vmul.f32 %v10818_v15, %v10630_v3  ;;  %v10824_v47 = vld [vmem:[#allocation2 + $0xe8] sm:$0x3] }
 0x48c   :  { %17722 = vst [vmem:[#allocation136_spill] sm:$0xff] %v10806_v17  ;;  %v10828_v16 = vmul.f32 %v10824_v47, %v10630_v3  ;;  %v17726_v17 = vld [vmem:[#allocation147_spill] sm:$0xff] }
 0x48d   :  { %17723 = vst [vmem:[#allocation137_spill] sm:$0xff] %v10812_v59  ;;  %v10832_v4 = vmul.f32 %v17726_v17, %v10630_v3  ;;  %v10836_v59 = vmul.f32 %v17727_v19, %v10630_v3  ;;  %v10852_v17 = vld [vmem:[#allocation2 + $0x190] sm:$0x3]  ;;  %v10858_v19 = vmul.f32 %v10854_v28, %v10630_v3 }
 0x48e   :  { %17724 = vst [vmem:[#allocation162_spill] sm:$0xff] %v10818_v15  ;;  %v10842_v15 = vmul.f32 %v10838_v44, %v10630_v3 }
 0x48f   :  { %17725 = vst [vmem:[#allocation101_spill] sm:$0xff] %v10824_v47  ;;  %v17730_v47 = vld [vmem:[#allocation27_spill] sm:$0xff] }
 0x490   :  { %17728 = vst [vmem:[#allocation96_spill] sm:$0xff] %v10838_v44  ;;  %v10850_v9 = vmul.f32 %v10630_v3, %v17730_v47  ;;  %v10862_v44 = vmul.f32 %v10630_v3, %v17733_v20  ;;  %v10872_v47 = vmul.f32 %v10868_v39, %v10630_v3  ;;  %v17738_v20 = vld [vmem:[#allocation151_spill] sm:$0xff] }
 0x491   :  { %17731 = vst [vmem:[#allocation38_spill] sm:$0xff] %v10852_v17  ;;  %v10884_v10 = vmul.f32 %v10630_v3, %v17738_v20  ;;  %v10904_v20 = vmul.f32 %v10630_v3, %v17743_v2  ;;  %v10924_v2 = vmul.f32 %v17747_v46, %v10630_v3  ;;  %v10944_v46 = vld [vmem:[#allocation2 + $0x1f0] sm:$0x3] }
 0x492   :  { %17732 = vst [vmem:[#allocation43_spill] sm:$0xff] %v10854_v28  ;;  %v17737_v28 = vld [vmem:[#allocation13_spill] sm:$0xff]  ;;  %v10948_v62 = vmul.f32 %v10944_v46, %v10630_v3 }
 0x493   :  { %17735 = vst [vmem:[#allocation147_spill] sm:$0xff] %v10868_v39  ;;  %v10880_v42 = vmul.f32 %v10630_v3, %v17737_v28  ;;  %v10892_v39 = vmul.f32 %v10630_v3, %v17740_v36  ;;  %v10900_v28 = vmul.f32 %v10630_v3, %v17742_v53  ;;  %v10912_v36 = vmul.f32 %v10630_v3, %v17745_v11 }
 0x494   :  { %v10920_v53 = vmul.f32 %v10630_v3, %v10852_v17  ;;  %17749 = vst [vmem:[#allocation148_spill] sm:$0xff] %v10930_v12  ;;  %v10934_v11 = vmul.f32 %v10930_v12, %v10630_v3  ;;  %v17753_v17 = vld [vmem:[#allocation12_spill] sm:$0xff]  ;;  %v17759_v12 = vld [vmem:[#allocation54_spill] sm:$0xff] }
 0x495   :  { %17752 = vst [vmem:[#allocation27_spill] sm:$0xff] %v10938_v48  ;;  %v10942_v58 = vmul.f32 %v10630_v3, %v17753_v17  ;;  %v10956_v18 = vmul.f32 %v17759_v12, %v10630_v3  ;;  %v10962_v17 = vmul.f32 %v10958_v21, %v10630_v3  ;;  %v10976_v12 = vmul.f32 %v10972_v54, %v10630_v3  ;;  %v17825_v48 = vld [vmem:[#allocation143_spill] sm:$0xff] }
 0x496   :  { %17750 = vst [vmem:[#allocation90_spill] sm:$0xff] %v10934_v11  ;;  %v17834_v11 = vld [vmem:[#allocation55_spill] sm:$0xff] }
 0x497   :  { %17754 = vst [vmem:[#allocation28_spill] sm:$0xff] %v10942_v58  ;;  %v10966_v58 = vmul.f32 %v17763_v56, %v10630_v3  ;;  %v10986_v56 = vld [vmem:[#allocation2 + $0x238] sm:$0x3] }
 0x498   :  { %17755 = vst [vmem:[#allocation29_spill] sm:$0xff] %v10944_v46  ;;  %v17765_v46 = vld [vmem:[#allocation63_spill] sm:$0xff] }
 0x499   :  { %17756 = vst [vmem:[#allocation19_spill] sm:$0xff] %v10948_v62  ;;  %v10970_v62 = vmul.f32 %v17765_v46, %v10630_v3  ;;  %v10990_v46 = vmul.f32 %v10986_v56, %v10630_v3 }
 0x49a   :  { %17758 = vst [vmem:[#allocation13_spill] sm:$0xff] %v10952_v24 }
 0x49b   :  { %17760 = vst [vmem:[#allocation151_spill] sm:$0xff] %v10956_v18  ;;  %v17769_v18 = vld [vmem:[#allocation57_spill] sm:$0xff] }
 0x49c   :  { %17761 = vst [vmem:[#allocation15_spill] sm:$0xff] %v10958_v21  ;;  %v10980_v24 = vmul.f32 %v17769_v18, %v10630_v3  ;;  %v17771_v21 = vld [vmem:[#allocation58_spill] sm:$0xff] }
 0x49d   :  { %17762 = vst [vmem:[#allocation105_spill] sm:$0xff] %v10962_v17  ;;  %v10984_v17 = vmul.f32 %v17771_v21, %v10630_v3 }
 0x49e   :  { %17764 = vst [vmem:[#allocation156_spill] sm:$0xff] %v10966_v58 }
 0x49f   :  { %17766 = vst [vmem:[#allocation111_spill] sm:$0xff] %v10970_v62  ;;  %v17775_v62 = vld [vmem:[#allocation56_spill] sm:$0xff] }
 0x4a0   :  { %17767 = vst [vmem:[#allocation31_spill] sm:$0xff] %v10972_v54  ;;  %v10994_v58 = vmul.f32 %v17775_v62, %v10630_v3  ;;  %v10996_v54 = vld [vmem:[#allocation2 + $0x248] sm:$0xff]  ;;  %v11014_v62 = vld [vmem:[#allocation2 + $0x260] sm:$0xff] }
 0x4a1   :  { %17768 = vst [vmem:[#allocation161_spill] sm:$0xff] %v10976_v12  ;;  %v11000_v18 = vmul.f32 %v10996_v54, %v10630_v3 }
 0x4a2   :  { %17770 = vst [vmem:[#allocation121_spill] sm:$0xff] %v10980_v24  ;;  %v11002_v24 = vld [vmem:[#allocation2 + $0x250] sm:$0x3] }
 0x4a3   :  { %17772 = vst [vmem:[#allocation112_spill] sm:$0xff] %v10984_v17  ;;  %v11006_v21 = vmul.f32 %v11002_v24, %v10630_v3  ;;  %v11008_v17 = vld [vmem:[#allocation2 + $0x258] sm:$0xff] }
 0x4a4   :  { %17773 = vst [vmem:[#allocation48_spill] sm:$0xff] %v10986_v56  ;;  %v11012_v56 = vmul.f32 %v11008_v17, %v10630_v3 }
 0x4a5   :  { %17774 = vst [vmem:[#allocation24_spill] sm:$0xff] %v10990_v46  ;;  %v17801_v46 = vld [vmem:[#allocation79_spill] sm:$0xff] }
 0x4a6   :  { %17776 = vst [vmem:[#allocation12_spill] sm:$0xff] %v10994_v58  ;;  %v11018_v58 = vmul.f32 %v11014_v62, %v10630_v3 }
 0x4a7   :  { %17777 = vst [vmem:[#allocation134_spill] sm:$0xff] %v10996_v54  ;;  %v11020_v54 = vld [vmem:[#allocation2 + $0x268] sm:$0x3] }
 0x4a8   :  { %17778 = vst [vmem:[#allocation164_spill] sm:$0xff] %v11000_v18  ;;  %v11024_v18 = vmul.f32 %v11020_v54, %v10630_v3 }
 0x4a9   :  { %17779 = vst [vmem:[#allocation165_spill] sm:$0xff] %v11002_v24  ;;  %v11026_v24 = vld [vmem:[#allocation2 + $0x270] sm:$0xff] }
 0x4aa   :  { %17780 = vst [vmem:[#allocation166_spill] sm:$0xff] %v11006_v21  ;;  %v11030_v21 = vmul.f32 %v11026_v24, %v10630_v3 }
 0x4ab   :  { %17781 = vst [vmem:[#allocation167_spill] sm:$0xff] %v11008_v17  ;;  %v11032_v17 = vld [vmem:[#allocation2 + $0x278] sm:$0xff] }
 0x4ac   :  { %17782 = vst [vmem:[#allocation168_spill] sm:$0xff] %v11012_v56  ;;  %v11036_v56 = vmul.f32 %v11032_v17, %v10630_v3 }
 0x4ad   :  { %17783 = vst [vmem:[#allocation169_spill] sm:$0xff] %v11014_v62  ;;  %v11038_v62 = vld [vmem:[#allocation2 + $0x280] sm:$0x3] }
 0x4ae   :  { %17784 = vst [vmem:[#allocation170_spill] sm:$0xff] %v11018_v58  ;;  %v11042_v58 = vmul.f32 %v11038_v62, %v10630_v3 }
 0x4af   :  { %17785 = vst [vmem:[#allocation171_spill] sm:$0xff] %v11020_v54  ;;  %v11044_v54 = vld [vmem:[#allocation2 + $0x288] sm:$0xff] }
 0x4b0   :  { %17786 = vst [vmem:[#allocation172_spill] sm:$0xff] %v11024_v18  ;;  %v11048_v18 = vmul.f32 %v11044_v54, %v10630_v3 }
 0x4b1   :  { %17787 = vst [vmem:[#allocation173_spill] sm:$0xff] %v11026_v24  ;;  %v11050_v24 = vld [vmem:[#allocation2 + $0x290] sm:$0xff] }
 0x4b2   :  { %17788 = vst [vmem:[#allocation174_spill] sm:$0xff] %v11030_v21  ;;  %v11054_v21 = vmul.f32 %v11050_v24, %v10630_v3 }
 0x4b3   :  { %17789 = vst [vmem:[#allocation175_spill] sm:$0xff] %v11032_v17  ;;  %v11056_v17 = vld [vmem:[#allocation2 + $0x298] sm:$0x3] }
 0x4b4   :  { %17790 = vst [vmem:[#allocation176_spill] sm:$0xff] %v11036_v56  ;;  %v11060_v56 = vmul.f32 %v11056_v17, %v10630_v3 }
 0x4b5   :  { %17791 = vst [vmem:[#allocation177_spill] sm:$0xff] %v11038_v62  ;;  %v17799_v62 = vld [vmem:[#allocation83_spill] sm:$0xff] }
 0x4b6   :  { %17792 = vst [vmem:[#allocation178_spill] sm:$0xff] %v11042_v58  ;;  %v11064_v58 = vmul.f32 %v17799_v62, %v10630_v3  ;;  %v11084_v62 = vld [vmem:[#allocation2 + $0x2c8] sm:$0x3] }
 0x4b7   :  { %17793 = vst [vmem:[#allocation179_spill] sm:$0xff] %v11044_v54  ;;  %v11068_v54 = vmul.f32 %v17801_v46, %v10630_v3  ;;  %v11088_v46 = vmul.f32 %v11084_v62, %v10630_v3 }
 0x4b8   :  { %17794 = vst [vmem:[#allocation180_spill] sm:$0xff] %v11048_v18  ;;  %v11070_v18 = vld [vmem:[#allocation2 + $0x2b0] sm:$0x3] }
 0x4b9   :  { %17795 = vst [vmem:[#allocation181_spill] sm:$0xff] %v11050_v24  ;;  %v11074_v24 = vmul.f32 %v11070_v18, %v10630_v3 }
 0x4ba   :  { %17796 = vst [vmem:[#allocation182_spill] sm:$0xff] %v11054_v21  ;;  %v17805_v21 = vld [vmem:[#allocation60_spill] sm:$0xff] }
 0x4bb   :  { %17797 = vst [vmem:[#allocation183_spill] sm:$0xff] %v11056_v17  ;;  %v11078_v12 = vmul.f32 %v10630_v3, %v17805_v21  ;;  %v17807_v17 = vld [vmem:[#allocation16_spill] sm:$0xff] }
 0x4bc   :  { %17798 = vst [vmem:[#allocation184_spill] sm:$0xff] %v11060_v56  ;;  %v11082_v56 = vmul.f32 %v10630_v3, %v17807_v17  ;;  %v11098_v21 = vld [vmem:[#allocation2 + $0x2e0] sm:$0x3] }
 0x4bd   :  { %17800 = vst [vmem:[#allocation83_spill] sm:$0xff] %v11064_v58  ;;  %v11102_v17 = vmul.f32 %v11098_v21, %v10630_v3 }
 0x4be   :  { %17802 = vst [vmem:[#allocation79_spill] sm:$0xff] %v11068_v54  ;;  %v17811_v54 = vld [vmem:[#allocation61_spill] sm:$0xff] }
 0x4bf   :  { %17803 = vst [vmem:[#allocation185_spill] sm:$0xff] %v11070_v18  ;;  %v11092_v58 = vmul.f32 %v10630_v3, %v17811_v54  ;;  %v17813_v18 = vld [vmem:[#allocation135_spill] sm:$0xff]  ;;  %v17821_v54 = vld [vmem:[#allocation9_spill] sm:$0xff] }
 0x4c0   :  { %17804 = vst [vmem:[#allocation186_spill] sm:$0xff] %v11074_v24  ;;  %v11096_v24 = vmul.f32 %v10630_v3, %v17813_v18  ;;  %v17823_v18 = vld [vmem:[#allocation140_spill] sm:$0xff] }
 0x4c1   :  { %17806 = vst [vmem:[#allocation60_spill] sm:$0xff] %v11078_v12 }
 0x4c2   :  { %17808 = vst [vmem:[#allocation16_spill] sm:$0xff] %v11082_v56  ;;  %v17817_v56 = vld [vmem:[#allocation138_spill] sm:$0xff] }
 0x4c3   :  { %17809 = vst [vmem:[#allocation187_spill] sm:$0xff] %v11084_v62  ;;  %v11106_v12 = vmul.f32 %v10630_v3, %v17817_v56  ;;  %v17819_v62 = vld [vmem:[#allocation139_spill] sm:$0xff] }
 0x4c4   :  { %17810 = vst [vmem:[#allocation188_spill] sm:$0xff] %v11088_v46  ;;  %v11110_v46 = vmul.f32 %v10630_v3, %v17819_v62 }
 0x4c5   :  { %17812 = vst [vmem:[#allocation61_spill] sm:$0xff] %v11092_v58  ;;  %v11114_v58 = vmul.f32 %v10630_v3, %v17821_v54  ;;  %v2904_v54 = vrot.slane %v10678_v61, 1  ;;  %v17833_v61 = vld [vmem:[#allocation80_spill] sm:$0xff] }
 0x4c6   :  { %17814 = vst [vmem:[#allocation135_spill] sm:$0xff] %v11096_v24  ;;  %v11118_v24 = vmul.f32 %v10630_v3, %v17823_v18  ;;  %v2908_v18 = vrot.slane %v10690_v52, 1  ;;  %v2918_v52 = vrot.slane %v10726_v55, 1 }
 0x4c7   :  { %17815 = vst [vmem:[#allocation189_spill] sm:$0xff] %v11098_v21  ;;  %v11122_v21 = vmul.f32 %v10630_v3, %v17825_v48  ;;  %v11137_v48 = vld [vmem:[#allocation2 + $0x340] sm:$0x3] }
 0x4c8   :  { %17816 = vst [vmem:[#allocation190_spill] sm:$0xff] %v11102_v17  ;;  %v17827_v17 = vld [vmem:[#allocation163_spill] sm:$0xff] }
 0x4c9   :  { %17818 = vst [vmem:[#allocation138_spill] sm:$0xff] %v11106_v12  ;;  %v11126_v56 = vmul.f32 %v10630_v3, %v17827_v17  ;;  %v17829_v12 = vld [vmem:[#allocation144_spill] sm:$0xff]  ;;  %v2913_v17 = vrot.slane %v10708_v23, 1  ;;  %v2921_v23 = vrot.slane %v10738_v60, 1 }
 0x4ca   :  { %17820 = vst [vmem:[#allocation139_spill] sm:$0xff] %v11110_v46  ;;  %v11130_v62 = vmul.f32 %v10630_v3, %v17829_v12  ;;  %v2903_v46 = vrot.slane %v10672_v5, 1  ;;  %v2916_v12 = vrot.slane %v10720_v26, 1  ;;  %v2924_v26 = vrot.slane %v10750_v45, 1 }
 0x4cb   :  { %17822 = vst [vmem:[#allocation9_spill] sm:$0xff] %v11114_v58  ;;  %v2906_v58 = vrot.slane %v10684_v63, 1  ;;  %v11149_v63 = vmul.f32 %v10630_v3, %v17833_v61  ;;  %v11166_v61 = vmul.f32 %v10630_v3, %v11137_v48 }
 0x4cc   :  { %17824 = vst [vmem:[#allocation140_spill] sm:$0xff] %v11118_v24  ;;  %v2909_v24 = vrot.slane %v10696_v0, 1  ;;  %v2919_v0 = vrot.slane %v10732_v8, 1  ;;  %v11169_v8 = vsel %vm1810_vm8, %v2903_v46, %v2904_v54  ;;  %v2926_v46 = vrot.slane %v10756_v1, 1 }
 0x4cd   :  { %17826 = vst [vmem:[#allocation143_spill] sm:$0xff] %v11122_v21  ;;  %v2911_v21 = vrot.slane %v10702_v14, 1  ;;  %v11155_v14 = vmul.f32 %v10630_v3, %v17834_v11  ;;  %v11172_v55 = vsel %vm1810_vm8, %v2904_v54, %v2906_v58  ;;  %v2928_v58 = vrot.slane %v10762_v43, 1 }
 0x4ce   :  { %17828 = vst [vmem:[#allocation163_spill] sm:$0xff] %v11126_v56  ;;  %v2914_v56 = vrot.slane %v10714_v37, 1  ;;  %v2923_v37 = vrot.slane %v10744_v35, 1  ;;  %v11175_v60 = vsel %vm1810_vm8, %v2908_v18, %v2909_v24  ;;  %v2929_v54 = vrot.slane %v10768_v57, 1 }
 0x4cf   :  { %17830 = vst [vmem:[#allocation144_spill] sm:$0xff] %v11130_v62  ;;  %v17832_v62 = vld [vmem:[#allocation145_spill] sm:$0xff]  ;;  %v11178_v35 = vsel %vm1810_vm8, %v2909_v24, %v2911_v21  ;;  %v11193_v18 = vsel %vm1810_vm8, %v2919_v0, %v2921_v23  ;;  %v2931_v21 = vrot.slane %v10774_v22, 1  ;;  %v2938_v1 = vrot.slane %v10798_v38, 1 }
 0x4d0   :  { %17831 = vst [vmem:[#allocation191_spill] sm:$0xff] %v11137_v48  ;;  %v11145_v5 = vmul.f32 %v10630_v3, %v17832_v62  ;;  %v11162_v62 = vmul.f32 %v10630_v3, %v10503_v31  ;;  %v11181_v45 = vsel %vm1810_vm8, %v2913_v17, %v2914_v56  ;;  %v11184_v31 = vsel %vm1810_vm8, %v2914_v56, %v2916_v12 }
 0x4d1   :  { %v11187_v3 = vsel %vm1810_vm8, %v2918_v52, %v2919_v0  ;;  %v11196_v24 = vsel %vm1810_vm8, %v2923_v37, %v2924_v26  ;;  %v2933_v56 = vrot.slane %v10780_v25, 1  ;;  %v2934_v17 = vrot.slane %v10786_v7, 1 }
 0x4d2   :  { %v2936_v12 = vrot.slane %v10792_v50, 1  ;;  %v2939_v43 = vrot.slane %v10804_v41, 1  ;;  %v2941_v57 = vrot.slane %v10810_v34, 1  ;;  %v2943_v52 = vrot.slane %v10816_v29, 1 }
 0x4d3   :  { %v2944_v0 = vrot.slane %v10822_v30, 1  ;;  %v2946_v23 = vrot.slane %v10828_v16, 1  ;;  %v11209_v22 = vsel %vm1810_vm8, %v2924_v26, %v2926_v46  ;;  %v2948_v25 = vrot.slane %v10832_v4, 1 }
 0x4d4   :  { %v2949_v7 = vrot.slane %v10836_v59, 1  ;;  %v2951_v50 = vrot.slane %v10842_v15, 1  ;;  %v11215_v38 = vsel %vm1810_vm8, %v2928_v58, %v2929_v54  ;;  %v2953_v34 = vrot.slane %v10846_v40, 1 }
 0x4d5   :  { %v2954_v29 = vrot.slane %v10850_v9, 1  ;;  %v2956_v30 = vrot.slane %v10858_v19, 1  ;;  %v11221_v16 = vsel %vm1810_vm8, %v2929_v54, %v2931_v21  ;;  %v11224_v41 = vsel %vm1810_vm8, %v2933_v56, %v2934_v17 }
 0x4d6   :  { %v11227_v4 = vsel %vm1810_vm8, %v2934_v17, %v2936_v12  ;;  %v11230_v59 = vsel %vm1810_vm8, %v2938_v1, %v2939_v43  ;;  %v11233_v15 = vsel %vm1810_vm8, %v2939_v43, %v2941_v57  ;;  %v11236_v40 = vsel %vm1810_vm8, %v2943_v52, %v2944_v0 }
 0x4d7   :  { %v11239_v9 = vsel %vm1810_vm8, %v2944_v0, %v2946_v23  ;;  %v2958_v19 = vrot.slane %v10862_v44, 1  ;;  %v11243_v37 = vsel %vm1810_vm8, %v2948_v25, %v2949_v7  ;;  %v11246_v26 = vsel %vm1810_vm8, %v2949_v7, %v2951_v50  ;;  %v17843_v0 = vld [vmem:[#allocation28_spill] sm:$0xff]  ;;  %v17844_v23 = vld [vmem:[#allocation19_spill] sm:$0xff] }
 0x4d8   :  { %v2959_v46 = vrot.slane %v10866_v13, 1  ;;  %v2961_v58 = vrot.slane %v10872_v47, 1  ;;  %v11251_v54 = vsel %vm1810_vm8, %v2953_v34, %v2954_v29  ;;  %v11254_v21 = vsel %vm1810_vm8, %v2954_v29, %v2956_v30 }
 0x4d9   :  { %17835 = vst [vmem:[#allocation145_spill] sm:$0xff] %v11251_v54  ;;  %v2963_v56 = vrot.slane %v10876_v33, 1  ;;  %v2964_v44 = vrot.slane %v10880_v42, 1  ;;  %v2966_v17 = vrot.slane %v10884_v10, 1  ;;  %v2968_v12 = vrot.slane %v10888_v49, 1  ;;  %v17886_v54 = vld [vmem:[#allocation138_spill] sm:$0xff] }
 0x4da   :  { %17836 = vst [vmem:[#allocation80_spill] sm:$0xff] %v11254_v21  ;;  %v2969_v1 = vrot.slane %v10892_v39, 1  ;;  %v2971_v13 = vrot.slane %v10896_v27, 1  ;;  %v2973_v47 = vrot.slane %v10900_v28, 1  ;;  %v2974_v43 = vrot.slane %v10904_v20, 1  ;;  %v17840_v20 = vld [vmem:[#allocation90_spill] sm:$0xff] }
 0x4db   :  { %v2976_v57 = vrot.slane %v10908_v32, 1  ;;  %v2978_v52 = vrot.slane %v10912_v36, 1  ;;  %v2979_v33 = vrot.slane %v10916_v6, 1  ;;  %v2981_v42 = vrot.slane %v10920_v53, 1  ;;  %v17842_v6 = vld [vmem:[#allocation27_spill] sm:$0xff]  ;;  %v17885_v21 = vld [vmem:[#allocation190_spill] sm:$0xff] }
 0x4dc   :  { %v2983_v10 = vrot.slane %v10924_v2, 1  ;;  %v2984_v49 = vrot.slane %v10928_v51, 1  ;;  %v11271_v39 = vsel %vm1810_vm8, %v2958_v19, %v2959_v46  ;;  %v11274_v27 = vsel %vm1810_vm8, %v2959_v46, %v2961_v58  ;;  %v17852_v46 = vld [vmem:[#allocation13_spill] sm:$0xff] }
 0x4dd   :  { %17837 = vst [vmem:[#allocation192_spill] sm:$0xff] %v11271_v39  ;;  %v11277_v28 = vsel %vm1810_vm8, %v2963_v56, %v2964_v44  ;;  %v2986_v32 = vrot.slane %v17840_v20, 1  ;;  %v11281_v36 = vsel %vm1810_vm8, %v2964_v44, %v2966_v17  ;;  %v2988_v53 = vrot.slane %v17842_v6, 1  ;;  %v17853_v44 = vld [vmem:[#allocation151_spill] sm:$0xff]  ;;  %v17858_v20 = vld [vmem:[#allocation121_spill] sm:$0xff] }
 0x4de   :  { %17838 = vst [vmem:[#allocation193_spill] sm:$0xff] %v11274_v27  ;;  %v2989_v2 = vrot.slane %v17843_v0, 1  ;;  %v2991_v51 = vrot.slane %v17844_v23, 1  ;;  %v11287_v25 = vsel %vm1810_vm8, %v2968_v12, %v2969_v1  ;;  %v11290_v7 = vsel %vm1810_vm8, %v2969_v1, %v2971_v13  ;;  %v17854_v12 = vld [vmem:[#allocation105_spill] sm:$0xff]  ;;  %v17855_v13 = vld [vmem:[#allocation156_spill] sm:$0xff]  ;;  %v17884_v39 = vld [vmem:[#allocation135_spill] sm:$0xff] }
 0x4df   :  { %17839 = vst [vmem:[#allocation194_spill] sm:$0xff] %v11277_v28  ;;  %v11293_v50 = vsel %vm1810_vm8, %v2973_v47, %v2974_v43  ;;  %v11296_v34 = vsel %vm1810_vm8, %v2974_v43, %v2976_v57  ;;  %v11299_v29 = vsel %vm1810_vm8, %v2978_v52, %v2979_v33  ;;  %v11302_v30 = vsel %vm1810_vm8, %v2979_v33, %v2981_v42  ;;  %v17856_v52 = vld [vmem:[#allocation111_spill] sm:$0xff]  ;;  %v17857_v42 = vld [vmem:[#allocation161_spill] sm:$0xff]  ;;  %v17860_v0 = vld [vmem:[#allocation24_spill] sm:$0xff] }
 0x4e0   :  { %17841 = vst [vmem:[#allocation90_spill] sm:$0xff] %v11281_v36  ;;  %v11305_v19 = vsel %vm1810_vm8, %v2983_v10, %v2984_v49  ;;  %v2993_v58 = vrot.slane %v17852_v46, 1  ;;  %v11309_v56 = vsel %vm1810_vm8, %v2984_v49, %v2986_v32  ;;  %v2994_v17 = vrot.slane %v17853_v44, 1  ;;  %v17859_v49 = vld [vmem:[#allocation112_spill] sm:$0xff]  ;;  %v17871_v36 = vld [vmem:[#allocation182_spill] sm:$0xff] }
 0x4e1   :  { %17845 = vst [vmem:[#allocation27_spill] sm:$0xff] %v11287_v25  ;;  %v2996_v1 = vrot.slane %v17854_v12, 1  ;;  %v2998_v47 = vrot.slane %v17855_v13, 1  ;;  %v11315_v43 = vsel %vm1810_vm8, %v2988_v53, %v2989_v2  ;;  %v11318_v57 = vsel %vm1810_vm8, %v2989_v2, %v2991_v51  ;;  %v17861_v46 = vld [vmem:[#allocation12_spill] sm:$0xff]  ;;  %v17865_v2 = vld [vmem:[#allocation170_spill] sm:$0xff] }
 0x4e2   :  { %17846 = vst [vmem:[#allocation28_spill] sm:$0xff] %v11290_v7  ;;  %v2999_v33 = vrot.slane %v17856_v52, 1  ;;  %v3001_v10 = vrot.slane %v17857_v42, 1  ;;  %v3003_v6 = vrot.slane %v17858_v20, 1  ;;  %v3004_v32 = vrot.slane %v17859_v49, 1  ;;  %v17862_v12 = vld [vmem:[#allocation164_spill] sm:$0xff] }
 0x4e3   :  { %17847 = vst [vmem:[#allocation19_spill] sm:$0xff] %v11293_v50  ;;  %v3006_v23 = vrot.slane %v17860_v0, 1  ;;  %v3008_v44 = vrot.slane %v17861_v46, 1  ;;  %v3009_v13 = vrot.slane %v17862_v12, 1  ;;  %v3014_v51 = vrot.slane %v17865_v2, 1  ;;  %v17867_v50 = vld [vmem:[#allocation174_spill] sm:$0xff] }
 0x4e4   :  { %17848 = vst [vmem:[#allocation195_spill] sm:$0xff] %v11296_v34  ;;  %v17866_v34 = vld [vmem:[#allocation172_spill] sm:$0xff]  ;;  %v3018_v42 = vrot.slane %v17867_v50, 1  ;;  %v17869_v25 = vld [vmem:[#allocation178_spill] sm:$0xff]  ;;  %v11335_v0 = vsel %vm1810_vm8, %v2993_v58, %v2994_v17  ;;  %v11338_v46 = vsel %vm1810_vm8, %v2994_v17, %v2996_v1  ;;  %v11343_v2 = vsel %vm1810_vm8, %v2998_v47, %v2999_v33 }
 0x4e5   :  { %17849 = vst [vmem:[#allocation196_spill] sm:$0xff] %v11299_v29  ;;  %v3016_v52 = vrot.slane %v17866_v34, 1  ;;  %v17868_v7 = vld [vmem:[#allocation176_spill] sm:$0xff]  ;;  %v3021_v49 = vrot.slane %v17869_v25, 1  ;;  %v11346_v34 = vsel %vm1810_vm8, %v2999_v33, %v3001_v10  ;;  %v11353_v58 = vsel %vm1810_vm8, %v3004_v32, %v3006_v23 }
 0x4e6   :  { %17850 = vst [vmem:[#allocation197_spill] sm:$0xff] %v11302_v30  ;;  %v17864_v30 = vld [vmem:[#allocation168_spill] sm:$0xff]  ;;  %v3019_v20 = vrot.slane %v17868_v7, 1  ;;  %v11349_v7 = vsel %vm1810_vm8, %v3003_v6, %v3004_v32  ;;  %v11356_v17 = vsel %vm1810_vm8, %v3008_v44, %v3009_v13  ;;  %v17875_v6 = vld [vmem:[#allocation83_spill] sm:$0xff]  ;;  %v3043_v48 = vrot.slane %v17886_v54, 1 }
 0x4e7   :  { %17851 = vst [vmem:[#allocation198_spill] sm:$0xff] %v11305_v19  ;;  %v17863_v19 = vld [vmem:[#allocation166_spill] sm:$0xff]  ;;  %v3013_v29 = vrot.slane %v17864_v30, 1  ;;  %v17870_v12 = vld [vmem:[#allocation180_spill] sm:$0xff]  ;;  %v3024_v30 = vrot.slane %v17871_v36, 1  ;;  %v11365_v47 = vsel %vm1810_vm8, %v3014_v51, %v3016_v52  ;;  %v3028_v32 = vrot.slane %v17875_v6, 1 }
 0x4e8   :  { %v3011_v53 = vrot.slane %v17863_v19, 1  ;;  %v3023_v19 = vrot.slane %v17870_v12, 1  ;;  %v17872_v25 = vld [vmem:[#allocation184_spill] sm:$0xff]  ;;  %v11368_v33 = vsel %vm1810_vm8, %v3018_v42, %v3019_v20  ;;  %v11371_v10 = vsel %vm1810_vm8, %v3019_v20, %v3021_v49  ;;  %v17877_v44 = vld [vmem:[#allocation79_spill] sm:$0xff]  ;;  %v17883_v20 = vld [vmem:[#allocation61_spill] sm:$0xff] }
 0x4e9   :  { %v3026_v50 = vrot.slane %v17872_v25, 1  ;;  %v11362_v36 = vsel %vm1810_vm8, %v3013_v29, %v3014_v51  ;;  %17873 = vst [vmem:[#allocation13_spill] sm:$0xff] %v11368_v33  ;;  %v17879_v29 = vld [vmem:[#allocation60_spill] sm:$0xff]  ;;  %v3038_v49 = vrot.slane %v17883_v20, 1  ;;  %v3039_v6 = vrot.slane %v17884_v39, 1 }
 0x4ea   :  { %v11359_v1 = vsel %vm1810_vm8, %v3009_v13, %v3011_v53  ;;  %17874 = vst [vmem:[#allocation151_spill] sm:$0xff] %v11371_v10  ;;  %v11375_v23 = vsel %vm1810_vm8, %v3023_v19, %v3024_v30  ;;  %v3029_v13 = vrot.slane %v17877_v44, 1  ;;  %v17878_v53 = vld [vmem:[#allocation186_spill] sm:$0xff]  ;;  %v3033_v25 = vrot.slane %v17879_v29, 1  ;;  %v17881_v52 = vld [vmem:[#allocation16_spill] sm:$0xff]  ;;  %v17887_v44 = vld [vmem:[#allocation139_spill] sm:$0xff] }
 0x4eb   :  { %17876 = vst [vmem:[#allocation105_spill] sm:$0xff] %v11375_v23  ;;  %v3031_v12 = vrot.slane %v17878_v53, 1  ;;  %v11381_v51 = vsel %vm1810_vm8, %v3024_v30, %v3026_v50  ;;  %v3034_v42 = vrot.slane %v17881_v52, 1  ;;  %v17882_v28 = vld [vmem:[#allocation188_spill] sm:$0xff]  ;;  %v3041_v19 = vrot.slane %v17885_v21, 1  ;;  %v17888_v53 = vld [vmem:[#allocation9_spill] sm:$0xff] }
 0x4ec   :  { %17880 = vst [vmem:[#allocation156_spill] sm:$0xff] %v11381_v51  ;;  %v3036_v27 = vrot.slane %v17882_v28, 1  ;;  %v3044_v11 = vrot.slane %v17887_v44, 1  ;;  %v3046_v23 = vrot.slane %v17888_v53, 1  ;;  %v17889_v29 = vld [vmem:[#allocation140_spill] sm:$0xff]  ;;  %v17890_v30 = vld [vmem:[#allocation143_spill] sm:$0xff]  ;;  %v3030_v28 = vsel %vm1810_vm8, %v3028_v32, %v3029_v13 }
 0x4ed   :  { %v3048_v10 = vrot.slane %v17889_v29, 1  ;;  %v3049_v50 = vrot.slane %v17890_v30, 1  ;;  %v17891_v51 = vld [vmem:[#allocation163_spill] sm:$0xff]  ;;  %v17892_v33 = vld [vmem:[#allocation144_spill] sm:$0xff]  ;;  %v3054_v39 = vrot.slane %v11145_v5, 1  ;;  %v3056_v21 = vrot.slane %v11149_v63, 1 }
 0x4ee   :  { %v3051_v52 = vrot.slane %v17891_v51, 1  ;;  %v3053_v20 = vrot.slane %v17892_v33, 1  ;;  %v3032_v54 = vsel %vm1810_vm8, %v3029_v13, %v3031_v12  ;;  %v3058_v44 = vrot.slane %v11155_v14, 1  ;;  %v17893_v12 = vld [vmem:[#allocation120_spill] sm:$0xff] }
 0x4ef   :  { %v3059_v53 = vrot.slane %v11162_v62, 1  ;;  %v3061_v29 = vrot.slane %v11166_v61, 1  ;;  %v3035_v30 = vsel %vm1810_vm8, %v3033_v25, %v3034_v42  ;;  %v3037_v51 = vsel %vm1810_vm8, %v3034_v42, %v3036_v27  ;;  %v17895_v27 = vld [vmem:[#allocation125_spill] sm:$0xff] }
 0x4f0   :  { %v3040_v32 = vsel %vm1810_vm8, %v3038_v49, %v3039_v6  ;;  %v3042_v33 = vsel %vm1810_vm8, %v3039_v6, %v3041_v19  ;;  %v3045_v5 = vsel %vm1810_vm8, %v3043_v48, %v3044_v11  ;;  %v3047_v63 = vsel %vm1810_vm8, %v3044_v11, %v3046_v23  ;;  %v17897_v23 = vld [vmem:[#allocation122_spill] sm:$0xff]  ;;  %v17899_v49 = vld [vmem:[#allocation123_spill] sm:$0xff]  ;;  %v17901_v19 = vld [vmem:[#allocation124_spill] sm:$0xff] }
 0x4f1   :  { %v3050_v13 = vsel %vm1810_vm8, %v3048_v10, %v3049_v50  ;;  %v3052_v14 = vsel %vm1810_vm8, %v3049_v50, %v3051_v52  ;;  %v3055_v62 = vsel %vm1810_vm8, %v3053_v20, %v3054_v39  ;;  %v3057_v61 = vsel %vm1810_vm8, %v3054_v39, %v3056_v21  ;;  %v17903_v50 = vld [vmem:[#allocation10_spill] sm:$0xff]  ;;  %v17905_v52 = vld [vmem:[#allocation7_spill] sm:$0xff]  ;;  %v17907_v39 = vld [vmem:[#allocation8_spill] sm:$0xff] }
 0x4f2   :  { %v11414_v25 = vadd.f32 %v11169_v8, %v17893_v12  ;;  %v11418_v42 = vadd.f32 %v11172_v55, %v17895_v27  ;;  %v3060_v48 = vsel %vm1810_vm8, %v3058_v44, %v3059_v53  ;;  %v3062_v11 = vsel %vm1810_vm8, %v3059_v53, %v3061_v29  ;;  %v17909_v21 = vld [vmem:[#allocation36_spill] sm:$0xff]  ;;  %v17911_v44 = vld [vmem:[#allocation37_spill] sm:$0xff]  ;;  %v17913_v53 = vld [vmem:[#allocation39_spill] sm:$0xff] }
 0x4f3   :  { %v11424_v10 = vadd.f32 %v11175_v60, %v17897_v23  ;;  %v11428_v6 = vadd.f32 %v11178_v35, %v17899_v49  ;;  %v11432_v8 = vadd.f32 %v11181_v45, %v17901_v19  ;;  %v11436_v55 = vadd.f32 %v11184_v31, %v17903_v50  ;;  %v17915_v29 = vld [vmem:[#allocation40_spill] sm:$0xff]  ;;  %v17917_v12 = vld [vmem:[#allocation41_spill] sm:$0xff]  ;;  %v17919_v27 = vld [vmem:[#allocation42_spill] sm:$0xff] }
 0x4f4   :  { %17894 = vst [vmem:[#allocation111_spill] sm:$0xff] %v11414_v25  ;;  %v11440_v20 = vadd.f32 %v11187_v3, %v17905_v52  ;;  %v11444_v60 = vadd.f32 %v11193_v18, %v17907_v39  ;;  %v11448_v35 = vadd.f32 %v11196_v24, %v17909_v21  ;;  %v11452_v45 = vadd.f32 %v11209_v22, %v17911_v44  ;;  %v17921_v23 = vld [vmem:[#allocation44_spill] sm:$0xff]  ;;  %v17923_v49 = vld [vmem:[#allocation45_spill] sm:$0xff]  ;;  %v17927_v50 = vld [vmem:[#allocation47_spill] sm:$0xff] }
 0x4f5   :  { %17896 = vst [vmem:[#allocation161_spill] sm:$0xff] %v11418_v42  ;;  %v11456_v31 = vadd.f32 %v11215_v38, %v17913_v53  ;;  %v11460_v3 = vadd.f32 %v11221_v16, %v17915_v29  ;;  %v11464_v18 = vadd.f32 %v11224_v41, %v17917_v12  ;;  %v11468_v24 = vadd.f32 %v11227_v4, %v17919_v27  ;;  %v17925_v19 = vld [vmem:[#allocation68_spill] sm:$0xff]  ;;  %v17931_v39 = vld [vmem:[#allocation77_spill] sm:$0xff]  ;;  %v17933_v21 = vld [vmem:[#allocation107_spill] sm:$0xff] }
 0x4f6   :  { %17898 = vst [vmem:[#allocation121_spill] sm:$0xff] %v11424_v10  ;;  %v11472_v22 = vadd.f32 %v11230_v59, %v17921_v23  ;;  %v11476_v38 = vadd.f32 %v11233_v15, %v17923_v49  ;;  %v11480_v16 = vadd.f32 %v11236_v40, %v17925_v19  ;;  %v11484_v41 = vadd.f32 %v11239_v9, %v17927_v50  ;;  %v17929_v52 = vld [vmem:[#allocation64_spill] sm:$0xff]  ;;  %v17934_v44 = vld [vmem:[#allocation103_spill] sm:$0xff]  ;;  %v17936_v29 = vld [vmem:[#allocation113_spill] sm:$0xff] }
 0x4f7   :  { %17900 = vst [vmem:[#allocation112_spill] sm:$0xff] %v11428_v6  ;;  %v11488_v4 = vadd.f32 %v11243_v37, %v17929_v52  ;;  %v11492_v59 = vadd.f32 %v11246_v26, %v17931_v39  ;;  %v11496_v15 = vadd.f32 %v11309_v56, %v17933_v21  ;;  %v11500_v40 = vadd.f32 %v11315_v43, %v17934_v44  ;;  %v17935_v53 = vld [vmem:[#allocation108_spill] sm:$0xff]  ;;  %v17937_v12 = vld [vmem:[#allocation109_spill] sm:$0xff]  ;;  %v17938_v27 = vld [vmem:[#allocation46_spill] sm:$0xff] }
 0x4f8   :  { %17902 = vst [vmem:[#allocation24_spill] sm:$0xff] %v11432_v8  ;;  %v11504_v9 = vadd.f32 %v11318_v57, %v17935_v53  ;;  %v11508_v37 = vadd.f32 %v11335_v0, %v17936_v29  ;;  %v11512_v26 = vadd.f32 %v11338_v46, %v17937_v12  ;;  %v11516_v56 = vadd.f32 %v11343_v2, %v17938_v27  ;;  %v17939_v23 = vld [vmem:[#allocation69_spill] sm:$0xff]  ;;  %v17940_v49 = vld [vmem:[#allocation127_spill] sm:$0xff]  ;;  %v17942_v19 = vld [vmem:[#allocation126_spill] sm:$0xff] }
 0x4f9   :  { %17904 = vst [vmem:[#allocation12_spill] sm:$0xff] %v11436_v55  ;;  %v11520_v43 = vadd.f32 %v11346_v34, %v17939_v23  ;;  %v11524_v57 = vadd.f32 %v11349_v7, %v17940_v49  ;;  %v11528_v0 = vadd.f32 %v11353_v58, %v17942_v19  ;;  %v17944_v50 = vld [vmem:[#allocation128_spill] sm:$0xff]  ;;  %v17946_v52 = vld [vmem:[#allocation53_spill] sm:$0xff]  ;;  %v17948_v39 = vld [vmem:[#allocation51_spill] sm:$0xff] }
 0x4fa   :  { %17906 = vst [vmem:[#allocation164_spill] sm:$0xff] %v11440_v20  ;;  %v11532_v46 = vadd.f32 %v11356_v17, %v17944_v50  ;;  %v11536_v2 = vadd.f32 %v11359_v1, %v17946_v52  ;;  %v11540_v34 = vadd.f32 %v11362_v36, %v17948_v39  ;;  %v17950_v21 = vld [vmem:[#allocation73_spill] sm:$0xff]  ;;  %v17952_v44 = vld [vmem:[#allocation86_spill] sm:$0xff]  ;;  %v17955_v29 = vld [vmem:[#allocation91_spill] sm:$0xff] }
 0x4fb   :  { %17908 = vst [vmem:[#allocation166_spill] sm:$0xff] %v11444_v60  ;;  %v11544_v7 = vadd.f32 %v11365_v47, %v17950_v21  ;;  %v17953_v53 = vld [vmem:[#allocation13_spill] sm:$0xff]  ;;  %v17956_v12 = vld [vmem:[#allocation151_spill] sm:$0xff]  ;;  %v17958_v27 = vld [vmem:[#allocation94_spill] sm:$0xff] }
 0x4fc   :  { %17910 = vst [vmem:[#allocation168_spill] sm:$0xff] %v11448_v35  ;;  %v11548_v58 = vadd.f32 %v17953_v53, %v17952_v44  ;;  %v11552_v17 = vadd.f32 %v17956_v12, %v17955_v29  ;;  %v17959_v23 = vld [vmem:[#allocation105_spill] sm:$0xff]  ;;  %v17961_v49 = vld [vmem:[#allocation20_spill] sm:$0xff]  ;;  %v17964_v50 = vld [vmem:[#allocation99_spill] sm:$0xff] }
 0x4fd   :  { %17912 = vst [vmem:[#allocation170_spill] sm:$0xff] %v11452_v45  ;;  %v11556_v1 = vadd.f32 %v17959_v23, %v17958_v27  ;;  %v17962_v19 = vld [vmem:[#allocation156_spill] sm:$0xff]  ;;  %v11563_v52 = vadd.f32 %v3030_v28, %v17964_v50  ;;  %v17966_v47 = vld [vmem:[#allocation102_spill] sm:$0xff]  ;;  %v17968_v21 = vld [vmem:[#allocation129_spill] sm:$0xff] }
 0x4fe   :  { %17914 = vst [vmem:[#allocation172_spill] sm:$0xff] %v11456_v31  ;;  %v11560_v36 = vadd.f32 %v17962_v19, %v17961_v49  ;;  %v11566_v39 = vadd.f32 %v3032_v54, %v17966_v47  ;;  %v11569_v44 = vperm.slane %v17968_v21, 2  ;;  %v17970_v53 = vld [vmem:[#allocation130_spill] sm:$0xff]  ;;  %v17972_v12 = vld [vmem:[#allocation131_spill] sm:$0xff]  ;;  %v17976_v49 = vld [vmem:[#allocation132_spill] sm:$0xff] }
 0x4ff   :  { %17916 = vst [vmem:[#allocation174_spill] sm:$0xff] %v11460_v3  ;;  %v11572_v29 = vadd.f32 %v3035_v30, %v17970_v53  ;;  %v17974_v27 = vld [vmem:[#allocation50_spill] sm:$0xff]  ;;  %v11581_v19 = vadd.f32 %v3042_v33, %v17976_v49  ;;  %v17978_v28 = vld [vmem:[#allocation52_spill] sm:$0xff]  ;;  %v17980_v54 = vld [vmem:[#allocation133_spill] sm:$0xff] }
 0x500   :  { %17918 = vst [vmem:[#allocation176_spill] sm:$0xff] %v11464_v18  ;;  %v11578_v23 = vadd.f32 %v3040_v32, %v17974_v27  ;;  %v11584_v50 = vadd.f32 %v3045_v5, %v17978_v28  ;;  %v11587_v47 = vadd.f32 %v3047_v63, %v17980_v54  ;;  %v17982_v21 = vld [vmem:[#allocation141_spill] sm:$0xff]  ;;  %v17984_v30 = vld [vmem:[#allocation142_spill] sm:$0xff]  ;;  %v18009_v18 = vld [vmem:[#allocation56_spill] sm:$0xff] }
 0x501   :  { %17920 = vst [vmem:[#allocation178_spill] sm:$0xff] %v11468_v24  ;;  %v11593_v53 = vadd.f32 %v3052_v14, %v17984_v30  ;;  %v17988_v32 = vld [vmem:[#allocation66_spill] sm:$0xff]  ;;  %v17994_v63 = vld [vmem:[#allocation49_spill] sm:$0xff]  ;;  %v18008_v24 = vld [vmem:[#allocation48_spill] sm:$0xff] }
 0x502   :  { %17922 = vst [vmem:[#allocation180_spill] sm:$0xff] %v11472_v22  ;;  %v11599_v27 = vadd.f32 %v3057_v61, %v17988_v32  ;;  %v17990_v33 = vld [vmem:[#allocation146_spill] sm:$0xff]  ;;  %v11609_v54 = vmul.f32 %v17994_v63, %v11569_v44  ;;  %v18002_v63 = vld [vmem:[#allocation15_spill] sm:$0xff]  ;;  %v18011_v31 = vld [vmem:[#allocation165_spill] sm:$0xff] }
 0x503   :  { %17924 = vst [vmem:[#allocation182_spill] sm:$0xff] %v11476_v38  ;;  %v11602_v49 = vadd.f32 %v3060_v48, %v17990_v33  ;;  %v17992_v5 = vld [vmem:[#allocation18_spill] sm:$0xff]  ;;  %v18006_v38 = vld [vmem:[#allocation57_spill] sm:$0xff]  ;;  %v18012_v45 = vld [vmem:[#allocation167_spill] sm:$0xff] }
 0x504   :  { %17926 = vst [vmem:[#allocation184_spill] sm:$0xff] %v11480_v16  ;;  %v11605_v28 = vadd.f32 %v3062_v11, %v17992_v5  ;;  %v11621_v61 = vld [vmem:[#allocation2 + $0x1e8] sm:$0xff]  ;;  %v18005_v16 = vld [vmem:[#allocation31_spill] sm:$0xff]  ;;  %v11717_v25 = vld [vmem:[#allocation2 + $0x2a0] sm:$0xff] }
 0x505   :  { %17928 = vst [vmem:[#allocation83_spill] sm:$0xff] %v11484_v41  ;;  %v11625_v48 = vmul.f32 %v11621_v61, %v11569_v44  ;;  %v17999_v11 = vld [vmem:[#allocation29_spill] sm:$0xff]  ;;  %v18001_v33 = vld [vmem:[#allocation54_spill] sm:$0xff]  ;;  %v18014_v60 = vld [vmem:[#allocation171_spill] sm:$0xff] }
 0x506   :  { %17930 = vst [vmem:[#allocation79_spill] sm:$0xff] %v11488_v4  ;;  %v11590_v4 = vadd.f32 %v3050_v13, %v17982_v21  ;;  %v17996_v13 = vld [vmem:[#allocation148_spill] sm:$0xff]  ;;  %v11629_v30 = vmul.f32 %v17999_v11, %v11569_v44  ;;  %v11639_v5 = vmul.f32 %v18001_v33, %v11569_v44  ;;  %v18004_v11 = vld [vmem:[#allocation63_spill] sm:$0xff]  ;;  %v11659_v33 = vmul.f32 %v18006_v38, %v11569_v44  ;;  %v18007_v22 = vld [vmem:[#allocation58_spill] sm:$0xff] }
 0x507   :  { %17932 = vst [vmem:[#allocation186_spill] sm:$0xff] %v11492_v59  ;;  %v11575_v59 = vadd.f32 %v3037_v51, %v17972_v12  ;;  %v17986_v51 = vld [vmem:[#allocation70_spill] sm:$0xff]  ;;  %v11613_v14 = vmul.f32 %v17996_v13, %v11569_v44  ;;  %v11615_v21 = vld [vmem:[#allocation2 + $0x1e0] sm:$0xff]  ;;  %v11643_v13 = vmul.f32 %v18002_v63, %v11569_v44  ;;  %v11651_v41 = vmul.f32 %v18004_v11, %v11569_v44  ;;  %v18016_v55 = vld [vmem:[#allocation175_spill] sm:$0xff] }
 0x508   :  { %17941 = vst [vmem:[#allocation60_spill] sm:$0xff] %v11524_v57  ;;  %v11596_v12 = vadd.f32 %v3055_v62, %v17986_v51  ;;  %v11619_v62 = vmul.f32 %v11615_v21, %v11569_v44  ;;  %v11631_v51 = vld [vmem:[#allocation2 + $0x1f8] sm:$0xff]  ;;  %v11663_v63 = vmul.f32 %v18007_v22, %v11569_v44  ;;  %v11671_v11 = vmul.f32 %v18009_v18, %v11569_v44  ;;  %v18010_v3 = vld [vmem:[#allocation134_spill] sm:$0xff]  ;;  %v18013_v35 = vld [vmem:[#allocation169_spill] sm:$0xff] }
 0x509   :  { %17943 = vst [vmem:[#allocation16_spill] sm:$0xff] %v11528_v0  ;;  %v11635_v32 = vmul.f32 %v11631_v51, %v11569_v44  ;;  %v11679_v38 = vmul.f32 %v18011_v31, %v11569_v44  ;;  %v11683_v22 = vmul.f32 %v18012_v45, %v11569_v44  ;;  %v11691_v18 = vmul.f32 %v18014_v60, %v11569_v44  ;;  %v18015_v20 = vld [vmem:[#allocation173_spill] sm:$0xff]  ;;  %v18018_v6 = vld [vmem:[#allocation179_spill] sm:$0xff] }
 0x50a   :  { %17945 = vst [vmem:[#allocation188_spill] sm:$0xff] %v11532_v46  ;;  %v11699_v31 = vmul.f32 %v18016_v55, %v11569_v44  ;;  %v18017_v8 = vld [vmem:[#allocation177_spill] sm:$0xff]  ;;  %v18020_v42 = vld [vmem:[#allocation183_spill] sm:$0xff]  ;;  %v11721_v55 = vmul.f32 %v11717_v25, %v11569_v44  ;;  %v3472_v46 = vrot.slane %v11629_v30, 2  ;;  %v3477_v57 = vrot.slane %v11643_v13, 2 }
 0x50b   :  { %17947 = vst [vmem:[#allocation61_spill] sm:$0xff] %v11536_v2  ;;  %v11703_v45 = vmul.f32 %v18017_v8, %v11569_v44  ;;  %v18019_v10 = vld [vmem:[#allocation181_spill] sm:$0xff]  ;;  %v3470_v2 = vrot.slane %v11625_v48, 2  ;;  %v3484_v48 = vrot.slane %v11659_v33, 2  ;;  %v3485_v30 = vrot.slane %v11663_v63, 2 }
 0x50c   :  { %17949 = vst [vmem:[#allocation135_spill] sm:$0xff] %v11540_v34  ;;  %v11711_v60 = vmul.f32 %v18019_v10, %v11569_v44  ;;  %v11723_v8 = vld [vmem:[#allocation2 + $0x2a8] sm:$0xff]  ;;  %v3500_v33 = vrot.slane %v11699_v31, 2 }
 0x50d   :  { %17951 = vst [vmem:[#allocation190_spill] sm:$0xff] %v11544_v7  ;;  %v18041_v7 = vld [vmem:[#allocation191_spill] sm:$0xff]  ;;  %v3502_v63 = vrot.slane %v11703_v45, 2 }
 0x50e   :  { %17954 = vst [vmem:[#allocation138_spill] sm:$0xff] %v11548_v58  ;;  %v18040_v58 = vld [vmem:[#allocation67_spill] sm:$0xff]  ;;  %v11831_v34 = vmul.f32 %v11569_v44, %v18041_v7 }
 0x50f   :  { %17957 = vst [vmem:[#allocation139_spill] sm:$0xff] %v11552_v17  ;;  %v3503_v45 = vsel %vm2292_vm9, %v3500_v33, %v3502_v63 }
 0x510   :  { %17960 = vst [vmem:[#allocation9_spill] sm:$0xff] %v11556_v1 }
 0x511   :  { %17963 = vst [vmem:[#allocation140_spill] sm:$0xff] %v11560_v36 }
 0x512   :  { %17965 = vst [vmem:[#allocation143_spill] sm:$0xff] %v11563_v52  ;;  %v11797_v52 = vld [vmem:[#allocation2 + $0x310] sm:$0x3] }
 0x513   :  { %17967 = vst [vmem:[#allocation163_spill] sm:$0xff] %v11566_v39  ;;  %v11791_v39 = vld [vmem:[#allocation2 + $0x308] sm:$0xff] }
 0x514   :  { %17969 = vst [vmem:[#allocation144_spill] sm:$0xff] %v11569_v44 }
 0x515   :  { %17971 = vst [vmem:[#allocation120_spill] sm:$0xff] %v11572_v29  ;;  %v11785_v29 = vld [vmem:[#allocation2 + $0x300] sm:$0xff] }
 0x516   :  { %17973 = vst [vmem:[#allocation125_spill] sm:$0xff] %v11575_v59  ;;  %v3467_v59 = vrot.slane %v11613_v14, 2 }
 0x517   :  { %17975 = vst [vmem:[#allocation122_spill] sm:$0xff] %v11578_v23  ;;  %v11777_v23 = vld [vmem:[#allocation2 + $0x2f8] sm:$0x3] }
 0x518   :  { %17977 = vst [vmem:[#allocation123_spill] sm:$0xff] %v11581_v19  ;;  %v11771_v19 = vld [vmem:[#allocation2 + $0x2f0] sm:$0xff] }
 0x519   :  { %17979 = vst [vmem:[#allocation124_spill] sm:$0xff] %v11584_v50  ;;  %v11765_v50 = vld [vmem:[#allocation2 + $0x2e8] sm:$0xff] }
 0x51a   :  { %17981 = vst [vmem:[#allocation10_spill] sm:$0xff] %v11587_v47  ;;  %v18029_v47 = vld [vmem:[#allocation189_spill] sm:$0xff] }
 0x51b   :  { %17983 = vst [vmem:[#allocation7_spill] sm:$0xff] %v11590_v4  ;;  %v11755_v4 = vld [vmem:[#allocation2 + $0x2d8] sm:$0xff] }
 0x51c   :  { %17985 = vst [vmem:[#allocation8_spill] sm:$0xff] %v11593_v53  ;;  %v11749_v53 = vld [vmem:[#allocation2 + $0x2d0] sm:$0xff] }
 0x51d   :  { %17987 = vst [vmem:[#allocation36_spill] sm:$0xff] %v11596_v12  ;;  %v18026_v12 = vld [vmem:[#allocation187_spill] sm:$0xff] }
 0x51e   :  { %17989 = vst [vmem:[#allocation37_spill] sm:$0xff] %v11599_v27  ;;  %v11739_v27 = vld [vmem:[#allocation2 + $0x2c0] sm:$0xff] }
 0x51f   :  { %17991 = vst [vmem:[#allocation39_spill] sm:$0xff] %v11602_v49  ;;  %v11733_v49 = vld [vmem:[#allocation2 + $0x2b8] sm:$0xff] }
 0x520   :  { %17993 = vst [vmem:[#allocation40_spill] sm:$0xff] %v11605_v28  ;;  %v18023_v28 = vld [vmem:[#allocation185_spill] sm:$0xff] }
 0x521   :  { %17995 = vst [vmem:[#allocation41_spill] sm:$0xff] %v11609_v54  ;;  %v11731_v10 = vmul.f32 %v18023_v28, %v11569_v44  ;;  %v11753_v28 = vmul.f32 %v11749_v53, %v11569_v44 }
 0x522   :  { %17997 = vst [vmem:[#allocation42_spill] sm:$0xff] %v11615_v21 }
 0x523   :  { %17998 = vst [vmem:[#allocation44_spill] sm:$0xff] %v11621_v61  ;;  %v18003_v61 = vld [vmem:[#allocation59_spill] sm:$0xff] }
 0x524   :  { %18000 = vst [vmem:[#allocation45_spill] sm:$0xff] %v11631_v51  ;;  %v11647_v21 = vmul.f32 %v18003_v61, %v11569_v44  ;;  %v11655_v51 = vmul.f32 %v18005_v16, %v11569_v44  ;;  %v11667_v61 = vmul.f32 %v18008_v24, %v11569_v44  ;;  %v11675_v16 = vmul.f32 %v18010_v3, %v11569_v44 }
 0x525   :  { %v11687_v24 = vmul.f32 %v18013_v35, %v11569_v44  ;;  %v11695_v3 = vmul.f32 %v18015_v20, %v11569_v44  ;;  %v11707_v35 = vmul.f32 %v18018_v6, %v11569_v44  ;;  %v11715_v20 = vmul.f32 %v18020_v42, %v11569_v44  ;;  %18021 = vst [vmem:[#allocation68_spill] sm:$0xff] %v11717_v25 }
 0x526   :  { %18022 = vst [vmem:[#allocation47_spill] sm:$0xff] %v11723_v8  ;;  %v11727_v6 = vmul.f32 %v11723_v8, %v11569_v44  ;;  %v11737_v42 = vmul.f32 %v11733_v49, %v11569_v44  ;;  %v11743_v25 = vmul.f32 %v11739_v27, %v11569_v44  ;;  %v11747_v8 = vmul.f32 %v18026_v12, %v11569_v44 }
 0x527   :  { %18024 = vst [vmem:[#allocation64_spill] sm:$0xff] %v11733_v49  ;;  %v11759_v49 = vmul.f32 %v11755_v4, %v11569_v44  ;;  %v11769_v12 = vmul.f32 %v11765_v50, %v11569_v44  ;;  %v3479_v7 = vrot.slane %v11647_v21, 2  ;;  %v3495_v21 = vrot.slane %v11687_v24, 2 }
 0x528   :  { %18025 = vst [vmem:[#allocation77_spill] sm:$0xff] %v11739_v27  ;;  %v11763_v27 = vmul.f32 %v18029_v47, %v11569_v44  ;;  %v11803_v47 = vld [vmem:[#allocation2 + $0x318] sm:$0xff]  ;;  %v3499_v13 = vrot.slane %v11695_v3, 2  ;;  %v3486_v24 = vsel %vm2292_vm9, %v3484_v48, %v3485_v30  ;;  %v3515_v48 = vrot.slane %v11743_v25, 2 }
 0x529   :  { %18027 = vst [vmem:[#allocation107_spill] sm:$0xff] %v11749_v53  ;;  %v11775_v53 = vmul.f32 %v11771_v19, %v11569_v44  ;;  %v11807_v14 = vmul.f32 %v11803_v47, %v11569_v44 }
 0x52a   :  { %18028 = vst [vmem:[#allocation103_spill] sm:$0xff] %v11755_v4  ;;  %v11781_v4 = vmul.f32 %v11777_v23, %v11569_v44 }
 0x52b   :  { %18030 = vst [vmem:[#allocation108_spill] sm:$0xff] %v11765_v50  ;;  %v11789_v50 = vmul.f32 %v11785_v29, %v11569_v44 }
 0x52c   :  { %18031 = vst [vmem:[#allocation113_spill] sm:$0xff] %v11771_v19  ;;  %v11795_v19 = vmul.f32 %v11791_v39, %v11569_v44 }
 0x52d   :  { %18032 = vst [vmem:[#allocation109_spill] sm:$0xff] %v11777_v23  ;;  %v11801_v23 = vmul.f32 %v11797_v52, %v11569_v44 }
 0x52e   :  { %18033 = vst [vmem:[#allocation46_spill] sm:$0xff] %v11785_v29  ;;  %v11809_v29 = vld [vmem:[#allocation2 + $0x320] sm:$0xff] }
 0x52f   :  { %18034 = vst [vmem:[#allocation69_spill] sm:$0xff] %v11791_v39  ;;  %v11813_v36 = vmul.f32 %v11809_v29, %v11569_v44  ;;  %v11815_v39 = vld [vmem:[#allocation2 + $0x328] sm:$0x3]  ;;  %v3532_v25 = vrot.slane %v11801_v23, 2 }
 0x530   :  { %18035 = vst [vmem:[#allocation127_spill] sm:$0xff] %v11797_v52  ;;  %v11819_v1 = vmul.f32 %v11815_v39, %v11569_v44  ;;  %v18039_v52 = vld [vmem:[#allocation55_spill] sm:$0xff] }
 0x531   :  { %18036 = vst [vmem:[#allocation126_spill] sm:$0xff] %v11803_v47  ;;  %v11823_v17 = vmul.f32 %v11569_v44, %v18039_v52  ;;  %v11827_v47 = vmul.f32 %v11569_v44, %v18040_v58  ;;  %v3474_v52 = vrot.slane %v11635_v32, 2  ;;  %v3475_v58 = vrot.slane %v11639_v5, 2 }
 0x532   :  { %18037 = vst [vmem:[#allocation128_spill] sm:$0xff] %v11809_v29  ;;  %v3469_v29 = vrot.slane %v11619_v62, 2  ;;  %v3480_v44 = vrot.slane %v11651_v41, 2  ;;  %v3482_v62 = vrot.slane %v11655_v51, 2  ;;  %v3492_v32 = vrot.slane %v11679_v38, 2 }
 0x533   :  { %18038 = vst [vmem:[#allocation53_spill] sm:$0xff] %v11815_v39  ;;  %v18042_v39 = vrot.slane %v11609_v54, 2  ;;  %v3487_v54 = vrot.slane %v11667_v61, 2  ;;  %v3494_v5 = vrot.slane %v11683_v22, 2  ;;  %v3497_v41 = vrot.slane %v11691_v18, 2 }
 0x534   :  { %v3471_v51 = vsel %vm2292_vm9, %v3469_v29, %v3470_v2  ;;  %v3473_v61 = vsel %vm2292_vm9, %v3470_v2, %v3472_v46  ;;  %v3481_v38 = vsel %vm2292_vm9, %v3479_v7, %v3480_v44  ;;  %v3483_v22 = vsel %vm2292_vm9, %v3480_v44, %v3482_v62 }
 0x535   :  { %v11839_v0 = vsel %vm2292_vm9, %v18042_v39, %v3467_v59  ;;  %v3489_v59 = vrot.slane %v11671_v11, 2  ;;  %v3490_v39 = vrot.slane %v11675_v16, 2  ;;  %v3476_v11 = vsel %vm2292_vm9, %v3474_v52, %v3475_v58 }
 0x536   :  { %v3478_v16 = vsel %vm2292_vm9, %v3475_v58, %v3477_v57  ;;  %v3488_v29 = vsel %vm2292_vm9, %v3485_v30, %v3487_v54  ;;  %v3496_v31 = vsel %vm2292_vm9, %v3494_v5, %v3495_v21  ;;  %v3498_v46 = vsel %vm2292_vm9, %v3495_v21, %v3497_v41 }
 0x537   :  { %v3491_v18 = vsel %vm2292_vm9, %v3489_v59, %v3490_v39  ;;  %v3493_v3 = vsel %vm2292_vm9, %v3490_v39, %v3492_v32  ;;  %v3504_v2 = vrot.slane %v11707_v35, 2  ;;  %v3501_v57 = vsel %vm2292_vm9, %v3499_v13, %v3500_v33 }
 0x538   :  { %v3505_v44 = vrot.slane %v11711_v60, 2  ;;  %v3507_v52 = vrot.slane %v11715_v20, 2  ;;  %v3509_v54 = vrot.slane %v11721_v55, 2  ;;  %v3510_v58 = vrot.slane %v11727_v6, 2 }
 0x539   :  { %v3512_v7 = vrot.slane %v11731_v10, 2  ;;  %v3514_v62 = vrot.slane %v11737_v42, 2  ;;  %v3517_v35 = vrot.slane %v11747_v8, 2  ;;  %v3519_v30 = vrot.slane %v11753_v28, 2 }
 0x53a   :  { %v3520_v59 = vrot.slane %v11759_v49, 2  ;;  %v3522_v60 = vrot.slane %v11763_v27, 2  ;;  %v3524_v20 = vrot.slane %v11769_v12, 2  ;;  %v3525_v55 = vrot.slane %v11775_v53, 2 }
 0x53b   :  { %v3527_v6 = vrot.slane %v11781_v4, 2  ;;  %v3529_v10 = vrot.slane %v11789_v50, 2  ;;  %v3530_v42 = vrot.slane %v11795_v19, 2  ;;  %v3534_v8 = vrot.slane %v11807_v14, 2 }
 0x53c   :  { %v3535_v28 = vrot.slane %v11813_v36, 2  ;;  %v3537_v49 = vrot.slane %v11819_v1, 2  ;;  %v3539_v27 = vrot.slane %v11823_v17, 2  ;;  %v3540_v12 = vrot.slane %v11827_v47, 2 }
 0x53d   :  { %v3506_v53 = vsel %vm2292_vm9, %v3504_v2, %v3505_v44  ;;  %v3508_v4 = vsel %vm2292_vm9, %v3505_v44, %v3507_v52  ;;  %v3511_v50 = vsel %vm2292_vm9, %v3509_v54, %v3510_v58  ;;  %v3542_v19 = vrot.slane %v11831_v34, 2 }
 0x53e   :  { %v3513_v23 = vsel %vm2292_vm9, %v3510_v58, %v3512_v7  ;;  %v3516_v14 = vsel %vm2292_vm9, %v3514_v62, %v3515_v48  ;;  %v3518_v36 = vsel %vm2292_vm9, %v3515_v48, %v3517_v35  ;;  %v3521_v1 = vsel %vm2292_vm9, %v3519_v30, %v3520_v59 }
 0x53f   :  { %v3523_v17 = vsel %vm2292_vm9, %v3520_v59, %v3522_v60  ;;  %v3526_v47 = vsel %vm2292_vm9, %v3524_v20, %v3525_v55  ;;  %v3528_v39 = vsel %vm2292_vm9, %v3525_v55, %v3527_v6  ;;  %v3531_v32 = vsel %vm2292_vm9, %v3529_v10, %v3530_v42  ;;  %v18080_v55 = vld [vmem:[#allocation123_spill] sm:$0xff]  ;;  %v18082_v10 = vld [vmem:[#allocation124_spill] sm:$0xff] }
 0x540   :  { %v3533_v5 = vsel %vm2292_vm9, %v3530_v42, %v3532_v25  ;;  %v3536_v34 = vsel %vm2292_vm9, %v3534_v8, %v3535_v28  ;;  %v3538_v21 = vsel %vm2292_vm9, %v3535_v28, %v3537_v49  ;;  %v3541_v41 = vsel %vm2292_vm9, %v3539_v27, %v3540_v12  ;;  %v18084_v25 = vld [vmem:[#allocation10_spill] sm:$0xff]  ;;  %v18086_v28 = vld [vmem:[#allocation7_spill] sm:$0xff]  ;;  %v18088_v27 = vld [vmem:[#allocation8_spill] sm:$0xff] }
 0x541   :  { %v3543_v13 = vsel %vm2292_vm9, %v3540_v12, %v3542_v19  ;;  %v11915_v33 = vadd.f32 %v11839_v0, %v11496_v15  ;;  %v11918_v63 = vadd.f32 %v3471_v51, %v11500_v40  ;;  %v11921_v2 = vadd.f32 %v3473_v61, %v11504_v9  ;;  %v18050_v15 = vld [vmem:[#allocation60_spill] sm:$0xff] }
 0x542   :  { %v11924_v44 = vadd.f32 %v3476_v11, %v11508_v37  ;;  %v11927_v52 = vadd.f32 %v3478_v16, %v11512_v26  ;;  %v11930_v54 = vadd.f32 %v3481_v38, %v11516_v56  ;;  %v11933_v58 = vadd.f32 %v3483_v22, %v11520_v43  ;;  %v18052_v40 = vld [vmem:[#allocation16_spill] sm:$0xff]  ;;  %v18056_v37 = vld [vmem:[#allocation61_spill] sm:$0xff]  ;;  %v18058_v26 = vld [vmem:[#allocation135_spill] sm:$0xff] }
 0x543   :  { %18043 = vst [vmem:[#allocation51_spill] sm:$0xff] %v11915_v33  ;;  %v11936_v0 = vadd.f32 %v3486_v24, %v18050_v15  ;;  %v11939_v51 = vadd.f32 %v3488_v29, %v18052_v40  ;;  %v18054_v9 = vld [vmem:[#allocation188_spill] sm:$0xff]  ;;  %v11945_v11 = vadd.f32 %v3493_v3, %v18056_v37  ;;  %v11948_v16 = vadd.f32 %v3496_v31, %v18058_v26  ;;  %v18060_v56 = vld [vmem:[#allocation190_spill] sm:$0xff]  ;;  %v18064_v24 = vld [vmem:[#allocation139_spill] sm:$0xff] }
 0x544   :  { %18044 = vst [vmem:[#allocation73_spill] sm:$0xff] %v11918_v63  ;;  %v11942_v61 = vadd.f32 %v3491_v18, %v18054_v9  ;;  %v11951_v38 = vadd.f32 %v3498_v46, %v18060_v56  ;;  %v18062_v43 = vld [vmem:[#allocation138_spill] sm:$0xff]  ;;  %v11957_v7 = vadd.f32 %v3503_v45, %v18064_v24  ;;  %v18066_v29 = vld [vmem:[#allocation9_spill] sm:$0xff]  ;;  %v18068_v18 = vld [vmem:[#allocation140_spill] sm:$0xff]  ;;  %v11981_v6 = vadd.f32 %v3523_v17, %v18080_v55 }
 0x545   :  { %18045 = vst [vmem:[#allocation86_spill] sm:$0xff] %v11921_v2  ;;  %v11954_v22 = vadd.f32 %v3501_v57, %v18062_v43  ;;  %v11960_v62 = vadd.f32 %v3506_v53, %v18066_v29  ;;  %v11963_v48 = vadd.f32 %v3508_v4, %v18068_v18  ;;  %v18070_v3 = vld [vmem:[#allocation143_spill] sm:$0xff]  ;;  %v18074_v46 = vld [vmem:[#allocation120_spill] sm:$0xff]  ;;  %v18076_v57 = vld [vmem:[#allocation125_spill] sm:$0xff]  ;;  %v11984_v42 = vadd.f32 %v3526_v47, %v18082_v10 }
 0x546   :  { %18046 = vst [vmem:[#allocation13_spill] sm:$0xff] %v11924_v44  ;;  %v11966_v35 = vadd.f32 %v3511_v50, %v18070_v3  ;;  %v18072_v31 = vld [vmem:[#allocation163_spill] sm:$0xff]  ;;  %v11972_v59 = vadd.f32 %v3516_v14, %v18074_v46  ;;  %v11975_v60 = vadd.f32 %v3518_v36, %v18076_v57  ;;  %v18078_v45 = vld [vmem:[#allocation122_spill] sm:$0xff]  ;;  %v11987_v8 = vadd.f32 %v3528_v39, %v18084_v25  ;;  %v18090_v53 = vld [vmem:[#allocation36_spill] sm:$0xff] }
 0x547   :  { %18047 = vst [vmem:[#allocation91_spill] sm:$0xff] %v11927_v52  ;;  %v11969_v30 = vadd.f32 %v3513_v23, %v18072_v31  ;;  %v11978_v20 = vadd.f32 %v3521_v1, %v18078_v45  ;;  %v11990_v49 = vadd.f32 %v3531_v32, %v18086_v28  ;;  %v11993_v12 = vadd.f32 %v3533_v5, %v18088_v27  ;;  %v18092_v50 = vld [vmem:[#allocation37_spill] sm:$0xff]  ;;  %v18094_v23 = vld [vmem:[#allocation39_spill] sm:$0xff]  ;;  %v18096_v36 = vld [vmem:[#allocation40_spill] sm:$0xff] }
 0x548   :  { %18048 = vst [vmem:[#allocation151_spill] sm:$0xff] %v11930_v54  ;;  %v11996_v4 = vadd.f32 %v3536_v34, %v18090_v53  ;;  %v11999_v19 = vadd.f32 %v3538_v21, %v18092_v50  ;;  %v12002_v14 = vadd.f32 %v3541_v41, %v18094_v23  ;;  %v12005_v1 = vadd.f32 %v3543_v13, %v18096_v36  ;;  %v18098_v17 = vld [vmem:[#allocation76_spill] sm:$0xff]  ;;  %v18099_v47 = vld [vmem:[#allocation145_spill] sm:$0xff]  ;;  %v18100_v32 = vld [vmem:[#allocation82_spill] sm:$0xff] }
 0x549   :  { %18049 = vst [vmem:[#allocation94_spill] sm:$0xff] %v11933_v58  ;;  %v12009_v39 = vadd.f32 %v18099_v47, %v18098_v17  ;;  %v18101_v15 = vld [vmem:[#allocation80_spill] sm:$0xff]  ;;  %v18102_v40 = vld [vmem:[#allocation62_spill] sm:$0xff]  ;;  %v18104_v21 = vld [vmem:[#allocation65_spill] sm:$0xff] }
 0x54a   :  { %18051 = vst [vmem:[#allocation105_spill] sm:$0xff] %v11936_v0  ;;  %v12013_v5 = vadd.f32 %v18101_v15, %v18100_v32  ;;  %v18103_v34 = vld [vmem:[#allocation192_spill] sm:$0xff]  ;;  %v18105_v37 = vld [vmem:[#allocation193_spill] sm:$0xff]  ;;  %v18107_v56 = vld [vmem:[#allocation194_spill] sm:$0xff] }
 0x54b   :  { %18053 = vst [vmem:[#allocation20_spill] sm:$0xff] %v11939_v51  ;;  %v12017_v9 = vadd.f32 %v18103_v34, %v18102_v40  ;;  %v12021_v26 = vadd.f32 %v18105_v37, %v18104_v21  ;;  %v18106_v41 = vld [vmem:[#allocation88_spill] sm:$0xff]  ;;  %v18108_v43 = vld [vmem:[#allocation75_spill] sm:$0xff]  ;;  %v18109_v24 = vld [vmem:[#allocation90_spill] sm:$0xff] }
 0x54c   :  { %18055 = vst [vmem:[#allocation156_spill] sm:$0xff] %v11942_v61  ;;  %v12025_v13 = vadd.f32 %v18107_v56, %v18106_v41  ;;  %v12029_v29 = vadd.f32 %v18109_v24, %v18108_v43  ;;  %v18111_v18 = vld [vmem:[#allocation74_spill] sm:$0xff]  ;;  %v18112_v3 = vld [vmem:[#allocation27_spill] sm:$0xff]  ;;  %v18114_v46 = vld [vmem:[#allocation81_spill] sm:$0xff] }
 0x54d   :  { %18057 = vst [vmem:[#allocation99_spill] sm:$0xff] %v11945_v11  ;;  %v12033_v31 = vadd.f32 %v18112_v3, %v18111_v18  ;;  %v18115_v57 = vld [vmem:[#allocation28_spill] sm:$0xff]  ;;  %v18117_v55 = vld [vmem:[#allocation87_spill] sm:$0xff]  ;;  %v18123_v50 = vld [vmem:[#allocation97_spill] sm:$0xff] }
 0x54e   :  { %18059 = vst [vmem:[#allocation102_spill] sm:$0xff] %v11948_v16  ;;  %v12037_v45 = vadd.f32 %v18115_v57, %v18114_v46  ;;  %v18118_v10 = vld [vmem:[#allocation19_spill] sm:$0xff]  ;;  %v18120_v28 = vld [vmem:[#allocation92_spill] sm:$0xff]  ;;  %v18126_v17 = vld [vmem:[#allocation93_spill] sm:$0xff] }
 0x54f   :  { %18061 = vst [vmem:[#allocation129_spill] sm:$0xff] %v11951_v38  ;;  %v12041_v25 = vadd.f32 %v18118_v10, %v18117_v55  ;;  %v18121_v27 = vld [vmem:[#allocation195_spill] sm:$0xff]  ;;  %v18124_v23 = vld [vmem:[#allocation196_spill] sm:$0xff]  ;;  %v18127_v47 = vld [vmem:[#allocation197_spill] sm:$0xff] }
 0x550   :  { %18063 = vst [vmem:[#allocation130_spill] sm:$0xff] %v11954_v22  ;;  %v12045_v53 = vadd.f32 %v18121_v27, %v18120_v28  ;;  %v12049_v36 = vadd.f32 %v18124_v23, %v18123_v50  ;;  %v12053_v32 = vadd.f32 %v18127_v47, %v18126_v17  ;;  %v18129_v15 = vld [vmem:[#allocation98_spill] sm:$0xff]  ;;  %v18132_v21 = vld [vmem:[#allocation144_spill] sm:$0xff]  ;;  %v18134_v56 = vld [vmem:[#allocation71_spill] sm:$0xff] }
 0x551   :  { %18065 = vst [vmem:[#allocation131_spill] sm:$0xff] %v11957_v7  ;;  %v18130_v40 = vld [vmem:[#allocation198_spill] sm:$0xff]  ;;  %v18133_v37 = vld [vmem:[#allocation104_spill] sm:$0xff]  ;;  %v12065_v43 = vmul.f32 %v18134_v56, %v18132_v21  ;;  %v18135_v24 = vld [vmem:[#allocation85_spill] sm:$0xff] }
 0x552   :  { %18067 = vst [vmem:[#allocation50_spill] sm:$0xff] %v11960_v62  ;;  %v12057_v34 = vadd.f32 %v18130_v40, %v18129_v15  ;;  %v12061_v41 = vmul.f32 %v18133_v37, %v18132_v21  ;;  %v12069_v18 = vmul.f32 %v18135_v24, %v18132_v21  ;;  %v18136_v3 = vld [vmem:[#allocation106_spill] sm:$0xff]  ;;  %v18137_v57 = vld [vmem:[#allocation116_spill] sm:$0xff]  ;;  %v18138_v10 = vld [vmem:[#allocation115_spill] sm:$0xff] }
 0x553   :  { %18069 = vst [vmem:[#allocation132_spill] sm:$0xff] %v11963_v48  ;;  %v12073_v46 = vmul.f32 %v18136_v3, %v18132_v21  ;;  %v12077_v55 = vmul.f32 %v18137_v57, %v18132_v21  ;;  %v12081_v28 = vmul.f32 %v18138_v10, %v18132_v21  ;;  %v18139_v27 = vld [vmem:[#allocation118_spill] sm:$0xff]  ;;  %v18140_v23 = vld [vmem:[#allocation119_spill] sm:$0xff]  ;;  %v18141_v47 = vld [vmem:[#allocation117_spill] sm:$0xff] }
 0x554   :  { %18071 = vst [vmem:[#allocation52_spill] sm:$0xff] %v11966_v35  ;;  %v12085_v50 = vmul.f32 %v18139_v27, %v18132_v21  ;;  %v12089_v17 = vmul.f32 %v18140_v23, %v18132_v21  ;;  %v12093_v15 = vmul.f32 %v18141_v47, %v18132_v21  ;;  %v18142_v40 = vld [vmem:[#allocation149_spill] sm:$0xff]  ;;  %v18143_v56 = vld [vmem:[#allocation150_spill] sm:$0xff]  ;;  %v18144_v3 = vld [vmem:[#allocation152_spill] sm:$0xff] }
 0x555   :  { %18073 = vst [vmem:[#allocation133_spill] sm:$0xff] %v11969_v30  ;;  %v12097_v37 = vmul.f32 %v18142_v40, %v18132_v21  ;;  %v12101_v24 = vmul.f32 %v18143_v56, %v18132_v21  ;;  %v12105_v57 = vmul.f32 %v18144_v3, %v18132_v21  ;;  %v18145_v10 = vld [vmem:[#allocation153_spill] sm:$0xff]  ;;  %v18146_v23 = vld [vmem:[#allocation110_spill] sm:$0xff]  ;;  %v18162_v48 = vld [vmem:[#allocation96_spill] sm:$0xff] }
 0x556   :  { %18075 = vst [vmem:[#allocation141_spill] sm:$0xff] %v11972_v59  ;;  %v12109_v27 = vmul.f32 %v18145_v10, %v18132_v21  ;;  %v12113_v47 = vmul.f32 %v18146_v23, %v18132_v21  ;;  %v18158_v59 = vld [vmem:[#allocation162_spill] sm:$0xff]  ;;  %v18159_v30 = vld [vmem:[#allocation101_spill] sm:$0xff]  ;;  %v18165_v38 = vld [vmem:[#allocation43_spill] sm:$0xff] }
 0x557   :  { %18077 = vst [vmem:[#allocation142_spill] sm:$0xff] %v11975_v60  ;;  %v18157_v60 = vld [vmem:[#allocation137_spill] sm:$0xff]  ;;  %v12167_v35 = vld [vmem:[#allocation2 + $0xf0] sm:$0xff]  ;;  %v12197_v16 = vmul.f32 %v18165_v38, %v18132_v21  ;;  %v12215_v54 = vld [vmem:[#allocation2 + $0x138] sm:$0xff] }
 0x558   :  { %18079 = vst [vmem:[#allocation70_spill] sm:$0xff] %v11978_v20  ;;  %v18156_v20 = vld [vmem:[#allocation136_spill] sm:$0xff]  ;;  %v12183_v62 = vld [vmem:[#allocation2 + $0x108] sm:$0xff]  ;;  %v12189_v7 = vld [vmem:[#allocation2 + $0x110] sm:$0xff]  ;;  %v12219_v38 = vmul.f32 %v12215_v54, %v18132_v21 }
 0x559   :  { %18081 = vst [vmem:[#allocation66_spill] sm:$0xff] %v11981_v6  ;;  %v18155_v6 = vld [vmem:[#allocation11_spill] sm:$0xff]  ;;  %v12193_v22 = vmul.f32 %v12189_v7, %v18132_v21  ;;  %v12199_v11 = vld [vmem:[#allocation2 + $0x120] sm:$0xff]  ;;  %v12205_v61 = vld [vmem:[#allocation2 + $0x128] sm:$0xff] }
 0x55a   :  { %18083 = vst [vmem:[#allocation146_spill] sm:$0xff] %v11984_v42  ;;  %v18154_v42 = vld [vmem:[#allocation160_spill] sm:$0xff]  ;;  %v12209_v51 = vmul.f32 %v12205_v61, %v18132_v21  ;;  %v18168_v0 = vld [vmem:[#allocation147_spill] sm:$0xff]  ;;  %v12227_v2 = vld [vmem:[#allocation2 + $0x148] sm:$0x3] }
 0x55b   :  { %18085 = vst [vmem:[#allocation18_spill] sm:$0xff] %v11987_v8  ;;  %v18153_v8 = vld [vmem:[#allocation159_spill] sm:$0xff]  ;;  %v12213_v58 = vmul.f32 %v18168_v0, %v18132_v21  ;;  %v12221_v52 = vld [vmem:[#allocation2 + $0x140] sm:$0xff]  ;;  %v12231_v63 = vmul.f32 %v12227_v2, %v18132_v21 }
 0x55c   :  { %18087 = vst [vmem:[#allocation49_spill] sm:$0xff] %v11990_v49  ;;  %v18152_v49 = vld [vmem:[#allocation158_spill] sm:$0xff]  ;;  %v12225_v44 = vmul.f32 %v12221_v52, %v18132_v21 }
 0x55d   :  { %18089 = vst [vmem:[#allocation148_spill] sm:$0xff] %v11993_v12  ;;  %v18151_v12 = vld [vmem:[#allocation157_spill] sm:$0xff]  ;;  %v12233_v0 = vld [vmem:[#allocation2 + $0x150] sm:$0xff] }
 0x55e   :  { %18091 = vst [vmem:[#allocation29_spill] sm:$0xff] %v11996_v4  ;;  %v18150_v4 = vld [vmem:[#allocation100_spill] sm:$0xff]  ;;  %v12133_v23 = vmul.f32 %v18151_v12, %v18132_v21  ;;  %v12153_v12 = vmul.f32 %v18156_v20, %v18132_v21  ;;  %v12237_v33 = vmul.f32 %v12233_v0, %v18132_v21 }
 0x55f   :  { %18093 = vst [vmem:[#allocation54_spill] sm:$0xff] %v11999_v19  ;;  %v18149_v19 = vld [vmem:[#allocation155_spill] sm:$0xff]  ;;  %v12129_v10 = vmul.f32 %v18150_v4, %v18132_v21  ;;  %v12149_v4 = vmul.f32 %v18155_v6, %v18132_v21  ;;  %v12171_v6 = vmul.f32 %v12167_v35, %v18132_v21 }
 0x560   :  { %18095 = vst [vmem:[#allocation15_spill] sm:$0xff] %v12002_v14  ;;  %v18148_v14 = vld [vmem:[#allocation114_spill] sm:$0xff]  ;;  %v12125_v3 = vmul.f32 %v18149_v19, %v18132_v21  ;;  %v12145_v19 = vmul.f32 %v18154_v42, %v18132_v21  ;;  %v12165_v42 = vmul.f32 %v18159_v30, %v18132_v21  ;;  %v12173_v20 = vld [vmem:[#allocation2 + $0xf8] sm:$0xff]  ;;  %v12187_v30 = vmul.f32 %v12183_v62, %v18132_v21 }
 0x561   :  { %18097 = vst [vmem:[#allocation59_spill] sm:$0xff] %v12005_v1  ;;  %v18147_v1 = vld [vmem:[#allocation154_spill] sm:$0xff]  ;;  %v12121_v56 = vmul.f32 %v18148_v14, %v18132_v21  ;;  %v12141_v14 = vmul.f32 %v18153_v8, %v18132_v21  ;;  %v12161_v8 = vmul.f32 %v18158_v59, %v18132_v21  ;;  %v12181_v59 = vmul.f32 %v18162_v48, %v18132_v21 }
 0x562   :  { %18110 = vst [vmem:[#allocation63_spill] sm:$0xff] %v12029_v29  ;;  %v12117_v40 = vmul.f32 %v18147_v1, %v18132_v21  ;;  %v12137_v1 = vmul.f32 %v18152_v49, %v18132_v21  ;;  %v12157_v49 = vmul.f32 %v18157_v60, %v18132_v21  ;;  %v12177_v60 = vmul.f32 %v12173_v20, %v18132_v21 }
 0x563   :  { %18113 = vst [vmem:[#allocation31_spill] sm:$0xff] %v12033_v31  ;;  %v12203_v48 = vmul.f32 %v12199_v11, %v18132_v21  ;;  %v3394_v31 = vrot.slane %v12085_v50, 2  ;;  %v3397_v29 = vrot.slane %v12093_v15, 2  ;;  %v3412_v50 = vrot.slane %v12129_v10, 2 }
 0x564   :  { %18116 = vst [vmem:[#allocation57_spill] sm:$0xff] %v12037_v45  ;;  %v3415_v15 = vrot.slane %v12137_v1, 2 }
 0x565   :  { %18119 = vst [vmem:[#allocation58_spill] sm:$0xff] %v12041_v25  ;;  %v3390_v25 = vrot.slane %v12077_v55, 2  ;;  %v3404_v55 = vrot.slane %v12109_v27, 2  ;;  %v3422_v27 = vrot.slane %v12153_v12, 2 }
 0x566   :  { %18122 = vst [vmem:[#allocation48_spill] sm:$0xff] %v12045_v53  ;;  %v3389_v53 = vrot.slane %v12073_v46, 2  ;;  %v3402_v46 = vrot.slane %v12105_v57, 2  ;;  %v3420_v57 = vrot.slane %v12149_v4, 2 }
 0x567   :  { %18125 = vst [vmem:[#allocation56_spill] sm:$0xff] %v12049_v36  ;;  %v6392_v36 = vld [vmem:[#allocation2 + $0x1c8] sm:$0xff] }
 0x568   :  { %18128 = vst [vmem:[#allocation134_spill] sm:$0xff] %v12053_v32 }
 0x569   :  { %18131 = vst [vmem:[#allocation165_spill] sm:$0xff] %v12057_v34 }
 0x56a   :  { %18160 = vst [vmem:[#allocation167_spill] sm:$0xff] %v12167_v35 }
 0x56b   :  { %18161 = vst [vmem:[#allocation169_spill] sm:$0xff] %v12173_v20 }
 0x56c   :  { %18163 = vst [vmem:[#allocation171_spill] sm:$0xff] %v12183_v62 }
 0x56d   :  { %18164 = vst [vmem:[#allocation173_spill] sm:$0xff] %v12189_v7 }
 0x56e   :  { %18166 = vst [vmem:[#allocation175_spill] sm:$0xff] %v12199_v11  ;;  %v3387_v11 = vrot.slane %v12069_v18, 2 }
 0x56f   :  { %18167 = vst [vmem:[#allocation177_spill] sm:$0xff] %v12205_v61  ;;  %v3385_v61 = vrot.slane %v12065_v43, 2  ;;  %v12260_v43 = vld [vmem:[#allocation2 + $0x170] sm:$0xff] }
 0x570   :  { %18169 = vst [vmem:[#allocation179_spill] sm:$0xff] %v12215_v54  ;;  %v3384_v54 = vrot.slane %v12061_v41, 2  ;;  %v12264_v18 = vmul.f32 %v12260_v43, %v18132_v21 }
 0x571   :  { %18170 = vst [vmem:[#allocation181_spill] sm:$0xff] %v12221_v52  ;;  %v12242_v52 = vld [vmem:[#allocation2 + $0x158] sm:$0xff] }
 0x572   :  { %18171 = vst [vmem:[#allocation183_spill] sm:$0xff] %v12227_v2  ;;  %v12246_v7 = vmul.f32 %v12242_v52, %v18132_v21  ;;  %v12248_v2 = vld [vmem:[#allocation2 + $0x160] sm:$0x3]  ;;  %v12295_v45 = vsel %vm2292_vm9, %v3384_v54, %v3385_v61  ;;  %v3405_v54 = vrot.slane %v12113_v47, 2  ;;  %v3391_v47 = vsel %vm2292_vm9, %v3389_v53, %v3390_v25 }
 0x573   :  { %18172 = vst [vmem:[#allocation185_spill] sm:$0xff] %v12233_v0  ;;  %v12252_v62 = vmul.f32 %v12248_v2, %v18132_v21  ;;  %v12254_v0 = vld [vmem:[#allocation2 + $0x168] sm:$0xff] }
 0x574   :  { %18173 = vst [vmem:[#allocation187_spill] sm:$0xff] %v12242_v52  ;;  %v12258_v41 = vmul.f32 %v12254_v0, %v18132_v21  ;;  %v12266_v52 = vld [vmem:[#allocation2 + $0x178] sm:$0x3] }
 0x575   :  { %18174 = vst [vmem:[#allocation189_spill] sm:$0xff] %v12248_v2  ;;  %v12270_v20 = vmul.f32 %v12266_v52, %v18132_v21  ;;  %v12272_v2 = vld [vmem:[#allocation2 + $0x180] sm:$0xff] }
 0x576   :  { %18175 = vst [vmem:[#allocation55_spill] sm:$0xff] %v12254_v0  ;;  %v12276_v35 = vmul.f32 %v12272_v2, %v18132_v21  ;;  %v12278_v0 = vld [vmem:[#allocation2 + $0x188] sm:$0xff] }
 0x577   :  { %18176 = vst [vmem:[#allocation67_spill] sm:$0xff] %v12260_v43  ;;  %v12282_v34 = vmul.f32 %v12278_v0, %v18132_v21  ;;  %v18180_v43 = vld [vmem:[#allocation38_spill] sm:$0xff] }
 0x578   :  { %18177 = vst [vmem:[#allocation191_spill] sm:$0xff] %v12266_v52  ;;  %v12286_v32 = vmul.f32 %v18132_v21, %v18180_v43  ;;  %v12289_v52 = vmul.f32 %v6392_v36, %v18132_v21  ;;  %v3395_v43 = vrot.slane %v12089_v17, 2  ;;  %v3399_v36 = vrot.slane %v12097_v37, 2 }
 0x579   :  { %18178 = vst [vmem:[#allocation60_spill] sm:$0xff] %v12272_v2  ;;  %v3392_v2 = vrot.slane %v12081_v28, 2  ;;  %v3400_v21 = vrot.slane %v12101_v24, 2  ;;  %v3407_v28 = vrot.slane %v12117_v40, 2  ;;  %v3414_v17 = vrot.slane %v12133_v23, 2 }
 0x57a   :  { %18179 = vst [vmem:[#allocation16_spill] sm:$0xff] %v12278_v0  ;;  %v12298_v0 = vsel %vm2292_vm9, %v3385_v61, %v3387_v11  ;;  %v3409_v61 = vrot.slane %v12121_v56, 2  ;;  %v3410_v11 = vrot.slane %v12125_v3, 2  ;;  %v3417_v37 = vrot.slane %v12141_v14, 2 }
 0x57b   :  { %v3419_v24 = vrot.slane %v12145_v19, 2  ;;  %v3393_v40 = vsel %vm2292_vm9, %v3390_v25, %v3392_v2  ;;  %v3424_v56 = vrot.slane %v12157_v49, 2  ;;  %v3425_v3 = vrot.slane %v12161_v8, 2 }
 0x57c   :  { %v3396_v10 = vsel %vm2292_vm9, %v3394_v31, %v3395_v43  ;;  %v3398_v23 = vsel %vm2292_vm9, %v3395_v43, %v3397_v29  ;;  %v3401_v1 = vsel %vm2292_vm9, %v3399_v36, %v3400_v21  ;;  %v3403_v14 = vsel %vm2292_vm9, %v3400_v21, %v3402_v46 }
 0x57d   :  { %v3406_v19 = vsel %vm2292_vm9, %v3404_v55, %v3405_v54  ;;  %v3408_v4 = vsel %vm2292_vm9, %v3405_v54, %v3407_v28  ;;  %v3411_v53 = vsel %vm2292_vm9, %v3409_v61, %v3410_v11  ;;  %v3413_v2 = vsel %vm2292_vm9, %v3410_v11, %v3412_v50 }
 0x57e   :  { %v3416_v25 = vsel %vm2292_vm9, %v3414_v17, %v3415_v15  ;;  %v3418_v12 = vsel %vm2292_vm9, %v3415_v15, %v3417_v37  ;;  %v3421_v31 = vsel %vm2292_vm9, %v3419_v24, %v3420_v57  ;;  %v3423_v29 = vsel %vm2292_vm9, %v3420_v57, %v3422_v27  ;;  %v18181_v57 = vld [vmem:[#allocation41_spill] sm:$0xff] }
 0x57f   :  { %v3426_v49 = vsel %vm2292_vm9, %v3424_v56, %v3425_v3  ;;  %v3427_v8 = vrot.slane %v12165_v42, 2  ;;  %v3429_v43 = vrot.slane %v12171_v6, 2  ;;  %v3430_v36 = vrot.slane %v12177_v60, 2 }
 0x580   :  { %v3432_v21 = vrot.slane %v12181_v59, 2  ;;  %v3434_v46 = vrot.slane %v12187_v30, 2  ;;  %v3435_v55 = vrot.slane %v12193_v22, 2  ;;  %v3437_v54 = vrot.slane %v12197_v16, 2 }
 0x581   :  { %v3439_v28 = vrot.slane %v12203_v48, 2  ;;  %v3440_v61 = vrot.slane %v12209_v51, 2  ;;  %v3442_v11 = vrot.slane %v12213_v58, 2  ;;  %v3444_v42 = vrot.slane %v12219_v38, 2 }
 0x582   :  { %v3445_v6 = vrot.slane %v12225_v44, 2  ;;  %v3447_v60 = vrot.slane %v12231_v63, 2  ;;  %v3449_v59 = vrot.slane %v12237_v33, 2  ;;  %v3450_v30 = vrot.slane %v12246_v7, 2 }
 0x583   :  { %v3452_v22 = vrot.slane %v12252_v62, 2  ;;  %v3454_v16 = vrot.slane %v12258_v41, 2  ;;  %v3455_v48 = vrot.slane %v12264_v18, 2  ;;  %v3457_v51 = vrot.slane %v12270_v20, 2 }
 0x584   :  { %v3459_v58 = vrot.slane %v12276_v35, 2  ;;  %v3460_v38 = vrot.slane %v12282_v34, 2  ;;  %v3462_v44 = vrot.slane %v12286_v32, 2  ;;  %v3464_v63 = vrot.slane %v12289_v52, 2 }
 0x585   :  { %v3428_v33 = vsel %vm2292_vm9, %v3425_v3, %v3427_v8  ;;  %v3431_v7 = vsel %vm2292_vm9, %v3429_v43, %v3430_v36  ;;  %v3433_v62 = vsel %vm2292_vm9, %v3430_v36, %v3432_v21  ;;  %v3436_v41 = vsel %vm2292_vm9, %v3434_v46, %v3435_v55  ;;  %v18183_v3 = vld [vmem:[#allocation111_spill] sm:$0xff]  ;;  %v18184_v43 = vld [vmem:[#allocation161_spill] sm:$0xff] }
 0x586   :  { %v3438_v18 = vsel %vm2292_vm9, %v3435_v55, %v3437_v54  ;;  %v3441_v20 = vsel %vm2292_vm9, %v3439_v28, %v3440_v61  ;;  %v3443_v35 = vsel %vm2292_vm9, %v3440_v61, %v3442_v11  ;;  %v3446_v34 = vsel %vm2292_vm9, %v3444_v42, %v3445_v6  ;;  %v18185_v21 = vld [vmem:[#allocation121_spill] sm:$0xff]  ;;  %v18186_v55 = vld [vmem:[#allocation112_spill] sm:$0xff] }
 0x587   :  { %v3448_v32 = vsel %vm2292_vm9, %v3445_v6, %v3447_v60  ;;  %v3451_v52 = vsel %vm2292_vm9, %v3449_v59, %v3450_v30  ;;  %v3453_v50 = vsel %vm2292_vm9, %v3450_v30, %v3452_v22  ;;  %v3456_v17 = vsel %vm2292_vm9, %v3454_v16, %v3455_v48  ;;  %v18187_v28 = vld [vmem:[#allocation24_spill] sm:$0xff] }
 0x588   :  { %v3458_v15 = vsel %vm2292_vm9, %v3455_v48, %v3457_v51  ;;  %v3461_v37 = vsel %vm2292_vm9, %v3459_v58, %v3460_v38  ;;  %v3463_v24 = vsel %vm2292_vm9, %v3460_v38, %v3462_v44  ;;  %v18182_v27 = vrot.slane %v18181_v57, 2  ;;  %v18188_v11 = vld [vmem:[#allocation12_spill] sm:$0xff] }
 0x589   :  { %v12378_v8 = vadd.f32 %v12295_v45, %v18183_v3  ;;  %v12382_v36 = vadd.f32 %v12298_v0, %v18184_v43  ;;  %v12385_v46 = vadd.f32 %v3391_v47, %v18185_v21  ;;  %v12388_v54 = vadd.f32 %v3393_v40, %v18186_v55  ;;  %v18189_v6 = vld [vmem:[#allocation164_spill] sm:$0xff]  ;;  %v18190_v45 = vld [vmem:[#allocation166_spill] sm:$0xff] }
 0x58a   :  { %v3466_v56 = vsel %vm2292_vm9, %v3464_v63, %v18182_v27  ;;  %v12391_v61 = vadd.f32 %v3396_v10, %v18187_v28  ;;  %v12394_v42 = vadd.f32 %v3398_v23, %v18188_v11  ;;  %v12397_v60 = vadd.f32 %v3401_v1, %v18189_v6  ;;  %v18191_v0 = vld [vmem:[#allocation168_spill] sm:$0xff]  ;;  %v18192_v47 = vld [vmem:[#allocation170_spill] sm:$0xff]  ;;  %v18226_v6 = vld [vmem:[#allocation169_spill] sm:$0xff] }
 0x58b   :  { %v12400_v59 = vadd.f32 %v3403_v14, %v18190_v45  ;;  %v12403_v30 = vadd.f32 %v3406_v19, %v18191_v0  ;;  %v12406_v22 = vadd.f32 %v3408_v4, %v18192_v47  ;;  %v18193_v40 = vld [vmem:[#allocation172_spill] sm:$0xff]  ;;  %v18194_v10 = vld [vmem:[#allocation174_spill] sm:$0xff]  ;;  %v18227_v0 = vld [vmem:[#allocation171_spill] sm:$0xff] }
 0x58c   :  { %v12409_v16 = vadd.f32 %v3411_v53, %v18193_v40  ;;  %v12412_v48 = vadd.f32 %v3413_v2, %v18194_v10  ;;  %v18195_v23 = vld [vmem:[#allocation176_spill] sm:$0xff]  ;;  %v18196_v1 = vld [vmem:[#allocation178_spill] sm:$0xff]  ;;  %v18200_v53 = vld [vmem:[#allocation83_spill] sm:$0xff] }
 0x58d   :  { %v12415_v51 = vadd.f32 %v3416_v25, %v18195_v23  ;;  %v12418_v58 = vadd.f32 %v3418_v12, %v18196_v1  ;;  %v18197_v14 = vld [vmem:[#allocation180_spill] sm:$0xff]  ;;  %v18198_v19 = vld [vmem:[#allocation182_spill] sm:$0xff]  ;;  %v12430_v57 = vadd.f32 %v3428_v33, %v18200_v53  ;;  %v18201_v2 = vld [vmem:[#allocation79_spill] sm:$0xff]  ;;  %v12439_v12 = vadd.f32 %v3436_v41, %v12009_v39 }
 0x58e   :  { %v12421_v38 = vadd.f32 %v3421_v31, %v18197_v14  ;;  %v12424_v44 = vadd.f32 %v3423_v29, %v18198_v19  ;;  %v18199_v4 = vld [vmem:[#allocation184_spill] sm:$0xff]  ;;  %v12433_v27 = vadd.f32 %v3431_v7, %v18201_v2  ;;  %v18202_v25 = vld [vmem:[#allocation186_spill] sm:$0xff]  ;;  %v12442_v31 = vadd.f32 %v3438_v18, %v12013_v5  ;;  %v18204_v7 = vld [vmem:[#allocation63_spill] sm:$0xff] }
 0x58f   :  { %v12427_v63 = vadd.f32 %v3426_v49, %v18199_v4  ;;  %v12436_v3 = vadd.f32 %v3433_v62, %v18202_v25  ;;  %v12445_v29 = vadd.f32 %v3441_v20, %v12017_v9  ;;  %v12448_v49 = vadd.f32 %v3443_v35, %v12021_v26  ;;  %v18206_v62 = vld [vmem:[#allocation31_spill] sm:$0xff]  ;;  %v18208_v39 = vld [vmem:[#allocation57_spill] sm:$0xff]  ;;  %v18210_v5 = vld [vmem:[#allocation58_spill] sm:$0xff] }
 0x590   :  { %v12451_v33 = vadd.f32 %v3446_v34, %v12025_v13  ;;  %v12454_v43 = vadd.f32 %v3448_v32, %v18204_v7  ;;  %v12457_v21 = vadd.f32 %v3451_v52, %v18206_v62  ;;  %v12460_v41 = vadd.f32 %v3453_v50, %v18208_v39  ;;  %v18212_v9 = vld [vmem:[#allocation48_spill] sm:$0xff]  ;;  %v18216_v13 = vld [vmem:[#allocation134_spill] sm:$0xff]  ;;  %v18218_v32 = vld [vmem:[#allocation165_spill] sm:$0xff] }
 0x591   :  { %v12463_v18 = vadd.f32 %v3456_v17, %v18210_v5  ;;  %v12466_v20 = vadd.f32 %v3458_v15, %v18212_v9  ;;  %v18214_v26 = vld [vmem:[#allocation56_spill] sm:$0xff]  ;;  %v12472_v34 = vadd.f32 %v3463_v24, %v18216_v13  ;;  %v12475_v55 = vadd.f32 %v3466_v56, %v18218_v32  ;;  %v18221_v28 = vld [vmem:[#allocation34_spill] sm:$0xff]  ;;  %v18228_v40 = vld [vmem:[#allocation173_spill] sm:$0xff] }
 0x592   :  { %18203 = vst [vmem:[#allocation188_spill] sm:$0xff] %v12451_v33  ;;  %v12469_v35 = vadd.f32 %v3461_v37, %v18214_v26  ;;  %v12477_v52 = vld [vmem:[#allocation2 + $0xd8] sm:$0xff]  ;;  %v12483_v17 = vld [vmem:[#allocation2 + $0xe0] sm:$0xff]  ;;  %v12499_v45 = vmul.f32 %v18226_v6, %v18221_v28  ;;  %v12503_v47 = vmul.f32 %v18227_v0, %v18221_v28  ;;  %v12507_v10 = vmul.f32 %v18228_v40, %v18221_v28 }
 0x593   :  { %18205 = vst [vmem:[#allocation61_spill] sm:$0xff] %v12454_v43  ;;  %v12481_v50 = vmul.f32 %v12477_v52, %v18221_v28  ;;  %v12487_v15 = vmul.f32 %v12483_v17, %v18221_v28  ;;  %v18223_v37 = vld [vmem:[#allocation167_spill] sm:$0xff]  ;;  %v12495_v56 = vld [vmem:[#allocation2 + $0x1a0] sm:$0xff] }
 0x594   :  { %18207 = vst [vmem:[#allocation135_spill] sm:$0xff] %v12457_v21  ;;  %v12491_v11 = vmul.f32 %v18223_v37, %v18221_v28  ;;  %v12493_v24 = vld [vmem:[#allocation2 + $0x198] sm:$0xff]  ;;  %v18230_v14 = vld [vmem:[#allocation177_spill] sm:$0xff] }
 0x595   :  { %18209 = vst [vmem:[#allocation190_spill] sm:$0xff] %v12460_v41  ;;  %v18229_v23 = vld [vmem:[#allocation175_spill] sm:$0xff]  ;;  %v12515_v19 = vmul.f32 %v18230_v14, %v18221_v28  ;;  %v18232_v2 = vld [vmem:[#allocation181_spill] sm:$0xff]  ;;  %v18248_v14 = vld [vmem:[#allocation42_spill] sm:$0xff] }
 0x596   :  { %18211 = vst [vmem:[#allocation138_spill] sm:$0xff] %v12463_v18  ;;  %v12511_v1 = vmul.f32 %v18229_v23, %v18221_v28  ;;  %v18231_v4 = vld [vmem:[#allocation179_spill] sm:$0xff]  ;;  %v12523_v25 = vmul.f32 %v18232_v2, %v18221_v28  ;;  %v18234_v7 = vld [vmem:[#allocation185_spill] sm:$0xff]  ;;  %v18250_v23 = vld [vmem:[#allocation44_spill] sm:$0xff] }
 0x597   :  { %18213 = vst [vmem:[#allocation139_spill] sm:$0xff] %v12466_v20  ;;  %v12519_v53 = vmul.f32 %v18231_v4, %v18221_v28  ;;  %v12527_v62 = vmul.f32 %v18234_v7, %v18221_v28  ;;  %v18236_v39 = vld [vmem:[#allocation187_spill] sm:$0xff]  ;;  %v18244_v4 = vld [vmem:[#allocation16_spill] sm:$0xff]  ;;  %v18252_v40 = vld [vmem:[#allocation45_spill] sm:$0xff] }
 0x598   :  { %18215 = vst [vmem:[#allocation9_spill] sm:$0xff] %v12469_v35  ;;  %v12531_v5 = vmul.f32 %v18236_v39, %v18221_v28  ;;  %v18238_v9 = vld [vmem:[#allocation55_spill] sm:$0xff]  ;;  %v12547_v7 = vmul.f32 %v18244_v4, %v18221_v28  ;;  %v12551_v39 = vmul.f32 %v18221_v28, %v12493_v24  ;;  %v12567_v4 = vmul.f32 %v18252_v40, %v18221_v28  ;;  %v12569_v0 = vld [vmem:[#allocation2 + $0x200] sm:$0xff]  ;;  %v12587_v37 = vld [vmem:[#allocation2 + $0x228] sm:$0xff] }
 0x599   :  { %18217 = vst [vmem:[#allocation140_spill] sm:$0xff] %v12472_v34  ;;  %v12535_v26 = vmul.f32 %v18238_v9, %v18221_v28  ;;  %v18240_v13 = vld [vmem:[#allocation67_spill] sm:$0xff]  ;;  %v12555_v9 = vmul.f32 %v18221_v28, %v12495_v56  ;;  %v12599_v34 = vld [vmem:[#allocation2 + $0x240] sm:$0xff]  ;;  %v12605_v35 = vld [vmem:[#allocation2 + $0x248] sm:$0xff] }
 0x59a   :  { %18219 = vst [vmem:[#allocation143_spill] sm:$0xff] %v12475_v55  ;;  %v12539_v32 = vmul.f32 %v18240_v13, %v18221_v28  ;;  %v18242_v55 = vld [vmem:[#allocation60_spill] sm:$0xff]  ;;  %v12559_v13 = vmul.f32 %v18248_v14, %v18221_v28  ;;  %v12623_v41 = vld [vmem:[#allocation2 + $0x270] sm:$0xff]  ;;  %v12627_v21 = vld [vmem:[#allocation2 + $0x288] sm:$0xff] }
 0x59b   :  { %18220 = vst [vmem:[#allocation163_spill] sm:$0xff] %v12477_v52  ;;  %v12543_v2 = vmul.f32 %v18242_v55, %v18221_v28  ;;  %v12563_v55 = vmul.f32 %v18250_v23, %v18221_v28  ;;  %v12593_v52 = vld [vmem:[#allocation2 + $0x230] sm:$0xff]  ;;  %v12611_v20 = vld [vmem:[#allocation2 + $0x258] sm:$0xff]  ;;  %v12617_v18 = vld [vmem:[#allocation2 + $0x260] sm:$0xff] }
 0x59c   :  { %18222 = vst [vmem:[#allocation120_spill] sm:$0xff] %v12483_v17  ;;  %v12591_v17 = vmul.f32 %v12587_v37, %v18221_v28 }
 0x59d   :  { %18224 = vst [vmem:[#allocation125_spill] sm:$0xff] %v12493_v24  ;;  %v12573_v24 = vmul.f32 %v12569_v0, %v18221_v28 }
 0x59e   :  { %18225 = vst [vmem:[#allocation122_spill] sm:$0xff] %v12495_v56  ;;  %v12575_v56 = vld [vmem:[#allocation2 + $0x210] sm:$0xff] }
 0x59f   :  { %18233 = vst [vmem:[#allocation123_spill] sm:$0xff] %v12523_v25  ;;  %v12579_v14 = vmul.f32 %v12575_v56, %v18221_v28 }
 0x5a0   :  { %18235 = vst [vmem:[#allocation124_spill] sm:$0xff] %v12527_v62 }
 0x5a1   :  { %18237 = vst [vmem:[#allocation10_spill] sm:$0xff] %v12531_v5 }
 0x5a2   :  { %18239 = vst [vmem:[#allocation7_spill] sm:$0xff] %v12535_v26  ;;  %v3717_v26 = vmul.f32 %v12623_v41, %v18221_v28 }
 0x5a3   :  { %18241 = vst [vmem:[#allocation8_spill] sm:$0xff] %v12539_v32  ;;  %v12621_v32 = vmul.f32 %v12617_v18, %v18221_v28 }
 0x5a4   :  { %18243 = vst [vmem:[#allocation36_spill] sm:$0xff] %v12543_v2  ;;  %v12615_v2 = vmul.f32 %v12611_v20, %v18221_v28 }
 0x5a5   :  { %18245 = vst [vmem:[#allocation37_spill] sm:$0xff] %v12547_v7  ;;  %v12609_v7 = vmul.f32 %v12605_v35, %v18221_v28 }
 0x5a6   :  { %18246 = vst [vmem:[#allocation39_spill] sm:$0xff] %v12551_v39  ;;  %v12603_v39 = vmul.f32 %v12599_v34, %v18221_v28 }
 0x5a7   :  { %18247 = vst [vmem:[#allocation40_spill] sm:$0xff] %v12555_v9  ;;  %v12597_v9 = vmul.f32 %v12593_v52, %v18221_v28 }
 0x5a8   :  { %18249 = vst [vmem:[#allocation76_spill] sm:$0xff] %v12559_v13  ;;  %v12581_v13 = vld [vmem:[#allocation2 + $0x218] sm:$0xff] }
 0x5a9   :  { %18251 = vst [vmem:[#allocation145_spill] sm:$0xff] %v12563_v55  ;;  %v12585_v6 = vmul.f32 %v12581_v13, %v18221_v28  ;;  %v12663_v55 = vld [vmem:[#allocation2 + $0x330] sm:$0xff] }
 0x5aa   :  { %18253 = vst [vmem:[#allocation82_spill] sm:$0xff] %v12567_v4 }
 0x5ab   :  { %18254 = vst [vmem:[#allocation80_spill] sm:$0xff] %v12569_v0  ;;  %v12641_v0 = vld [vmem:[#allocation2 + $0x350] sm:$0xff] }
 0x5ac   :  { %18255 = vst [vmem:[#allocation62_spill] sm:$0xff] %v12573_v24 }
 0x5ad   :  { %18256 = vst [vmem:[#allocation192_spill] sm:$0xff] %v12575_v56  ;;  %v12639_v56 = vld [vmem:[#allocation2 + $0x348] sm:$0xff] }
 0x5ae   :  { %18257 = vst [vmem:[#allocation65_spill] sm:$0xff] %v12579_v14 }
 0x5af   :  { %18258 = vst [vmem:[#allocation193_spill] sm:$0xff] %v12581_v13 }
 0x5b0   :  { %18259 = vst [vmem:[#allocation88_spill] sm:$0xff] %v12585_v6 }
 0x5b1   :  { %18260 = vst [vmem:[#allocation194_spill] sm:$0xff] %v12587_v37 }
 0x5b2   :  { %18261 = vst [vmem:[#allocation75_spill] sm:$0xff] %v12591_v17  ;;  %v18285_v17 = vld [vmem:[#allocation46_spill] sm:$0xff] }
 0x5b3   :  { %18262 = vst [vmem:[#allocation90_spill] sm:$0xff] %v12593_v52  ;;  %v18275_v52 = vld [vmem:[#allocation68_spill] sm:$0xff]  ;;  %v3729_v6 = vmul.f32 %v18285_v17, %v18221_v28  ;;  %v3735_v17 = vmul.f32 %v18221_v28, %v12639_v56 }
 0x5b4   :  { %18263 = vst [vmem:[#allocation74_spill] sm:$0xff] %v12597_v9  ;;  %v3721_v37 = vmul.f32 %v18275_v52, %v18221_v28  ;;  %v18283_v52 = vld [vmem:[#allocation108_spill] sm:$0xff] }
 0x5b5   :  { %18264 = vst [vmem:[#allocation27_spill] sm:$0xff] %v12599_v34  ;;  %v12631_v34 = vld [vmem:[#allocation2 + $0x290] sm:$0xff] }
 0x5b6   :  { %18265 = vst [vmem:[#allocation81_spill] sm:$0xff] %v12603_v39  ;;  %v3727_v39 = vmul.f32 %v18283_v52, %v18221_v28  ;;  %v3733_v52 = vmul.f32 %v12663_v55, %v18221_v28 }
 0x5b7   :  { %18266 = vst [vmem:[#allocation28_spill] sm:$0xff] %v12605_v35  ;;  %v3719_v35 = vmul.f32 %v12627_v21, %v18221_v28 }
 0x5b8   :  { %18267 = vst [vmem:[#allocation87_spill] sm:$0xff] %v12609_v7 }
 0x5b9   :  { %18268 = vst [vmem:[#allocation19_spill] sm:$0xff] %v12611_v20  ;;  %v3720_v20 = vmul.f32 %v12631_v34, %v18221_v28 }
 0x5ba   :  { %18269 = vst [vmem:[#allocation92_spill] sm:$0xff] %v12615_v2 }
 0x5bb   :  { %18270 = vst [vmem:[#allocation195_spill] sm:$0xff] %v12617_v18  ;;  %v18276_v18 = vld [vmem:[#allocation47_spill] sm:$0xff] }
 0x5bc   :  { %18271 = vst [vmem:[#allocation97_spill] sm:$0xff] %v12621_v32  ;;  %v3722_v13 = vmul.f32 %v18276_v18, %v18221_v28  ;;  %v18281_v32 = vld [vmem:[#allocation107_spill] sm:$0xff]  ;;  %v18284_v18 = vld [vmem:[#allocation113_spill] sm:$0xff] }
 0x5bd   :  { %18272 = vst [vmem:[#allocation196_spill] sm:$0xff] %v12623_v41  ;;  %v18279_v41 = vld [vmem:[#allocation64_spill] sm:$0xff]  ;;  %v3725_v2 = vmul.f32 %v18281_v32, %v18221_v28  ;;  %v3728_v9 = vmul.f32 %v18284_v18, %v18221_v28 }
 0x5be   :  { %18273 = vst [vmem:[#allocation93_spill] sm:$0xff] %v12627_v21  ;;  %v3723_v40 = vmul.f32 %v18279_v41, %v18221_v28  ;;  %v18280_v21 = vld [vmem:[#allocation77_spill] sm:$0xff]  ;;  %v18288_v32 = vld [vmem:[#allocation128_spill] sm:$0xff] }
 0x5bf   :  { %18274 = vst [vmem:[#allocation197_spill] sm:$0xff] %v12631_v34  ;;  %v3724_v23 = vmul.f32 %v18280_v21, %v18221_v28  ;;  %v18282_v34 = vld [vmem:[#allocation103_spill] sm:$0xff]  ;;  %v18286_v41 = vld [vmem:[#allocation69_spill] sm:$0xff]  ;;  %v18287_v21 = vld [vmem:[#allocation126_spill] sm:$0xff]  ;;  %v3732_v4 = vmul.f32 %v18288_v32, %v18221_v28 }
 0x5c0   :  { %18277 = vst [vmem:[#allocation98_spill] sm:$0xff] %v12639_v56  ;;  %v3726_v7 = vmul.f32 %v18282_v34, %v18221_v28  ;;  %v3730_v14 = vmul.f32 %v18286_v41, %v18221_v28  ;;  %v3731_v24 = vmul.f32 %v18287_v21, %v18221_v28  ;;  %v12667_v34 = vld [vmem:[#allocation2 + $0x338] sm:$0xff]  ;;  %v3736_v41 = vmul.f32 %v18221_v28, %v12641_v0  ;;  %v18291_v21 = vld [vmem:[#allocation22_spill] sm:$0xff] }
 0x5c1   :  { %18278 = vst [vmem:[#allocation198_spill] sm:$0xff] %v12641_v0  ;;  %v3734_v18 = vmul.f32 %v12667_v34, %v18221_v28  ;;  %v12677_v5 = vadd.f32 %v18291_v21, %v12378_v8  ;;  %v18293_v32 = vld [vmem:[#allocation26_spill] sm:$0xff]  ;;  %v18301_v28 = vld [vmem:[#allocation32_spill] sm:$0xff] }
 0x5c2   :  { %18289 = vst [vmem:[#allocation144_spill] sm:$0xff] %v12663_v55  ;;  %v12681_v43 = vadd.f32 %v18293_v32, %v12382_v36  ;;  %v18295_v55 = vld [vmem:[#allocation17_spill] sm:$0xff]  ;;  %v18299_v56 = vld [vmem:[#allocation30_spill] sm:$0xff]  ;;  %v12697_v8 = vadd.f32 %v18301_v28, %v12394_v42  ;;  %v18303_v21 = vld [vmem:[#allocation72_spill] sm:$0xff] }
 0x5c3   :  { %18290 = vst [vmem:[#allocation104_spill] sm:$0xff] %v12667_v34  ;;  %v12685_v62 = vadd.f32 %v18295_v55, %v12385_v46  ;;  %v18297_v34 = vld [vmem:[#allocation14_spill] sm:$0xff]  ;;  %v12693_v25 = vadd.f32 %v18299_v56, %v12391_v61  ;;  %v12701_v36 = vadd.f32 %v18303_v21, %v12397_v60  ;;  %v18307_v55 = vld [vmem:[#allocation84_spill] sm:$0xff]  ;;  %v18311_v56 = vld [vmem:[#allocation21_spill] sm:$0xff] }
 0x5c4   :  { %18292 = vst [vmem:[#allocation71_spill] sm:$0xff] %v12677_v5  ;;  %v12689_v33 = vadd.f32 %v18297_v34, %v12388_v54  ;;  %v18305_v32 = vld [vmem:[#allocation78_spill] sm:$0xff]  ;;  %v12709_v54 = vadd.f32 %v18307_v55, %v12403_v30  ;;  %v18309_v34 = vld [vmem:[#allocation89_spill] sm:$0xff]  ;;  %v12717_v42 = vadd.f32 %v18311_v56, %v12409_v16  ;;  %v18315_v21 = vld [vmem:[#allocation35_spill] sm:$0xff]  ;;  %v12737_v16 = vadd.f32 %v12487_v15, %v12424_v44 }
 0x5c5   :  { %18294 = vst [vmem:[#allocation85_spill] sm:$0xff] %v12681_v43  ;;  %v12705_v46 = vadd.f32 %v18305_v32, %v12400_v59  ;;  %v12713_v61 = vadd.f32 %v18309_v34, %v12406_v22  ;;  %v18313_v28 = vld [vmem:[#allocation33_spill] sm:$0xff]  ;;  %v12725_v59 = vadd.f32 %v18315_v21, %v12415_v51  ;;  %v18317_v32 = vld [vmem:[#allocation23_spill] sm:$0xff]  ;;  %v12733_v22 = vadd.f32 %v12481_v50, %v12421_v38  ;;  %v18330_v15 = vld [vmem:[#allocation188_spill] sm:$0xff] }
 0x5c6   :  { %18296 = vst [vmem:[#allocation106_spill] sm:$0xff] %v12685_v62  ;;  %v12721_v60 = vadd.f32 %v18313_v28, %v12412_v48  ;;  %v12729_v30 = vadd.f32 %v18317_v32, %v12418_v58  ;;  %v12741_v48 = vadd.f32 %v12491_v11, %v12427_v63  ;;  %v12745_v51 = vadd.f32 %v12499_v45, %v12430_v57  ;;  %v18328_v50 = vld [vmem:[#allocation123_spill] sm:$0xff]  ;;  %v18331_v11 = vld [vmem:[#allocation124_spill] sm:$0xff]  ;;  %v18333_v45 = vld [vmem:[#allocation61_spill] sm:$0xff] }
 0x5c7   :  { %18298 = vst [vmem:[#allocation116_spill] sm:$0xff] %v12689_v33  ;;  %v12749_v58 = vadd.f32 %v12503_v47, %v12433_v27  ;;  %v12753_v38 = vadd.f32 %v12507_v10, %v12436_v3  ;;  %v12757_v44 = vadd.f32 %v12511_v1, %v12439_v12  ;;  %v12761_v63 = vadd.f32 %v12515_v19, %v12442_v31  ;;  %v18334_v47 = vld [vmem:[#allocation10_spill] sm:$0xff]  ;;  %v18336_v10 = vld [vmem:[#allocation51_spill] sm:$0xff]  ;;  %v18337_v1 = vld [vmem:[#allocation145_spill] sm:$0xff] }
 0x5c8   :  { %18300 = vst [vmem:[#allocation115_spill] sm:$0xff] %v12693_v25  ;;  %v12765_v57 = vadd.f32 %v12519_v53, %v12445_v29  ;;  %v12769_v27 = vadd.f32 %v18328_v50, %v12448_v49  ;;  %v12773_v3 = vadd.f32 %v18331_v11, %v18330_v15  ;;  %v12777_v12 = vadd.f32 %v18334_v47, %v18333_v45  ;;  %v18338_v19 = vld [vmem:[#allocation73_spill] sm:$0xff]  ;;  %v18339_v55 = vld [vmem:[#allocation82_spill] sm:$0xff]  ;;  %v18344_v32 = vld [vmem:[#allocation91_spill] sm:$0xff] }
 0x5c9   :  { %18302 = vst [vmem:[#allocation118_spill] sm:$0xff] %v12697_v8  ;;  %v12781_v31 = vadd.f32 %v18337_v1, %v18336_v10  ;;  %v12785_v29 = vadd.f32 %v18339_v55, %v18338_v19  ;;  %v18340_v53 = vld [vmem:[#allocation86_spill] sm:$0xff]  ;;  %v18342_v56 = vld [vmem:[#allocation13_spill] sm:$0xff]  ;;  %v18345_v50 = vld [vmem:[#allocation88_spill] sm:$0xff] }
 0x5ca   :  { %18304 = vst [vmem:[#allocation119_spill] sm:$0xff] %v12701_v36  ;;  %v18341_v34 = vld [vmem:[#allocation62_spill] sm:$0xff]  ;;  %v18343_v28 = vld [vmem:[#allocation65_spill] sm:$0xff]  ;;  %v12797_v15 = vadd.f32 %v18345_v50, %v18344_v32  ;;  %v18346_v11 = vld [vmem:[#allocation151_spill] sm:$0xff] }
 0x5cb   :  { %18306 = vst [vmem:[#allocation117_spill] sm:$0xff] %v12705_v46  ;;  %v12789_v49 = vadd.f32 %v18341_v34, %v18340_v53  ;;  %v12793_v21 = vadd.f32 %v18343_v28, %v18342_v56  ;;  %v18347_v45 = vld [vmem:[#allocation75_spill] sm:$0xff]  ;;  %v18348_v10 = vld [vmem:[#allocation94_spill] sm:$0xff]  ;;  %v18350_v55 = vld [vmem:[#allocation105_spill] sm:$0xff] }
 0x5cc   :  { %18308 = vst [vmem:[#allocation149_spill] sm:$0xff] %v12709_v54  ;;  %v12801_v47 = vadd.f32 %v18347_v45, %v18346_v11  ;;  %v18349_v1 = vld [vmem:[#allocation74_spill] sm:$0xff]  ;;  %v18353_v34 = vld [vmem:[#allocation20_spill] sm:$0xff]  ;;  %v18359_v50 = vld [vmem:[#allocation99_spill] sm:$0xff] }
 0x5cd   :  { %18310 = vst [vmem:[#allocation150_spill] sm:$0xff] %v12713_v61  ;;  %v12805_v19 = vadd.f32 %v18349_v1, %v18348_v10  ;;  %v18356_v28 = vld [vmem:[#allocation156_spill] sm:$0xff]  ;;  %v18362_v45 = vld [vmem:[#allocation102_spill] sm:$0xff]  ;;  %v18364_v10 = vld [vmem:[#allocation129_spill] sm:$0xff] }
 0x5ce   :  { %18312 = vst [vmem:[#allocation152_spill] sm:$0xff] %v12717_v42  ;;  %v18365_v1 = vld [vmem:[#allocation95_spill] sm:$0xff]  ;;  %v18418_v46 = vld [vmem:[#allocation28_spill] sm:$0xff]  ;;  %v18426_v8 = vld [vmem:[#allocation93_spill] sm:$0xff] }
 0x5cf   :  { %18314 = vst [vmem:[#allocation153_spill] sm:$0xff] %v12721_v60  ;;  %v12938_v60 = vld [vmem:[#allocation2 + $0x238] sm:$0x3]  ;;  %v18427_v25 = vld [vmem:[#allocation197_spill] sm:$0xff] }
 0x5d0   :  { %18316 = vst [vmem:[#allocation110_spill] sm:$0xff] %v12725_v59  ;;  %v18417_v61 = vld [vmem:[#allocation27_spill] sm:$0xff]  ;;  %v18429_v62 = vld [vmem:[#allocation68_spill] sm:$0xff] }
 0x5d1   :  { %18318 = vst [vmem:[#allocation154_spill] sm:$0xff] %v12729_v30  ;;  %v18415_v30 = vld [vmem:[#allocation90_spill] sm:$0xff]  ;;  %v12996_v33 = vld [vmem:[#allocation2 + $0x298] sm:$0x3] }
 0x5d2   :  { %18319 = vst [vmem:[#allocation114_spill] sm:$0xff] %v12733_v22 }
 0x5d3   :  { %18320 = vst [vmem:[#allocation155_spill] sm:$0xff] %v12737_v16  ;;  %v18414_v16 = vld [vmem:[#allocation194_spill] sm:$0xff] }
 0x5d4   :  { %18321 = vst [vmem:[#allocation100_spill] sm:$0xff] %v12741_v48 }
 0x5d5   :  { %18322 = vst [vmem:[#allocation157_spill] sm:$0xff] %v12745_v51  ;;  %v18393_v51 = vld [vmem:[#allocation49_spill] sm:$0xff] }
 0x5d6   :  { %18323 = vst [vmem:[#allocation158_spill] sm:$0xff] %v12749_v58  ;;  %v12875_v48 = vadd.f32 %v3731_v24, %v18393_v51  ;;  %v12896_v24 = vld [vmem:[#allocation2 + $0x1f0] sm:$0x3] }
 0x5d7   :  { %18324 = vst [vmem:[#allocation159_spill] sm:$0xff] %v12753_v38  ;;  %v18371_v38 = vld [vmem:[#allocation50_spill] sm:$0xff] }
 0x5d8   :  { %18325 = vst [vmem:[#allocation160_spill] sm:$0xff] %v12757_v44  ;;  %v12828_v44 = vadd.f32 %v18365_v1, %v18364_v10  ;;  %v18381_v10 = vld [vmem:[#allocation141_spill] sm:$0xff]  ;;  %v18385_v1 = vld [vmem:[#allocation70_spill] sm:$0xff] }
 0x5d9   :  { %18326 = vst [vmem:[#allocation11_spill] sm:$0xff] %v12761_v63  ;;  %v12824_v63 = vadd.f32 %v3717_v26, %v18362_v45  ;;  %v18377_v26 = vld [vmem:[#allocation133_spill] sm:$0xff] }
 0x5da   :  { %18327 = vst [vmem:[#allocation136_spill] sm:$0xff] %v12765_v57  ;;  %v18360_v57 = vld [vmem:[#allocation97_spill] sm:$0xff]  ;;  %v12846_v45 = vadd.f32 %v3724_v23, %v18377_v26 }
 0x5db   :  { %18329 = vst [vmem:[#allocation137_spill] sm:$0xff] %v12769_v27  ;;  %v18357_v27 = vld [vmem:[#allocation92_spill] sm:$0xff]  ;;  %v12821_v11 = vadd.f32 %v18360_v57, %v18359_v50 }
 0x5dc   :  { %18332 = vst [vmem:[#allocation162_spill] sm:$0xff] %v12773_v3  ;;  %v18354_v3 = vld [vmem:[#allocation87_spill] sm:$0xff]  ;;  %v12817_v32 = vadd.f32 %v18357_v27, %v18356_v28  ;;  %v12837_v27 = vadd.f32 %v3721_v37, %v18371_v38  ;;  %v18373_v28 = vld [vmem:[#allocation132_spill] sm:$0xff]  ;;  %v12857_v37 = vadd.f32 %v3725_v2, %v18381_v10  ;;  %v18383_v38 = vld [vmem:[#allocation142_spill] sm:$0xff] }
 0x5dd   :  { %18335 = vst [vmem:[#allocation101_spill] sm:$0xff] %v12777_v12  ;;  %v18351_v12 = vld [vmem:[#allocation81_spill] sm:$0xff]  ;;  %v12813_v56 = vadd.f32 %v18354_v3, %v18353_v34  ;;  %v18369_v3 = vld [vmem:[#allocation131_spill] sm:$0xff]  ;;  %v12840_v58 = vadd.f32 %v3722_v13, %v18373_v28  ;;  %v18375_v57 = vld [vmem:[#allocation52_spill] sm:$0xff]  ;;  %v12860_v13 = vadd.f32 %v3726_v7, %v18383_v38 }
 0x5de   :  { %v12809_v53 = vadd.f32 %v18351_v12, %v18350_v55  ;;  %18358 = vst [vmem:[#allocation147_spill] sm:$0xff] %v12817_v32  ;;  %v18367_v12 = vld [vmem:[#allocation130_spill] sm:$0xff]  ;;  %v12834_v34 = vadd.f32 %v3720_v20, %v18369_v3  ;;  %v12843_v50 = vadd.f32 %v3723_v40, %v18375_v57  ;;  %v12863_v40 = vadd.f32 %v3727_v39, %v18385_v1  ;;  %v18395_v2 = vld [vmem:[#allocation148_spill] sm:$0xff]  ;;  %v18397_v7 = vld [vmem:[#allocation29_spill] sm:$0xff] }
 0x5df   :  { %18355 = vst [vmem:[#allocation43_spill] sm:$0xff] %v12813_v56  ;;  %v12831_v55 = vadd.f32 %v3719_v35, %v18367_v12  ;;  %v12851_v35 = vld [vmem:[%s16261_s5 + $0x8] sm:$0x7]  ;;  %v18387_v12 = vld [vmem:[#allocation66_spill] sm:$0xff]  ;;  %v12878_v10 = vadd.f32 %v3732_v4, %v18395_v2  ;;  %v12881_v38 = vadd.f32 %v3733_v52, %v18397_v7 }
 0x5e0   :  { %18352 = vst [vmem:[#allocation96_spill] sm:$0xff] %v12809_v53  ;;  %v12854_v20 = vperm.slane %v12851_v35, 1  ;;  %v12866_v23 = vadd.f32 %v3728_v9, %v18387_v12  ;;  %v18389_v3 = vld [vmem:[#allocation146_spill] sm:$0xff]  ;;  %v18401_v9 = vld [vmem:[#allocation15_spill] sm:$0xff]  ;;  %v18408_v52 = vld [vmem:[#allocation45_spill] sm:$0xff] }
 0x5e1   :  { %18361 = vst [vmem:[#allocation38_spill] sm:$0xff] %v12821_v11  ;;  %v12869_v28 = vadd.f32 %v3729_v6, %v18389_v3  ;;  %v18391_v57 = vld [vmem:[#allocation18_spill] sm:$0xff]  ;;  %v12887_v12 = vadd.f32 %v3735_v17, %v18401_v9  ;;  %v18403_v6 = vld [vmem:[#allocation59_spill] sm:$0xff]  ;;  %v18409_v17 = vld [vmem:[#allocation80_spill] sm:$0xff] }
 0x5e2   :  { %18363 = vst [vmem:[#allocation41_spill] sm:$0xff] %v12824_v63  ;;  %v12872_v26 = vadd.f32 %v3730_v14, %v18391_v57  ;;  %v18399_v39 = vld [vmem:[#allocation54_spill] sm:$0xff]  ;;  %v12890_v3 = vadd.f32 %v3736_v41, %v18403_v6  ;;  %v18405_v14 = vld [vmem:[#allocation44_spill] sm:$0xff]  ;;  %v12900_v4 = vmul.f32 %v12896_v24, %v12854_v20  ;;  %v12908_v51 = vmul.f32 %v18409_v17, %v12854_v20  ;;  %v18412_v9 = vld [vmem:[#allocation193_spill] sm:$0xff] }
 0x5e3   :  { %18366 = vst [vmem:[#allocation111_spill] sm:$0xff] %v12828_v44  ;;  %v12884_v1 = vadd.f32 %v3734_v18, %v18399_v39  ;;  %v12894_v57 = vmul.f32 %v18405_v14, %v12854_v20  ;;  %v12904_v18 = vmul.f32 %v18408_v52, %v12854_v20  ;;  %v12910_v41 = vld [vmem:[#allocation2 + $0x208] sm:$0x3]  ;;  %v18411_v7 = vld [vmem:[#allocation192_spill] sm:$0xff]  ;;  %v12922_v6 = vmul.f32 %v18412_v9, %v12854_v20 }
 0x5e4   :  { %18368 = vst [vmem:[#allocation161_spill] sm:$0xff] %v12831_v55  ;;  %v12914_v2 = vmul.f32 %v12910_v41, %v12854_v20  ;;  %v12918_v39 = vmul.f32 %v18411_v7, %v12854_v20  ;;  %v12924_v14 = vld [vmem:[#allocation2 + $0x220] sm:$0x3]  ;;  %v12932_v22 = vmul.f32 %v18414_v16, %v12854_v20  ;;  %v12936_v59 = vmul.f32 %v18415_v30, %v12854_v20  ;;  %v12952_v16 = vld [vmem:[#allocation2 + $0x250] sm:$0x3] }
 0x5e5   :  { %18370 = vst [vmem:[#allocation121_spill] sm:$0xff] %v12834_v34  ;;  %v12928_v52 = vmul.f32 %v12924_v14, %v12854_v20  ;;  %v12942_v42 = vmul.f32 %v12938_v60, %v12854_v20  ;;  %v12946_v54 = vmul.f32 %v18417_v61, %v12854_v20  ;;  %v12950_v36 = vmul.f32 %v18418_v46, %v12854_v20  ;;  %v12966_v61 = vld [vmem:[#allocation2 + $0x268] sm:$0x3]  ;;  %v18448_v55 = vld [vmem:[#allocation144_spill] sm:$0xff] }
 0x5e6   :  { %18372 = vst [vmem:[#allocation112_spill] sm:$0xff] %v12837_v27  ;;  %v12956_v30 = vmul.f32 %v12952_v16, %v12854_v20  ;;  %v12970_v46 = vmul.f32 %v12966_v61, %v12854_v20  ;;  %v13004_v43 = vmul.f32 %v18429_v62, %v12854_v20  ;;  %v13024_v62 = vld [vmem:[#allocation2 + $0x2c8] sm:$0x3]  ;;  %v4080_v11 = vrot.slane %v12908_v51, 1 }
 0x5e7   :  { %18374 = vst [vmem:[#allocation24_spill] sm:$0xff] %v12840_v58  ;;  %v18447_v34 = vld [vmem:[#allocation53_spill] sm:$0xff]  ;;  %v4082_v32 = vrot.slane %v12914_v2, 1  ;;  %v4087_v53 = vrot.slane %v12928_v52, 1  ;;  %v4094_v51 = vrot.slane %v12946_v54, 1  ;;  %v4095_v2 = vrot.slane %v12950_v36, 1 }
 0x5e8   :  { %18376 = vst [vmem:[#allocation12_spill] sm:$0xff] %v12843_v50  ;;  %v4077_v50 = vrot.slane %v12900_v4, 1  ;;  %v13092_v4 = vld [vmem:[#allocation2 + $0x340] sm:$0x3] }
 0x5e9   :  { %18378 = vst [vmem:[#allocation164_spill] sm:$0xff] %v12846_v45 }
 0x5ea   :  { %18379 = vst [vmem:[#allocation166_spill] sm:$0xff] %v12851_v35  ;;  %v18432_v35 = vld [vmem:[#allocation64_spill] sm:$0xff] }
 0x5eb   :  { %18380 = vst [vmem:[#allocation168_spill] sm:$0xff] %v12854_v20 }
 0x5ec   :  { %18382 = vst [vmem:[#allocation170_spill] sm:$0xff] %v12857_v37 }
 0x5ed   :  { %18384 = vst [vmem:[#allocation172_spill] sm:$0xff] %v12860_v13  ;;  %v13060_v13 = vld [vmem:[#allocation2 + $0x358] sm:$0x3] }
 0x5ee   :  { %18386 = vst [vmem:[#allocation174_spill] sm:$0xff] %v12863_v40 }
 0x5ef   :  { %18388 = vst [vmem:[#allocation176_spill] sm:$0xff] %v12866_v23 }
 0x5f0   :  { %18390 = vst [vmem:[#allocation178_spill] sm:$0xff] %v12869_v28 }
 0x5f1   :  { %18392 = vst [vmem:[#allocation180_spill] sm:$0xff] %v12872_v26 }
 0x5f2   :  { %18394 = vst [vmem:[#allocation182_spill] sm:$0xff] %v12875_v48  ;;  %v18438_v48 = vld [vmem:[#allocation108_spill] sm:$0xff] }
 0x5f3   :  { %18396 = vst [vmem:[#allocation184_spill] sm:$0xff] %v12878_v10  ;;  %v13046_v26 = vmul.f32 %v18438_v48, %v12854_v20  ;;  %v18444_v48 = vld [vmem:[#allocation127_spill] sm:$0xff] }
 0x5f4   :  { %18398 = vst [vmem:[#allocation83_spill] sm:$0xff] %v12881_v38  ;;  %v13068_v45 = vmul.f32 %v18444_v48, %v12854_v20  ;;  %v13086_v48 = vmul.f32 %v18448_v55, %v12854_v20  ;;  %v13108_v55 = vmul.f32 %v12854_v20, %v13060_v13 }
 0x5f5   :  { %18400 = vst [vmem:[#allocation79_spill] sm:$0xff] %v12884_v1  ;;  %v18435_v1 = vld [vmem:[#allocation107_spill] sm:$0xff] }
 0x5f6   :  { %18402 = vst [vmem:[#allocation186_spill] sm:$0xff] %v12887_v12  ;;  %v13032_v38 = vmul.f32 %v18435_v1, %v12854_v20  ;;  %v18440_v1 = vld [vmem:[#allocation109_spill] sm:$0xff] }
 0x5f7   :  { %18404 = vst [vmem:[#allocation63_spill] sm:$0xff] %v12890_v3  ;;  %v13018_v3 = vmul.f32 %v18432_v35, %v12854_v20  ;;  %v13038_v35 = vld [vmem:[#allocation2 + $0x2e0] sm:$0x3]  ;;  %v13054_v23 = vmul.f32 %v18440_v1, %v12854_v20  ;;  %v18445_v1 = vld [vmem:[#allocation126_spill] sm:$0xff] }
 0x5f8   :  { %18406 = vst [vmem:[#allocation31_spill] sm:$0xff] %v12894_v57  ;;  %v13074_v58 = vmul.f32 %v18445_v1, %v12854_v20  ;;  %v13096_v1 = vmul.f32 %v13092_v4, %v12854_v20 }
 0x5f9   :  { %18407 = vst [vmem:[#allocation57_spill] sm:$0xff] %v12896_v24  ;;  %v12982_v24 = vld [vmem:[#allocation2 + $0x280] sm:$0x3] }
 0x5fa   :  { %18410 = vst [vmem:[#allocation58_spill] sm:$0xff] %v12910_v41  ;;  %v18423_v41 = vld [vmem:[#allocation196_spill] sm:$0xff] }
 0x5fb   :  { %18413 = vst [vmem:[#allocation48_spill] sm:$0xff] %v12924_v14  ;;  %v18420_v14 = vld [vmem:[#allocation19_spill] sm:$0xff]  ;;  %v12974_v17 = vmul.f32 %v18423_v41, %v12854_v20  ;;  %v12994_v41 = vmul.f32 %v18427_v25, %v12854_v20 }
 0x5fc   :  { %18416 = vst [vmem:[#allocation56_spill] sm:$0xff] %v12938_v60  ;;  %v12960_v9 = vmul.f32 %v18420_v14, %v12854_v20  ;;  %v18421_v60 = vld [vmem:[#allocation195_spill] sm:$0xff] }
 0x5fd   :  { %18419 = vst [vmem:[#allocation134_spill] sm:$0xff] %v12952_v16  ;;  %v12964_v7 = vmul.f32 %v18421_v60, %v12854_v20  ;;  %v12976_v16 = vld [vmem:[#allocation2 + $0x278] sm:$0xff]  ;;  %v12986_v60 = vmul.f32 %v12982_v24, %v12854_v20  ;;  %v4104_v52 = vrot.slane %v12974_v17, 1  ;;  %v4110_v36 = vrot.slane %v12994_v41, 1 }
 0x5fe   :  { %18422 = vst [vmem:[#allocation165_spill] sm:$0xff] %v12966_v61  ;;  %v12980_v14 = vmul.f32 %v12976_v16, %v12854_v20  ;;  %v12990_v61 = vmul.f32 %v18426_v8, %v12854_v20  ;;  %v13010_v8 = vld [vmem:[#allocation2 + $0x2b0] sm:$0x3] }
 0x5ff   :  { %18424 = vst [vmem:[#allocation34_spill] sm:$0xff] %v12976_v16  ;;  %v13000_v16 = vmul.f32 %v12996_v33, %v12854_v20  ;;  %v13014_v25 = vmul.f32 %v13010_v8, %v12854_v20 }
 0x600   :  { %18425 = vst [vmem:[#allocation42_spill] sm:$0xff] %v12982_v24  ;;  %v18430_v24 = vld [vmem:[#allocation47_spill] sm:$0xff]  ;;  %v4109_v54 = vrot.slane %v12990_v61, 1 }
 0x601   :  { %18428 = vst [vmem:[#allocation22_spill] sm:$0xff] %v12996_v33  ;;  %v13008_v5 = vmul.f32 %v18430_v24, %v12854_v20  ;;  %v18433_v33 = vld [vmem:[#allocation77_spill] sm:$0xff]  ;;  %v13028_v24 = vmul.f32 %v13024_v62, %v12854_v20 }
 0x602   :  { %18431 = vst [vmem:[#allocation26_spill] sm:$0xff] %v13010_v8  ;;  %v13022_v12 = vmul.f32 %v18433_v33, %v12854_v20  ;;  %v18436_v8 = vld [vmem:[#allocation103_spill] sm:$0xff]  ;;  %v13042_v33 = vmul.f32 %v13038_v35, %v12854_v20 }
 0x603   :  { %18434 = vst [vmem:[#allocation17_spill] sm:$0xff] %v13024_v62  ;;  %v13036_v10 = vmul.f32 %v18436_v8, %v12854_v20  ;;  %v18439_v62 = vld [vmem:[#allocation113_spill] sm:$0xff]  ;;  %v18441_v8 = vld [vmem:[#allocation46_spill] sm:$0xff] }
 0x604   :  { %18437 = vst [vmem:[#allocation14_spill] sm:$0xff] %v13038_v35  ;;  %v13050_v28 = vmul.f32 %v18439_v62, %v12854_v20  ;;  %v13058_v40 = vmul.f32 %v18441_v8, %v12854_v20  ;;  %v18443_v35 = vld [vmem:[#allocation69_spill] sm:$0xff]  ;;  %v18446_v8 = vld [vmem:[#allocation128_spill] sm:$0xff] }
 0x605   :  { %18442 = vst [vmem:[#allocation30_spill] sm:$0xff] %v13060_v13  ;;  %v13064_v37 = vmul.f32 %v18443_v35, %v12854_v20  ;;  %v13078_v27 = vmul.f32 %v18446_v8, %v12854_v20  ;;  %v13082_v35 = vmul.f32 %v18447_v34, %v12854_v20  ;;  %v18449_v62 = vld [vmem:[#allocation104_spill] sm:$0xff]  ;;  %v18451_v8 = vld [vmem:[#allocation98_spill] sm:$0xff]  ;;  %v13104_v34 = vmul.f32 %v12854_v20, %v12641_v0 }
 0x606   :  { %v13090_v44 = vmul.f32 %v18449_v62, %v12854_v20  ;;  %18450 = vst [vmem:[#allocation32_spill] sm:$0xff] %v13092_v4  ;;  %v13100_v63 = vmul.f32 %v12854_v20, %v18451_v8  ;;  %v4079_v62 = vrot.slane %v12904_v18, 1  ;;  %v18452_v4 = vrot.slane %v12894_v57, 1 }
 0x607   :  { %v4084_v8 = vrot.slane %v12918_v39, 1  ;;  %v4085_v0 = vrot.slane %v12922_v6, 1  ;;  %v4089_v13 = vrot.slane %v12932_v22, 1  ;;  %v4090_v20 = vrot.slane %v12936_v59, 1 }
 0x608   :  { %v13116_v56 = vsel %vm1810_vm8, %v18452_v4, %v4077_v50  ;;  %v4092_v18 = vrot.slane %v12942_v42, 1  ;;  %v4097_v57 = vrot.slane %v12956_v30, 1  ;;  %v4099_v50 = vrot.slane %v12960_v9, 1 }
 0x609   :  { %v4100_v39 = vrot.slane %v12964_v7, 1  ;;  %v4102_v6 = vrot.slane %v12970_v46, 1  ;;  %v4105_v22 = vrot.slane %v12980_v14, 1  ;;  %v4107_v59 = vrot.slane %v12986_v60, 1 }
 0x60a   :  { %v4081_v42 = vsel %vm1810_vm8, %v4079_v62, %v4080_v11  ;;  %v4112_v30 = vrot.slane %v13000_v16, 1  ;;  %v4083_v9 = vsel %vm1810_vm8, %v4080_v11, %v4082_v32  ;;  %v4086_v7 = vsel %vm1810_vm8, %v4084_v8, %v4085_v0 }
 0x60b   :  { %v4088_v46 = vsel %vm1810_vm8, %v4085_v0, %v4087_v53  ;;  %v4091_v17 = vsel %vm1810_vm8, %v4089_v13, %v4090_v20  ;;  %v4093_v14 = vsel %vm1810_vm8, %v4090_v20, %v4092_v18  ;;  %v4096_v60 = vsel %vm1810_vm8, %v4094_v51, %v4095_v2 }
 0x60c   :  { %v4098_v62 = vsel %vm1810_vm8, %v4095_v2, %v4097_v57  ;;  %v4101_v61 = vsel %vm1810_vm8, %v4099_v50, %v4100_v39  ;;  %v4103_v41 = vsel %vm1810_vm8, %v4100_v39, %v4102_v6  ;;  %v4106_v16 = vsel %vm1810_vm8, %v4104_v52, %v4105_v22 }
 0x60d   :  { %v4108_v32 = vsel %vm1810_vm8, %v4105_v22, %v4107_v59  ;;  %v4114_v11 = vrot.slane %v13004_v43, 1  ;;  %v4111_v0 = vsel %vm1810_vm8, %v4109_v54, %v4110_v36  ;;  %v4113_v53 = vsel %vm1810_vm8, %v4110_v36, %v4112_v30 }
 0x60e   :  { %v4115_v20 = vrot.slane %v13008_v5, 1  ;;  %v4117_v13 = vrot.slane %v13014_v25, 1  ;;  %v4119_v57 = vrot.slane %v13018_v3, 1  ;;  %v4120_v4 = vrot.slane %v13022_v12, 1 }
 0x60f   :  { %v4122_v8 = vrot.slane %v13028_v24, 1  ;;  %v4124_v18 = vrot.slane %v13032_v38, 1  ;;  %v4125_v51 = vrot.slane %v13036_v10, 1  ;;  %v4127_v43 = vrot.slane %v13042_v33, 1 }
 0x610   :  { %v4129_v2 = vrot.slane %v13046_v26, 1  ;;  %v4130_v50 = vrot.slane %v13050_v28, 1  ;;  %v4132_v5 = vrot.slane %v13054_v23, 1  ;;  %v4134_v25 = vrot.slane %v13058_v40, 1 }
 0x611   :  { %v4135_v3 = vrot.slane %v13064_v37, 1  ;;  %v4137_v12 = vrot.slane %v13068_v45, 1  ;;  %v4139_v24 = vrot.slane %v13074_v58, 1  ;;  %v4140_v38 = vrot.slane %v13078_v27, 1 }
 0x612   :  { %v4142_v10 = vrot.slane %v13082_v35, 1  ;;  %v4144_v33 = vrot.slane %v13086_v48, 1  ;;  %v4145_v26 = vrot.slane %v13090_v44, 1  ;;  %v4147_v28 = vrot.slane %v13096_v1, 1 }
 0x613   :  { %v4149_v23 = vrot.slane %v13100_v63, 1  ;;  %v4150_v40 = vrot.slane %v13104_v34, 1  ;;  %v4116_v37 = vsel %vm1810_vm8, %v4114_v11, %v4115_v20  ;;  %v4118_v45 = vsel %vm1810_vm8, %v4115_v20, %v4117_v13 }
 0x614   :  { %v4121_v58 = vsel %vm1810_vm8, %v4119_v57, %v4120_v4  ;;  %v4152_v27 = vrot.slane %v13108_v55, 1  ;;  %v4123_v35 = vsel %vm1810_vm8, %v4120_v4, %v4122_v8  ;;  %v4126_v48 = vsel %vm1810_vm8, %v4124_v18, %v4125_v51 }
 0x615   :  { %v4128_v44 = vsel %vm1810_vm8, %v4125_v51, %v4127_v43  ;;  %v4131_v1 = vsel %vm1810_vm8, %v4129_v2, %v4130_v50  ;;  %v4133_v63 = vsel %vm1810_vm8, %v4130_v50, %v4132_v5  ;;  %v4136_v34 = vsel %vm1810_vm8, %v4134_v25, %v4135_v3 }
 0x616   :  { %v4138_v39 = vsel %vm1810_vm8, %v4135_v3, %v4137_v12  ;;  %v4141_v6 = vsel %vm1810_vm8, %v4139_v24, %v4140_v38  ;;  %v4143_v52 = vsel %vm1810_vm8, %v4140_v38, %v4142_v10  ;;  %v4146_v55 = vsel %vm1810_vm8, %v4144_v33, %v4145_v26  ;;  %v18490_v3 = vld [vmem:[#allocation176_spill] sm:$0xff]  ;;  %v18492_v24 = vld [vmem:[#allocation178_spill] sm:$0xff] }
 0x617   :  { %v4148_v22 = vsel %vm1810_vm8, %v4145_v26, %v4147_v28  ;;  %v4151_v59 = vsel %vm1810_vm8, %v4149_v23, %v4150_v40  ;;  %v4153_v54 = vsel %vm1810_vm8, %v4150_v40, %v4152_v27  ;;  %v13192_v36 = vadd.f32 %v13116_v56, %v12781_v31  ;;  %v18460_v31 = vld [vmem:[#allocation96_spill] sm:$0xff]  ;;  %v18496_v26 = vld [vmem:[#allocation182_spill] sm:$0xff] }
 0x618   :  { %v13195_v30 = vadd.f32 %v4081_v42, %v12785_v29  ;;  %v13198_v11 = vadd.f32 %v4083_v9, %v12789_v49  ;;  %v13201_v20 = vadd.f32 %v4086_v7, %v12793_v21  ;;  %v13204_v13 = vadd.f32 %v4088_v46, %v12797_v15  ;;  %v18462_v29 = vld [vmem:[#allocation43_spill] sm:$0xff]  ;;  %v18466_v21 = vld [vmem:[#allocation38_spill] sm:$0xff]  ;;  %v18468_v15 = vld [vmem:[#allocation41_spill] sm:$0xff] }
 0x619   :  { %18453 = vst [vmem:[#allocation72_spill] sm:$0xff] %v13192_v36  ;;  %v13207_v57 = vadd.f32 %v4091_v17, %v12801_v47  ;;  %v13210_v4 = vadd.f32 %v4093_v14, %v12805_v19  ;;  %v13213_v56 = vadd.f32 %v4096_v60, %v18460_v31  ;;  %v13216_v42 = vadd.f32 %v4098_v62, %v18462_v29  ;;  %v18464_v49 = vld [vmem:[#allocation147_spill] sm:$0xff]  ;;  %v18472_v19 = vld [vmem:[#allocation161_spill] sm:$0xff]  ;;  %v18476_v62 = vld [vmem:[#allocation112_spill] sm:$0xff] }
 0x61a   :  { %18454 = vst [vmem:[#allocation78_spill] sm:$0xff] %v13195_v30  ;;  %v13219_v9 = vadd.f32 %v4101_v61, %v18464_v49  ;;  %v13222_v7 = vadd.f32 %v4103_v41, %v18466_v21  ;;  %v13225_v46 = vadd.f32 %v4106_v16, %v18468_v15  ;;  %v18470_v47 = vld [vmem:[#allocation111_spill] sm:$0xff]  ;;  %v13231_v14 = vadd.f32 %v4111_v0, %v18472_v19  ;;  %v18474_v60 = vld [vmem:[#allocation121_spill] sm:$0xff]  ;;  %v18478_v61 = vld [vmem:[#allocation24_spill] sm:$0xff] }
 0x61b   :  { %18455 = vst [vmem:[#allocation84_spill] sm:$0xff] %v13198_v11  ;;  %v13228_v17 = vadd.f32 %v4108_v32, %v18470_v47  ;;  %v13234_v8 = vadd.f32 %v4113_v53, %v18474_v60  ;;  %v13237_v18 = vadd.f32 %v4116_v37, %v18476_v62  ;;  %v13240_v51 = vadd.f32 %v4118_v45, %v18478_v61  ;;  %v18480_v41 = vld [vmem:[#allocation12_spill] sm:$0xff]  ;;  %v18484_v32 = vld [vmem:[#allocation170_spill] sm:$0xff]  ;;  %v18500_v37 = vld [vmem:[#allocation83_spill] sm:$0xff] }
 0x61c   :  { %18456 = vst [vmem:[#allocation89_spill] sm:$0xff] %v13201_v20  ;;  %v13243_v43 = vadd.f32 %v4121_v58, %v18480_v41  ;;  %v18482_v16 = vld [vmem:[#allocation164_spill] sm:$0xff]  ;;  %v13249_v50 = vadd.f32 %v4126_v48, %v18484_v32  ;;  %v18488_v53 = vld [vmem:[#allocation174_spill] sm:$0xff]  ;;  %v13258_v12 = vadd.f32 %v4133_v63, %v18490_v3  ;;  %v13261_v38 = vadd.f32 %v4136_v34, %v18492_v24  ;;  %v18502_v58 = vld [vmem:[#allocation79_spill] sm:$0xff] }
 0x61d   :  { %18457 = vst [vmem:[#allocation21_spill] sm:$0xff] %v13204_v13  ;;  %v13246_v2 = vadd.f32 %v4123_v35, %v18482_v16  ;;  %v18486_v0 = vld [vmem:[#allocation172_spill] sm:$0xff]  ;;  %v13255_v25 = vadd.f32 %v4131_v1, %v18488_v53  ;;  %v13267_v28 = vadd.f32 %v4141_v6, %v18496_v26  ;;  %v13273_v45 = vadd.f32 %v4146_v55, %v18500_v37  ;;  %v18504_v35 = vld [vmem:[#allocation186_spill] sm:$0xff]  ;;  %v18508_v63 = vld [vmem:[#allocation135_spill] sm:$0xff] }
 0x61e   :  { %18458 = vst [vmem:[#allocation33_spill] sm:$0xff] %v13207_v57  ;;  %v13252_v5 = vadd.f32 %v4128_v44, %v18486_v0  ;;  %v18494_v10 = vld [vmem:[#allocation180_spill] sm:$0xff]  ;;  %v13276_v27 = vadd.f32 %v4148_v22, %v18502_v58  ;;  %v13279_v48 = vadd.f32 %v4151_v59, %v18504_v35  ;;  %v18506_v44 = vld [vmem:[#allocation63_spill] sm:$0xff]  ;;  %v18511_v6 = vld [vmem:[#allocation190_spill] sm:$0xff] }
 0x61f   :  { %18459 = vst [vmem:[#allocation35_spill] sm:$0xff] %v13210_v4  ;;  %v13264_v33 = vadd.f32 %v4138_v39, %v18494_v10  ;;  %v18498_v23 = vld [vmem:[#allocation184_spill] sm:$0xff]  ;;  %v13282_v1 = vadd.f32 %v4153_v54, %v18506_v44  ;;  %v18509_v34 = vld [vmem:[#allocation7_spill] sm:$0xff]  ;;  %v18514_v29 = vld [vmem:[#allocation138_spill] sm:$0xff] }
 0x620   :  { %18461 = vst [vmem:[#allocation23_spill] sm:$0xff] %v13213_v56  ;;  %v13270_v40 = vadd.f32 %v4143_v52, %v18498_v23  ;;  %v13286_v39 = vadd.f32 %v18509_v34, %v18508_v63  ;;  %v18512_v31 = vld [vmem:[#allocation8_spill] sm:$0xff]  ;;  %v18517_v22 = vld [vmem:[#allocation139_spill] sm:$0xff]  ;;  %v18518_v21 = vld [vmem:[#allocation37_spill] sm:$0xff] }
 0x621   :  { %18463 = vst [vmem:[#allocation123_spill] sm:$0xff] %v13216_v42  ;;  %v13290_v52 = vadd.f32 %v18512_v31, %v18511_v6  ;;  %v18515_v55 = vld [vmem:[#allocation36_spill] sm:$0xff]  ;;  %v13298_v15 = vadd.f32 %v18518_v21, %v18517_v22  ;;  %v18520_v59 = vld [vmem:[#allocation9_spill] sm:$0xff]  ;;  %v18521_v47 = vld [vmem:[#allocation39_spill] sm:$0xff] }
 0x622   :  { %18465 = vst [vmem:[#allocation188_spill] sm:$0xff] %v13219_v9  ;;  %v13294_v49 = vadd.f32 %v18515_v55, %v18514_v29  ;;  %v13302_v54 = vadd.f32 %v18521_v47, %v18520_v59  ;;  %v18523_v19 = vld [vmem:[#allocation140_spill] sm:$0xff]  ;;  %v13308_v61 = vld [vmem:[#allocation2 + $0x30] sm:$0xff]  ;;  %v13326_v24 = vld [vmem:[#allocation2 + $0x48] sm:$0xff] }
 0x623   :  { %18467 = vst [vmem:[#allocation124_spill] sm:$0xff] %v13222_v7  ;;  %v18524_v60 = vld [vmem:[#allocation40_spill] sm:$0xff]  ;;  %v13332_v26 = vld [vmem:[#allocation2 + $0x50] sm:$0xff]  ;;  %v13350_v63 = vld [vmem:[#allocation2 + $0x68] sm:$0xff] }
 0x624   :  { %18469 = vst [vmem:[#allocation61_spill] sm:$0xff] %v13225_v46  ;;  %v13306_v62 = vadd.f32 %v18524_v60, %v18523_v19  ;;  %v18526_v41 = vld [vmem:[#allocation168_spill] sm:$0xff]  ;;  %v13356_v6 = vld [vmem:[#allocation2 + $0x70] sm:$0x3]  ;;  %v13374_v59 = vld [vmem:[#allocation2 + $0x88] sm:$0x3] }
 0x625   :  { %18471 = vst [vmem:[#allocation10_spill] sm:$0xff] %v13228_v17  ;;  %v13312_v16 = vmul.f32 %v13308_v61, %v18526_v41  ;;  %v13314_v32 = vld [vmem:[#allocation2 + $0x38] sm:$0xff]  ;;  %v13320_v53 = vld [vmem:[#allocation2 + $0x40] sm:$0x3]  ;;  %v13330_v10 = vmul.f32 %v13326_v24, %v18526_v41  ;;  %v13336_v23 = vmul.f32 %v13332_v26, %v18526_v41  ;;  %v13354_v34 = vmul.f32 %v13350_v63, %v18526_v41  ;;  %v13380_v19 = vld [vmem:[#allocation2 + $0x90] sm:$0xff] }
 0x626   :  { %18473 = vst [vmem:[#allocation51_spill] sm:$0xff] %v13231_v14  ;;  %v13318_v0 = vmul.f32 %v13314_v32, %v18526_v41  ;;  %v13324_v3 = vmul.f32 %v13320_v53, %v18526_v41  ;;  %v13338_v37 = vld [vmem:[#allocation2 + $0x58] sm:$0x3]  ;;  %v13344_v35 = vld [vmem:[#allocation2 + $0x60] sm:$0xff]  ;;  %v13360_v31 = vmul.f32 %v13356_v6, %v18526_v41  ;;  %v13378_v47 = vmul.f32 %v13374_v59, %v18526_v41  ;;  %v13510_v57 = vld [vmem:[#allocation2 + $0x1a8] sm:$0x3] }
 0x627   :  { %18475 = vst [vmem:[#allocation145_spill] sm:$0xff] %v13234_v8  ;;  %v13342_v58 = vmul.f32 %v13338_v37, %v18526_v41  ;;  %v13348_v44 = vmul.f32 %v13344_v35, %v18526_v41  ;;  %v13362_v29 = vld [vmem:[#allocation2 + $0x78] sm:$0xff]  ;;  %v13368_v22 = vld [vmem:[#allocation2 + $0x80] sm:$0xff]  ;;  %v13384_v60 = vmul.f32 %v13380_v19, %v18526_v41  ;;  %v3999_v36 = vrot.slane %v13330_v10, 1 }
 0x628   :  { %18477 = vst [vmem:[#allocation73_spill] sm:$0xff] %v13237_v18  ;;  %v13366_v55 = vmul.f32 %v13362_v29, %v18526_v41  ;;  %v13372_v21 = vmul.f32 %v13368_v22, %v18526_v41  ;;  %v18551_v8 = vld [vmem:[#allocation175_spill] sm:$0xff]  ;;  %v3995_v11 = vrot.slane %v13318_v0, 1  ;;  %v18567_v10 = vld [vmem:[#allocation125_spill] sm:$0xff] }
 0x629   :  { %18479 = vst [vmem:[#allocation82_spill] sm:$0xff] %v13240_v51  ;;  %v13478_v14 = vmul.f32 %v18551_v8, %v18526_v41  ;;  %v18554_v46 = vld [vmem:[#allocation179_spill] sm:$0xff] }
 0x62a   :  { %18481 = vst [vmem:[#allocation86_spill] sm:$0xff] %v13243_v43  ;;  %v18548_v43 = vld [vmem:[#allocation171_spill] sm:$0xff]  ;;  %v13492_v7 = vmul.f32 %v18554_v46, %v18526_v41  ;;  %v18560_v46 = vld [vmem:[#allocation189_spill] sm:$0xff] }
 0x62b   :  { %18483 = vst [vmem:[#allocation62_spill] sm:$0xff] %v13246_v2  ;;  %v13464_v51 = vmul.f32 %v18548_v43, %v18526_v41  ;;  %v13484_v43 = vld [vmem:[#allocation2 + $0x130] sm:$0x3]  ;;  %v13514_v13 = vmul.f32 %v18560_v46, %v18526_v41 }
 0x62c   :  { %18485 = vst [vmem:[#allocation13_spill] sm:$0xff] %v13249_v50  ;;  %v18556_v8 = vld [vmem:[#allocation183_spill] sm:$0xff] }
 0x62d   :  { %18487 = vst [vmem:[#allocation65_spill] sm:$0xff] %v13252_v5  ;;  %v18545_v5 = vld [vmem:[#allocation167_spill] sm:$0xff]  ;;  %v13500_v42 = vmul.f32 %v18556_v8, %v18526_v41  ;;  %v3994_v8 = vrot.slane %v13312_v16, 1  ;;  %v18565_v16 = vld [vmem:[#allocation16_spill] sm:$0xff] }
 0x62e   :  { %18489 = vst [vmem:[#allocation91_spill] sm:$0xff] %v13255_v25  ;;  %v13442_v25 = vld [vmem:[#allocation2 + $0xe8] sm:$0x3]  ;;  %v13450_v50 = vmul.f32 %v18545_v5, %v18526_v41  ;;  %v13470_v5 = vld [vmem:[#allocation2 + $0x118] sm:$0x3]  ;;  %v13539_v0 = vmul.f32 %v18565_v16, %v18526_v41  ;;  %v13559_v16 = vld [vmem:[#allocation2 + $0x1e0] sm:$0xff] }
 0x62f   :  { %18491 = vst [vmem:[#allocation88_spill] sm:$0xff] %v13258_v12  ;;  %v18543_v12 = vld [vmem:[#allocation120_spill] sm:$0xff]  ;;  %v18558_v4 = vld [vmem:[#allocation187_spill] sm:$0xff] }
 0x630   :  { %18493 = vst [vmem:[#allocation151_spill] sm:$0xff] %v13261_v38  ;;  %v18563_v46 = vld [vmem:[#allocation191_spill] sm:$0xff] }
 0x631   :  { %18495 = vst [vmem:[#allocation75_spill] sm:$0xff] %v13264_v33 }
 0x632   :  { %18497 = vst [vmem:[#allocation94_spill] sm:$0xff] %v13267_v28 }
 0x633   :  { %18499 = vst [vmem:[#allocation74_spill] sm:$0xff] %v13270_v40 }
 0x634   :  { %18501 = vst [vmem:[#allocation105_spill] sm:$0xff] %v13273_v45 }
 0x635   :  { %18503 = vst [vmem:[#allocation81_spill] sm:$0xff] %v13276_v27  ;;  %v13410_v27 = vld [vmem:[#allocation2 + $0xb8] sm:$0x3] }
 0x636   :  { %18505 = vst [vmem:[#allocation20_spill] sm:$0xff] %v13279_v48  ;;  %v13414_v45 = vmul.f32 %v13410_v27, %v18526_v41 }
 0x637   :  { %18507 = vst [vmem:[#allocation87_spill] sm:$0xff] %v13282_v1  ;;  %v13404_v1 = vld [vmem:[#allocation2 + $0xb0] sm:$0xff] }
 0x638   :  { %18510 = vst [vmem:[#allocation156_spill] sm:$0xff] %v13286_v39  ;;  %v13408_v48 = vmul.f32 %v13404_v1, %v18526_v41 }
 0x639   :  { %18513 = vst [vmem:[#allocation92_spill] sm:$0xff] %v13290_v52  ;;  %v13398_v52 = vld [vmem:[#allocation2 + $0xa8] sm:$0xff] }
 0x63a   :  { %18516 = vst [vmem:[#allocation99_spill] sm:$0xff] %v13294_v49  ;;  %v13402_v39 = vmul.f32 %v13398_v52, %v18526_v41 }
 0x63b   :  { %18519 = vst [vmem:[#allocation97_spill] sm:$0xff] %v13298_v15  ;;  %v13392_v15 = vld [vmem:[#allocation2 + $0xa0] sm:$0x3] }
 0x63c   :  { %18522 = vst [vmem:[#allocation102_spill] sm:$0xff] %v13302_v54  ;;  %v13396_v49 = vmul.f32 %v13392_v15, %v18526_v41 }
 0x63d   :  { %18525 = vst [vmem:[#allocation129_spill] sm:$0xff] %v13306_v62  ;;  %v13386_v62 = vld [vmem:[#allocation2 + $0x98] sm:$0xff] }
 0x63e   :  { %18527 = vst [vmem:[#allocation95_spill] sm:$0xff] %v13344_v35  ;;  %v13390_v54 = vmul.f32 %v13386_v62, %v18526_v41  ;;  %v4007_v35 = vrot.slane %v13360_v31, 1 }
 0x63f   :  { %18528 = vst [vmem:[#allocation130_spill] sm:$0xff] %v13350_v63 }
 0x640   :  { %18529 = vst [vmem:[#allocation131_spill] sm:$0xff] %v13356_v6  ;;  %v4004_v6 = vrot.slane %v13348_v44, 1  ;;  %v4015_v44 = vrot.slane %v13390_v54, 1 }
 0x641   :  { %18530 = vst [vmem:[#allocation50_spill] sm:$0xff] %v13362_v29  ;;  %v13563_v29 = vmul.f32 %v13559_v16, %v18526_v41 }
 0x642   :  { %18531 = vst [vmem:[#allocation132_spill] sm:$0xff] %v13368_v22 }
 0x643   :  { %18532 = vst [vmem:[#allocation52_spill] sm:$0xff] %v13374_v59 }
 0x644   :  { %18533 = vst [vmem:[#allocation133_spill] sm:$0xff] %v13380_v19  ;;  %v13531_v19 = vmul.f32 %v18563_v46, %v18526_v41  ;;  %v18568_v46 = vld [vmem:[#allocation122_spill] sm:$0xff] }
 0x645   :  { %18534 = vst [vmem:[#allocation141_spill] sm:$0xff] %v13386_v62  ;;  %v4000_v62 = vrot.slane %v13336_v23, 1  ;;  %v13549_v23 = vmul.f32 %v18526_v41, %v18567_v10  ;;  %v13553_v22 = vmul.f32 %v18526_v41, %v18568_v46  ;;  %v4002_v10 = vrot.slane %v13342_v58, 1 }
 0x646   :  { %18535 = vst [vmem:[#allocation142_spill] sm:$0xff] %v13392_v15  ;;  %v13416_v15 = vld [vmem:[#allocation2 + $0xc0] sm:$0xff]  ;;  %v4005_v46 = vrot.slane %v13354_v34, 1  ;;  %v4014_v58 = vrot.slane %v13384_v60, 1  ;;  %v4017_v34 = vrot.slane %v13396_v49, 1  ;;  %v4034_v49 = vrot.slane %v13450_v50, 1 }
 0x647   :  { %18536 = vst [vmem:[#allocation70_spill] sm:$0xff] %v13398_v52  ;;  %v13420_v40 = vmul.f32 %v13416_v15, %v18526_v41  ;;  %v13422_v52 = vld [vmem:[#allocation2 + $0xc8] sm:$0xff] }
 0x648   :  { %18537 = vst [vmem:[#allocation66_spill] sm:$0xff] %v13404_v1  ;;  %v13426_v28 = vmul.f32 %v13422_v52, %v18526_v41  ;;  %v13428_v1 = vld [vmem:[#allocation2 + $0xd0] sm:$0x3]  ;;  %v13609_v50 = vsel %vm1810_vm8, %v4015_v44, %v4017_v34 }
 0x649   :  { %18538 = vst [vmem:[#allocation146_spill] sm:$0xff] %v13410_v27  ;;  %v13432_v33 = vmul.f32 %v13428_v1, %v18526_v41  ;;  %v18542_v27 = vld [vmem:[#allocation163_spill] sm:$0xff]  ;;  %v4024_v31 = vrot.slane %v13420_v40, 1  ;;  %v4008_v40 = vsel %vm1810_vm8, %v4005_v46, %v4007_v35 }
 0x64a   :  { %18539 = vst [vmem:[#allocation18_spill] sm:$0xff] %v13416_v15  ;;  %v13436_v38 = vmul.f32 %v18542_v27, %v18526_v41  ;;  %v13440_v15 = vmul.f32 %v18543_v12, %v18526_v41  ;;  %v13456_v27 = vld [vmem:[#allocation2 + $0x100] sm:$0x3] }
 0x64b   :  { %18540 = vst [vmem:[#allocation49_spill] sm:$0xff] %v13422_v52  ;;  %v13446_v52 = vmul.f32 %v13442_v25, %v18526_v41  ;;  %v13460_v12 = vmul.f32 %v13456_v27, %v18526_v41 }
 0x64c   :  { %18541 = vst [vmem:[#allocation148_spill] sm:$0xff] %v13428_v1  ;;  %v18546_v1 = vld [vmem:[#allocation169_spill] sm:$0xff]  ;;  %v4030_v60 = vrot.slane %v13440_v15, 1 }
 0x64d   :  { %18544 = vst [vmem:[#allocation29_spill] sm:$0xff] %v13442_v25  ;;  %v13454_v2 = vmul.f32 %v18546_v1, %v18526_v41  ;;  %v18549_v25 = vld [vmem:[#allocation173_spill] sm:$0xff]  ;;  %v13474_v1 = vmul.f32 %v13470_v5, %v18526_v41  ;;  %v4032_v54 = vrot.slane %v13446_v52, 1  ;;  %v13606_v52 = vsel %vm1810_vm8, %v4014_v58, %v4015_v44 }
 0x64e   :  { %18547 = vst [vmem:[#allocation54_spill] sm:$0xff] %v13456_v27  ;;  %v13468_v18 = vmul.f32 %v18549_v25, %v18526_v41  ;;  %v18552_v27 = vld [vmem:[#allocation177_spill] sm:$0xff]  ;;  %v13488_v25 = vmul.f32 %v13484_v43, %v18526_v41  ;;  %v4044_v58 = vrot.slane %v13478_v14, 1 }
 0x64f   :  { %18550 = vst [vmem:[#allocation15_spill] sm:$0xff] %v13470_v5  ;;  %v13482_v17 = vmul.f32 %v18552_v27, %v18526_v41  ;;  %v18555_v5 = vld [vmem:[#allocation181_spill] sm:$0xff] }
 0x650   :  { %18553 = vst [vmem:[#allocation59_spill] sm:$0xff] %v13484_v43  ;;  %v13496_v9 = vmul.f32 %v18555_v5, %v18526_v41  ;;  %v18557_v27 = vld [vmem:[#allocation185_spill] sm:$0xff]  ;;  %v13508_v43 = vmul.f32 %v18558_v4, %v18526_v41  ;;  %v18561_v5 = vld [vmem:[#allocation55_spill] sm:$0xff]  ;;  %v3997_v4 = vrot.slane %v13324_v3, 1  ;;  %v4047_v34 = vrot.slane %v13488_v25, 1 }
 0x651   :  { %v13504_v56 = vmul.f32 %v18557_v27, %v18526_v41  ;;  %18559 = vst [vmem:[#allocation44_spill] sm:$0xff] %v13510_v57  ;;  %v13518_v20 = vmul.f32 %v18561_v5, %v18526_v41  ;;  %v18562_v27 = vld [vmem:[#allocation67_spill] sm:$0xff]  ;;  %v18564_v5 = vld [vmem:[#allocation60_spill] sm:$0xff]  ;;  %v4045_v44 = vrot.slane %v13482_v17, 1  ;;  %v4062_v17 = vrot.slane %v13531_v19, 1 }
 0x652   :  { %v13524_v30 = vmul.f32 %v18562_v27, %v18526_v41  ;;  %v13535_v59 = vmul.f32 %v18564_v5, %v18526_v41  ;;  %v13541_v27 = vld [vmem:[#allocation2 + $0x190] sm:$0x3]  ;;  %18569 = vst [vmem:[#allocation68_spill] sm:$0xff] %v13553_v22  ;;  %v13557_v5 = vmul.f32 %v18526_v41, %v13510_v57  ;;  %v13572_v63 = vsel %vm1810_vm8, %v3995_v11, %v3997_v4 }
 0x653   :  { %18566 = vst [vmem:[#allocation45_spill] sm:$0xff] %v13541_v27  ;;  %v13545_v3 = vmul.f32 %v13541_v27, %v18526_v41  ;;  %v13566_v27 = vsel %vm1810_vm8, %v3994_v8, %v3995_v11  ;;  %v13575_v57 = vsel %vm1810_vm8, %v3999_v36, %v4000_v62  ;;  %v4009_v41 = vrot.slane %v13366_v55, 1 }
 0x654   :  { %18570 = vst [vmem:[#allocation47_spill] sm:$0xff] %v13557_v5  ;;  %v4012_v8 = vrot.slane %v13378_v47, 1  ;;  %v4019_v11 = vrot.slane %v13402_v39, 1  ;;  %v4020_v4 = vrot.slane %v13408_v48, 1  ;;  %v4022_v36 = vrot.slane %v13414_v45, 1  ;;  %v18637_v5 = vld [vmem:[#allocation19_spill] sm:$0xff] }
 0x655   :  { %18571 = vst [vmem:[#allocation64_spill] sm:$0xff] %v13559_v16  ;;  %v4010_v16 = vrot.slane %v13372_v21, 1  ;;  %v4025_v55 = vrot.slane %v13426_v28, 1  ;;  %v4027_v21 = vrot.slane %v13432_v33, 1  ;;  %v4029_v47 = vrot.slane %v13436_v38, 1 }
 0x656   :  { %18572 = vst [vmem:[#allocation77_spill] sm:$0xff] %v13563_v29  ;;  %v4035_v39 = vrot.slane %v13454_v2, 1  ;;  %v4003_v48 = vsel %vm1810_vm8, %v4000_v62, %v4002_v10  ;;  %v4006_v45 = vsel %vm1810_vm8, %v4004_v6, %v4005_v46  ;;  %v4037_v28 = vrot.slane %v13460_v12, 1  ;;  %v18633_v29 = vld [vmem:[#allocation56_spill] sm:$0xff] }
 0x657   :  { %v13600_v33 = vsel %vm1810_vm8, %v4009_v41, %v4010_v16  ;;  %v13603_v38 = vsel %vm1810_vm8, %v4010_v16, %v4012_v8  ;;  %18575 = vst [vmem:[#allocation108_spill] sm:$0xff] %v13606_v52  ;;  %v13612_v2 = vsel %vm1810_vm8, %v4019_v11, %v4020_v4  ;;  %v13615_v15 = vsel %vm1810_vm8, %v4020_v4, %v4022_v36  ;;  %v6466_v52 = vld [vmem:[#allocation2 + $0x328] sm:$0x3] }
 0x658   :  { %18573 = vst [vmem:[#allocation107_spill] sm:$0xff] %v13600_v33  ;;  %v13618_v62 = vsel %vm1810_vm8, %v4024_v31, %v4025_v55  ;;  %v13621_v35 = vsel %vm1810_vm8, %v4025_v55, %v4027_v21  ;;  %v13624_v6 = vsel %vm1810_vm8, %v4029_v47, %v4030_v60  ;;  %v13627_v12 = vsel %vm1810_vm8, %v4030_v60, %v4032_v54  ;;  %v18632_v60 = vld [vmem:[#allocation90_spill] sm:$0xff] }
 0x659   :  { %18574 = vst [vmem:[#allocation103_spill] sm:$0xff] %v13603_v38  ;;  %v13630_v16 = vsel %vm1810_vm8, %v4034_v49, %v4035_v39  ;;  %v4039_v10 = vrot.slane %v13464_v51, 1  ;;  %v13634_v46 = vsel %vm1810_vm8, %v4035_v39, %v4037_v28  ;;  %v4040_v41 = vrot.slane %v13468_v18, 1  ;;  %v18630_v28 = vld [vmem:[#allocation48_spill] sm:$0xff] }
 0x65a   :  { %18576 = vst [vmem:[#allocation113_spill] sm:$0xff] %v13609_v50  ;;  %v4042_v8 = vrot.slane %v13474_v1, 1  ;;  %v4049_v11 = vrot.slane %v13492_v7, 1  ;;  %v4050_v4 = vrot.slane %v13496_v9, 1  ;;  %v4052_v36 = vrot.slane %v13500_v42, 1 }
 0x65b   :  { %18577 = vst [vmem:[#allocation109_spill] sm:$0xff] %v13612_v2  ;;  %v4054_v51 = vrot.slane %v13504_v56, 1  ;;  %v4055_v31 = vrot.slane %v13508_v43, 1  ;;  %v4057_v18 = vrot.slane %v13514_v13, 1  ;;  %v4059_v1 = vrot.slane %v13518_v20, 1  ;;  %v6459_v2 = vld [vmem:[#allocation2 + $0x2f0] sm:$0xff] }
 0x65c   :  { %18578 = vst [vmem:[#allocation46_spill] sm:$0xff] %v13615_v15  ;;  %v4060_v14 = vrot.slane %v13524_v30, 1  ;;  %v4064_v25 = vrot.slane %v13535_v59, 1  ;;  %v4065_v7 = vrot.slane %v13539_v0, 1  ;;  %v4067_v9 = vrot.slane %v13545_v3, 1  ;;  %v18592_v3 = vld [vmem:[#allocation166_spill] sm:$0xff] }
 0x65d   :  { %18579 = vst [vmem:[#allocation69_spill] sm:$0xff] %v13618_v62  ;;  %v4069_v42 = vrot.slane %v13549_v23, 1  ;;  %v16739_v56 = vrot.slane %v13553_v22, 1  ;;  %v13656_v43 = vsel %vm1810_vm8, %v4039_v10, %v4040_v41  ;;  %v13659_v13 = vsel %vm1810_vm8, %v4040_v41, %v4042_v8  ;;  %v18600_v10 = vld [vmem:[#allocation71_spill] sm:$0xff]  ;;  %v18602_v8 = vld [vmem:[#allocation85_spill] sm:$0xff]  ;;  %v18636_v22 = vld [vmem:[#allocation134_spill] sm:$0xff] }
 0x65e   :  { %18580 = vst [vmem:[#allocation127_spill] sm:$0xff] %v13621_v35  ;;  %v13662_v30 = vsel %vm1810_vm8, %v4044_v58, %v4045_v44  ;;  %v13665_v20 = vsel %vm1810_vm8, %v4045_v44, %v4047_v34  ;;  %v13668_v59 = vsel %vm1810_vm8, %v4049_v11, %v4050_v4  ;;  %v13671_v19 = vsel %vm1810_vm8, %v4050_v4, %v4052_v36  ;;  %v18604_v44 = vld [vmem:[#allocation106_spill] sm:$0xff]  ;;  %v18606_v11 = vld [vmem:[#allocation116_spill] sm:$0xff]  ;;  %v18608_v36 = vld [vmem:[#allocation115_spill] sm:$0xff] }
 0x65f   :  { %18581 = vst [vmem:[#allocation126_spill] sm:$0xff] %v13624_v6  ;;  %v13674_v0 = vsel %vm1810_vm8, %v4054_v51, %v4055_v31  ;;  %v13677_v23 = vperm.slane %v18592_v3, 2  ;;  %v13680_v55 = vsel %vm1810_vm8, %v4055_v31, %v4057_v18  ;;  %v13683_v21 = vsel %vm1810_vm8, %v4059_v1, %v4060_v14  ;;  %v18610_v31 = vld [vmem:[#allocation118_spill] sm:$0xff]  ;;  %v6457_v35 = vld [vmem:[#allocation2 + $0x2d8] sm:$0xff] }
 0x660   :  { %18582 = vst [vmem:[#allocation128_spill] sm:$0xff] %v13627_v12  ;;  %v13686_v47 = vsel %vm1810_vm8, %v4060_v14, %v4062_v17  ;;  %v13690_v54 = vsel %vm1810_vm8, %v4064_v25, %v4065_v7  ;;  %v13693_v49 = vsel %vm1810_vm8, %v4065_v7, %v4067_v9  ;;  %v13698_v39 = vsel %vm1810_vm8, %v4069_v42, %v16739_v56  ;;  %v18613_v1 = vld [vmem:[#allocation130_spill] sm:$0xff]  ;;  %v18614_v14 = vld [vmem:[#allocation131_spill] sm:$0xff]  ;;  %v18617_v25 = vld [vmem:[#allocation132_spill] sm:$0xff] }
 0x661   :  { %18583 = vst [vmem:[#allocation53_spill] sm:$0xff] %v13630_v16  ;;  %v13703_v41 = vadd.f32 %v13566_v27, %v18600_v10  ;;  %v13707_v58 = vadd.f32 %v13572_v63, %v18602_v8  ;;  %v13711_v34 = vadd.f32 %v13575_v57, %v18604_v44  ;;  %v13714_v4 = vadd.f32 %v4003_v48, %v18606_v11  ;;  %v18615_v17 = vld [vmem:[#allocation50_spill] sm:$0xff]  ;;  %v18619_v7 = vld [vmem:[#allocation52_spill] sm:$0xff]  ;;  %v18621_v42 = vld [vmem:[#allocation133_spill] sm:$0xff] }
 0x662   :  { %18584 = vst [vmem:[#allocation96_spill] sm:$0xff] %v13634_v46  ;;  %v13717_v51 = vadd.f32 %v4006_v45, %v18608_v36  ;;  %v13720_v18 = vadd.f32 %v4008_v40, %v18610_v31  ;;  %v13724_v27 = vmul.f32 %v13308_v61, %v13677_v23  ;;  %v13728_v63 = vmul.f32 %v13314_v32, %v13677_v23  ;;  %v18612_v40 = vld [vmem:[#allocation95_spill] sm:$0xff]  ;;  %v18623_v10 = vld [vmem:[#allocation141_spill] sm:$0xff]  ;;  %v18631_v56 = vld [vmem:[#allocation194_spill] sm:$0xff] }
 0x663   :  { %18585 = vst [vmem:[#allocation43_spill] sm:$0xff] %v13656_v43  ;;  %v13732_v57 = vmul.f32 %v13320_v53, %v13677_v23  ;;  %v13736_v48 = vmul.f32 %v13326_v24, %v13677_v23  ;;  %v13740_v45 = vmul.f32 %v13332_v26, %v13677_v23  ;;  %v13744_v61 = vmul.f32 %v13338_v37, %v13677_v23  ;;  %v6450_v44 = vld [vmem:[#allocation2 + $0x1e8] sm:$0xff]  ;;  %v6454_v46 = vld [vmem:[#allocation2 + $0x2b8] sm:$0xff]  ;;  %v6455_v16 = vld [vmem:[#allocation2 + $0x2c0] sm:$0xff] }
 0x664   :  { %18586 = vst [vmem:[#allocation147_spill] sm:$0xff] %v13659_v13  ;;  %v13748_v32 = vmul.f32 %v18612_v40, %v13677_v23  ;;  %v13752_v53 = vmul.f32 %v18613_v1, %v13677_v23  ;;  %v13756_v24 = vmul.f32 %v18614_v14, %v13677_v23  ;;  %v13760_v26 = vmul.f32 %v18615_v17, %v13677_v23  ;;  %v18625_v36 = vld [vmem:[#allocation57_spill] sm:$0xff]  ;;  %v6451_v40 = vld [vmem:[#allocation2 + $0x1f8] sm:$0xff]  ;;  %v18646_v43 = vld [vmem:[#allocation26_spill] sm:$0xff] }
 0x665   :  { %18587 = vst [vmem:[#allocation38_spill] sm:$0xff] %v13662_v30  ;;  %v13764_v37 = vmul.f32 %v18617_v25, %v13677_v23  ;;  %v13768_v9 = vmul.f32 %v18619_v7, %v13677_v23  ;;  %v13772_v3 = vmul.f32 %v18621_v42, %v13677_v23  ;;  %v13776_v8 = vmul.f32 %v18623_v10, %v13677_v23  ;;  %v18626_v14 = vld [vmem:[#allocation80_spill] sm:$0xff]  ;;  %v18627_v25 = vld [vmem:[#allocation58_spill] sm:$0xff]  ;;  %v18647_v12 = vld [vmem:[#allocation17_spill] sm:$0xff] }
 0x666   :  { %18588 = vst [vmem:[#allocation41_spill] sm:$0xff] %v13665_v20  ;;  %v13779_v11 = vmul.f32 %v6450_v44, %v13677_v23  ;;  %v13783_v31 = vmul.f32 %v18625_v36, %v13677_v23  ;;  %v13786_v1 = vmul.f32 %v6451_v40, %v13677_v23  ;;  %v13790_v17 = vmul.f32 %v18626_v14, %v13677_v23  ;;  %v18628_v42 = vld [vmem:[#allocation192_spill] sm:$0xff]  ;;  %v18629_v44 = vld [vmem:[#allocation193_spill] sm:$0xff]  ;;  %v18645_v20 = vld [vmem:[#allocation22_spill] sm:$0xff] }
 0x667   :  { %18589 = vst [vmem:[#allocation111_spill] sm:$0xff] %v13668_v59  ;;  %v13794_v7 = vmul.f32 %v18627_v25, %v13677_v23  ;;  %v13798_v10 = vmul.f32 %v18628_v42, %v13677_v23  ;;  %v13802_v36 = vmul.f32 %v18629_v44, %v13677_v23  ;;  %v13806_v40 = vmul.f32 %v18630_v28, %v13677_v23  ;;  %v18644_v59 = vld [vmem:[#allocation197_spill] sm:$0xff]  ;;  %v6456_v6 = vld [vmem:[#allocation2 + $0x2d0] sm:$0xff]  ;;  %v6460_v50 = vld [vmem:[#allocation2 + $0x2f8] sm:$0x3] }
 0x668   :  { %18590 = vst [vmem:[#allocation161_spill] sm:$0xff] %v13671_v19  ;;  %v13810_v14 = vmul.f32 %v18631_v56, %v13677_v23  ;;  %v13814_v25 = vmul.f32 %v18632_v60, %v13677_v23  ;;  %v13818_v42 = vmul.f32 %v18633_v29, %v13677_v23  ;;  %v13830_v56 = vmul.f32 %v18636_v22, %v13677_v23  ;;  %v18643_v19 = vld [vmem:[#allocation93_spill] sm:$0xff]  ;;  %v18648_v62 = vld [vmem:[#allocation14_spill] sm:$0xff] }
 0x669   :  { %18591 = vst [vmem:[#allocation121_spill] sm:$0xff] %v13674_v0  ;;  %v13834_v60 = vmul.f32 %v18637_v5, %v13677_v23  ;;  %v18642_v0 = vld [vmem:[#allocation42_spill] sm:$0xff]  ;;  %v6452_v30 = vld [vmem:[#allocation2 + $0x2a0] sm:$0xff]  ;;  %v4475_v38 = vrot.slane %v13724_v27, 2  ;;  %v4478_v33 = vrot.slane %v13732_v57, 2  ;;  %v4558_v57 = vrot.slane %v13783_v31, 2 }
 0x66a   :  { %18593 = vst [vmem:[#allocation112_spill] sm:$0xff] %v13677_v23  ;;  %v13854_v5 = vmul.f32 %v18642_v0, %v13677_v23  ;;  %v6453_v13 = vld [vmem:[#allocation2 + $0x2a8] sm:$0xff]  ;;  %v18651_v27 = vld [vmem:[#allocation32_spill] sm:$0xff] }
 0x66b   :  { %18594 = vst [vmem:[#allocation24_spill] sm:$0xff] %v13680_v55  ;;  %v18641_v55 = vld [vmem:[#allocation34_spill] sm:$0xff]  ;;  %v13872_v0 = vmul.f32 %v6453_v13, %v13677_v23  ;;  %v13889_v13 = vmul.f32 %v6456_v6, %v13677_v23  ;;  %v13905_v6 = vmul.f32 %v6460_v50, %v13677_v23 }
 0x66c   :  { %18595 = vst [vmem:[#allocation12_spill] sm:$0xff] %v13683_v21  ;;  %v18640_v21 = vld [vmem:[#allocation196_spill] sm:$0xff]  ;;  %v13850_v22 = vmul.f32 %v18641_v55, %v13677_v23  ;;  %v13869_v55 = vmul.f32 %v6452_v30, %v13677_v23  ;;  %v13886_v30 = vmul.f32 %v18647_v12, %v13677_v23  ;;  %v6458_v15 = vld [vmem:[#allocation2 + $0x2e8] sm:$0xff]  ;;  %v13902_v12 = vmul.f32 %v6459_v2, %v13677_v23 }
 0x66d   :  { %18596 = vst [vmem:[#allocation164_spill] sm:$0xff] %v13686_v47  ;;  %v18639_v47 = vld [vmem:[#allocation165_spill] sm:$0xff] }
 0x66e   :  { %18597 = vst [vmem:[#allocation170_spill] sm:$0xff] %v13690_v54  ;;  %v18638_v54 = vld [vmem:[#allocation195_spill] sm:$0xff] }
 0x66f   :  { %18598 = vst [vmem:[#allocation172_spill] sm:$0xff] %v13693_v49  ;;  %v18635_v49 = vld [vmem:[#allocation28_spill] sm:$0xff]  ;;  %v13838_v29 = vmul.f32 %v18638_v54, %v13677_v23  ;;  %v13858_v54 = vmul.f32 %v18643_v19, %v13677_v23  ;;  %v13876_v19 = vmul.f32 %v18646_v43, %v13677_v23  ;;  %v13892_v43 = vmul.f32 %v6457_v35, %v13677_v23 }
 0x670   :  { %18599 = vst [vmem:[#allocation174_spill] sm:$0xff] %v13698_v39  ;;  %v18634_v39 = vld [vmem:[#allocation27_spill] sm:$0xff]  ;;  %v13826_v28 = vmul.f32 %v18635_v49, %v13677_v23  ;;  %v13846_v49 = vmul.f32 %v18640_v21, %v13677_v23  ;;  %v13866_v21 = vmul.f32 %v18645_v20, %v13677_v23  ;;  %v13882_v20 = vmul.f32 %v6455_v16, %v13677_v23 }
 0x671   :  { %18601 = vst [vmem:[#allocation176_spill] sm:$0xff] %v13703_v41  ;;  %v13822_v44 = vmul.f32 %v18634_v39, %v13677_v23  ;;  %v13842_v39 = vmul.f32 %v18639_v47, %v13677_v23  ;;  %v13862_v47 = vmul.f32 %v18644_v59, %v13677_v23  ;;  %v13879_v59 = vmul.f32 %v6454_v46, %v13677_v23 }
 0x672   :  { %18603 = vst [vmem:[#allocation178_spill] sm:$0xff] %v13707_v58  ;;  %v13896_v46 = vmul.f32 %v18648_v62, %v13677_v23  ;;  %v13899_v16 = vmul.f32 %v6458_v15, %v13677_v23  ;;  %v4561_v41 = vrot.slane %v13790_v17, 2  ;;  %v4576_v31 = vrot.slane %v13826_v28, 2 }
 0x673   :  { %18605 = vst [vmem:[#allocation180_spill] sm:$0xff] %v13711_v34  ;;  %v13941_v34 = vmul.f32 %v18651_v27, %v13677_v23  ;;  %v4575_v17 = vrot.slane %v13822_v44, 2  ;;  %v4591_v44 = vrot.slane %v13862_v47, 2  ;;  %v4593_v28 = vrot.slane %v13866_v21, 2 }
 0x674   :  { %18607 = vst [vmem:[#allocation182_spill] sm:$0xff] %v13714_v4  ;;  %v18650_v4 = vld [vmem:[#allocation104_spill] sm:$0xff] }
 0x675   :  { %18609 = vst [vmem:[#allocation184_spill] sm:$0xff] %v13717_v51  ;;  %v6465_v51 = vld [vmem:[#allocation2 + $0x320] sm:$0xff]  ;;  %v4577_v47 = vsel %vm2292_vm9, %v4575_v17, %v4576_v31  ;;  %v4608_v17 = vrot.slane %v13896_v46, 2 }
 0x676   :  { %18611 = vst [vmem:[#allocation83_spill] sm:$0xff] %v13720_v18  ;;  %v6463_v18 = vld [vmem:[#allocation2 + $0x310] sm:$0x3]  ;;  %v13920_v50 = vmul.f32 %v6465_v51, %v13677_v23  ;;  %v4483_v51 = vrot.slane %v13744_v61, 2 }
 0x677   :  { %18616 = vst [vmem:[#allocation79_spill] sm:$0xff] %v13760_v26  ;;  %v13914_v15 = vmul.f32 %v6463_v18, %v13677_v23  ;;  %v18649_v18 = vld [vmem:[#allocation144_spill] sm:$0xff]  ;;  %v4481_v26 = vrot.slane %v13740_v45, 2  ;;  %v18655_v61 = vld [vmem:[#allocation30_spill] sm:$0xff] }
 0x678   :  { %18618 = vst [vmem:[#allocation186_spill] sm:$0xff] %v13764_v37  ;;  %v13930_v37 = vmul.f32 %v18649_v18, %v13677_v23  ;;  %v18652_v18 = vld [vmem:[#allocation98_spill] sm:$0xff] }
 0x679   :  { %18620 = vst [vmem:[#allocation63_spill] sm:$0xff] %v13768_v9  ;;  %v6464_v9 = vld [vmem:[#allocation2 + $0x318] sm:$0xff]  ;;  %v13947_v58 = vmul.f32 %v13677_v23, %v18652_v18  ;;  %v4566_v18 = vrot.slane %v13802_v36, 2  ;;  %v4583_v36 = vrot.slane %v13842_v39, 2  ;;  %v4596_v39 = vrot.slane %v13872_v0, 2 }
 0x67a   :  { %18622 = vst [vmem:[#allocation135_spill] sm:$0xff] %v13772_v3  ;;  %v6462_v3 = vld [vmem:[#allocation2 + $0x308] sm:$0xff]  ;;  %v13917_v2 = vmul.f32 %v6464_v9, %v13677_v23  ;;  %v4480_v9 = vrot.slane %v13736_v48, 2  ;;  %v4625_v46 = vrot.slane %v13930_v37, 2 }
 0x67b   :  { %18624 = vst [vmem:[#allocation7_spill] sm:$0xff] %v13776_v8  ;;  %v6461_v8 = vld [vmem:[#allocation2 + $0x300] sm:$0xff]  ;;  %v13911_v62 = vmul.f32 %v6462_v3, %v13677_v23  ;;  %v4476_v3 = vrot.slane %v13728_v63, 2  ;;  %v18654_v48 = vld [vmem:[#allocation198_spill] sm:$0xff] }
 0x67c   :  { %v13908_v35 = vmul.f32 %v6461_v8, %v13677_v23  ;;  %v13923_v8 = vmul.f32 %v6466_v52, %v13677_v23  ;;  %v13937_v52 = vmul.f32 %v18650_v4, %v13677_v23  ;;  %18653 = vst [vmem:[#allocation190_spill] sm:$0xff] %v13947_v58  ;;  %v13951_v45 = vmul.f32 %v13677_v23, %v18654_v48 }
 0x67d   :  { %v13955_v4 = vmul.f32 %v13677_v23, %v18655_v61  ;;  %v13959_v27 = vsel %vm2292_vm9, %v4475_v38, %v4476_v3  ;;  %v13962_v63 = vsel %vm2292_vm9, %v4476_v3, %v4478_v33  ;;  %v13967_v58 = vsel %vm2292_vm9, %v4480_v9, %v4481_v26 }
 0x67e   :  { %v13970_v48 = vsel %vm2292_vm9, %v4481_v26, %v4483_v51  ;;  %v4560_v61 = vrot.slane %v13786_v1, 2  ;;  %v18656_v38 = vrot.slane %v13779_v11, 2  ;;  %v4563_v33 = vrot.slane %v13794_v7, 2 }
 0x67f   :  { %v4565_v3 = vrot.slane %v13798_v10, 2  ;;  %v4568_v9 = vrot.slane %v13806_v40, 2  ;;  %v4570_v26 = vrot.slane %v13810_v14, 2  ;;  %v4571_v51 = vrot.slane %v13814_v25, 2 }
 0x680   :  { %v13977_v23 = vsel %vm2292_vm9, %v18656_v38, %v4558_v57  ;;  %v4573_v1 = vrot.slane %v13818_v42, 2  ;;  %v4578_v57 = vrot.slane %v13830_v56, 2  ;;  %v4580_v7 = vrot.slane %v13834_v60, 2 }
 0x681   :  { %v4581_v10 = vrot.slane %v13838_v29, 2  ;;  %v4585_v40 = vrot.slane %v13846_v49, 2  ;;  %v4586_v14 = vrot.slane %v13850_v22, 2  ;;  %v4588_v25 = vrot.slane %v13854_v5, 2 }
 0x682   :  { %v4590_v42 = vrot.slane %v13858_v54, 2  ;;  %v4562_v56 = vsel %vm2292_vm9, %v4560_v61, %v4561_v41  ;;  %v4564_v60 = vsel %vm2292_vm9, %v4561_v41, %v4563_v33  ;;  %v4595_v29 = vrot.slane %v13869_v55, 2 }
 0x683   :  { %v4567_v49 = vsel %vm2292_vm9, %v4565_v3, %v4566_v18  ;;  %v4569_v22 = vsel %vm2292_vm9, %v4566_v18, %v4568_v9  ;;  %v4572_v5 = vsel %vm2292_vm9, %v4570_v26, %v4571_v51  ;;  %v4574_v54 = vsel %vm2292_vm9, %v4571_v51, %v4573_v1 }
 0x684   :  { %v4579_v21 = vsel %vm2292_vm9, %v4576_v31, %v4578_v57  ;;  %v4582_v61 = vsel %vm2292_vm9, %v4580_v7, %v4581_v10  ;;  %v4584_v41 = vsel %vm2292_vm9, %v4581_v10, %v4583_v36  ;;  %v4587_v55 = vsel %vm2292_vm9, %v4585_v40, %v4586_v14  ;;  %v18657_v36 = vld [vmem:[#allocation190_spill] sm:$0xff] }
 0x685   :  { %v4589_v0 = vsel %vm2292_vm9, %v4586_v14, %v4588_v25  ;;  %v4592_v38 = vsel %vm2292_vm9, %v4590_v42, %v4591_v44  ;;  %v4594_v18 = vsel %vm2292_vm9, %v4591_v44, %v4593_v28  ;;  %v4597_v33 = vsel %vm2292_vm9, %v4595_v29, %v4596_v39  ;;  %v18658_v29 = vld [vmem:[#allocation176_spill] sm:$0xff] }
 0x686   :  { %v4598_v3 = vrot.slane %v13876_v19, 2  ;;  %v4600_v9 = vrot.slane %v13879_v59, 2  ;;  %v4601_v31 = vrot.slane %v13882_v20, 2  ;;  %v4603_v26 = vrot.slane %v13886_v30, 2 }
 0x687   :  { %v4605_v51 = vrot.slane %v13889_v13, 2  ;;  %v4606_v1 = vrot.slane %v13892_v43, 2  ;;  %v4610_v57 = vrot.slane %v13899_v16, 2  ;;  %v4611_v7 = vrot.slane %v13902_v12, 2 }
 0x688   :  { %v4613_v10 = vrot.slane %v13905_v6, 2  ;;  %v4615_v19 = vrot.slane %v13908_v35, 2  ;;  %v4616_v59 = vrot.slane %v13911_v62, 2  ;;  %v4618_v20 = vrot.slane %v13914_v15, 2 }
 0x689   :  { %v4620_v30 = vrot.slane %v13917_v2, 2  ;;  %v4621_v13 = vrot.slane %v13920_v50, 2  ;;  %v4623_v43 = vrot.slane %v13923_v8, 2  ;;  %v4626_v16 = vrot.slane %v13937_v52, 2 }
 0x68a   :  { %v4628_v12 = vrot.slane %v13941_v34, 2  ;;  %v4599_v6 = vsel %vm2292_vm9, %v4596_v39, %v4598_v3  ;;  %v4630_v35 = vrot.slane %v18657_v36, 2  ;;  %v4631_v62 = vrot.slane %v13951_v45, 2  ;;  %v18660_v3 = vld [vmem:[#allocation178_spill] sm:$0xff] }
 0x68b   :  { %v4633_v15 = vrot.slane %v13955_v4, 2  ;;  %v4602_v2 = vsel %vm2292_vm9, %v4600_v9, %v4601_v31  ;;  %v4604_v50 = vsel %vm2292_vm9, %v4601_v31, %v4603_v26  ;;  %v4607_v8 = vsel %vm2292_vm9, %v4605_v51, %v4606_v1  ;;  %v18662_v31 = vld [vmem:[#allocation180_spill] sm:$0xff] }
 0x68c   :  { %v4609_v37 = vsel %vm2292_vm9, %v4606_v1, %v4608_v17  ;;  %v4612_v52 = vsel %vm2292_vm9, %v4610_v57, %v4611_v7  ;;  %v4614_v34 = vsel %vm2292_vm9, %v4611_v7, %v4613_v10  ;;  %v4617_v40 = vsel %vm2292_vm9, %v4615_v19, %v4616_v59  ;;  %v18664_v51 = vld [vmem:[#allocation72_spill] sm:$0xff]  ;;  %v18665_v17 = vld [vmem:[#allocation78_spill] sm:$0xff] }
 0x68d   :  { %v4619_v14 = vsel %vm2292_vm9, %v4616_v59, %v4618_v20  ;;  %v4622_v45 = vsel %vm2292_vm9, %v4620_v30, %v4621_v13  ;;  %v4624_v4 = vsel %vm2292_vm9, %v4621_v13, %v4623_v43  ;;  %v4627_v25 = vsel %vm2292_vm9, %v4625_v46, %v4626_v16  ;;  %v18666_v7 = vld [vmem:[#allocation84_spill] sm:$0xff]  ;;  %v18668_v59 = vld [vmem:[#allocation21_spill] sm:$0xff] }
 0x68e   :  { %v4629_v42 = vsel %vm2292_vm9, %v4626_v16, %v4628_v12  ;;  %v4632_v44 = vsel %vm2292_vm9, %v4630_v35, %v4631_v62  ;;  %v4634_v28 = vsel %vm2292_vm9, %v4631_v62, %v4633_v15  ;;  %v14054_v39 = vadd.f32 %v13959_v27, %v18658_v29  ;;  %v18667_v27 = vld [vmem:[#allocation89_spill] sm:$0xff] }
 0x68f   :  { %v14058_v9 = vadd.f32 %v13962_v63, %v18660_v3  ;;  %v14062_v26 = vadd.f32 %v13967_v58, %v18662_v31  ;;  %v14066_v1 = vadd.f32 %v13977_v23, %v18664_v51  ;;  %v14069_v57 = vadd.f32 %v4562_v56, %v18665_v17  ;;  %v18669_v20 = vld [vmem:[#allocation33_spill] sm:$0xff]  ;;  %v18670_v58 = vld [vmem:[#allocation35_spill] sm:$0xff] }
 0x690   :  { %18659 = vst [vmem:[#allocation8_spill] sm:$0xff] %v14054_v39  ;;  %v14072_v10 = vadd.f32 %v4564_v60, %v18666_v7  ;;  %v14075_v19 = vadd.f32 %v4567_v49, %v18667_v27  ;;  %v14078_v63 = vadd.f32 %v4569_v22, %v18668_v59  ;;  %v14081_v30 = vadd.f32 %v4572_v5, %v18669_v20  ;;  %v18671_v23 = vld [vmem:[#allocation23_spill] sm:$0xff]  ;;  %v18673_v60 = vld [vmem:[#allocation188_spill] sm:$0xff]  ;;  %v18675_v22 = vld [vmem:[#allocation61_spill] sm:$0xff] }
 0x691   :  { %18661 = vst [vmem:[#allocation138_spill] sm:$0xff] %v14058_v9  ;;  %v14084_v13 = vadd.f32 %v4574_v54, %v18670_v58  ;;  %v14087_v43 = vadd.f32 %v4577_v47, %v18671_v23  ;;  %v18672_v56 = vld [vmem:[#allocation123_spill] sm:$0xff]  ;;  %v14093_v16 = vadd.f32 %v4582_v61, %v18673_v60  ;;  %v18674_v49 = vld [vmem:[#allocation124_spill] sm:$0xff]  ;;  %v14099_v36 = vadd.f32 %v4587_v55, %v18675_v22  ;;  %v18676_v5 = vld [vmem:[#allocation10_spill] sm:$0xff] }
 0x692   :  { %18663 = vst [vmem:[#allocation36_spill] sm:$0xff] %v14062_v26  ;;  %v14090_v46 = vadd.f32 %v4579_v21, %v18672_v56  ;;  %v14096_v12 = vadd.f32 %v4584_v41, %v18674_v49  ;;  %v14102_v35 = vadd.f32 %v4589_v0, %v18676_v5  ;;  %v18677_v54 = vld [vmem:[#allocation51_spill] sm:$0xff]  ;;  %v18678_v47 = vld [vmem:[#allocation145_spill] sm:$0xff]  ;;  %v18680_v61 = vld [vmem:[#allocation82_spill] sm:$0xff] }
 0x693   :  { %v14105_v62 = vadd.f32 %v4592_v38, %v18677_v54  ;;  %v14108_v15 = vadd.f32 %v4594_v18, %v18678_v47  ;;  %v18679_v21 = vld [vmem:[#allocation73_spill] sm:$0xff]  ;;  %v14114_v3 = vadd.f32 %v4599_v6, %v18680_v61  ;;  %v18681_v41 = vld [vmem:[#allocation86_spill] sm:$0xff]  ;;  %v18685_v18 = vld [vmem:[#allocation91_spill] sm:$0xff] }
 0x694   :  { %v14111_v29 = vadd.f32 %v4597_v33, %v18679_v21  ;;  %v14117_v31 = vadd.f32 %v4602_v2, %v18681_v41  ;;  %v18682_v55 = vld [vmem:[#allocation62_spill] sm:$0xff]  ;;  %v18683_v0 = vld [vmem:[#allocation13_spill] sm:$0xff]  ;;  %v14129_v27 = vadd.f32 %v4612_v52, %v18685_v18  ;;  %v18686_v33 = vld [vmem:[#allocation88_spill] sm:$0xff] }
 0x695   :  { %v14120_v51 = vadd.f32 %v4604_v50, %v18682_v55  ;;  %v14123_v17 = vadd.f32 %v4607_v8, %v18683_v0  ;;  %v18684_v38 = vld [vmem:[#allocation65_spill] sm:$0xff]  ;;  %v14132_v59 = vadd.f32 %v4614_v34, %v18686_v33  ;;  %v18687_v6 = vld [vmem:[#allocation151_spill] sm:$0xff]  ;;  %v18689_v50 = vld [vmem:[#allocation94_spill] sm:$0xff] }
 0x696   :  { %v14126_v7 = vadd.f32 %v4609_v37, %v18684_v38  ;;  %v14135_v20 = vadd.f32 %v4617_v40, %v18687_v6  ;;  %v18688_v2 = vld [vmem:[#allocation75_spill] sm:$0xff]  ;;  %v14141_v23 = vadd.f32 %v4622_v45, %v18689_v50  ;;  %v18690_v8 = vld [vmem:[#allocation74_spill] sm:$0xff]  ;;  %v18691_v37 = vld [vmem:[#allocation105_spill] sm:$0xff]  ;;  %v4765_v45 = vsel %vm526_vm2, %v14054_v39, 0.0 }
 0x697   :  { %v14138_v58 = vadd.f32 %v4619_v14, %v18688_v2  ;;  %v14144_v56 = vadd.f32 %v4624_v4, %v18690_v8  ;;  %v14147_v60 = vadd.f32 %v4627_v25, %v18691_v37  ;;  %v18692_v52 = vld [vmem:[#allocation81_spill] sm:$0xff]  ;;  %v18693_v34 = vld [vmem:[#allocation20_spill] sm:$0xff]  ;;  %v18694_v40 = vld [vmem:[#allocation87_spill] sm:$0xff]  ;;  %v4766_v4 = vsel %vm526_vm2, %v14058_v9, 0.0 }
 0x698   :  { %v14150_v49 = vadd.f32 %v4629_v42, %v18692_v52  ;;  %v14153_v22 = vadd.f32 %v4632_v44, %v18693_v34  ;;  %v14156_v5 = vadd.f32 %v4634_v28, %v18694_v40  ;;  %v18695_v14 = vld [vmem:[#allocation182_spill] sm:$0xff]  ;;  %v4768_v25 = vsel %vm526_vm2, %v14062_v26, 0.0  ;;  %v18699_v47 = vld [vmem:[#allocation79_spill] sm:$0xff]  ;;  %v18703_v18 = vld [vmem:[#allocation117_spill] sm:$0xff] }
 0x699   :  { %v14160_v54 = vadd.f32 %v13970_v48, %v18695_v14  ;;  %v18697_v42 = vrot.slane %v13752_v53, 2  ;;  %v18698_v44 = vrot.slane %v13748_v32, 2  ;;  %v4490_v21 = vrot.slane %v18699_v47, 2  ;;  %v18700_v61 = vld [vmem:[#allocation186_spill] sm:$0xff]  ;;  %v18701_v55 = vld [vmem:[#allocation119_spill] sm:$0xff]  ;;  %v18705_v2 = vld [vmem:[#allocation149_spill] sm:$0xff] }
 0x69a   :  { %v4491_v48 = vrot.slane %v18700_v61, 2  ;;  %v4767_v41 = vadd.f32 %v4766_v4, %v4765_v45  ;;  %v18702_v0 = vld [vmem:[#allocation107_spill] sm:$0xff]  ;;  %v18706_v50 = vld [vmem:[#allocation108_spill] sm:$0xff]  ;;  %v18710_v34 = vld [vmem:[#allocation142_spill] sm:$0xff]  ;;  %v18711_v14 = vrot.slane %v13756_v24, 2 }
 0x69b   :  { %18696 = vst [vmem:[#allocation139_spill] sm:$0xff] %v14160_v54  ;;  %v4487_v28 = vsel %vm2292_vm9, %v18698_v44, %v18697_v42  ;;  %v4224_v38 = vadd.f32 %v18702_v0, %v18701_v55  ;;  %v18704_v33 = vld [vmem:[#allocation103_spill] sm:$0xff]  ;;  %v4226_v8 = vadd.f32 %v18706_v50, %v18705_v2  ;;  %v18707_v37 = vld [vmem:[#allocation184_spill] sm:$0xff]  ;;  %v18713_v61 = vld [vmem:[#allocation70_spill] sm:$0xff]  ;;  %v4770_v2 = vsel %vm526_vm2, %v14160_v54, 0.0 }
 0x69c   :  { %v4225_v6 = vadd.f32 %v18704_v33, %v18703_v18  ;;  %v14182_v52 = vadd.f32 %v4487_v28, %v18707_v37  ;;  %v18709_v32 = vld [vmem:[#allocation112_spill] sm:$0xff]  ;;  %v4489_v45 = vsel %vm2292_vm9, %v18697_v42, %v18711_v14  ;;  %v18712_v4 = vld [vmem:[#allocation63_spill] sm:$0xff]  ;;  %v4769_v47 = vadd.f32 %v4768_v25, %v4767_v41  ;;  %v18714_v0 = vld [vmem:[#allocation66_spill] sm:$0xff] }
 0x69d   :  { %v4297_v40 = vmul.f32 %v18710_v34, %v18709_v32  ;;  %v4493_v44 = vrot.slane %v18712_v4, 2  ;;  %v4298_v55 = vmul.f32 %v18713_v61, %v18709_v32  ;;  %v4299_v18 = vmul.f32 %v18714_v0, %v18709_v32  ;;  %v18715_v28 = vld [vmem:[#allocation83_spill] sm:$0xff]  ;;  %v18719_v25 = vld [vmem:[#allocation150_spill] sm:$0xff]  ;;  %v18720_v41 = vld [vmem:[#allocation113_spill] sm:$0xff] }
 0x69e   :  { %18708 = vst [vmem:[#allocation37_spill] sm:$0xff] %v14182_v52  ;;  %v14197_v33 = vadd.f32 %v4489_v45, %v18715_v28  ;;  %v4492_v24 = vsel %vm2292_vm9, %v4490_v21, %v4491_v48  ;;  %v18717_v53 = vld [vmem:[#allocation135_spill] sm:$0xff]  ;;  %v4771_v14 = vadd.f32 %v4770_v2, %v4769_v47  ;;  %v4227_v42 = vadd.f32 %v18720_v41, %v18719_v25  ;;  %v18721_v4 = vld [vmem:[#allocation152_spill] sm:$0xff]  ;;  %v18722_v61 = vld [vmem:[#allocation109_spill] sm:$0xff] }
 0x69f   :  { %v4495_v50 = vrot.slane %v18717_v53, 2  ;;  %v18718_v37 = vld [vmem:[#allocation7_spill] sm:$0xff]  ;;  %v4228_v26 = vadd.f32 %v18722_v61, %v18721_v4  ;;  %v14208_v0 = vadd.f32 %v4492_v24, %v4224_v38  ;;  %v4772_v45 = vsel %vm526_vm2, %v14182_v52, 0.0  ;;  %v18724_v28 = vld [vmem:[#allocation146_spill] sm:$0xff]  ;;  %v18728_v52 = vld [vmem:[#allocation153_spill] sm:$0xff] }
 0x6a0   :  { %18716 = vst [vmem:[#allocation9_spill] sm:$0xff] %v14197_v33  ;;  %v4496_v34 = vrot.slane %v18718_v37, 2  ;;  %v4300_v54 = vmul.f32 %v18724_v28, %v18709_v32  ;;  %v4494_v21 = vsel %vm2292_vm9, %v4491_v48, %v4493_v44  ;;  %v4498_v53 = vrot.slane %v4297_v40, 2  ;;  %v18725_v47 = vld [vmem:[#allocation18_spill] sm:$0xff]  ;;  %v18726_v37 = vld [vmem:[#allocation49_spill] sm:$0xff]  ;;  %v18785_v39 = vld [vmem:[#allocation99_spill] sm:$0xff] }
 0x6a1   :  { %18723 = vst [vmem:[#allocation39_spill] sm:$0xff] %v14208_v0  ;;  %v4773_v9 = vadd.f32 %v4772_v45, %v4771_v14  ;;  %v4301_v2 = vmul.f32 %v18725_v47, %v18709_v32  ;;  %v4302_v25 = vmul.f32 %v18726_v37, %v18709_v32  ;;  %v14219_v41 = vadd.f32 %v4494_v21, %v4225_v6  ;;  %v18729_v48 = vld [vmem:[#allocation46_spill] sm:$0xff]  ;;  %v18731_v14 = vld [vmem:[#allocation69_spill] sm:$0xff]  ;;  %v18733_v21 = vld [vmem:[#allocation148_spill] sm:$0xff] }
 0x6a2   :  { %v4774_v38 = vsel %vm526_vm2, %v14197_v33, 0.0  ;;  %v4497_v24 = vsel %vm2292_vm9, %v4495_v50, %v4496_v34  ;;  %v4500_v4 = vrot.slane %v4298_v55, 2  ;;  %v4501_v61 = vrot.slane %v4299_v18, 2  ;;  %v18730_v44 = vld [vmem:[#allocation110_spill] sm:$0xff]  ;;  %v6467_v18 = vld [vmem:[#allocation2 + $0xd8] sm:$0xff] }
 0x6a3   :  { %18727 = vst [vmem:[#allocation140_spill] sm:$0xff] %v14219_v41  ;;  %v4775_v28 = vadd.f32 %v4774_v38, %v4773_v9  ;;  %v4229_v40 = vadd.f32 %v18729_v48, %v18728_v52  ;;  %v4230_v45 = vadd.f32 %v18731_v14, %v18730_v44  ;;  %v14228_v47 = vadd.f32 %v4497_v24, %v4226_v8  ;;  %v6468_v38 = vld [vmem:[#allocation2 + $0xe0] sm:$0xff] }
 0x6a4   :  { %v4776_v6 = vsel %vm526_vm2, %v14208_v0, 0.0  ;;  %v4303_v37 = vmul.f32 %v18733_v21, %v18709_v32  ;;  %v4499_v33 = vsel %vm2292_vm9, %v4496_v34, %v4498_v53  ;;  %v4503_v50 = vrot.slane %v4300_v54, 2  ;;  %v18735_v0 = vld [vmem:[#allocation154_spill] sm:$0xff]  ;;  %v18736_v34 = vld [vmem:[#allocation127_spill] sm:$0xff] }
 0x6a5   :  { %18732 = vst [vmem:[#allocation40_spill] sm:$0xff] %v14228_v47  ;;  %v4777_v55 = vadd.f32 %v4776_v6, %v4775_v28  ;;  %v4304_v9 = vmul.f32 %v6467_v18, %v18709_v32  ;;  %v4305_v52 = vmul.f32 %v6468_v38, %v18709_v32  ;;  %v14237_v48 = vadd.f32 %v4499_v33, %v4227_v42  ;;  %v18737_v53 = vld [vmem:[#allocation114_spill] sm:$0xff]  ;;  %v18740_v42 = vld [vmem:[#allocation29_spill] sm:$0xff] }
 0x6a6   :  { %v4778_v8 = vsel %vm526_vm2, %v14219_v41, 0.0  ;;  %v4502_v24 = vsel %vm2292_vm9, %v4500_v4, %v4501_v61  ;;  %v4505_v44 = vrot.slane %v4301_v2, 2  ;;  %v4506_v14 = vrot.slane %v4302_v25, 2  ;;  %v18738_v28 = vld [vmem:[#allocation126_spill] sm:$0xff] }
 0x6a7   :  { %18734 = vst [vmem:[#allocation168_spill] sm:$0xff] %v14237_v48  ;;  %v4779_v21 = vadd.f32 %v4778_v8, %v4777_v55  ;;  %v4231_v54 = vadd.f32 %v18736_v34, %v18735_v0  ;;  %v4232_v6 = vadd.f32 %v18738_v28, %v18737_v53  ;;  %v14246_v18 = vadd.f32 %v4502_v24, %v4228_v26  ;;  %v6469_v25 = vld [vmem:[#allocation2 + $0xf0] sm:$0xff]  ;;  %v6470_v8 = vld [vmem:[#allocation2 + $0xf8] sm:$0xff] }
 0x6a8   :  { %v4780_v33 = vsel %vm526_vm2, %v14228_v47, 0.0  ;;  %v4306_v38 = vmul.f32 %v18740_v42, %v18709_v32  ;;  %v4504_v41 = vsel %vm2292_vm9, %v4501_v61, %v4503_v50  ;;  %v4508_v4 = vrot.slane %v4303_v37, 2  ;;  %v18742_v47 = vld [vmem:[#allocation155_spill] sm:$0xff]  ;;  %v18743_v61 = vld [vmem:[#allocation128_spill] sm:$0xff] }
 0x6a9   :  { %18739 = vst [vmem:[#allocation163_spill] sm:$0xff] %v14246_v18  ;;  %v4781_v2 = vadd.f32 %v4780_v33, %v4779_v21  ;;  %v4307_v55 = vmul.f32 %v6469_v25, %v18709_v32  ;;  %v4308_v0 = vmul.f32 %v6470_v8, %v18709_v32  ;;  %v14255_v34 = vadd.f32 %v4504_v41, %v4229_v40  ;;  %v18744_v50 = vld [vmem:[#allocation100_spill] sm:$0xff]  ;;  %v18745_v21 = vld [vmem:[#allocation53_spill] sm:$0xff]  ;;  %v18747_v40 = vld [vmem:[#allocation54_spill] sm:$0xff] }
 0x6aa   :  { %v4782_v26 = vsel %vm526_vm2, %v14237_v48, 0.0  ;;  %v4507_v24 = vsel %vm2292_vm9, %v4505_v44, %v4506_v14  ;;  %v4510_v53 = vrot.slane %v4304_v9, 2  ;;  %v4511_v28 = vrot.slane %v4305_v52, 2  ;;  %v6471_v52 = vld [vmem:[#allocation2 + $0x108] sm:$0xff] }
 0x6ab   :  { %18741 = vst [vmem:[#allocation120_spill] sm:$0xff] %v14255_v34  ;;  %v4783_v42 = vadd.f32 %v4782_v26, %v4781_v2  ;;  %v4233_v37 = vadd.f32 %v18743_v61, %v18742_v47  ;;  %v4234_v33 = vadd.f32 %v18745_v21, %v18744_v50  ;;  %v14264_v25 = vadd.f32 %v4507_v24, %v4230_v45  ;;  %v6472_v26 = vld [vmem:[#allocation2 + $0x110] sm:$0xff] }
 0x6ac   :  { %v4784_v41 = vsel %vm526_vm2, %v14246_v18, 0.0  ;;  %v4309_v8 = vmul.f32 %v18747_v40, %v18709_v32  ;;  %v4509_v48 = vsel %vm2292_vm9, %v4506_v14, %v4508_v4  ;;  %v4513_v44 = vrot.slane %v4306_v38, 2  ;;  %v18749_v18 = vld [vmem:[#allocation157_spill] sm:$0xff]  ;;  %v18750_v14 = vld [vmem:[#allocation96_spill] sm:$0xff]  ;;  %v18751_v4 = vld [vmem:[#allocation158_spill] sm:$0xff] }
 0x6ad   :  { %18746 = vst [vmem:[#allocation167_spill] sm:$0xff] %v14264_v25  ;;  %v4785_v9 = vadd.f32 %v4784_v41, %v4783_v42  ;;  %v4310_v2 = vmul.f32 %v6471_v52, %v18709_v32  ;;  %v4311_v47 = vmul.f32 %v6472_v26, %v18709_v32  ;;  %v14273_v61 = vadd.f32 %v4509_v48, %v4231_v54  ;;  %v18752_v42 = vld [vmem:[#allocation43_spill] sm:$0xff] }
 0x6ae   :  { %v4786_v45 = vsel %vm526_vm2, %v14255_v34, 0.0  ;;  %v4512_v24 = vsel %vm2292_vm9, %v4510_v53, %v4511_v28  ;;  %v4515_v50 = vrot.slane %v4307_v55, 2  ;;  %v4516_v21 = vrot.slane %v4308_v0, 2  ;;  %v18754_v54 = vld [vmem:[#allocation15_spill] sm:$0xff]  ;;  %v6473_v0 = vld [vmem:[#allocation2 + $0x120] sm:$0xff] }
 0x6af   :  { %18748 = vst [vmem:[#allocation169_spill] sm:$0xff] %v14273_v61  ;;  %v4787_v40 = vadd.f32 %v4786_v45, %v4785_v9  ;;  %v4235_v38 = vadd.f32 %v18750_v14, %v18749_v18  ;;  %v4236_v41 = vadd.f32 %v18752_v42, %v18751_v4  ;;  %v14282_v52 = vadd.f32 %v4512_v24, %v4232_v6  ;;  %v6474_v45 = vld [vmem:[#allocation2 + $0x128] sm:$0xff] }
 0x6b0   :  { %v4788_v48 = vsel %vm526_vm2, %v14264_v25, 0.0  ;;  %v4312_v26 = vmul.f32 %v18754_v54, %v18709_v32  ;;  %v4514_v34 = vsel %vm2292_vm9, %v4511_v28, %v4513_v44  ;;  %v4518_v53 = vrot.slane %v4309_v8, 2  ;;  %v18756_v25 = vld [vmem:[#allocation159_spill] sm:$0xff]  ;;  %v18758_v44 = vld [vmem:[#allocation160_spill] sm:$0xff] }
 0x6b1   :  { %18753 = vst [vmem:[#allocation171_spill] sm:$0xff] %v14282_v52  ;;  %v4789_v55 = vadd.f32 %v4788_v48, %v4787_v40  ;;  %v4313_v9 = vmul.f32 %v6473_v0, %v18709_v32  ;;  %v4314_v18 = vmul.f32 %v6474_v45, %v18709_v32  ;;  %v14291_v14 = vadd.f32 %v4514_v34, %v4233_v37  ;;  %v18757_v28 = vld [vmem:[#allocation147_spill] sm:$0xff]  ;;  %v18759_v40 = vld [vmem:[#allocation38_spill] sm:$0xff] }
 0x6b2   :  { %v4790_v6 = vsel %vm526_vm2, %v14273_v61, 0.0  ;;  %v4517_v24 = vsel %vm2292_vm9, %v4515_v50, %v4516_v21  ;;  %v4520_v4 = vrot.slane %v4310_v2, 2  ;;  %v4521_v42 = vrot.slane %v4311_v47, 2  ;;  %v18761_v37 = vld [vmem:[#allocation59_spill] sm:$0xff] }
 0x6b3   :  { %18755 = vst [vmem:[#allocation173_spill] sm:$0xff] %v14291_v14  ;;  %v4791_v54 = vadd.f32 %v4790_v6, %v4789_v55  ;;  %v4237_v8 = vadd.f32 %v18757_v28, %v18756_v25  ;;  %v4238_v48 = vadd.f32 %v18759_v40, %v18758_v44  ;;  %v14300_v0 = vadd.f32 %v4517_v24, %v4234_v33  ;;  %v6475_v47 = vld [vmem:[#allocation2 + $0x138] sm:$0xff]  ;;  %v6476_v6 = vld [vmem:[#allocation2 + $0x140] sm:$0xff] }
 0x6b4   :  { %v4792_v34 = vsel %vm526_vm2, %v14282_v52, 0.0  ;;  %v4315_v45 = vmul.f32 %v18761_v37, %v18709_v32  ;;  %v4519_v61 = vsel %vm2292_vm9, %v4516_v21, %v4518_v53  ;;  %v4523_v50 = vrot.slane %v4312_v26, 2  ;;  %v18763_v52 = vld [vmem:[#allocation11_spill] sm:$0xff]  ;;  %v18764_v21 = vld [vmem:[#allocation41_spill] sm:$0xff]  ;;  %v18765_v53 = vld [vmem:[#allocation136_spill] sm:$0xff] }
 0x6b5   :  { %18760 = vst [vmem:[#allocation175_spill] sm:$0xff] %v14300_v0  ;;  %v4793_v2 = vadd.f32 %v4792_v34, %v4791_v54  ;;  %v4316_v55 = vmul.f32 %v6475_v47, %v18709_v32  ;;  %v4317_v25 = vmul.f32 %v6476_v6, %v18709_v32  ;;  %v14309_v28 = vadd.f32 %v4519_v61, %v4235_v38  ;;  %v18766_v54 = vld [vmem:[#allocation111_spill] sm:$0xff]  ;;  %v6477_v38 = vld [vmem:[#allocation2 + $0x148] sm:$0x3] }
 0x6b6   :  { %v4794_v33 = vsel %vm526_vm2, %v14291_v14, 0.0  ;;  %v4522_v24 = vsel %vm2292_vm9, %v4520_v4, %v4521_v42  ;;  %v4525_v44 = vrot.slane %v4313_v9, 2  ;;  %v4526_v40 = vrot.slane %v4314_v18, 2  ;;  %v6478_v18 = vld [vmem:[#allocation2 + $0x150] sm:$0xff] }
 0x6b7   :  { %18762 = vst [vmem:[#allocation177_spill] sm:$0xff] %v14309_v28  ;;  %v4795_v37 = vadd.f32 %v4794_v33, %v4793_v2  ;;  %v4239_v26 = vadd.f32 %v18764_v21, %v18763_v52  ;;  %v4240_v34 = vadd.f32 %v18766_v54, %v18765_v53  ;;  %v14318_v47 = vadd.f32 %v4522_v24, %v4236_v41  ;;  %v6479_v33 = vld [vmem:[#allocation2 + $0x158] sm:$0xff] }
 0x6b8   :  { %v4796_v61 = vsel %vm526_vm2, %v14300_v0, 0.0  ;;  %v4318_v6 = vmul.f32 %v6477_v38, %v18709_v32  ;;  %v4524_v14 = vsel %vm2292_vm9, %v4521_v42, %v4523_v50  ;;  %v4528_v4 = vrot.slane %v4315_v45, 2  ;;  %v18769_v0 = vld [vmem:[#allocation137_spill] sm:$0xff]  ;;  %v18771_v50 = vld [vmem:[#allocation162_spill] sm:$0xff] }
 0x6b9   :  { %18767 = vst [vmem:[#allocation179_spill] sm:$0xff] %v14318_v47  ;;  %v4797_v9 = vadd.f32 %v4796_v61, %v4795_v37  ;;  %v4319_v2 = vmul.f32 %v6478_v18, %v18709_v32  ;;  %v4320_v52 = vmul.f32 %v6479_v33, %v18709_v32  ;;  %v14326_v21 = vadd.f32 %v4524_v14, %v4237_v8  ;;  %v18770_v42 = vld [vmem:[#allocation161_spill] sm:$0xff] }
 0x6ba   :  { %v4798_v41 = vsel %vm526_vm2, %v14309_v28, 0.0  ;;  %v4527_v24 = vsel %vm2292_vm9, %v4525_v44, %v4526_v40  ;;  %v4530_v53 = vrot.slane %v4316_v55, 2  ;;  %v4531_v54 = vrot.slane %v4317_v25, 2  ;;  %v18772_v37 = vld [vmem:[#allocation121_spill] sm:$0xff] }
 0x6bb   :  { %18768 = vst [vmem:[#allocation181_spill] sm:$0xff] %v14326_v21  ;;  %v4799_v38 = vadd.f32 %v4798_v41, %v4797_v9  ;;  %v4241_v45 = vadd.f32 %v18770_v42, %v18769_v0  ;;  %v4242_v61 = vadd.f32 %v18772_v37, %v18771_v50  ;;  %v14335_v18 = vadd.f32 %v4527_v24, %v4238_v48  ;;  %v6480_v8 = vld [vmem:[#allocation2 + $0x160] sm:$0x3]  ;;  %v6481_v25 = vld [vmem:[#allocation2 + $0x168] sm:$0xff]  ;;  %v6482_v41 = vld [vmem:[#allocation2 + $0x170] sm:$0xff] }
 0x6bc   :  { %v4800_v14 = vsel %vm526_vm2, %v14318_v47, 0.0  ;;  %v4321_v33 = vmul.f32 %v6480_v8, %v18709_v32  ;;  %v4529_v28 = vsel %vm2292_vm9, %v4526_v40, %v4528_v4  ;;  %v4533_v44 = vrot.slane %v4318_v6, 2  ;;  %v18775_v47 = vld [vmem:[#allocation101_spill] sm:$0xff]  ;;  %v18776_v40 = vld [vmem:[#allocation24_spill] sm:$0xff] }
 0x6bd   :  { %18773 = vst [vmem:[#allocation183_spill] sm:$0xff] %v14335_v18  ;;  %v4801_v55 = vadd.f32 %v4800_v14, %v4799_v38  ;;  %v4322_v9 = vmul.f32 %v6481_v25, %v18709_v32  ;;  %v4323_v0 = vmul.f32 %v6482_v41, %v18709_v32  ;;  %v14343_v42 = vadd.f32 %v4529_v28, %v4239_v26  ;;  %v18777_v4 = vld [vmem:[#allocation156_spill] sm:$0xff] }
 0x6be   :  { %v4802_v48 = vsel %vm526_vm2, %v14326_v21, 0.0  ;;  %v4532_v24 = vsel %vm2292_vm9, %v4530_v53, %v4531_v54  ;;  %v4535_v50 = vrot.slane %v4319_v2, 2  ;;  %v4536_v37 = vrot.slane %v4320_v52, 2  ;;  %v18778_v38 = vld [vmem:[#allocation12_spill] sm:$0xff] }
 0x6bf   :  { %18774 = vst [vmem:[#allocation185_spill] sm:$0xff] %v14343_v42  ;;  %v4803_v8 = vadd.f32 %v4802_v48, %v4801_v55  ;;  %v4243_v6 = vadd.f32 %v18776_v40, %v18775_v47  ;;  %v4244_v14 = vadd.f32 %v18778_v38, %v18777_v4  ;;  %v14352_v25 = vadd.f32 %v4532_v24, %v4240_v34  ;;  %v6483_v26 = vld [vmem:[#allocation2 + $0x178] sm:$0x3]  ;;  %v6484_v52 = vld [vmem:[#allocation2 + $0x180] sm:$0xff]  ;;  %v6485_v48 = vld [vmem:[#allocation2 + $0x188] sm:$0xff] }
 0x6c0   :  { %v4804_v28 = vsel %vm526_vm2, %v14335_v18, 0.0  ;;  %v4324_v41 = vmul.f32 %v6483_v26, %v18709_v32  ;;  %v4534_v21 = vsel %vm2292_vm9, %v4531_v54, %v4533_v44  ;;  %v4538_v53 = vrot.slane %v4321_v33, 2  ;;  %v18781_v54 = vld [vmem:[#allocation45_spill] sm:$0xff]  ;;  %v6486_v44 = vld [vmem:[#allocation2 + $0x198] sm:$0xff] }
 0x6c1   :  { %18779 = vst [vmem:[#allocation187_spill] sm:$0xff] %v14352_v25  ;;  %v4805_v2 = vadd.f32 %v4804_v28, %v4803_v8  ;;  %v4325_v55 = vmul.f32 %v6484_v52, %v18709_v32  ;;  %v4326_v47 = vmul.f32 %v6485_v48, %v18709_v32  ;;  %v14360_v40 = vadd.f32 %v4534_v21, %v4241_v45  ;;  %v6487_v45 = vld [vmem:[#allocation2 + $0x1a0] sm:$0xff] }
 0x6c2   :  { %v4806_v34 = vsel %vm526_vm2, %v14343_v42, 0.0  ;;  %v4537_v24 = vsel %vm2292_vm9, %v4535_v50, %v4536_v37  ;;  %v4540_v4 = vrot.slane %v4322_v9, 2  ;;  %v4541_v38 = vrot.slane %v4323_v0, 2  ;;  %v18782_v0 = vld [vmem:[#allocation92_spill] sm:$0xff] }
 0x6c3   :  { %18780 = vst [vmem:[#allocation189_spill] sm:$0xff] %v14360_v40  ;;  %v4807_v26 = vadd.f32 %v4806_v34, %v4805_v2  ;;  %v4327_v33 = vmul.f32 %v18781_v54, %v18709_v32  ;;  %v4328_v8 = vmul.f32 %v6486_v44, %v18709_v32  ;;  %v14368_v28 = vadd.f32 %v4537_v24, %v4242_v61  ;;  %v18783_v2 = vld [vmem:[#allocation164_spill] sm:$0xff] }
 0x6c4   :  { %v4808_v21 = vsel %vm526_vm2, %v14352_v25, 0.0  ;;  %v4329_v52 = vmul.f32 %v6487_v45, %v18709_v32  ;;  %v4539_v48 = vsel %vm2292_vm9, %v4536_v37, %v4538_v53  ;;  %v4543_v50 = vrot.slane %v4324_v41, 2  ;;  %v18784_v42 = vld [vmem:[#allocation44_spill] sm:$0xff]  ;;  %v18786_v37 = vld [vmem:[#allocation170_spill] sm:$0xff] }
 0x6c5   :  { %v4809_v9 = vadd.f32 %v4808_v21, %v4807_v26  ;;  %v4245_v34 = vadd.f32 %v18783_v2, %v18782_v0  ;;  %v4330_v54 = vmul.f32 %v18709_v32, %v18784_v42  ;;  %v14378_v18 = vadd.f32 %v4539_v48, %v4243_v6  ;;  %v18787_v2 = vld [vmem:[#allocation47_spill] sm:$0xff] }
 0x6c6   :  { %v4810_v61 = vsel %vm526_vm2, %v14360_v40, 0.0  ;;  %v4542_v24 = vsel %vm2292_vm9, %v4540_v4, %v4541_v38  ;;  %v4545_v44 = vrot.slane %v4325_v55, 2  ;;  %v4546_v25 = vrot.slane %v4326_v47, 2  ;;  %v18789_v4 = vld [vmem:[#allocation68_spill] sm:$0xff] }
 0x6c7   :  { %v4811_v45 = vadd.f32 %v4810_v61, %v4809_v9  ;;  %v4246_v41 = vadd.f32 %v18786_v37, %v18785_v39  ;;  %v4548_v53 = vrot.slane %v4327_v33, 2  ;;  %v14385_v26 = vadd.f32 %v4542_v24, %v4244_v14  ;;  %v18791_v9 = vld [vmem:[#allocation97_spill] sm:$0xff]  ;;  %v18792_v61 = vld [vmem:[#allocation172_spill] sm:$0xff] }
 0x6c8   :  { %v4812_v21 = vsel %vm526_vm2, %v14368_v28, 0.0  ;;  %v4544_v42 = vsel %vm2292_vm9, %v4541_v38, %v4543_v50  ;;  %v4550_v6 = vrot.slane %v4328_v8, 2  ;;  %v4551_v48 = vrot.slane %v4329_v52, 2  ;;  %v18793_v24 = vld [vmem:[#allocation64_spill] sm:$0xff] }
 0x6c9   :  { %v4813_v0 = vadd.f32 %v4812_v21, %v4811_v45  ;;  %v18788_v40 = vrot.slane %v18787_v2, 1  ;;  %v18790_v55 = vrot.slane %v18789_v4, 1  ;;  %v4247_v39 = vadd.f32 %v18792_v61, %v18791_v9  ;;  %v18794_v45 = vld [vmem:[#allocation143_spill] sm:$0xff]  ;;  %v18795_v37 = vld [vmem:[#allocation76_spill] sm:$0xff]  ;;  %v18796_v2 = vld [vmem:[#allocation102_spill] sm:$0xff] }
 0x6ca   :  { %v14397_v33 = vadd.f32 %v4544_v42, %v4245_v34  ;;  %v4814_v14 = vsel %vm526_vm2, %v14378_v18, 0.0  ;;  %v4331_v38 = vmul.f32 %v18793_v24, %v18709_v32  ;;  %v4547_v8 = vsel %vm2292_vm9, %v4545_v44, %v4546_v25  ;;  %v18798_v61 = vld [vmem:[#allocation129_spill] sm:$0xff] }
 0x6cb   :  { %v4073_v47 = vsel %vm1810_vm8, %v18790_v55, %v18788_v40  ;;  %v4553_v52 = vrot.slane %v4330_v54, 2  ;;  %v4815_v50 = vadd.f32 %v4814_v14, %v4813_v0  ;;  %v3769_v21 = vadd.f32 %v18795_v37, %v18794_v45  ;;  %v18797_v40 = vld [vmem:[#allocation174_spill] sm:$0xff]  ;;  %v18799_v14 = vld [vmem:[#allocation31_spill] sm:$0xff]  ;;  %v18801_v45 = vld [vmem:[#allocation77_spill] sm:$0xff] }
 0x6cc   :  { %v4248_v4 = vadd.f32 %v18797_v40, %v18796_v2  ;;  %v14408_v55 = vadd.f32 %v4547_v8, %v4246_v41  ;;  %v4816_v34 = vsel %vm526_vm2, %v14385_v26, 0.0  ;;  %v4549_v42 = vsel %vm2292_vm9, %v4546_v25, %v4548_v53 }
 0x6cd   :  { %v4552_v9 = vsel %vm2292_vm9, %v4550_v6, %v4551_v48  ;;  %v4817_v32 = vadd.f32 %v4816_v34, %v4815_v50  ;;  %v4249_v44 = vadd.f32 %v4073_v47, %v18798_v61  ;;  %v14415_v54 = vadd.f32 %v4549_v42, %v4247_v39 }
 0x6ce   :  { %v4818_v0 = vsel %vm526_vm2, %v14397_v33, 0.0  ;;  %v18800_v24 = vrot.slane %v18799_v14, 1  ;;  %v18802_v41 = vrot.slane %v18801_v45, 1  ;;  %v4554_v37 = vsel %vm2292_vm9, %v4551_v48, %v4553_v52 }
 0x6cf   :  { %v4555_v2 = vrot.slane %v4331_v38, 2  ;;  %v4819_v25 = vadd.f32 %v4818_v0, %v4817_v32  ;;  %v14425_v6 = vadd.f32 %v4552_v9, %v4248_v4  ;;  %v4820_v47 = vsel %vm526_vm2, %v14408_v55, 0.0 }
 0x6d0   :  { %v4076_v8 = vsel %vm1810_vm8, %v18802_v41, %v18800_v24  ;;  %v14429_v50 = vadd.f32 %v4554_v37, %v4249_v44  ;;  %v4822_v40 = vsel %vm526_vm2, %v14415_v54, 0.0  ;;  %v18803_v34 = vrot.slane %v13779_v11, 2 }
 0x6d1   :  { %v4250_v53 = vadd.f32 %v4076_v8, %v3769_v21  ;;  %v4821_v39 = vadd.f32 %v4820_v47, %v4819_v25  ;;  %v4824_v38 = vsel %vm526_vm2, %v14425_v6, 0.0  ;;  %v4830_v11 = vsel %vm526_vm2, %v14066_v1, 0.0 }
 0x6d2   :  { %v4557_v42 = vsel %vm2292_vm9, %v4555_v2, %v18803_v34  ;;  %v4826_v21 = vsel %vm526_vm2, %v14429_v50, 0.0  ;;  %v4832_v0 = vsel %vm526_vm2, %v14069_v57, 0.0  ;;  %v4834_v24 = vsel %vm526_vm2, %v14072_v10, 0.0 }
 0x6d3   :  { %v4823_v61 = vadd.f32 %v4822_v40, %v4821_v39  ;;  %v14436_v48 = vadd.f32 %v4557_v42, %v4250_v53  ;;  %v4836_v41 = vsel %vm526_vm2, %v14075_v19, 0.0  ;;  %v4838_v37 = vsel %vm526_vm2, %v14078_v63, 0.0 }
 0x6d4   :  { %v4840_v25 = vsel %vm526_vm2, %v14081_v30, 0.0  ;;  %v4842_v47 = vsel %vm526_vm2, %v14084_v13, 0.0  ;;  %v4844_v40 = vsel %vm526_vm2, %v14087_v43, 0.0  ;;  %v4846_v42 = vsel %vm526_vm2, %v14090_v46, 0.0 }
 0x6d5   :  { %v4825_v52 = vadd.f32 %v4824_v38, %v4823_v61  ;;  %v4828_v9 = vsel %vm526_vm2, %v14436_v48, 0.0  ;;  %v4848_v38 = vsel %vm526_vm2, %v14093_v16, 0.0 }
 0x6d7   :  { %v4827_v4 = vadd.f32 %v4826_v21, %v4825_v52  ;;  %v4850_v21 = vsel %vm526_vm2, %v14096_v12, 0.0 }
 0x6d9   :  { %v4829_v32 = vadd.f32 %v4828_v9, %v4827_v4  ;;  %v4852_v9 = vsel %vm526_vm2, %v14099_v36, 0.0 }
 0x6db   :  { %v4831_v44 = vadd.f32 %v4830_v11, %v4829_v32  ;;  %v4854_v11 = vsel %vm526_vm2, %v14102_v35, 0.0 }
 0x6dd   :  { %v4833_v14 = vadd.f32 %v4832_v0, %v4831_v44  ;;  %v4856_v0 = vsel %vm526_vm2, %v14105_v62, 0.0 }
 0x6df   :  { %v4835_v45 = vadd.f32 %v4834_v24, %v4833_v14  ;;  %v4858_v24 = vsel %vm526_vm2, %v14108_v15, 0.0 }
 0x6e1   :  { %v4837_v8 = vadd.f32 %v4836_v41, %v4835_v45  ;;  %v4860_v41 = vsel %vm526_vm2, %v14111_v29, 0.0 }
 0x6e3   :  { %v4839_v2 = vadd.f32 %v4838_v37, %v4837_v8  ;;  %v4862_v37 = vsel %vm526_vm2, %v14114_v3, 0.0 }
 0x6e5   :  { %v4841_v53 = vadd.f32 %v4840_v25, %v4839_v2  ;;  %v4864_v25 = vsel %vm526_vm2, %v14117_v31, 0.0 }
 0x6e7   :  { %v4843_v39 = vadd.f32 %v4842_v47, %v4841_v53  ;;  %v4866_v47 = vsel %vm526_vm2, %v14120_v51, 0.0 }
 0x6e9   :  { %v4845_v34 = vadd.f32 %v4844_v40, %v4843_v39  ;;  %v4868_v40 = vsel %vm526_vm2, %v14123_v17, 0.0 }
 0x6eb   :  { %v4847_v61 = vadd.f32 %v4846_v42, %v4845_v34  ;;  %v4870_v42 = vsel %vm526_vm2, %v14126_v7, 0.0 }
 0x6ed   :  { %v4849_v52 = vadd.f32 %v4848_v38, %v4847_v61  ;;  %v4872_v38 = vsel %vm526_vm2, %v14129_v27, 0.0 }
 0x6ef   :  { %v4851_v4 = vadd.f32 %v4850_v21, %v4849_v52  ;;  %v4874_v21 = vsel %vm526_vm2, %v14132_v59, 0.0 }
 0x6f1   :  { %v4853_v32 = vadd.f32 %v4852_v9, %v4851_v4  ;;  %v4876_v9 = vsel %vm526_vm2, %v14135_v20, 0.0 }
 0x6f3   :  { %v4855_v44 = vadd.f32 %v4854_v11, %v4853_v32  ;;  %v4878_v11 = vsel %vm526_vm2, %v14138_v58, 0.0 }
 0x6f5   :  { %v4857_v14 = vadd.f32 %v4856_v0, %v4855_v44  ;;  %v4880_v0 = vsel %vm526_vm2, %v14141_v23, 0.0 }
 0x6f7   :  { %v4859_v45 = vadd.f32 %v4858_v24, %v4857_v14  ;;  %v4882_v24 = vsel %vm526_vm2, %v14144_v56, 0.0 }
 0x6f9   :  { %v4861_v8 = vadd.f32 %v4860_v41, %v4859_v45  ;;  %v4884_v41 = vsel %vm526_vm2, %v14147_v60, 0.0 }
 0x6fb   :  { %v4863_v2 = vadd.f32 %v4862_v37, %v4861_v8  ;;  %v4886_v37 = vsel %vm526_vm2, %v14150_v49, 0.0 }
 0x6fd   :  { %v4865_v53 = vadd.f32 %v4864_v25, %v4863_v2  ;;  %v4888_v25 = vsel %vm526_vm2, %v14153_v22, 0.0 }
 0x6ff   :  { %v4867_v39 = vadd.f32 %v4866_v47, %v4865_v53  ;;  %v4890_v47 = vsel %vm526_vm2, %v14156_v5, 0.0 }
 0x701   :  { %v4869_v34 = vadd.f32 %v4868_v40, %v4867_v39 }
 0x703   :  { %v4871_v61 = vadd.f32 %v4870_v42, %v4869_v34 }
 0x705   :  { %v4873_v52 = vadd.f32 %v4872_v38, %v4871_v61 }
 0x707   :  { %v4875_v4 = vadd.f32 %v4874_v21, %v4873_v52  ;;  %v18804_v21 = vld [vmem:[#allocation25_spill] sm:$0xff] }
 0x709   :  { %v4877_v32 = vadd.f32 %v4876_v9, %v4875_v4  ;;  %v18805_v9 = vld [vmem:[#allocation8_spill] sm:$0xff] }
 0x70b   :  { %v4879_v44 = vadd.f32 %v4878_v11, %v4877_v32  ;;  %v18806_v11 = vld [vmem:[#allocation138_spill] sm:$0xff] }
 0x70d   :  { %v4881_v14 = vadd.f32 %v4880_v0, %v4879_v44  ;;  %v18807_v0 = vld [vmem:[#allocation36_spill] sm:$0xff] }
 0x70f   :  { %v4883_v45 = vadd.f32 %v4882_v24, %v4881_v14  ;;  %v18808_v24 = vld [vmem:[#allocation139_spill] sm:$0xff] }
 0x711   :  { %v4885_v8 = vadd.f32 %v4884_v41, %v4883_v45 }
 0x713   :  { %v4887_v2 = vadd.f32 %v4886_v37, %v4885_v8  ;;  %v18809_v37 = vld [vmem:[#allocation37_spill] sm:$0xff] }
 0x715   :  { %v4889_v53 = vadd.f32 %v4888_v25, %v4887_v2 }
 0x717   :  { %v4891_v39 = vadd.f32 %v4890_v47, %v4889_v53  ;;  %v18810_v53 = vld [vmem:[#allocation9_spill] sm:$0xff] }
 0x719   :  { %v4892_v40 = vrot.slane %v4891_v39, 4 }
 0x71b   :  { %v4893_v34 = vadd.f32 %v4892_v40, %v4891_v39 }
 0x71d   :  { %v4894_v42 = vrot.slane %v4893_v34, 2 }
 0x71f   :  { %v4895_v61 = vadd.f32 %v4894_v42, %v4893_v34 }
 0x721   :  { %v4896_v38 = vrot.slane %v4895_v61, 1 }
 0x723   :  { %v4897_v52 = vadd.f32 %v4896_v38, %v4895_v61  ;;  %v18811_v61 = vld [vmem:[#allocation39_spill] sm:$0xff] }
 0x725   :  { %v14507_v4 = vmul.f32 %v4897_v52, %v18804_v21 }
 0x727   :  { %v14511_v32 = vsub.f32 %v18805_v9, %v14507_v4  ;;  %v14515_v44 = vsub.f32 %v18806_v11, %v14507_v4  ;;  %v14519_v14 = vsub.f32 %v18807_v0, %v14507_v4  ;;  %v14523_v45 = vsub.f32 %v18808_v24, %v14507_v4  ;;  %v18813_v0 = vld [vmem:[#allocation140_spill] sm:$0xff] }
 0x728   :  { %v14531_v2 = vsub.f32 %v18809_v37, %v14507_v4  ;;  %v14537_v47 = vsub.f32 %v18810_v53, %v14507_v4  ;;  %v14545_v38 = vsub.f32 %v18811_v61, %v14507_v4  ;;  %v14552_v24 = vsub.f32 %v18813_v0, %v14507_v4  ;;  %v18815_v53 = vld [vmem:[#allocation40_spill] sm:$0xff] }
 0x729   :  { %v4963_v41 = vmul.f32 %v14511_v32, %v14511_v32  ;;  %v4964_v8 = vmul.f32 %v14515_v44, %v14515_v44  ;;  %v4965_v25 = vmul.f32 %v14519_v14, %v14519_v14  ;;  %v4966_v39 = vmul.f32 %v14523_v45, %v14523_v45  ;;  %v18817_v61 = vld [vmem:[#allocation168_spill] sm:$0xff] }
 0x72a   :  { %18812 = vst [vmem:[#allocation55_spill] sm:$0xff] %v14545_v38  ;;  %v4967_v52 = vmul.f32 %v14531_v2, %v14531_v2  ;;  %v4970_v0 = vmul.f32 %v14552_v24, %v14552_v24 }
 0x72b   :  { %v5027_v40 = vsel %vm526_vm2, %v4963_v41, 0.0  ;;  %v5028_v34 = vsel %vm526_vm2, %v4964_v8, 0.0  ;;  %v5030_v9 = vsel %vm526_vm2, %v4965_v25, 0.0  ;;  %18814 = vst [vmem:[#allocation67_spill] sm:$0xff] %v14552_v24  ;;  %v4968_v41 = vmul.f32 %v14537_v47, %v14537_v47 }
 0x72c   :  { %v5029_v42 = vadd.f32 %v5028_v34, %v5027_v40  ;;  %v5032_v8 = vsel %vm526_vm2, %v4966_v39, 0.0  ;;  %v14559_v40 = vsub.f32 %v18815_v53, %v14507_v4  ;;  %v4969_v34 = vmul.f32 %v14545_v38, %v14545_v38 }
 0x72d   :  { %v5034_v25 = vsel %vm526_vm2, %v4967_v52, 0.0  ;;  %v5036_v39 = vsel %vm526_vm2, %v4968_v41, 0.0  ;;  %v5040_v41 = vsel %vm526_vm2, %v4970_v0, 0.0 }
 0x72e   :  { %v5031_v11 = vadd.f32 %v5030_v9, %v5029_v42  ;;  %18816 = vst [vmem:[#allocation191_spill] sm:$0xff] %v14559_v40  ;;  %v14566_v9 = vsub.f32 %v18817_v61, %v14507_v4  ;;  %v4971_v38 = vmul.f32 %v14559_v40, %v14559_v40  ;;  %v5038_v52 = vsel %vm526_vm2, %v4969_v34, 0.0 }
 0x730   :  { %v5033_v37 = vadd.f32 %v5032_v8, %v5031_v11  ;;  %18818 = vst [vmem:[#allocation60_spill] sm:$0xff] %v14566_v9  ;;  %v18819_v8 = vld [vmem:[#allocation163_spill] sm:$0xff]  ;;  %v4972_v24 = vmul.f32 %v14566_v9, %v14566_v9  ;;  %v5042_v34 = vsel %vm526_vm2, %v4971_v38, 0.0 }
 0x731   :  { %v14573_v53 = vsub.f32 %v18819_v8, %v14507_v4 }
 0x732   :  { %v5035_v42 = vadd.f32 %v5034_v25, %v5033_v37  ;;  %v18821_v25 = vld [vmem:[#allocation120_spill] sm:$0xff]  ;;  %v5044_v0 = vsel %vm526_vm2, %v4972_v24, 0.0 }
 0x733   :  { %18820 = vst [vmem:[#allocation16_spill] sm:$0xff] %v14573_v53  ;;  %v14580_v61 = vsub.f32 %v18821_v25, %v14507_v4  ;;  %v4973_v40 = vmul.f32 %v14573_v53, %v14573_v53 }
 0x734   :  { %v5037_v11 = vadd.f32 %v5036_v39, %v5035_v42  ;;  %v18823_v39 = vld [vmem:[#allocation167_spill] sm:$0xff] }
 0x735   :  { %18822 = vst [vmem:[#allocation125_spill] sm:$0xff] %v14580_v61  ;;  %v14587_v8 = vsub.f32 %v18823_v39, %v14507_v4  ;;  %v4974_v9 = vmul.f32 %v14580_v61, %v14580_v61  ;;  %v5046_v38 = vsel %vm526_vm2, %v4973_v40, 0.0 }
 0x736   :  { %v5039_v37 = vadd.f32 %v5038_v52, %v5037_v11  ;;  %v18825_v52 = vld [vmem:[#allocation169_spill] sm:$0xff] }
 0x737   :  { %18824 = vst [vmem:[#allocation122_spill] sm:$0xff] %v14587_v8  ;;  %v14594_v25 = vsub.f32 %v18825_v52, %v14507_v4  ;;  %v4975_v53 = vmul.f32 %v14587_v8, %v14587_v8  ;;  %v5048_v24 = vsel %vm526_vm2, %v4974_v9, 0.0 }
 0x738   :  { %v5041_v42 = vadd.f32 %v5040_v41, %v5039_v37  ;;  %v18827_v41 = vld [vmem:[#allocation171_spill] sm:$0xff] }
 0x739   :  { %18826 = vst [vmem:[#allocation166_spill] sm:$0xff] %v14594_v25  ;;  %v14601_v39 = vsub.f32 %v18827_v41, %v14507_v4  ;;  %v4976_v61 = vmul.f32 %v14594_v25, %v14594_v25  ;;  %v5050_v40 = vsel %vm526_vm2, %v4975_v53, 0.0 }
 0x73a   :  { %v5043_v11 = vadd.f32 %v5042_v34, %v5041_v42  ;;  %v18829_v34 = vld [vmem:[#allocation173_spill] sm:$0xff] }
 0x73b   :  { %18828 = vst [vmem:[#allocation71_spill] sm:$0xff] %v14601_v39  ;;  %v14608_v52 = vsub.f32 %v18829_v34, %v14507_v4  ;;  %v4977_v8 = vmul.f32 %v14601_v39, %v14601_v39  ;;  %v5052_v9 = vsel %vm526_vm2, %v4976_v61, 0.0 }
 0x73c   :  { %v5045_v37 = vadd.f32 %v5044_v0, %v5043_v11  ;;  %v18831_v0 = vld [vmem:[#allocation175_spill] sm:$0xff] }
 0x73d   :  { %18830 = vst [vmem:[#allocation85_spill] sm:$0xff] %v14608_v52  ;;  %v14615_v41 = vsub.f32 %v18831_v0, %v14507_v4  ;;  %v4978_v25 = vmul.f32 %v14608_v52, %v14608_v52  ;;  %v5054_v53 = vsel %vm526_vm2, %v4977_v8, 0.0 }
 0x73e   :  { %v5047_v42 = vadd.f32 %v5046_v38, %v5045_v37  ;;  %v18833_v38 = vld [vmem:[#allocation177_spill] sm:$0xff] }
 0x73f   :  { %18832 = vst [vmem:[#allocation106_spill] sm:$0xff] %v14615_v41  ;;  %v14622_v34 = vsub.f32 %v18833_v38, %v14507_v4  ;;  %v4979_v39 = vmul.f32 %v14615_v41, %v14615_v41  ;;  %v5056_v61 = vsel %vm526_vm2, %v4978_v25, 0.0 }
 0x740   :  { %v5049_v11 = vadd.f32 %v5048_v24, %v5047_v42  ;;  %v18835_v24 = vld [vmem:[#allocation179_spill] sm:$0xff] }
 0x741   :  { %18834 = vst [vmem:[#allocation116_spill] sm:$0xff] %v14622_v34  ;;  %v14629_v0 = vsub.f32 %v18835_v24, %v14507_v4  ;;  %v4980_v52 = vmul.f32 %v14622_v34, %v14622_v34  ;;  %v5058_v8 = vsel %vm526_vm2, %v4979_v39, 0.0 }
 0x742   :  { %v5051_v37 = vadd.f32 %v5050_v40, %v5049_v11  ;;  %v18837_v40 = vld [vmem:[#allocation181_spill] sm:$0xff] }
 0x743   :  { %18836 = vst [vmem:[#allocation115_spill] sm:$0xff] %v14629_v0  ;;  %v14636_v38 = vsub.f32 %v18837_v40, %v14507_v4  ;;  %v4981_v41 = vmul.f32 %v14629_v0, %v14629_v0  ;;  %v5060_v25 = vsel %vm526_vm2, %v4980_v52, 0.0 }
 0x744   :  { %v5053_v42 = vadd.f32 %v5052_v9, %v5051_v37  ;;  %v18839_v9 = vld [vmem:[#allocation183_spill] sm:$0xff] }
 0x745   :  { %18838 = vst [vmem:[#allocation118_spill] sm:$0xff] %v14636_v38  ;;  %v14643_v24 = vsub.f32 %v18839_v9, %v14507_v4  ;;  %v4982_v34 = vmul.f32 %v14636_v38, %v14636_v38  ;;  %v5062_v39 = vsel %vm526_vm2, %v4981_v41, 0.0 }
 0x746   :  { %v5055_v11 = vadd.f32 %v5054_v53, %v5053_v42  ;;  %v18840_v53 = vld [vmem:[#allocation185_spill] sm:$0xff] }
 0x747   :  { %v14650_v40 = vsub.f32 %v18840_v53, %v14507_v4  ;;  %v4983_v0 = vmul.f32 %v14643_v24, %v14643_v24  ;;  %v5064_v52 = vsel %vm526_vm2, %v4982_v34, 0.0 }
 0x748   :  { %v5057_v37 = vadd.f32 %v5056_v61, %v5055_v11  ;;  %v18841_v61 = vld [vmem:[#allocation187_spill] sm:$0xff] }
 0x749   :  { %v14657_v9 = vsub.f32 %v18841_v61, %v14507_v4  ;;  %v4984_v38 = vmul.f32 %v14650_v40, %v14650_v40  ;;  %v5066_v41 = vsel %vm526_vm2, %v4983_v0, 0.0 }
 0x74a   :  { %v5059_v42 = vadd.f32 %v5058_v8, %v5057_v37  ;;  %v18842_v8 = vld [vmem:[#allocation189_spill] sm:$0xff] }
 0x74b   :  { %v14664_v53 = vsub.f32 %v18842_v8, %v14507_v4  ;;  %v4985_v61 = vmul.f32 %v14657_v9, %v14657_v9  ;;  %v5068_v34 = vsel %vm526_vm2, %v4984_v38, 0.0 }
 0x74c   :  { %v5061_v11 = vadd.f32 %v5060_v25, %v5059_v42  ;;  %v14671_v25 = vsub.f32 %v14368_v28, %v14507_v4  ;;  %v14685_v28 = vsub.f32 %v14385_v26, %v14507_v4  ;;  %v14699_v26 = vsub.f32 %v14408_v55, %v14507_v4 }
 0x74d   :  { %v4986_v8 = vmul.f32 %v14664_v53, %v14664_v53  ;;  %v5070_v0 = vsel %vm526_vm2, %v4985_v61, 0.0  ;;  %v14713_v55 = vsub.f32 %v14425_v6, %v14507_v4  ;;  %v14727_v6 = vsub.f32 %v14436_v48, %v14507_v4 }
 0x74e   :  { %v5063_v37 = vadd.f32 %v5062_v39, %v5061_v11  ;;  %v14678_v39 = vsub.f32 %v14378_v18, %v14507_v4  ;;  %v14692_v18 = vsub.f32 %v14397_v33, %v14507_v4  ;;  %v14706_v33 = vsub.f32 %v14415_v54, %v14507_v4 }
 0x74f   :  { %v5072_v38 = vsel %vm526_vm2, %v4986_v8, 0.0  ;;  %v14720_v54 = vsub.f32 %v14429_v50, %v14507_v4  ;;  %v14734_v50 = vsub.f32 %v14066_v1, %v14507_v4  ;;  %v14741_v48 = vsub.f32 %v14069_v57, %v14507_v4 }
 0x750   :  { %v5065_v42 = vadd.f32 %v5064_v52, %v5063_v37  ;;  %v4987_v52 = vmul.f32 %v14671_v25, %v14671_v25  ;;  %v14748_v1 = vsub.f32 %v14072_v10, %v14507_v4  ;;  %v14755_v57 = vsub.f32 %v14075_v19, %v14507_v4 }
 0x751   :  { %v14762_v10 = vsub.f32 %v14078_v63, %v14507_v4  ;;  %v14769_v19 = vsub.f32 %v14081_v30, %v14507_v4  ;;  %v14776_v63 = vsub.f32 %v14084_v13, %v14507_v4  ;;  %v14783_v30 = vsub.f32 %v14087_v43, %v14507_v4 }
 0x752   :  { %v5067_v11 = vadd.f32 %v5066_v41, %v5065_v42  ;;  %v4988_v41 = vmul.f32 %v14678_v39, %v14678_v39  ;;  %v5074_v61 = vsel %vm526_vm2, %v4987_v52, 0.0  ;;  %v14790_v13 = vsub.f32 %v14090_v46, %v14507_v4 }
 0x753   :  { %v14797_v43 = vsub.f32 %v14093_v16, %v14507_v4  ;;  %v14804_v46 = vsub.f32 %v14096_v12, %v14507_v4  ;;  %v14811_v16 = vsub.f32 %v14099_v36, %v14507_v4  ;;  %v14818_v12 = vsub.f32 %v14102_v35, %v14507_v4 }
 0x754   :  { %v5069_v37 = vadd.f32 %v5068_v34, %v5067_v11  ;;  %v4989_v34 = vmul.f32 %v14685_v28, %v14685_v28  ;;  %v5076_v8 = vsel %vm526_vm2, %v4988_v41, 0.0  ;;  %v14825_v36 = vsub.f32 %v14105_v62, %v14507_v4 }
 0x755   :  { %v14832_v35 = vsub.f32 %v14108_v15, %v14507_v4  ;;  %v14839_v62 = vsub.f32 %v14111_v29, %v14507_v4  ;;  %v14846_v15 = vsub.f32 %v14114_v3, %v14507_v4  ;;  %v14853_v29 = vsub.f32 %v14117_v31, %v14507_v4 }
 0x756   :  { %v5071_v42 = vadd.f32 %v5070_v0, %v5069_v37  ;;  %v4990_v0 = vmul.f32 %v14692_v18, %v14692_v18  ;;  %v5078_v52 = vsel %vm526_vm2, %v4989_v34, 0.0  ;;  %v14860_v3 = vsub.f32 %v14120_v51, %v14507_v4 }
 0x757   :  { %v14867_v31 = vsub.f32 %v14123_v17, %v14507_v4  ;;  %v14874_v51 = vsub.f32 %v14126_v7, %v14507_v4  ;;  %v14881_v17 = vsub.f32 %v14129_v27, %v14507_v4  ;;  %v14888_v7 = vsub.f32 %v14132_v59, %v14507_v4 }
 0x758   :  { %v5073_v11 = vadd.f32 %v5072_v38, %v5071_v42  ;;  %v4991_v38 = vmul.f32 %v14699_v26, %v14699_v26  ;;  %v5080_v41 = vsel %vm526_vm2, %v4990_v0, 0.0  ;;  %v14895_v27 = vsub.f32 %v14135_v20, %v14507_v4 }
 0x759   :  { %v14902_v59 = vsub.f32 %v14138_v58, %v14507_v4  ;;  %v14909_v20 = vsub.f32 %v14141_v23, %v14507_v4  ;;  %v14916_v58 = vsub.f32 %v14144_v56, %v14507_v4  ;;  %v14923_v23 = vsub.f32 %v14147_v60, %v14507_v4 }
 0x75a   :  { %v5075_v37 = vadd.f32 %v5074_v61, %v5073_v11  ;;  %v4992_v61 = vmul.f32 %v14706_v33, %v14706_v33  ;;  %v5082_v34 = vsel %vm526_vm2, %v4991_v38, 0.0  ;;  %v14930_v56 = vsub.f32 %v14150_v49, %v14507_v4 }
 0x75b   :  { %18843 = vst [vmem:[#allocation95_spill] sm:$0xff] %v14902_v59  ;;  %v14937_v60 = vsub.f32 %v14153_v22, %v14507_v4  ;;  %v14944_v49 = vsub.f32 %v14156_v5, %v14507_v4 }
 0x75c   :  { %v5077_v42 = vadd.f32 %v5076_v8, %v5075_v37  ;;  %v4993_v8 = vmul.f32 %v14713_v55, %v14713_v55  ;;  %v5084_v0 = vsel %vm526_vm2, %v4992_v61, 0.0  ;;  %18844 = vst [vmem:[#allocation130_spill] sm:$0xff] %v14909_v20 }
 0x75d   :  { %18845 = vst [vmem:[#allocation131_spill] sm:$0xff] %v14916_v58  ;;  %v5025_v22 = vmul.f32 %v14937_v60, %v14937_v60 }
 0x75e   :  { %v5079_v11 = vadd.f32 %v5078_v52, %v5077_v42  ;;  %v4994_v52 = vmul.f32 %v14720_v54, %v14720_v54  ;;  %v5086_v38 = vsel %vm526_vm2, %v4993_v8, 0.0  ;;  %18846 = vst [vmem:[#allocation50_spill] sm:$0xff] %v14923_v23 }
 0x75f   :  { %18847 = vst [vmem:[#allocation132_spill] sm:$0xff] %v14930_v56  ;;  %v5150_v5 = vsel %vm526_vm2, %v5025_v22, 0.0 }
 0x760   :  { %v5081_v37 = vadd.f32 %v5080_v41, %v5079_v11  ;;  %v4995_v41 = vmul.f32 %v14727_v6, %v14727_v6  ;;  %v5088_v61 = vsel %vm526_vm2, %v4994_v52, 0.0  ;;  %18848 = vst [vmem:[#allocation52_spill] sm:$0xff] %v14937_v60 }
 0x761   :  { %18849 = vst [vmem:[#allocation133_spill] sm:$0xff] %v14944_v49 }
 0x762   :  { %v5083_v42 = vadd.f32 %v5082_v34, %v5081_v37  ;;  %v4996_v34 = vmul.f32 %v14734_v50, %v14734_v50  ;;  %v5090_v8 = vsel %vm526_vm2, %v4995_v41, 0.0 }
 0x764   :  { %v5085_v11 = vadd.f32 %v5084_v0, %v5083_v42  ;;  %v4997_v0 = vmul.f32 %v14741_v48, %v14741_v48  ;;  %v5092_v52 = vsel %vm526_vm2, %v4996_v34, 0.0 }
 0x766   :  { %v5087_v37 = vadd.f32 %v5086_v38, %v5085_v11  ;;  %v4998_v38 = vmul.f32 %v14748_v1, %v14748_v1  ;;  %v5094_v41 = vsel %vm526_vm2, %v4997_v0, 0.0 }
 0x768   :  { %v5089_v42 = vadd.f32 %v5088_v61, %v5087_v37  ;;  %v4999_v61 = vmul.f32 %v14755_v57, %v14755_v57  ;;  %v5096_v34 = vsel %vm526_vm2, %v4998_v38, 0.0 }
 0x76a   :  { %v5091_v11 = vadd.f32 %v5090_v8, %v5089_v42  ;;  %v5000_v8 = vmul.f32 %v14762_v10, %v14762_v10  ;;  %v5098_v0 = vsel %vm526_vm2, %v4999_v61, 0.0 }
 0x76c   :  { %v5093_v37 = vadd.f32 %v5092_v52, %v5091_v11  ;;  %v5001_v52 = vmul.f32 %v14769_v19, %v14769_v19  ;;  %v5100_v38 = vsel %vm526_vm2, %v5000_v8, 0.0 }
 0x76e   :  { %v5095_v42 = vadd.f32 %v5094_v41, %v5093_v37  ;;  %v5002_v41 = vmul.f32 %v14776_v63, %v14776_v63  ;;  %v5102_v61 = vsel %vm526_vm2, %v5001_v52, 0.0 }
 0x770   :  { %v5097_v11 = vadd.f32 %v5096_v34, %v5095_v42  ;;  %v5003_v34 = vmul.f32 %v14783_v30, %v14783_v30  ;;  %v5104_v8 = vsel %vm526_vm2, %v5002_v41, 0.0 }
 0x772   :  { %v5099_v37 = vadd.f32 %v5098_v0, %v5097_v11  ;;  %v5004_v0 = vmul.f32 %v14790_v13, %v14790_v13  ;;  %v5106_v52 = vsel %vm526_vm2, %v5003_v34, 0.0 }
 0x774   :  { %v5101_v42 = vadd.f32 %v5100_v38, %v5099_v37  ;;  %v5005_v38 = vmul.f32 %v14797_v43, %v14797_v43  ;;  %v5108_v41 = vsel %vm526_vm2, %v5004_v0, 0.0 }
 0x776   :  { %v5103_v11 = vadd.f32 %v5102_v61, %v5101_v42  ;;  %v5006_v61 = vmul.f32 %v14804_v46, %v14804_v46  ;;  %v5110_v34 = vsel %vm526_vm2, %v5005_v38, 0.0 }
 0x778   :  { %v5105_v37 = vadd.f32 %v5104_v8, %v5103_v11  ;;  %v5007_v8 = vmul.f32 %v14811_v16, %v14811_v16  ;;  %v5112_v0 = vsel %vm526_vm2, %v5006_v61, 0.0 }
 0x77a   :  { %v5107_v42 = vadd.f32 %v5106_v52, %v5105_v37  ;;  %v5008_v52 = vmul.f32 %v14818_v12, %v14818_v12  ;;  %v5114_v38 = vsel %vm526_vm2, %v5007_v8, 0.0 }
 0x77c   :  { %v5109_v11 = vadd.f32 %v5108_v41, %v5107_v42  ;;  %v5009_v41 = vmul.f32 %v14825_v36, %v14825_v36  ;;  %v5116_v61 = vsel %vm526_vm2, %v5008_v52, 0.0 }
 0x77e   :  { %v5111_v37 = vadd.f32 %v5110_v34, %v5109_v11  ;;  %v5010_v34 = vmul.f32 %v14832_v35, %v14832_v35  ;;  %v5118_v8 = vsel %vm526_vm2, %v5009_v41, 0.0 }
 0x780   :  { %v5113_v42 = vadd.f32 %v5112_v0, %v5111_v37  ;;  %v5011_v0 = vmul.f32 %v14839_v62, %v14839_v62  ;;  %v5120_v52 = vsel %vm526_vm2, %v5010_v34, 0.0 }
 0x782   :  { %v5115_v11 = vadd.f32 %v5114_v38, %v5113_v42  ;;  %v5012_v38 = vmul.f32 %v14846_v15, %v14846_v15  ;;  %v5122_v41 = vsel %vm526_vm2, %v5011_v0, 0.0 }
 0x784   :  { %v5117_v37 = vadd.f32 %v5116_v61, %v5115_v11  ;;  %v5013_v61 = vmul.f32 %v14853_v29, %v14853_v29  ;;  %v5124_v34 = vsel %vm526_vm2, %v5012_v38, 0.0 }
 0x786   :  { %v5119_v42 = vadd.f32 %v5118_v8, %v5117_v37  ;;  %v5014_v8 = vmul.f32 %v14860_v3, %v14860_v3  ;;  %v5126_v0 = vsel %vm526_vm2, %v5013_v61, 0.0 }
 0x788   :  { %v5121_v11 = vadd.f32 %v5120_v52, %v5119_v42  ;;  %v5015_v52 = vmul.f32 %v14867_v31, %v14867_v31  ;;  %v5128_v38 = vsel %vm526_vm2, %v5014_v8, 0.0 }
 0x78a   :  { %v5123_v37 = vadd.f32 %v5122_v41, %v5121_v11  ;;  %v5016_v41 = vmul.f32 %v14874_v51, %v14874_v51  ;;  %v5130_v61 = vsel %vm526_vm2, %v5015_v52, 0.0 }
 0x78c   :  { %v5125_v42 = vadd.f32 %v5124_v34, %v5123_v37  ;;  %v5017_v34 = vmul.f32 %v14881_v17, %v14881_v17  ;;  %v5132_v8 = vsel %vm526_vm2, %v5016_v41, 0.0 }
 0x78e   :  { %v5127_v11 = vadd.f32 %v5126_v0, %v5125_v42  ;;  %v5018_v0 = vmul.f32 %v14888_v7, %v14888_v7  ;;  %v5134_v52 = vsel %vm526_vm2, %v5017_v34, 0.0 }
 0x790   :  { %v5129_v37 = vadd.f32 %v5128_v38, %v5127_v11  ;;  %v5019_v38 = vmul.f32 %v14895_v27, %v14895_v27  ;;  %v5136_v41 = vsel %vm526_vm2, %v5018_v0, 0.0 }
 0x792   :  { %v5131_v42 = vadd.f32 %v5130_v61, %v5129_v37  ;;  %v5020_v61 = vmul.f32 %v14902_v59, %v14902_v59  ;;  %v5138_v34 = vsel %vm526_vm2, %v5019_v38, 0.0 }
 0x794   :  { %v5133_v11 = vadd.f32 %v5132_v8, %v5131_v42  ;;  %v5021_v8 = vmul.f32 %v14909_v20, %v14909_v20  ;;  %v5140_v0 = vsel %vm526_vm2, %v5020_v61, 0.0 }
 0x796   :  { %v5135_v37 = vadd.f32 %v5134_v52, %v5133_v11  ;;  %v5022_v52 = vmul.f32 %v14916_v58, %v14916_v58  ;;  %v5142_v38 = vsel %vm526_vm2, %v5021_v8, 0.0  ;;  %v5026_v8 = vmul.f32 %v14944_v49, %v14944_v49 }
 0x798   :  { %v5137_v42 = vadd.f32 %v5136_v41, %v5135_v37  ;;  %v5023_v41 = vmul.f32 %v14923_v23, %v14923_v23  ;;  %v5144_v61 = vsel %vm526_vm2, %v5022_v52, 0.0 }
 0x79a   :  { %v5139_v11 = vadd.f32 %v5138_v34, %v5137_v42  ;;  %v5024_v34 = vmul.f32 %v14930_v56, %v14930_v56  ;;  %v5152_v56 = vsel %vm526_vm2, %v5026_v8, 0.0  ;;  %v18850_v8 = vld [vmem:[#allocation55_spill] sm:$0xff] }
 0x79c   :  { %v5141_v37 = vadd.f32 %v5140_v0, %v5139_v11  ;;  %v5146_v0 = vsel %vm526_vm2, %v5023_v41, 0.0 }
 0x79e   :  { %v5143_v42 = vadd.f32 %v5142_v38, %v5141_v37  ;;  %v5148_v37 = vsel %vm526_vm2, %v5024_v34, 0.0 }
 0x7a0   :  { %v5145_v11 = vadd.f32 %v5144_v61, %v5143_v42 }
 0x7a2   :  { %v5147_v58 = vadd.f32 %v5146_v0, %v5145_v11 }
 0x7a4   :  { %v5149_v38 = vadd.f32 %v5148_v37, %v5147_v58 }
 0x7a6   :  { %v5151_v4 = vadd.f32 %v5150_v5, %v5149_v38  ;;  %v18851_v38 = vld [vmem:[#allocation67_spill] sm:$0xff] }
 0x7a7   :  { %v18852_v5 = vld [vmem:[#allocation191_spill] sm:$0xff] }
 0x7a8   :  { %v5153_v23 = vadd.f32 %v5152_v56, %v5151_v4  ;;  %v18853_v4 = vld [vmem:[#allocation60_spill] sm:$0xff] }
 0x7aa   :  { %v5154_v52 = vrot.slane %v5153_v23, 4 }
 0x7ac   :  { %v5155_v42 = vadd.f32 %v5154_v52, %v5153_v23  ;;  %v18854_v52 = vld [vmem:[#allocation16_spill] sm:$0xff] }
 0x7ae   :  { %v5156_v61 = vrot.slane %v5155_v42, 2 }
 0x7b0   :  { %v5157_v20 = vadd.f32 %v5156_v61, %v5155_v42  ;;  %v18855_v42 = vld [vmem:[#allocation125_spill] sm:$0xff] }
 0x7b2   :  { %v5158_v60 = vrot.slane %v5157_v20, 1 }
 0x7b4   :  { %v5159_v59 = vadd.f32 %v5158_v60, %v5157_v20 }
 0x7b6   :  { %v5160_v41 = vmul.f32 %v5159_v59, %v18804_v21 }
 0x7b8   :  { %v5161_v11 = vadd.f32 1e-05, %v5160_v41  ;;  %v18856_v41 = vld [vmem:[#allocation122_spill] sm:$0xff] }
 0x7ba   :  { %6285 = vrsqrt.f32 %v5161_v11  ;;  %vm5168_vm11 = vweird.f32 %v5161_v11 }
 0x7c0   :  { %v6286_v0 = vpop.eup %6285 }
 0x7c1   :  { %v5163_v49 = vmul.f32 %v6286_v0, %v5161_v11  ;;  %vm5169_vm10 = vweird.f32 %v6286_v0 }
 0x7c2   :  { %vm5170_vm12 = vmor %vm5168_vm11, %vm5169_vm10 }
 0x7c3   :  { %v5164_v34 = vmul.f32 %v6286_v0, %v5163_v49 }
 0x7c5   :  { %v5165_v58 = vmul.f32 0.5, %v5164_v34 }
 0x7c7   :  { %v5166_v37 = vsub.f32 1.5, %v5165_v58  ;;  %v18858_v58 = vld [vmem:[#allocation71_spill] sm:$0xff] }
 0x7c9   :  { %v5167_v22 = vmul.f32 %v6286_v0, %v5166_v37 }
 0x7cb   :  { %v14958_v56 = vsel %vm5170_vm12, %v6286_v0, %v5167_v22  ;;  %v18857_v0 = vld [vmem:[#allocation166_spill] sm:$0xff]  ;;  %v18859_v22 = vld [vmem:[#allocation85_spill] sm:$0xff] }
 0x7cc   :  { %v14962_v23 = vmul.f32 %v14958_v56, %v14511_v32  ;;  %v14966_v59 = vmul.f32 %v14958_v56, %v14515_v44  ;;  %v14970_v20 = vmul.f32 %v14958_v56, %v14519_v14  ;;  %v14974_v60 = vmul.f32 %v14958_v56, %v14523_v45 }
 0x7cd   :  { %v14978_v49 = vmul.f32 %v14958_v56, %v14531_v2  ;;  %v14982_v32 = vmul.f32 %v14958_v56, %v14537_v47  ;;  %v14986_v44 = vmul.f32 %v14958_v56, %v18850_v8  ;;  %v14990_v14 = vmul.f32 %v14958_v56, %v18851_v38  ;;  %v18860_v38 = vld [vmem:[#allocation106_spill] sm:$0xff] }
 0x7ce   :  { %v14994_v45 = vmul.f32 %v14958_v56, %v18852_v5  ;;  %v14998_v2 = vmul.f32 %v14958_v56, %v18853_v4  ;;  %v15002_v47 = vmul.f32 %v14958_v56, %v18854_v52  ;;  %v15006_v61 = vmul.f32 %v14958_v56, %v18855_v42  ;;  %v18861_v4 = vld [vmem:[#allocation116_spill] sm:$0xff]  ;;  %v18862_v42 = vld [vmem:[#allocation115_spill] sm:$0xff] }
 0x7cf   :  { %v15010_v11 = vmul.f32 %v14958_v56, %v18856_v41  ;;  %v15014_v34 = vmul.f32 %v14958_v56, %v18857_v0  ;;  %v15018_v37 = vmul.f32 %v14958_v56, %v18858_v58  ;;  %v15022_v8 = vmul.f32 %v14958_v56, %v18859_v22  ;;  %v18863_v0 = vld [vmem:[#allocation118_spill] sm:$0xff] }
 0x7d0   :  { %v15026_v5 = vmul.f32 %v14958_v56, %v18860_v38  ;;  %v15030_v52 = vmul.f32 %v14958_v56, %v18861_v4  ;;  %v15034_v41 = vmul.f32 %v14958_v56, %v18862_v42  ;;  %v15038_v58 = vmul.f32 %v14958_v56, %v18863_v0 }
 0x7d1   :  { %v15042_v22 = vmul.f32 %v14958_v56, %v14643_v24  ;;  %v15046_v38 = vmul.f32 %v14958_v56, %v14650_v40  ;;  %v15050_v4 = vmul.f32 %v14958_v56, %v14657_v9  ;;  %v15054_v42 = vmul.f32 %v14958_v56, %v14664_v53 }
 0x7d2   :  { %v15058_v0 = vmul.f32 %v14958_v56, %v14671_v25  ;;  %v15062_v24 = vmul.f32 %v14958_v56, %v14678_v39  ;;  %v15066_v40 = vmul.f32 %v14958_v56, %v14685_v28  ;;  %v15070_v9 = vmul.f32 %v14958_v56, %v14692_v18 }
 0x7d3   :  { %v15074_v53 = vmul.f32 %v14958_v56, %v14699_v26  ;;  %v15078_v25 = vmul.f32 %v14958_v56, %v14706_v33  ;;  %v15082_v39 = vmul.f32 %v14958_v56, %v14713_v55  ;;  %v15086_v28 = vmul.f32 %v14958_v56, %v14720_v54 }
 0x7d4   :  { %v15090_v18 = vmul.f32 %v14958_v56, %v14727_v6  ;;  %v15094_v26 = vmul.f32 %v14958_v56, %v14734_v50  ;;  %v15098_v33 = vmul.f32 %v14958_v56, %v14741_v48  ;;  %v15102_v55 = vmul.f32 %v14958_v56, %v14748_v1 }
 0x7d5   :  { %v15106_v54 = vmul.f32 %v14958_v56, %v14755_v57  ;;  %v15110_v6 = vmul.f32 %v14958_v56, %v14762_v10  ;;  %v15114_v50 = vmul.f32 %v14958_v56, %v14769_v19  ;;  %v15118_v48 = vmul.f32 %v14958_v56, %v14776_v63 }
 0x7d6   :  { %v15122_v1 = vmul.f32 %v14958_v56, %v14783_v30  ;;  %v15126_v57 = vmul.f32 %v14958_v56, %v14790_v13  ;;  %v15130_v10 = vmul.f32 %v14958_v56, %v14797_v43  ;;  %v15134_v19 = vmul.f32 %v14958_v56, %v14804_v46  ;;  %v15147_v13 = vld [vmem:[%s16262_s6] ss:$0 sm:$0xff] }
 0x7d7   :  { %v15138_v63 = vmul.f32 %v14958_v56, %v14811_v16  ;;  %v15142_v30 = vmul.f32 %v14958_v56, %v14818_v12  ;;  %v15151_v43 = vmul.f32 %v14958_v56, %v14825_v36  ;;  %v15155_v46 = vmul.f32 %v14958_v56, %v14832_v35 }
 0x7d8   :  { %v15159_v16 = vmul.f32 %v14958_v56, %v14839_v62  ;;  %v15163_v12 = vmul.f32 %v14958_v56, %v14846_v15  ;;  %v15167_v21 = vmul.f32 %v14958_v56, %v14853_v29  ;;  %v15171_v36 = vmul.f32 %v14958_v56, %v14860_v3 }
 0x7d9   :  { %v15175_v35 = vmul.f32 %v14958_v56, %v14867_v31  ;;  %v15179_v62 = vmul.f32 %v14958_v56, %v14874_v51  ;;  %v15183_v15 = vmul.f32 %v14958_v56, %v14881_v17  ;;  %v15187_v29 = vmul.f32 %v14958_v56, %v14888_v7 }
 0x7da   :  { %18864 = vst [vmem:[#allocation141_spill] sm:$0xff] %v15171_v36  ;;  %v15191_v3 = vmul.f32 %v14958_v56, %v14895_v27  ;;  %v18870_v36 = vld [vmem:[#allocation95_spill] sm:$0xff] }
 0x7db   :  { %18865 = vst [vmem:[#allocation57_spill] sm:$0xff] %v15175_v35  ;;  %v15195_v31 = vmul.f32 %v14958_v56, %v18870_v36  ;;  %v18872_v35 = vld [vmem:[#allocation130_spill] sm:$0xff] }
 0x7dc   :  { %18866 = vst [vmem:[#allocation80_spill] sm:$0xff] %v15179_v62  ;;  %v15199_v51 = vmul.f32 %v14958_v56, %v18872_v35  ;;  %v18873_v62 = vld [vmem:[#allocation131_spill] sm:$0xff] }
 0x7dd   :  { %18867 = vst [vmem:[#allocation58_spill] sm:$0xff] %v15183_v15  ;;  %v15203_v17 = vmul.f32 %v14958_v56, %v18873_v62  ;;  %v18875_v15 = vld [vmem:[#allocation50_spill] sm:$0xff]  ;;  %v5239_v62 = vmul.f32 %v15147_v13, %v14962_v23  ;;  %v15239_v23 = vmul.f32 %v15147_v13, %v14990_v14  ;;  %v15267_v14 = vmul.f32 %v15147_v13, %v15018_v37 }
 0x7de   :  { %18868 = vst [vmem:[#allocation192_spill] sm:$0xff] %v15187_v29  ;;  %v15207_v7 = vmul.f32 %v14958_v56, %v18875_v15  ;;  %v18876_v29 = vld [vmem:[#allocation132_spill] sm:$0xff]  ;;  %v5241_v15 = vmul.f32 %v15147_v13, %v14970_v20  ;;  %v15247_v20 = vmul.f32 %v15147_v13, %v14998_v2  ;;  %v15275_v2 = vmul.f32 %v15147_v13, %v15026_v5 }
 0x7df   :  { %18869 = vst [vmem:[#allocation193_spill] sm:$0xff] %v15191_v3  ;;  %v15211_v27 = vmul.f32 %v14958_v56, %v18876_v29  ;;  %v18877_v3 = vld [vmem:[#allocation52_spill] sm:$0xff]  ;;  %v5242_v29 = vmul.f32 %v15147_v13, %v14974_v60  ;;  %v15251_v60 = vmul.f32 %v15147_v13, %v15002_v47  ;;  %v15279_v47 = vmul.f32 %v15147_v13, %v15030_v52 }
 0x7e0   :  { %18871 = vst [vmem:[#allocation48_spill] sm:$0xff] %v15195_v31  ;;  %v15215_v36 = vmul.f32 %v14958_v56, %v18877_v3  ;;  %v18879_v31 = vld [vmem:[#allocation133_spill] sm:$0xff]  ;;  %v5243_v3 = vmul.f32 %v15147_v13, %v14978_v49  ;;  %v15255_v49 = vmul.f32 %v15147_v13, %v15006_v61  ;;  %v15284_v61 = vld [vmem:[%s16263_s7] ss:$0 sm:$0xff]  ;;  %v15296_v37 = vmul.f32 %v15147_v13, %v15042_v22 }
 0x7e1   :  { %18874 = vst [vmem:[#allocation194_spill] sm:$0xff] %v15203_v17  ;;  %v15219_v35 = vmul.f32 %v14958_v56, %v18879_v31  ;;  %v5240_v17 = vmul.f32 %v15147_v13, %v14966_v59  ;;  %v15235_v56 = vmul.f32 %v15147_v13, %v14986_v44  ;;  %v15243_v59 = vmul.f32 %v15147_v13, %v14994_v45 }
 0x7e2   :  { %18878 = vst [vmem:[#allocation90_spill] sm:$0xff] %v15215_v36  ;;  %v5244_v36 = vmul.f32 %v15147_v13, %v14982_v32  ;;  %v15259_v32 = vmul.f32 %v15147_v13, %v15010_v11  ;;  %v15263_v44 = vmul.f32 %v15147_v13, %v15014_v34  ;;  %v15271_v45 = vmul.f32 %v15147_v13, %v15022_v8 }
 0x7e3   :  { %18880 = vst [vmem:[#allocation56_spill] sm:$0xff] %v15219_v35  ;;  %v15288_v11 = vmul.f32 %v15147_v13, %v15034_v41  ;;  %v15292_v34 = vmul.f32 %v15147_v13, %v15038_v58  ;;  %v15300_v8 = vmul.f32 %v15147_v13, %v15046_v38  ;;  %v15304_v5 = vmul.f32 %v15147_v13, %v15050_v4  ;;  %v18891_v35 = vld [vmem:[#allocation57_spill] sm:$0xff] }
 0x7e4   :  { %v15308_v52 = vmul.f32 %v15147_v13, %v15054_v42  ;;  %v15312_v41 = vmul.f32 %v15147_v13, %v15058_v0  ;;  %v15316_v58 = vmul.f32 %v15147_v13, %v15062_v24  ;;  %v15320_v22 = vmul.f32 %v15147_v13, %v15066_v40 }
 0x7e5   :  { %v15324_v38 = vmul.f32 %v15147_v13, %v15070_v9  ;;  %v15328_v4 = vmul.f32 %v15147_v13, %v15074_v53  ;;  %v15332_v42 = vmul.f32 %v15147_v13, %v15078_v25  ;;  %v15336_v0 = vmul.f32 %v15147_v13, %v15082_v39 }
 0x7e6   :  { %v15340_v24 = vmul.f32 %v15147_v13, %v15086_v28  ;;  %v5271_v40 = vmul.f32 %v15147_v13, %v15090_v18  ;;  %v5272_v9 = vmul.f32 %v15147_v13, %v15094_v26  ;;  %v5273_v53 = vmul.f32 %v15147_v13, %v15098_v33 }
 0x7e7   :  { %18881 = vst [vmem:[#allocation27_spill] sm:$0xff] %v15324_v38  ;;  %v5274_v25 = vmul.f32 %v15147_v13, %v15102_v55  ;;  %v15351_v31 = vadd.f32 %v15284_v61, %v5239_v62  ;;  %v15354_v39 = vadd.f32 %v15284_v61, %v5240_v17  ;;  %v5275_v28 = vmul.f32 %v15147_v13, %v15106_v54  ;;  %v18899_v38 = vld [vmem:[#allocation48_spill] sm:$0xff] }
 0x7e8   :  { %18882 = vst [vmem:[#allocation28_spill] sm:$0xff] %v15328_v4  ;;  %v5276_v18 = vmul.f32 %v15147_v13, %v15110_v6  ;;  %v15362_v26 = vmul.f32 %v15147_v13, %v15114_v50  ;;  %v15366_v33 = vmul.f32 %v15147_v13, %v15118_v48  ;;  %v15370_v55 = vmul.f32 %v15147_v13, %v15122_v1  ;;  %v18898_v4 = vld [vmem:[#allocation193_spill] sm:$0xff] }
 0x7e9   :  { %18883 = vst [vmem:[#allocation134_spill] sm:$0xff] %v15332_v42  ;;  %v15374_v17 = vmul.f32 %v15147_v13, %v15126_v57  ;;  %v15378_v54 = vmul.f32 %v15147_v13, %v15130_v10  ;;  %v15381_v6 = vadd.f32 %v15284_v61, %v5241_v15  ;;  %v15385_v50 = vmul.f32 %v15147_v13, %v15134_v19  ;;  %v18896_v42 = vld [vmem:[#allocation192_spill] sm:$0xff] }
 0x7ea   :  { %18884 = vst [vmem:[#allocation19_spill] sm:$0xff] %v15336_v0  ;;  %v15389_v48 = vmul.f32 %v15147_v13, %v15138_v63  ;;  %v15393_v1 = vmul.f32 %v15147_v13, %v15142_v30  ;;  %v15397_v57 = vmul.f32 %v15147_v13, %v15151_v43  ;;  %v15401_v10 = vmul.f32 %v15147_v13, %v15155_v46  ;;  %v18890_v46 = vld [vmem:[#allocation141_spill] sm:$0xff]  ;;  %v18892_v63 = vld [vmem:[#allocation80_spill] sm:$0xff]  ;;  %v18894_v0 = vld [vmem:[#allocation58_spill] sm:$0xff] }
 0x7eb   :  { %18885 = vst [vmem:[#allocation195_spill] sm:$0xff] %v15340_v24  ;;  %v15404_v62 = vadd.f32 %v15284_v61, %v5242_v29  ;;  %v15410_v15 = vmul.f32 %v15147_v13, %v15159_v16  ;;  %v15414_v30 = vmul.f32 %v15147_v13, %v15163_v12  ;;  %v15418_v43 = vmul.f32 %v15147_v13, %v15167_v21  ;;  %v18905_v12 = vld [vmem:[#allocation194_spill] sm:$0xff] }
 0x7ec   :  { %18886 = vst [vmem:[#allocation165_spill] sm:$0xff] %v15351_v31  ;;  %v15422_v29 = vmul.f32 %v15147_v13, %v18890_v46  ;;  %v15426_v19 = vmul.f32 %v15147_v13, %v18891_v35  ;;  %v15430_v16 = vmul.f32 %v15147_v13, %v18892_v63  ;;  %v15433_v24 = vadd.f32 %v15284_v61, %v5243_v3 }
 0x7ed   :  { %18887 = vst [vmem:[#allocation196_spill] sm:$0xff] %v15354_v39  ;;  %v15438_v21 = vmul.f32 %v15147_v13, %v18894_v0  ;;  %v15442_v46 = vmul.f32 %v15147_v13, %v18896_v42  ;;  %v15446_v35 = vmul.f32 %v15147_v13, %v18898_v4  ;;  %v15450_v63 = vmul.f32 %v15147_v13, %v18899_v38 }
 0x7ee   :  { %18888 = vst [vmem:[#allocation34_spill] sm:$0xff] %v15381_v6  ;;  %v15453_v3 = vadd.f32 %v15284_v61, %v5244_v36  ;;  %v18901_v0 = vmax.f32 %v15351_v31, 0.0  ;;  %v18902_v42 = vmax.f32 %v15354_v39, 0.0  ;;  %v15464_v4 = vmul.f32 %v15147_v13, %v15199_v51 }
 0x7ef   :  { %18889 = vst [vmem:[#allocation42_spill] sm:$0xff] %v15404_v62  ;;  %v15467_v38 = vadd.f32 %v15284_v61, %v5271_v40  ;;  %v15470_v36 = vadd.f32 %v15284_v61, %v5272_v9  ;;  %v15474_v31 = vmul.f32 %v15147_v13, %v18905_v12  ;;  %v18906_v51 = vmax.f32 %v15381_v6, 0.0 }
 0x7f0   :  { %18893 = vst [vmem:[#allocation93_spill] sm:$0xff] %v15433_v24  ;;  %v15486_v40 = vmul.f32 %v15147_v13, %v15207_v7  ;;  %v15490_v9 = vmul.f32 %v15147_v13, %v15211_v27  ;;  %v15493_v12 = vadd.f32 %v15284_v61, %v5273_v53  ;;  %v18909_v7 = vmax.f32 %v15404_v62, 0.0 }
 0x7f1   :  { %18895 = vst [vmem:[#allocation197_spill] sm:$0xff] %v15438_v21  ;;  %v5434_v21 = vsel %vm526_vm2, %v18901_v0, 0.0  ;;  %v15478_v0 = vadd.f32 %v15284_v61, %v15235_v56  ;;  %v5437_v39 = vsel %vm526_vm2, %v18906_v51, 0.0  ;;  %v18908_v56 = vld [vmem:[#allocation90_spill] sm:$0xff]  ;;  %v15508_v27 = vadd.f32 %v15284_v61, %v5274_v25 }
 0x7f2   :  { %18897 = vst [vmem:[#allocation22_spill] sm:$0xff] %v15442_v46  ;;  %v5435_v46 = vsel %vm526_vm2, %v18902_v42, 0.0  ;;  %v15501_v42 = vadd.f32 %v15284_v61, %v15239_v23  ;;  %v5439_v6 = vsel %vm526_vm2, %v18909_v7, 0.0  ;;  %v15518_v23 = vadd.f32 %v15284_v61, %v15247_v20 }
 0x7f3   :  { %18900 = vst [vmem:[#allocation26_spill] sm:$0xff] %v15450_v63  ;;  %v5436_v63 = vadd.f32 %v5435_v46, %v5434_v21  ;;  %v15497_v46 = vmul.f32 %v15147_v13, %v18908_v56  ;;  %v15514_v56 = vadd.f32 %v15284_v61, %v15243_v59  ;;  %v18910_v7 = vmax.f32 %v15433_v24, 0.0 }
 0x7f4   :  { %18903 = vst [vmem:[#allocation17_spill] sm:$0xff] %v15467_v38  ;;  %v15526_v53 = vadd.f32 %v15284_v61, %v15251_v60  ;;  %v15534_v20 = vadd.f32 %v15284_v61, %v15255_v49  ;;  %v15537_v51 = vadd.f32 %v15284_v61, %v5276_v18  ;;  %v18912_v24 = vmax.f32 %v15467_v38, 0.0 }
 0x7f5   :  { %18904 = vst [vmem:[#allocation14_spill] sm:$0xff] %v15470_v36  ;;  %v5438_v21 = vadd.f32 %v5437_v39, %v5436_v63  ;;  %v5441_v25 = vsel %vm526_vm2, %v18910_v7, 0.0  ;;  %v18911_v7 = vmax.f32 %v15453_v3, 0.0  ;;  %v15552_v18 = vadd.f32 %v15284_v61, %v15259_v32 }
 0x7f6   :  { %18907 = vst [vmem:[#allocation144_spill] sm:$0xff] %v15493_v12  ;;  %v18914_v59 = vmax.f32 %v15478_v0, 0.0  ;;  %v15568_v32 = vadd.f32 %v15284_v61, %v15263_v44  ;;  %v15584_v44 = vadd.f32 %v15284_v61, %v15267_v14  ;;  %v15600_v14 = vadd.f32 %v15284_v61, %v15271_v45 }
 0x7f7   :  { %v5440_v63 = vadd.f32 %v5439_v6, %v5438_v21  ;;  %v15529_v6 = vadd.f32 %v15284_v61, %v5275_v28  ;;  %v5443_v60 = vsel %vm526_vm2, %v18911_v7, 0.0  ;;  %v15616_v45 = vadd.f32 %v15284_v61, %v15275_v2 }
 0x7f8   :  { %v5445_v7 = vsel %vm526_vm2, %v18914_v59, 0.0  ;;  %v18916_v59 = vmax.f32 %v15501_v42, 0.0  ;;  %v15632_v2 = vadd.f32 %v15284_v61, %v15279_v47  ;;  %v15648_v47 = vadd.f32 %v15284_v61, %v15288_v11 }
 0x7f9   :  { %v5442_v21 = vadd.f32 %v5441_v25, %v5440_v63  ;;  %v5503_v63 = vsel %vm526_vm2, %v18912_v24, 0.0  ;;  %v18913_v25 = vmax.f32 %v15470_v36, 0.0  ;;  %18922 = vst [vmem:[#allocation104_spill] sm:$0xff] %v15616_v45  ;;  %v15664_v11 = vadd.f32 %v15284_v61, %v15292_v34 }
 0x7fa   :  { %18925 = vst [vmem:[#allocation32_spill] sm:$0xff] %v15632_v2  ;;  %v15680_v34 = vadd.f32 %v15284_v61, %v15296_v37  ;;  %v15696_v37 = vadd.f32 %v15284_v61, %v15300_v8  ;;  %v15712_v8 = vadd.f32 %v15284_v61, %v15304_v5  ;;  %v15728_v5 = vadd.f32 %v15284_v61, %v15308_v52 }
 0x7fb   :  { %v5444_v28 = vadd.f32 %v5443_v60, %v5442_v21  ;;  %v5504_v49 = vsel %vm526_vm2, %v18913_v25, 0.0  ;;  %v15560_v21 = vadd.f32 %v15284_v61, %v15362_v26  ;;  %v18915_v25 = vmax.f32 %v15493_v12, 0.0 }
 0x7fc   :  { %v5505_v62 = vadd.f32 %v5504_v49, %v5503_v63  ;;  %v5447_v63 = vsel %vm526_vm2, %v18916_v59, 0.0  ;;  %v15576_v26 = vadd.f32 %v15284_v61, %v15366_v33  ;;  %v18918_v59 = vmax.f32 %v15514_v56, 0.0 }
 0x7fd   :  { %v5446_v60 = vadd.f32 %v5445_v7, %v5444_v28  ;;  %v5506_v38 = vsel %vm526_vm2, %v18915_v25, 0.0  ;;  %v18917_v25 = vmax.f32 %v15508_v27, 0.0  ;;  %v15592_v33 = vadd.f32 %v15284_v61, %v15370_v55 }
 0x7fe   :  { %v5507_v49 = vadd.f32 %v5506_v38, %v5505_v62  ;;  %v5449_v62 = vsel %vm526_vm2, %v18918_v59, 0.0  ;;  %v18920_v59 = vmax.f32 %v15518_v23, 0.0  ;;  %v15608_v55 = vadd.f32 %v15284_v61, %v15374_v17 }
 0x7ff   :  { %v5448_v7 = vadd.f32 %v5447_v63, %v5446_v60  ;;  %v5508_v24 = vsel %vm526_vm2, %v18917_v25, 0.0  ;;  %v18919_v25 = vmax.f32 %v15529_v6, 0.0  ;;  %v15624_v17 = vadd.f32 %v15284_v61, %v15378_v54 }
 0x800   :  { %v5509_v38 = vadd.f32 %v5508_v24, %v5507_v49  ;;  %v5451_v24 = vsel %vm526_vm2, %v18920_v59, 0.0  ;;  %v18923_v59 = vmax.f32 %v15526_v53, 0.0  ;;  %v15640_v54 = vadd.f32 %v15284_v61, %v15385_v50 }
 0x801   :  { %v5450_v63 = vadd.f32 %v5449_v62, %v5448_v7  ;;  %v5510_v28 = vsel %vm526_vm2, %v18919_v25, 0.0  ;;  %v18921_v25 = vmax.f32 %v15537_v51, 0.0  ;;  %v15656_v50 = vadd.f32 %v15284_v61, %v15389_v48 }
 0x802   :  { %v5511_v49 = vadd.f32 %v5510_v28, %v5509_v38  ;;  %v5453_v28 = vsel %vm526_vm2, %v18923_v59, 0.0  ;;  %v18926_v59 = vmax.f32 %v15534_v20, 0.0  ;;  %v15672_v48 = vadd.f32 %v15284_v61, %v15393_v1 }
 0x803   :  { %v5452_v62 = vadd.f32 %v5451_v24, %v5450_v63  ;;  %v5512_v60 = vsel %vm526_vm2, %v18921_v25, 0.0  ;;  %v18924_v25 = vmax.f32 %v15560_v21, 0.0  ;;  %v15688_v1 = vadd.f32 %v15284_v61, %v15397_v57 }
 0x804   :  { %v5513_v38 = vadd.f32 %v5512_v60, %v5511_v49  ;;  %v5455_v60 = vsel %vm526_vm2, %v18926_v59, 0.0  ;;  %v18928_v59 = vmax.f32 %v15552_v18, 0.0  ;;  %v15704_v57 = vadd.f32 %v15284_v61, %v15401_v10 }
 0x805   :  { %v5454_v24 = vadd.f32 %v5453_v28, %v5452_v62  ;;  %v5514_v7 = vsel %vm526_vm2, %v18924_v25, 0.0  ;;  %v18927_v25 = vmax.f32 %v15576_v26, 0.0  ;;  %v15720_v10 = vadd.f32 %v15284_v61, %v15410_v15 }
 0x806   :  { %v5515_v49 = vadd.f32 %v5514_v7, %v5513_v38  ;;  %v5457_v7 = vsel %vm526_vm2, %v18928_v59, 0.0  ;;  %v18930_v59 = vmax.f32 %v15568_v32, 0.0  ;;  %v15736_v15 = vadd.f32 %v15284_v61, %v15414_v30 }
 0x807   :  { %v5456_v28 = vadd.f32 %v5455_v60, %v5454_v24  ;;  %v5516_v63 = vsel %vm526_vm2, %v18927_v25, 0.0  ;;  %v18929_v25 = vmax.f32 %v15592_v33, 0.0  ;;  %18937 = vst [vmem:[#allocation98_spill] sm:$0xff] %v15720_v10  ;;  %v15744_v52 = vadd.f32 %v15284_v61, %v15312_v41 }
 0x808   :  { %v5517_v38 = vadd.f32 %v5516_v63, %v5515_v49  ;;  %v5459_v63 = vsel %vm526_vm2, %v18930_v59, 0.0  ;;  %v18932_v59 = vmax.f32 %v15584_v44, 0.0  ;;  %18940 = vst [vmem:[#allocation198_spill] sm:$0xff] %v15736_v15  ;;  %v15752_v30 = vadd.f32 %v15284_v61, %v15418_v43 }
 0x809   :  { %v5458_v60 = vadd.f32 %v5457_v7, %v5456_v28  ;;  %v5518_v62 = vsel %vm526_vm2, %v18929_v25, 0.0  ;;  %v18931_v25 = vmax.f32 %v15608_v55, 0.0  ;;  %v15760_v41 = vadd.f32 %v15284_v61, %v15316_v58 }
 0x80a   :  { %v5519_v49 = vadd.f32 %v5518_v62, %v5517_v38  ;;  %v5461_v62 = vsel %vm526_vm2, %v18932_v59, 0.0  ;;  %v18934_v59 = vmax.f32 %v15600_v14, 0.0  ;;  %18943 = vst [vmem:[#allocation30_spill] sm:$0xff] %v15752_v30  ;;  %v15768_v43 = vadd.f32 %v15284_v61, %v15422_v29 }
 0x80b   :  { %v5460_v7 = vadd.f32 %v5459_v63, %v5458_v60  ;;  %v5520_v24 = vsel %vm526_vm2, %v18931_v25, 0.0  ;;  %v18933_v25 = vmax.f32 %v15624_v17, 0.0  ;;  %v15776_v58 = vadd.f32 %v15284_v61, %v15320_v22  ;;  %v18951_v22 = vld [vmem:[#allocation27_spill] sm:$0xff] }
 0x80c   :  { %v5521_v38 = vadd.f32 %v5520_v24, %v5519_v49  ;;  %v5463_v24 = vsel %vm526_vm2, %v18934_v59, 0.0  ;;  %v18936_v59 = vmax.f32 %v15616_v45, 0.0  ;;  %18946 = vst [vmem:[#allocation190_spill] sm:$0xff] %v15768_v43  ;;  %v15784_v29 = vadd.f32 %v15284_v61, %v15426_v19 }
 0x80d   :  { %v5462_v63 = vadd.f32 %v5461_v62, %v5460_v7  ;;  %v5522_v28 = vsel %vm526_vm2, %v18933_v25, 0.0  ;;  %v18935_v25 = vmax.f32 %v15640_v54, 0.0  ;;  %v15792_v45 = vadd.f32 %v15284_v61, %v18951_v22  ;;  %v18955_v22 = vld [vmem:[#allocation28_spill] sm:$0xff] }
 0x80e   :  { %v5523_v49 = vadd.f32 %v5522_v28, %v5521_v38  ;;  %v5465_v28 = vsel %vm526_vm2, %v18936_v59, 0.0  ;;  %v18939_v59 = vmax.f32 %v15632_v2, 0.0  ;;  %18949 = vst [vmem:[#allocation176_spill] sm:$0xff] %v15784_v29  ;;  %v15800_v19 = vadd.f32 %v15284_v61, %v15430_v16  ;;  %v18957_v16 = vld [vmem:[#allocation197_spill] sm:$0xff] }
 0x80f   :  { %v5464_v62 = vadd.f32 %v5463_v24, %v5462_v63  ;;  %v5524_v60 = vsel %vm526_vm2, %v18935_v25, 0.0  ;;  %v18938_v25 = vmax.f32 %v15656_v50, 0.0  ;;  %v15816_v36 = vadd.f32 %v15284_v61, %v18957_v16  ;;  %v18962_v16 = vld [vmem:[#allocation22_spill] sm:$0xff] }
 0x810   :  { %v5525_v38 = vadd.f32 %v5524_v60, %v5523_v49  ;;  %v5467_v60 = vsel %vm526_vm2, %v18939_v59, 0.0  ;;  %v18942_v59 = vmax.f32 %v15648_v47, 0.0  ;;  %18953 = vst [vmem:[#allocation178_spill] sm:$0xff] %v15800_v19  ;;  %v15832_v2 = vadd.f32 %v15284_v61, %v18962_v16 }
 0x811   :  { %v5466_v24 = vadd.f32 %v5465_v28, %v5464_v62  ;;  %v5526_v7 = vsel %vm526_vm2, %v18938_v25, 0.0  ;;  %v18941_v25 = vmax.f32 %v15672_v48, 0.0  ;;  %18958 = vst [vmem:[#allocation180_spill] sm:$0xff] %v15816_v36  ;;  %v15848_v16 = vadd.f32 %v15284_v61, %v15446_v35  ;;  %v18971_v35 = vld [vmem:[#allocation26_spill] sm:$0xff] }
 0x812   :  { %v5527_v49 = vadd.f32 %v5526_v7, %v5525_v38  ;;  %v5469_v7 = vsel %vm526_vm2, %v18942_v59, 0.0  ;;  %v18945_v59 = vmax.f32 %v15664_v11, 0.0  ;;  %18963 = vst [vmem:[#allocation72_spill] sm:$0xff] %v15832_v2  ;;  %v15864_v12 = vadd.f32 %v15284_v61, %v18971_v35 }
 0x813   :  { %v5468_v28 = vadd.f32 %v5467_v60, %v5466_v24  ;;  %v5528_v63 = vsel %vm526_vm2, %v18941_v25, 0.0  ;;  %v18944_v25 = vmax.f32 %v15688_v1, 0.0  ;;  %18967 = vst [vmem:[#allocation78_spill] sm:$0xff] %v15848_v16  ;;  %v18978_v39 = vmax.f32 %v15792_v45, 0.0 }
 0x814   :  { %v5529_v38 = vadd.f32 %v5528_v63, %v5527_v49  ;;  %v5471_v63 = vsel %vm526_vm2, %v18945_v59, 0.0  ;;  %v18948_v59 = vmax.f32 %v15680_v34, 0.0  ;;  %18972 = vst [vmem:[#allocation84_spill] sm:$0xff] %v15864_v12 }
 0x815   :  { %v5470_v60 = vadd.f32 %v5469_v7, %v5468_v28  ;;  %v5530_v62 = vsel %vm526_vm2, %v18944_v25, 0.0  ;;  %v18947_v25 = vmax.f32 %v15704_v57, 0.0 }
 0x816   :  { %v5531_v49 = vadd.f32 %v5530_v62, %v5529_v38  ;;  %v5473_v62 = vsel %vm526_vm2, %v18948_v59, 0.0  ;;  %v18952_v59 = vmax.f32 %v15696_v37, 0.0 }
 0x817   :  { %v5472_v7 = vadd.f32 %v5471_v63, %v5470_v60  ;;  %v5532_v24 = vsel %vm526_vm2, %v18947_v25, 0.0  ;;  %v18950_v25 = vmax.f32 %v15720_v10, 0.0  ;;  %v15808_v10 = vadd.f32 %v15284_v61, %v18955_v22  ;;  %v18960_v22 = vld [vmem:[#allocation134_spill] sm:$0xff] }
 0x818   :  { %v5533_v38 = vadd.f32 %v5532_v24, %v5531_v49  ;;  %v5475_v24 = vsel %vm526_vm2, %v18952_v59, 0.0  ;;  %v18956_v59 = vmax.f32 %v15712_v8, 0.0 }
 0x819   :  { %v5474_v63 = vadd.f32 %v5473_v62, %v5472_v7  ;;  %v5534_v28 = vsel %vm526_vm2, %v18950_v25, 0.0  ;;  %v18954_v25 = vmax.f32 %v15736_v15, 0.0  ;;  %v15824_v15 = vadd.f32 %v15284_v61, %v18960_v22  ;;  %v18965_v22 = vld [vmem:[#allocation19_spill] sm:$0xff] }
 0x81a   :  { %v5535_v49 = vadd.f32 %v5534_v28, %v5533_v38  ;;  %v5477_v28 = vsel %vm526_vm2, %v18956_v59, 0.0  ;;  %v18961_v59 = vmax.f32 %v15728_v5, 0.0 }
 0x81b   :  { %v5476_v62 = vadd.f32 %v5475_v24, %v5474_v63  ;;  %v5536_v60 = vsel %vm526_vm2, %v18954_v25, 0.0  ;;  %v18959_v25 = vmax.f32 %v15752_v30, 0.0  ;;  %v15840_v30 = vadd.f32 %v15284_v61, %v18965_v22  ;;  %v18969_v22 = vld [vmem:[#allocation195_spill] sm:$0xff] }
 0x81c   :  { %v5537_v38 = vadd.f32 %v5536_v60, %v5535_v49  ;;  %v5479_v60 = vsel %vm526_vm2, %v18961_v59, 0.0  ;;  %v18966_v59 = vmax.f32 %v15744_v52, 0.0 }
 0x81d   :  { %v5478_v24 = vadd.f32 %v5477_v28, %v5476_v62  ;;  %v5538_v7 = vsel %vm526_vm2, %v18959_v25, 0.0  ;;  %v18964_v25 = vmax.f32 %v15768_v43, 0.0  ;;  %v15856_v43 = vadd.f32 %v15284_v61, %v18969_v22 }
 0x81e   :  { %v5539_v49 = vadd.f32 %v5538_v7, %v5537_v38  ;;  %v5481_v7 = vsel %vm526_vm2, %v18966_v59, 0.0  ;;  %v18970_v59 = vmax.f32 %v15760_v41, 0.0  ;;  %v15872_v22 = vadd.f32 %v15284_v61, %v15464_v4 }
 0x81f   :  { %v5480_v28 = vadd.f32 %v5479_v60, %v5478_v24  ;;  %v5540_v63 = vsel %vm526_vm2, %v18964_v25, 0.0  ;;  %v18968_v25 = vmax.f32 %v15784_v29, 0.0 }
 0x820   :  { %v5541_v38 = vadd.f32 %v5540_v63, %v5539_v49  ;;  %v5483_v63 = vsel %vm526_vm2, %v18970_v59, 0.0  ;;  %18974 = vst [vmem:[#allocation89_spill] sm:$0xff] %v15872_v22  ;;  %v18975_v59 = vmax.f32 %v15776_v58, 0.0 }
 0x821   :  { %v5482_v60 = vadd.f32 %v5481_v7, %v5480_v28  ;;  %v5542_v62 = vsel %vm526_vm2, %v18968_v25, 0.0  ;;  %v18973_v25 = vmax.f32 %v15800_v19, 0.0  ;;  %v5487_v28 = vsel %vm526_vm2, %v18978_v39, 0.0 }
 0x822   :  { %v5543_v49 = vadd.f32 %v5542_v62, %v5541_v38  ;;  %v5485_v62 = vsel %vm526_vm2, %v18975_v59, 0.0  ;;  %v18980_v59 = vmax.f32 %v15832_v2, 0.0  ;;  %v6516_v39 = vmov 256.0  }
 0x823   :  { %v5484_v7 = vadd.f32 %v5483_v63, %v5482_v60  ;;  %v5544_v24 = vsel %vm526_vm2, %v18973_v25, 0.0  ;;  %v18976_v60 = vmax.f32 %v15816_v36, 0.0  ;;  %v15884_v25 = vadd.f32 %v15284_v61, %v15474_v31 }
 0x824   :  { %v5545_v38 = vadd.f32 %v5544_v24, %v5543_v49  ;;  %v15892_v24 = vadd.f32 %v15284_v61, %v15486_v40  ;;  %v16807_v49 = vmax.f32 %v15864_v12, 0.0  ;;  %6287 = vrcp.f32 %v6516_v39 }
 0x825   :  { %v5486_v29 = vadd.f32 %v5485_v62, %v5484_v7  ;;  %v5546_v63 = vsel %vm526_vm2, %v18976_v60, 0.0  ;;  %18977 = vst [vmem:[#allocation21_spill] sm:$0xff] %v15884_v25  ;;  %v5548_v62 = vsel %vm526_vm2, %v18980_v59, 0.0  ;;  %v18981_v60 = vmax.f32 %v15808_v10, 0.0  ;;  %v18983_v59 = vld [vmem:[#allocation56_spill] sm:$0xff] }
 0x826   :  { %v5547_v19 = vadd.f32 %v5546_v63, %v5545_v38  ;;  %18979 = vst [vmem:[#allocation33_spill] sm:$0xff] %v15892_v24  ;;  %v18982_v63 = vmax.f32 %v15848_v16, 0.0  ;;  %v5302_v31 = vmul.f32 %v15147_v13, %v18983_v59  ;;  %v5552_v38 = vsel %vm526_vm2, %v16807_v49, 0.0 }
 0x827   :  { %v5488_v7 = vadd.f32 %v5487_v28, %v5486_v29  ;;  %v5489_v4 = vsel %vm526_vm2, %v18981_v60, 0.0  ;;  %v5614_v28 = vld [vmem:[%s16266_s10] sm:$0x1]  ;;  %v18985_v13 = vmax.f32 %v15840_v30, 0.0  ;;  %v18989_v36 = vmax.f32 %v15892_v24, 0.0 }
 0x828   :  { %v5549_v35 = vadd.f32 %v5548_v62, %v5547_v19  ;;  %v5550_v29 = vsel %vm526_vm2, %v18982_v63, 0.0  ;;  %v18984_v19 = vmax.f32 %v15824_v15, 0.0  ;;  %6191 = vmatpush.msk.msrb.mxu2 %vm5623_vm13, %v5614_v28  ;;  %v18986_v28 = vmax.f32 %v15872_v22, 0.0 }
 0x829   :  { %v5490_v40 = vadd.f32 %v5489_v4, %v5488_v7  ;;  %v15917_v4 = vadd.f32 %v15284_v61, %v15490_v9  ;;  %v5493_v59 = vsel %vm526_vm2, %v18985_v13, 0.0  ;;  %v15938_v13 = vadd.f32 %v15284_v61, %v5302_v31 }
 0x82a   :  { %v5491_v62 = vsel %vm526_vm2, %v18984_v19, 0.0  ;;  %v5551_v39 = vadd.f32 %v5550_v29, %v5549_v35  ;;  %v15928_v35 = vadd.f32 %v15284_v61, %v15497_v46  ;;  %v6288_v19 = vpop.eup %6287  ;;  %v5558_v2 = vsel %vm526_vm2, %v18989_v36, 0.0 }
 0x82b   :  { %v5492_v63 = vadd.f32 %v5491_v62, %v5490_v40  ;;  %v5554_v40 = vsel %vm526_vm2, %v18986_v28, 0.0  ;;  %v18987_v62 = vmax.f32 %v15856_v43, 0.0  ;;  %v5433_v61 = vmax.f32 %v15938_v13, 0.0 }
 0x82c   :  { %v5553_v60 = vadd.f32 %v5552_v38, %v5551_v39  ;;  %v16813_v38 = vmax.f32 %v15917_v4, 0.0  ;;  %v18988_v39 = vmax.f32 %v15884_v25, 0.0  ;;  %v16816_v29 = vmax.f32 %v15928_v35, 0.0 }
 0x82d   :  { %v5494_v9 = vadd.f32 %v5493_v59, %v5492_v63  ;;  %v5495_v49 = vsel %vm526_vm2, %v18987_v62, 0.0  ;;  %v5573_v62 = vmul.f32 256.0, %v6288_v19  ;;  %v5564_v36 = vsel %vm526_vm2, %v5433_v61, 0.0 }
 0x82e   :  { %v5555_v7 = vadd.f32 %v5554_v40, %v5553_v60  ;;  %v5556_v63 = vsel %vm526_vm2, %v18988_v39, 0.0  ;;  %vm5577_vm14 = vweird.f32 %v6288_v19  ;;  %v19049_v13 = vmax.f32 %v15917_v4, 0.0 }
 0x82f   :  { %v5496_v46 = vadd.f32 %v5495_v49, %v5494_v9  ;;  %v5560_v49 = vsel %vm526_vm2, %v16813_v38, 0.0  ;;  %v5574_v39 = vsub.f32 1.0, %v5573_v62 }
 0x830   :  { %v5557_v59 = vadd.f32 %v5556_v63, %v5555_v7  ;;  %v5562_v7 = vsel %vm526_vm2, %v16816_v29, 0.0 }
 0x831   :  { %v5497_v28 = vrot.slane %v5496_v46, 4  ;;  %v5575_v16 = vmul.f32 %v6288_v19, %v5574_v39 }
 0x832   :  { %v5559_v60 = vadd.f32 %v5558_v2, %v5557_v59 }
 0x833   :  { %v5498_v31 = vadd.f32 %v5497_v28, %v5496_v46  ;;  %v5576_v22 = vadd.f32 %v6288_v19, %v5575_v16  ;;  %v6280_v16 = vld [vmem:[%s16267_s11] ss:$0 sm:$0xff] }
 0x834   :  { %v5561_v9 = vadd.f32 %v5560_v49, %v5559_v60 }
 0x835   :  { %v5499_v40 = vrot.slane %v5498_v31, 2  ;;  %v5578_v25 = vsel %vm5577_vm14, %v6288_v19, %v5576_v22 }
 0x836   :  { %v5563_v63 = vadd.f32 %v5562_v7, %v5561_v9 }
 0x837   :  { %v5500_v2 = vadd.f32 %v5499_v40, %v5498_v31  ;;  %v6279_v31 = vld [vmem:[#allocation3] ss:$0 sm:$0xff] }
 0x838   :  { %v5565_v59 = vadd.f32 %v5564_v36, %v5563_v63 }
 0x839   :  { %v5501_v28 = vrot.slane %v5500_v2, 1 }
 0x83a   :  { %v5566_v46 = vrot.slane %v5565_v59, 4 }
 0x83b   :  { %v5502_v60 = vadd.f32 %v5501_v28, %v5500_v2 }
 0x83c   :  { %v5567_v12 = vadd.f32 %v5566_v46, %v5565_v59 }
 0x83d   :  { %v5579_v62 = vmul.f32 %v5578_v25, %v5502_v60 }
 0x83e   :  { %v5568_v38 = vrot.slane %v5567_v12, 2 }
 0x840   :  { %v5569_v49 = vadd.f32 %v5568_v38, %v5567_v12 }
 0x842   :  { %v5570_v24 = vrot.slane %v5569_v49, 1 }
 0x844   :  { %v5571_v29 = vadd.f32 %v5570_v24, %v5569_v49 }
 0x846   :  { %v5580_v9 = vmul.f32 %v5578_v25, %v5571_v29 }
 0x848   :  { %v5590_v7 = vsel %vm5589_vm15, %v5580_v9, %v5579_v62 }
 0x849   :  { %6190 = vmatmul.msk.f32.vlgmr.msrb.gmra.mxu1 %vm526_vm2, %v5590_v7 }
 0x8c6   :  { %v5610_v40 = vpop.f32.mrf.mxu1 }
 0x8c7   :  { %v5611_v39 = vadd.f32 %v6279_v31, %v5610_v40  ;;  %v18990_v40 = vmax.f32 %v15600_v14, 0.0 }
 0x8c9   :  { %v5613_v63 = vmax.f32 %v5611_v39, 0.0 }
 0x8cb   :  { %6192 = vmatmul.msk.f32.vlgmr.msrb.gmra.mxu2 %vm5619_vm1, %v5613_v63  ;;  %v18991_v63 = vmax.f32 %v15856_v43, 0.0 }
 0x94e   :  { %v5644_v12 = vpop.f32.mrf.mxu2 }
 0x94f   :  { %v5645_v22 = vadd.f32 %v6280_v16, %v5644_v12  ;;  %v18992_v12 = vmax.f32 %v15704_v57, 0.0 }
 0x951   :  { %v6193_v19 = vmul.f32 -1.442695, %v5645_v22 }
 0x953   :  { %6289 = vpow2.f32 %v6193_v19  ;;  %v18993_v19 = vmax.f32 %v15584_v44, 0.0 }
 0x959   :  { %v6290_v24 = vpop.eup %6289 }
 0x95a   :  { %v5650_v38 = vadd.f32 1.0, %v6290_v24  ;;  %v18994_v24 = vmax.f32 %v15840_v30, 0.0 }
 0x95c   :  { %6291 = vrcp.f32 %v5650_v38  ;;  %v5662_v2 = vand.u32 2147483648, %v5650_v38  ;;  %v5660_v46 = vand.u32 2147483647, %v5650_v38  ;;  %vm5656_vm4 = vweird.f32 %v5650_v38 }
 0x95e   :  { %v5663_v60 = vor.u32 1.1754944e-38, %v5662_v2  ;;  %vm5661_vm6 = vcmp.eq.f32.partialorder %v5660_v46, 8.507059e+37  ;;  %v18999_v2 = vmax.f32 %v15552_v18, 0.0  ;;  %v19001_v46 = vmax.f32 %v15656_v50, 0.0 }
 0x962   :  { %v6292_v25 = vpop.eup %6291 }
 0x963   :  { %v5652_v29 = vmul.f32 %v6292_v25, %v5650_v38  ;;  %vm5657_vm3 = vweird.f32 %v6292_v25  ;;  %v18995_v38 = vmax.f32 %v15688_v1, 0.0 }
 0x964   :  { %vm5658_vm5 = vmor %vm5656_vm4, %vm5657_vm3 }
 0x965   :  { %v5653_v36 = vsub.f32 1.0, %v5652_v29  ;;  %v18997_v29 = vmax.f32 %v15824_v15, 0.0 }
 0x967   :  { %v5654_v59 = vmul.f32 %v6292_v25, %v5653_v36  ;;  %v18998_v36 = vmax.f32 %v15672_v48, 0.0 }
 0x969   :  { %v5655_v28 = vadd.f32 %v6292_v25, %v5654_v59  ;;  %v19000_v59 = vmax.f32 %v15808_v10, 0.0 }
 0x96b   :  { %v5659_v49 = vsel %vm5658_vm5, %v6292_v25, %v5655_v28  ;;  %v18996_v25 = vmax.f32 %v15568_v32, 0.0  ;;  %v19002_v28 = vmax.f32 %v15534_v20, 0.0 }
 0x96c   :  { %v5664_v62 = vsel %vm5661_vm6, %v5663_v60, %v5659_v49  ;;  %v19003_v60 = vmax.f32 %v15792_v45, 0.0  ;;  %v19004_v49 = vmax.f32 %v15640_v54, 0.0 }
 0x96d   :  { %v5667_v9 = vrot.slane %v5664_v62, 1  ;;  %v15962_v7 = vperm.slane %v5664_v62, 0  ;;  %v19005_v62 = vmax.f32 %v15526_v53, 0.0 }
 0x96f   :  { %v15964_v31 = vperm.slane %v5667_v9, 0  ;;  %v5687_v39 = vmul.f32 %v15962_v7, %v18990_v40  ;;  %v5703_v16 = vmul.f32 %v15962_v7, %v18991_v63  ;;  %v5686_v14 = vmul.f32 %v15962_v7, %v18993_v19 }
 0x970   :  { %v5702_v43 = vmul.f32 %v15962_v7, %v18994_v24  ;;  %v5685_v44 = vmul.f32 %v15962_v7, %v18996_v25  ;;  %v5701_v30 = vmul.f32 %v15962_v7, %v18997_v29  ;;  %v5684_v32 = vmul.f32 %v15962_v7, %v18999_v2 }
 0x971   :  { %6194 = vmatpush.xpose.msk.msrb.mxu3 %vm526_vm2, %v5687_v39  ;;  %6211 = vmatpush.xpose.msk.msra.mxu2 %vm526_vm2, %v5703_v16  ;;  %v5719_v22 = vmul.f32 %v15964_v31, %v18992_v12  ;;  %v5718_v57 = vmul.f32 %v15964_v31, %v18995_v38  ;;  %v5717_v1 = vmul.f32 %v15964_v31, %v18998_v36  ;;  %v19006_v9 = vmax.f32 %v15776_v58, 0.0  ;;  %v19023_v36 = vld [vmem:[#allocation93_spill] sm:$0xff] }
 0x972   :  { %v5700_v15 = vmul.f32 %v15962_v7, %v19000_v59  ;;  %v5716_v48 = vmul.f32 %v15964_v31, %v19001_v46  ;;  %v5683_v18 = vmul.f32 %v15962_v7, %v19002_v28  ;;  %v5699_v10 = vmul.f32 %v15962_v7, %v19003_v60  ;;  %v19027_v59 = vld [vmem:[#allocation42_spill] sm:$0xff] }
 0x973   :  { %6228 = vmatpush.xpose.msk.msra.mxu1 %vm526_vm2, %v5719_v22  ;;  %v5715_v50 = vmul.f32 %v15964_v31, %v19004_v49  ;;  %v5682_v20 = vmul.f32 %v15962_v7, %v19005_v62  ;;  %v5698_v45 = vmul.f32 %v15962_v7, %v19006_v9  ;;  %v19007_v40 = vmax.f32 %v15624_v17, 0.0 }
 0x974   :  { %v19008_v39 = vmax.f32 %v15518_v23, 0.0  ;;  %v19009_v63 = vmax.f32 %v15760_v41, 0.0  ;;  %v19010_v16 = vmax.f32 %v15608_v55, 0.0  ;;  %v19011_v12 = vmax.f32 %v15514_v56, 0.0 }
 0x975   :  { %6195 = vmatpush.xpose.msk.msrb.mxu3 %vm526_vm2, %v5686_v14  ;;  %6212 = vmatpush.xpose.msk.msra.mxu2 %vm526_vm2, %v5702_v43  ;;  %v5714_v54 = vmul.f32 %v15964_v31, %v19007_v40  ;;  %v19012_v22 = vmax.f32 %v15744_v52, 0.0  ;;  %v19013_v19 = vmax.f32 %v15592_v33, 0.0  ;;  %v19014_v14 = vmax.f32 %v15501_v42, 0.0  ;;  %v19038_v40 = vld [vmem:[#allocation32_spill] sm:$0xff] }
 0x976   :  { %v5681_v53 = vmul.f32 %v15962_v7, %v19008_v39  ;;  %v5697_v58 = vmul.f32 %v15962_v7, %v19009_v63  ;;  %v5713_v17 = vmul.f32 %v15964_v31, %v19010_v16  ;;  %v5680_v23 = vmul.f32 %v15962_v7, %v19011_v12  ;;  %v19040_v39 = vld [vmem:[#allocation14_spill] sm:$0xff]  ;;  %v19044_v12 = vld [vmem:[#allocation104_spill] sm:$0xff] }
 0x977   :  { %6229 = vmatpush.xpose.msk.msra.mxu1 %vm526_vm2, %v5718_v57  ;;  %v5696_v41 = vmul.f32 %v15962_v7, %v19012_v22  ;;  %v5712_v55 = vmul.f32 %v15964_v31, %v19013_v19  ;;  %v5679_v56 = vmul.f32 %v15962_v7, %v19014_v14  ;;  %v19015_v24 = vmax.f32 %v15728_v5, 0.0  ;;  %v19046_v19 = vld [vmem:[#allocation17_spill] sm:$0xff] }
 0x978   :  { %v19016_v43 = vmax.f32 %v15576_v26, 0.0  ;;  %v19017_v38 = vmax.f32 %v15478_v0, 0.0  ;;  %v19018_v57 = vmax.f32 %v15712_v8, 0.0  ;;  %v19019_v25 = vmax.f32 %v15560_v21, 0.0 }
 0x979   :  { %6196 = vmatpush.xpose.msk.msrb.mxu3 %vm526_vm2, %v5685_v44  ;;  %6213 = vmatpush.xpose.msk.msra.mxu2 %vm526_vm2, %v5701_v30  ;;  %v5695_v52 = vmul.f32 %v15962_v7, %v19015_v24  ;;  %v19020_v44 = vmax.f32 %v15453_v3, 0.0  ;;  %v19021_v29 = vmax.f32 %v15696_v37, 0.0  ;;  %v19022_v30 = vmax.f32 %v15537_v51, 0.0  ;;  %v19050_v24 = vld [vmem:[#allocation33_spill] sm:$0xff] }
 0x97a   :  { %v5711_v33 = vmul.f32 %v15964_v31, %v19016_v43  ;;  %v5678_v42 = vmul.f32 %v15962_v7, %v19017_v38  ;;  %v5694_v5 = vmul.f32 %v15962_v7, %v19018_v57  ;;  %v5710_v26 = vmul.f32 %v15964_v31, %v19019_v25  ;;  %v19056_v25 = vld [vmem:[#allocation84_spill] sm:$0xff] }
 0x97b   :  { %6230 = vmatpush.xpose.msk.msra.mxu1 %vm526_vm2, %v5717_v1  ;;  %v5677_v0 = vmul.f32 %v15962_v7, %v19020_v44  ;;  %v5693_v8 = vmul.f32 %v15962_v7, %v19021_v29  ;;  %v5709_v21 = vmul.f32 %v15964_v31, %v19022_v30  ;;  %v19024_v1 = vmax.f32 %v19023_v36, 0.0  ;;  %v19060_v30 = vld [vmem:[#allocation72_spill] sm:$0xff] }
 0x97c   :  { %v19025_v2 = vmax.f32 %v15680_v34, 0.0  ;;  %v19030_v28 = vmax.f32 %v15508_v27, 0.0  ;;  %v19033_v49 = vmax.f32 %v15648_v47, 0.0 }
 0x97d   :  { %6197 = vmatpush.xpose.msk.msrb.mxu3 %vm526_vm2, %v5684_v32  ;;  %6214 = vmatpush.xpose.msk.msra.mxu2 %vm526_vm2, %v5700_v15  ;;  %v5676_v3 = vmul.f32 %v15962_v7, %v19024_v1  ;;  %v19026_v32 = vmax.f32 %v15529_v6, 0.0  ;;  %v19028_v15 = vmax.f32 %v19027_v59, 0.0  ;;  %v19062_v1 = vld [vmem:[#allocation180_spill] sm:$0xff] }
 0x97e   :  { %v5692_v37 = vmul.f32 %v15962_v7, %v19025_v2  ;;  %v5707_v6 = vmul.f32 %v15964_v31, %v19030_v28  ;;  %v19066_v59 = vld [vmem:[#allocation176_spill] sm:$0xff] }
 0x97f   :  { %6231 = vmatpush.xpose.msk.msra.mxu1 %vm526_vm2, %v5716_v48  ;;  %v5708_v51 = vmul.f32 %v15964_v31, %v19026_v32  ;;  %v5675_v46 = vmul.f32 %v15962_v7, %v19028_v15  ;;  %v19029_v48 = vmax.f32 %v15664_v11, 0.0  ;;  %v5690_v11 = vmul.f32 %v15962_v7, %v19033_v49 }
 0x980   :  { %v19067_v15 = vmax.f32 %v19066_v59, 0.0 }
 0x981   :  { %6198 = vmatpush.xpose.msk.msrb.mxu3 %vm526_vm2, %v5683_v18  ;;  %6215 = vmatpush.xpose.msk.msra.mxu2 %vm526_vm2, %v5699_v10  ;;  %v5691_v34 = vmul.f32 %v15962_v7, %v19029_v48  ;;  %v19031_v18 = vld [vmem:[#allocation34_spill] sm:$0xff] }
 0x982   :  { %v19032_v60 = vmax.f32 %v19031_v18, 0.0  ;;  %v19068_v48 = vld [vmem:[#allocation190_spill] sm:$0xff] }
 0x983   :  { %6232 = vmatpush.xpose.msk.msra.mxu1 %vm526_vm2, %v5715_v50  ;;  %v19034_v50 = vld [vmem:[#allocation144_spill] sm:$0xff] }
 0x984   :  { %v5674_v10 = vmul.f32 %v15962_v7, %v19032_v60  ;;  %v19035_v62 = vmax.f32 %v19034_v50, 0.0  ;;  %v19074_v50 = vld [vmem:[#allocation98_spill] sm:$0xff] }
 0x985   :  { %6199 = vmatpush.xpose.msk.msrb.mxu3 %vm526_vm2, %v5682_v20  ;;  %6216 = vmatpush.xpose.msk.msra.mxu2 %vm526_vm2, %v5698_v45  ;;  %v19036_v20 = vld [vmem:[#allocation196_spill] sm:$0xff] }
 0x986   :  { %v5706_v27 = vmul.f32 %v15964_v31, %v19035_v62  ;;  %v19037_v9 = vmax.f32 %v19036_v20, 0.0  ;;  %v19075_v62 = vmax.f32 %v19074_v50, 0.0 }
 0x987   :  { %6233 = vmatpush.xpose.msk.msra.mxu1 %vm526_vm2, %v5714_v54  ;;  %v19039_v54 = vmax.f32 %v19038_v40, 0.0 }
 0x988   :  { %v5673_v45 = vmul.f32 %v15962_v7, %v19037_v9 }
 0x989   :  { %6200 = vmatpush.xpose.msk.msrb.mxu3 %vm526_vm2, %v5681_v53  ;;  %6217 = vmatpush.xpose.msk.msra.mxu2 %vm526_vm2, %v5697_v58  ;;  %v5689_v47 = vmul.f32 %v15962_v7, %v19039_v54  ;;  %v19041_v53 = vmax.f32 %v19040_v39, 0.0  ;;  %v19042_v58 = vld [vmem:[#allocation165_spill] sm:$0xff] }
 0x98a   :  { %v19043_v16 = vmax.f32 %v19042_v58, 0.0 }
 0x98b   :  { %6234 = vmatpush.xpose.msk.msra.mxu1 %vm526_vm2, %v5713_v17  ;;  %v5705_v63 = vmul.f32 %v15964_v31, %v19041_v53 }
 0x98c   :  { %v5672_v17 = vmul.f32 %v15962_v7, %v19043_v16 }
 0x98d   :  { %6201 = vmatpush.xpose.msk.msrb.mxu3 %vm526_vm2, %v5680_v23  ;;  %6218 = vmatpush.xpose.msk.msra.mxu2 %vm526_vm2, %v5696_v41  ;;  %v19045_v23 = vmax.f32 %v19044_v12, 0.0  ;;  %v5735_v41 = vmul.f32 %v15964_v31, %v5433_v61  ;;  %v5733_v61 = vmul.f32 %v15964_v31, %v19049_v13  ;;  %v6065_v12 = vld [vmem:[%s16270_s14] sm:$0xf] }
 0x98f   :  { %6235 = vmatpush.xpose.msk.msra.mxu1 %vm526_vm2, %v5712_v55  ;;  %v5688_v22 = vmul.f32 %v15962_v7, %v19045_v23  ;;  %v19047_v55 = vmax.f32 %v19046_v19, 0.0 }
 0x991   :  { %6202 = vmatpush.xpose.msk.msrb.mxu3 %vm526_vm2, %v5679_v56  ;;  %6219 = vmatpush.xpose.msk.msra.mxu2 %vm526_vm2, %v5695_v52  ;;  %v5704_v14 = vmul.f32 %v15964_v31, %v19047_v55  ;;  %v19048_v56 = vmax.f32 %v15928_v35, 0.0  ;;  %v19051_v52 = vmax.f32 %v19050_v24, 0.0 }
 0x993   :  { %6236 = vmatpush.xpose.msk.msra.mxu1 %vm526_vm2, %v5711_v33  ;;  %v5734_v7 = vmul.f32 %v15964_v31, %v19048_v56  ;;  %v5732_v43 = vmul.f32 %v15964_v31, %v19051_v52  ;;  %v19052_v33 = vld [vmem:[#allocation21_spill] sm:$0xff] }
 0x994   :  { %v19053_v38 = vmax.f32 %v19052_v33, 0.0 }
 0x995   :  { %6203 = vmatpush.xpose.msk.msrb.mxu3 %vm526_vm2, %v5678_v42  ;;  %6220 = vmatpush.xpose.msk.msra.mxu2 %vm526_vm2, %v5694_v5  ;;  %v19054_v42 = vld [vmem:[#allocation89_spill] sm:$0xff]  ;;  %v5736_v5 = vld [vmem:[%s16268_s12] sm:$0xf] }
 0x996   :  { %v5731_v35 = vmul.f32 %v15964_v31, %v19053_v38  ;;  %v19055_v57 = vmax.f32 %v19054_v42, 0.0 }
 0x997   :  { %6237 = vmatpush.xpose.msk.msra.mxu1 %vm526_vm2, %v5710_v26  ;;  %v19057_v26 = vmax.f32 %v19056_v25, 0.0 }
 0x998   :  { %v5730_v4 = vmul.f32 %v15964_v31, %v19055_v57 }
 0x999   :  { %6204 = vmatpush.xpose.msk.msrb.mxu3 %vm526_vm2, %v5677_v0  ;;  %6221 = vmatpush.xpose.msk.msra.mxu2 %vm526_vm2, %v5693_v8  ;;  %v5729_v44 = vmul.f32 %v15964_v31, %v19057_v26  ;;  %v19058_v0 = vld [vmem:[#allocation78_spill] sm:$0xff] }
 0x99a   :  { %v19059_v29 = vmax.f32 %v19058_v0, 0.0 }
 0x99b   :  { %6238 = vmatpush.xpose.msk.msra.mxu1 %vm526_vm2, %v5709_v21  ;;  %v19061_v21 = vmax.f32 %v19060_v30, 0.0 }
 0x99c   :  { %v5728_v8 = vmul.f32 %v15964_v31, %v19059_v29 }
 0x99d   :  { %6205 = vmatpush.xpose.msk.msrb.mxu3 %vm526_vm2, %v5676_v3  ;;  %6222 = vmatpush.xpose.msk.msra.mxu2 %vm526_vm2, %v5692_v37  ;;  %v5727_v36 = vmul.f32 %v15964_v31, %v19061_v21  ;;  %v19063_v3 = vmax.f32 %v19062_v1, 0.0  ;;  %v19064_v37 = vld [vmem:[#allocation178_spill] sm:$0xff] }
 0x99e   :  { %v19065_v32 = vmax.f32 %v19064_v37, 0.0 }
 0x99f   :  { %6239 = vmatpush.xpose.msk.msra.mxu1 %vm526_vm2, %v5708_v51  ;;  %v5726_v2 = vmul.f32 %v15964_v31, %v19063_v3 }
 0x9a0   :  { %v5725_v51 = vmul.f32 %v15964_v31, %v19065_v32 }
 0x9a1   :  { %6206 = vmatpush.xpose.msk.msrb.mxu3 %vm526_vm2, %v5675_v46  ;;  %6223 = vmatpush.xpose.msk.msra.mxu2 %vm526_vm2, %v5691_v34  ;;  %v5724_v46 = vmul.f32 %v15964_v31, %v19067_v15  ;;  %v19069_v34 = vmax.f32 %v19068_v48, 0.0 }
 0x9a3   :  { %6240 = vmatpush.xpose.msk.msra.mxu1 %vm526_vm2, %v5707_v6  ;;  %v5723_v28 = vmul.f32 %v15964_v31, %v19069_v34  ;;  %v19070_v6 = vld [vmem:[#allocation30_spill] sm:$0xff] }
 0x9a4   :  { %v19071_v18 = vmax.f32 %v19070_v6, 0.0 }
 0x9a5   :  { %6207 = vmatpush.xpose.msk.msrb.mxu3 %vm526_vm2, %v5674_v10  ;;  %6224 = vmatpush.xpose.msk.msra.mxu2 %vm526_vm2, %v5690_v11  ;;  %v19072_v10 = vld [vmem:[#allocation198_spill] sm:$0xff] }
 0x9a6   :  { %v5722_v60 = vmul.f32 %v15964_v31, %v19071_v18  ;;  %v19073_v49 = vmax.f32 %v19072_v10, 0.0 }
 0x9a7   :  { %6241 = vmatpush.xpose.msk.msra.mxu1 %vm526_vm2, %v5706_v27  ;;  %v5720_v27 = vmul.f32 %v15964_v31, %v19075_v62 }
 0x9a8   :  { %v5721_v11 = vmul.f32 %v15964_v31, %v19073_v49  ;;  %v6055_v31 = vld [vmem:[%s16269_s13] sm:$0xf] }
 0x9a9   :  { %6208 = vmatpush.xpose.msk.msrb.mxu3 %vm526_vm2, %v5673_v45  ;;  %6225 = vmatpush.xpose.msk.msra.mxu2 %vm526_vm2, %v5689_v47 }
 0x9ab   :  { %6242 = vmatpush.xpose.msk.msra.mxu1 %vm526_vm2, %v5705_v63 }
 0x9ad   :  { %6209 = vmatpush.xpose.msk.msrb.mxu3 %vm526_vm2, %v5672_v17  ;;  %6226 = vmatpush.xpose.msk.msra.mxu2 %vm526_vm2, %v5688_v22  ;;  %v6517_v17 = vmov 0   ;;  %v19076_v22 = vld [vmem:[#allocation25_spill] sm:$0xff] }
 0x9ae   :  { %6273 = vset.pattern.permute.xlu1 %v6517_v17  ;;  %6274 = vset.pattern.permute.xlu0 %v6517_v17 }
 0x9af   :  { %6243 = vmatpush.xpose.msk.msra.mxu1 %vm526_vm2, %v5704_v14  ;;  %6058 = vperm.xlu1 %6273, %v6055_v31  }
 0x9b0   :  { %6210 = vmatmul.msk.f32.vlgmr.msrb.gmra.mxu3 %vm526_vm2, %v5736_v5  ;;  %6227 = vmatmul.msk.f32.vlgmr.msra.gmra.mxu2 %vm526_vm2, %v5736_v5 }
 0x9b1   :  { %6245 = vmatpush.xpose.msk.msra.mxu3 %vm526_vm2, %v5735_v41 }
 0x9b2   :  { %6244 = vmatmul.msk.f32.vlgmr.msra.gmra.mxu1 %vm526_vm2, %v5736_v5 }
 0x9b5   :  { %6246 = vmatpush.xpose.msk.msra.mxu3 %vm526_vm2, %v5734_v7 }
 0x9b7   :  { %6068 = vperm.xlu1 %6273, %v6065_v12  }
 0x9b9   :  { %6247 = vmatpush.xpose.msk.msra.mxu3 %vm526_vm2, %v5733_v61 }
 0x9bd   :  { %6248 = vmatpush.xpose.msk.msra.mxu3 %vm526_vm2, %v5732_v43 }
 0x9c1   :  { %6249 = vmatpush.xpose.msk.msra.mxu3 %vm526_vm2, %v5731_v35 }
 0x9c5   :  { %6250 = vmatpush.xpose.msk.msra.mxu3 %vm526_vm2, %v5730_v4  ;;  %v6075_v4 = vld [vmem:[%s16257_s1] sm:$0xff] }
 0x9c6   :  { %6077 = vst [vmem:[#allocation1] ss:$2 sm:$0xff] %v6075_v4 }
 0x9c9   :  { %6251 = vmatpush.xpose.msk.msra.mxu3 %vm526_vm2, %v5729_v44 }
 0x9cd   :  { %6252 = vmatpush.xpose.msk.msra.mxu3 %vm526_vm2, %v5728_v8  ;;  %v6078_v25 = vld.sshfl [vmem:[#allocation1] sm:$0xff pattern:$0x75316420]  ;;  %v6079_v26 = vld.sshfl [vmem:[#allocation1 + $0x8] sm:$0xff pattern:$0x75316420] }
 0x9d1   :  { %6253 = vmatpush.xpose.msk.msra.mxu3 %vm526_vm2, %v5727_v36 }
 0x9d5   :  { %6254 = vmatpush.xpose.msk.msra.mxu3 %vm526_vm2, %v5726_v2 }
 0x9d9   :  { %6255 = vmatpush.xpose.msk.msra.mxu3 %vm526_vm2, %v5725_v51 }
 0x9dd   :  { %6256 = vmatpush.xpose.msk.msra.mxu3 %vm526_vm2, %v5724_v46 }
 0x9e1   :  { %6257 = vmatpush.xpose.msk.msra.mxu3 %vm526_vm2, %v5723_v28 }
 0x9e5   :  { %6258 = vmatpush.xpose.msk.msra.mxu3 %vm526_vm2, %v5722_v60 }
 0x9e9   :  { %6259 = vmatpush.xpose.msk.msra.mxu3 %vm526_vm2, %v5721_v11 }
 0x9ed   :  { %6260 = vmatpush.xpose.msk.msra.mxu3 %vm526_vm2, %v5720_v27 }
 0x9f0   :  { %6261 = vmatmul.msk.f32.vlgmr.msra.gmra.mxu3 %vm526_vm2, %v5736_v5  ;;  %v6262_v5 = vld [vmem:[%s16257_s1 + $0x8] sm:$0xff]  ;;  %s6518_s1 = smov [#allocation4]  }
 0x9f1   :  { %6093 = vst [vmem:[#allocation1] ss:$2 sm:$0xff] %v6262_v5  ;;  %s6111_s18 = sshll.u32 %s6518_s1, 4  ;;  %s6112_s18 = int_to_ptr.vmem [resolvable:$true] %s6111_s18 }
 0x9f8   :  { %v6095_v6 = vld.sshfl [vmem:[#allocation1 + $0x8] sm:$0xff pattern:$0x75316420]  ;;  %v6094_v50 = vld.sshfl [vmem:[#allocation1] sm:$0xff pattern:$0x75316420] }
 0xa21   :  { %v6059_v1 = vpop.permute.xlu1 %6058 }
 0xa29   :  { %v6069_v18 = vpop.permute.xlu1 %6068 }
 0xa2f   :  { %v5989_v54 = vpop.f32.mrf.mxu1 }
 0xa30   :  { %v6015_v39 = vsel %vm311_vm0, %v5989_v54, 0.0 }
 0xa33   :  { %v5949_v20 = vpop.f32.mrf.mxu3  ;;  %v5969_v9 = vpop.f32.mrf.mxu2 }
 0xa34   :  { %v6012_v45 = vsel %vm311_vm0, %v5949_v20, 0.0  ;;  %v6013_v40 = vsel %vm311_vm0, %v5969_v9, 0.0 }
 0xa35   :  { %v6014_v47 = vadd.f32 %v6013_v40, %v6012_v45 }
 0xa37   :  { %v6016_v53 = vadd.f32 %v6015_v39, %v6014_v47 }
 0xa73   :  { %v6009_v63 = vpop.f32.mrf.mxu3 }
 0xa74   :  { %v6017_v58 = vsel %vm311_vm0, %v6009_v63, 0.0 }
 0xa75   :  { %v6018_v16 = vadd.f32 %v6017_v58, %v6016_v53 }
 0xa77   :  { %6019 = vadd.xlane.f32.xlu0 %v6018_v16 }
 0xaea   :  { %v6020_v23 = vpop.xlane.xlu0 %6019 }
 0xaeb   :  { %v6021_v41 = vmul.f32 %v6020_v23, %v19076_v22 }
 0xaed   :  { %v6022_v19 = vsub.f32 %v5949_v20, %v6021_v41  ;;  %v6023_v55 = vsub.f32 %v5969_v9, %v6021_v41  ;;  %v6024_v14 = vsub.f32 %v5989_v54, %v6021_v41  ;;  %v6025_v56 = vsub.f32 %v6009_v63, %v6021_v41 }
 0xaef   :  { %v6026_v7 = vmul.f32 %v6022_v19, %v6022_v19  ;;  %v6027_v13 = vmul.f32 %v6023_v55, %v6023_v55  ;;  %v6028_v61 = vmul.f32 %v6024_v14, %v6024_v14  ;;  %v6029_v24 = vmul.f32 %v6025_v56, %v6025_v56 }
 0xaf1   :  { %v6030_v52 = vsel %vm311_vm0, %v6026_v7, 0.0  ;;  %v6031_v43 = vsel %vm311_vm0, %v6027_v13, 0.0  ;;  %v6033_v38 = vsel %vm311_vm0, %v6028_v61, 0.0  ;;  %v6035_v42 = vsel %vm311_vm0, %v6029_v24, 0.0 }
 0xaf2   :  { %v6032_v33 = vadd.f32 %v6031_v43, %v6030_v52 }
 0xaf4   :  { %v6034_v35 = vadd.f32 %v6033_v38, %v6032_v33 }
 0xaf6   :  { %v6036_v57 = vadd.f32 %v6035_v42, %v6034_v35 }
 0xaf8   :  { %6037 = vadd.xlane.f32.xlu0 %v6036_v57 }
 0xb6b   :  { %v6038_v44 = vpop.xlane.xlu0 %6037 }
 0xb6c   :  { %v6039_v0 = vmul.f32 %v6038_v44, %v19076_v22 }
 0xb6e   :  { %v6040_v29 = vadd.f32 1e-05, %v6039_v0 }
 0xb70   :  { %6293 = vrsqrt.f32 %v6040_v29  ;;  %vm6047_vm7 = vweird.f32 %v6040_v29 }
 0xb76   :  { %v6294_v8 = vpop.eup %6293 }
 0xb77   :  { %v6042_v30 = vmul.f32 %v6294_v8, %v6040_v29  ;;  %vm6048_vm2 = vweird.f32 %v6294_v8 }
 0xb78   :  { %vm6049_vm8 = vmor %vm6047_vm7, %vm6048_vm2 }
 0xb79   :  { %v6043_v21 = vmul.f32 %v6294_v8, %v6042_v30 }
 0xb7b   :  { %v6044_v36 = vmul.f32 0.5, %v6043_v21 }
 0xb7d   :  { %v6045_v3 = vsub.f32 1.5, %v6044_v36 }
 0xb7f   :  { %v6046_v2 = vmul.f32 %v6294_v8, %v6045_v3 }
 0xb81   :  { %v6050_v37 = vsel %vm6049_vm8, %v6294_v8, %v6046_v2 }
 0xb82   :  { %v6051_v32 = vmul.f32 %v6050_v37, %v6022_v19  ;;  %v6052_v51 = vmul.f32 %v6050_v37, %v6023_v55  ;;  %v6053_v59 = vmul.f32 %v6050_v37, %v6024_v14  ;;  %v6054_v15 = vmul.f32 %v6050_v37, %v6025_v56 }
 0xb84   :  { %v6061_v46 = vmul.f32 %v6059_v1, %v6051_v32  ;;  %v6062_v48 = vmul.f32 %v6059_v1, %v6052_v51  ;;  %v6063_v34 = vmul.f32 %v6059_v1, %v6053_v59  ;;  %v6064_v28 = vmul.f32 %v6059_v1, %v6054_v15 }
 0xb86   :  { %v6071_v60 = vadd.f32 %v6069_v18, %v6061_v46  ;;  %v6072_v10 = vadd.f32 %v6069_v18, %v6062_v48  ;;  %v6073_v49 = vadd.f32 %v6069_v18, %v6063_v34  ;;  %v6074_v11 = vadd.f32 %v6069_v18, %v6064_v28 }
 0xb88   :  { %v6083_v62 = vadd.f32 %v6079_v26, %v6072_v10  ;;  %v6099_v27 = vadd.f32 %v6095_v6, %v6074_v11  ;;  %v6082_v20 = vadd.f32 %v6078_v25, %v6071_v60  ;;  %v6098_v45 = vadd.f32 %v6094_v50, %v6073_v49 }
 0xb8a   :  { %v6086_v9 = vrot.slane %v6083_v62, 4  ;;  %v6102_v40 = vrot.slane %v6099_v27, 4 }
 0xb8c   :  { %v6087_v54 = vsel %vm311_vm0, %v6082_v20, %v6086_v9  ;;  %v6103_v47 = vsel %vm311_vm0, %v6098_v45, %v6102_v40 }
 0xb8d   :  { %6089 = vst [vmem:[#allocation4] sm:$0xff] %v6087_v54 }
 0xb8e   :  { %6106 = vst [vmem:[#allocation4 + $0x8] sm:$0xff] %v6103_v47 }
 0xb8f   :  { %6119 = dma.vmem_to_hbm [thread:$0]  %s6112_s18, 256, %s6114_s21, [#allocation5], %s6519_s22, %s6519_s22, %s6520_s23  }
 0xb90   :  { %6512 = dma.done.wait [#allocation5], 256  }
 0xb91   :  { %6513 = vsyncadd [#allocation5], 4294967040 }
 0xb92   :  { %6124 = vsyncpa [#allocation5], 1 }

</bundles_post_ra>
